<compile_context>
chip_gen: v6e
topology: v6e:2x2x1
jax: 0.10.0
libtpu: 0.0.40
codegen_flags: <defaults>
</compile_context>

<pallas_src>
import jax
import jax.numpy as jnp
from jax.experimental import pallas as pl
from jax.experimental.pallas import tpu as pltpu

# ----------------------------- configuration -----------------------------
B = 2                 # batch
T = 8                 # tokens per image
C_IN = 4096           # hard-coded in Trident (Conv1d in_channels=4096)
IMG_EMB_DIM = 1024    # cfg.MODEL.img_emb_dim (== feat_dim)
EMB_DIM = 1024        # cfg.MODEL.emb_dim (==1024 -> global_pre branch skipped)
WORD_DIM = 32
NUM_ATTRS = 4
NUM_OBJS = 3
NUM_WORDS = NUM_ATTRS + NUM_OBJS
N_PAIRS = 6
GLOBAL_FEATURE_NUM = 4
LOCAL_FEATURE_NUM = 3
BN_EPS = 1e-5
TN = 512              # faa output-channel tile (4 MiB bf16 weight tile)


# ------------------------------ Pallas kernel ------------------------------

def _trident_kernel(x_ref, w_ref, scale_ref, bias_ref, sel_ref, g_ref,
                    gmask_ref, wl_ref, bl_ref, iew_ref, ieb_ref,
                    cin_ref, cw_ref, cb_ref, o_ref, feat_ref):
    """One grid step computes one output-channel tile of the faa conv
    (bf16 x bf16 MXU matmul, f32 accumulation, folded eval-BN + ReLU epilogue)
    into a persistent VMEM scratch; the last step additionally runs the whole
    fused tail (local attn, global masks, merged image embedder, compose
    linear, cosine classifier, scale=False)."""
    j = pl.program_id(0)

    # ---- faa channel tile: x(bf16) @ W_tile(bf16) -> f32, BN + ReLU.
    fj = jnp.dot(x_ref[...], w_ref[...], preferred_element_type=jnp.float32)
    feat_ref[j] = jnp.maximum(fj * scale_ref[...] + bias_ref[...], 0.0)

    # ---- fused tail on the final tile (all data already resident in VMEM).
    @pl.when(j == pl.num_programs(0) - 1)
    def _():
        nblk = feat_ref.shape[0]                                   # static
        f = jnp.concatenate([feat_ref[i] for i in range(nblk)],
                            axis=-1)                               # (B*T, D) f32

        # local features: att = sigmoid(1x1 conv heads); the mean over heads
        # and over tokens is folded into one tiny selection matmul.
        logits = jax.lax.dot_general(
            f, wl_ref[...], (((1,), (1,)), ((), ())),
            preferred_element_type=jnp.float32) + bl_ref[...]      # (B*T, L)
        att = jax.nn.sigmoid(logits)
        w_t = jnp.sum(att, axis=1, keepdims=True)                  # (B*T, 1)
        local_mean = jnp.dot(sel_ref[...], w_t * f,
                             preferred_element_type=jnp.float32)   # (B, D)

        # global features: per-head ReLU'd mask, mean over heads folds to a
        # single broadcast multiply.
        gmean = jnp.mean(jnp.maximum(gmask_ref[...], 0.0),
                         axis=0, keepdims=True)                    # (1, D)
        glob_mean = g_ref[...] * gmean                             # (B, D)

        # image embedder: single merged K=2D bf16 matmul (no f32 weight cast).
        img_cat = jnp.concatenate([local_mean, glob_mean],
                                  axis=-1).astype(jnp.bfloat16)    # (B, 2D)
        img_emb = jnp.dot(img_cat, iew_ref[...],
                          preferred_element_type=jnp.float32) + ieb_ref[...]

        # compose_word_embeddings(mode='val'): Linear on [obj ; attr]
        concept = jnp.dot(cin_ref[...], cw_ref[...],
                          preferred_element_type=jnp.float32) + cb_ref[...]

        # CosineClassifier, scale=False. F.normalize (eps=1e-12) semantics:
        # x / max(||x||, eps) == x * rsqrt(max(||x||^2, eps^2)); rsqrt -> EUP.
        eps2 = 1e-24
        img_n = img_emb * jax.lax.rsqrt(
            jnp.maximum(jnp.sum(img_emb * img_emb, axis=-1, keepdims=True),
                        eps2))
        con_n = concept * jax.lax.rsqrt(
            jnp.maximum(jnp.sum(concept * concept, axis=-1, keepdims=True),
                        eps2))
        o_ref[...] = jax.lax.dot_general(
            img_n, con_n, (((1,), (1,)), ((), ())),
            preferred_element_type=jnp.float32)                    # (B, P)


def pallas_trident_val(x_bf16, faa_w, scale, bias, sel, img_global, gmask,
                       wl, bl, iew, ieb, cin, cw, cb, *, tn=TN):
    n, kdim = x_bf16.shape
    d = faa_w.shape[1]
    b = sel.shape[0]
    p_ = cin.shape[0]
    nblk = d // tn

    def full(a):
        shp = a.shape
        return pl.BlockSpec(shp, lambda j, _n=len(shp): (0,) * _n)

    return pl.pallas_call(
        _trident_kernel,
        out_shape=jax.ShapeDtypeStruct((b, p_), jnp.float32),
        grid=(nblk,),
        in_specs=[
            full(x_bf16),                                  # x, fetched once
            pl.BlockSpec((kdim, tn), lambda j: (0, j)),    # faa weight tile
            pl.BlockSpec((1, tn), lambda j: (0, j)),       # BN scale tile
            pl.BlockSpec((1, tn), lambda j: (0, j)),       # BN bias tile
            full(sel), full(img_global), full(gmask),
            full(wl), full(bl), full(iew), full(ieb),
            full(cin), full(cw), full(cb),
        ],
        out_specs=pl.BlockSpec((b, p_), lambda j: (0, 0)),
        scratch_shapes=[pltpu.VMEM((nblk, n, tn), jnp.float32)],
        compiler_params=pltpu.CompilerParams(
            dimension_semantics=("arbitrary",),
            vmem_limit_bytes=32 * 1024 * 1024),
    )(x_bf16, faa_w, scale, bias, sel, img_global, gmask,
      wl, bl, iew, ieb, cin, cw, cb)


# ------------------------------ parameters ------------------------------

def init_params(key):
    ks = jax.random.split(key, 12)
    p = {}
    # word embedder + compose (Dropout is identity in eval)
    p["word_embed"] = jax.random.normal(ks[0], (NUM_WORDS, WORD_DIM)) * 0.1
    p["compose_w"] = jax.random.normal(ks[1], (2 * WORD_DIM, EMB_DIM)) * 0.05
    p["compose_b"] = jax.random.normal(ks[2], (EMB_DIM,)) * 0.01
    # faa: Conv1d(4096 -> IMG_EMB_DIM, k=1) + BatchNorm1d (eval) + ReLU.
    # Weight stored bf16 (halves HBM weight streaming); matmul runs bf16xbf16
    # on the MXU with f32 accumulation.
    p["faa_w"] = (jax.random.normal(ks[3], (C_IN, IMG_EMB_DIM)) * 0.02
                  ).astype(jnp.bfloat16)
    p["faa_b"] = jax.random.normal(ks[4], (IMG_EMB_DIM,)) * 0.01
    p["bn_gamma"] = 0.5 + jax.random.uniform(ks[5], (IMG_EMB_DIM,))
    p["bn_beta"] = jax.random.normal(ks[6], (IMG_EMB_DIM,)) * 0.01
    p["bn_mean"] = jax.random.normal(ks[7], (IMG_EMB_DIM,)) * 0.01
    p["bn_var"] = 0.5 + jax.random.uniform(ks[8], (IMG_EMB_DIM,))
    # local aggregation heads: Conv1d(IMG_EMB_DIM -> 1, k=1) per head
    p["local_w"] = jax.random.normal(ks[9], (LOCAL_FEATURE_NUM, IMG_EMB_DIM)) * 0.05
    p["local_b"] = jnp.zeros((LOCAL_FEATURE_NUM,), jnp.float32)
    # global conditional masks (nn.Embedding)
    p["global_masks"] = jax.random.normal(ks[10], (GLOBAL_FEATURE_NUM, EMB_DIM)) * 0.5
    # image embedder Linear(2*feat_dim -> emb_dim): single merged bf16 weight
    # (rows 0:D multiply the local half, rows D:2D the global half) —
    # mathematically identical to the Linear on the concatenated input.
    p["ie_w"] = (jax.random.normal(ks[11], (2 * IMG_EMB_DIM, EMB_DIM)) * 0.02
                 ).astype(jnp.bfloat16)
    p["ie_b"] = jnp.zeros((EMB_DIM,), jnp.float32)
    # val pairs (attr idx into [0, NUM_ATTRS), obj idx into [0, NUM_OBJS))
    p["val_attrs"] = jnp.array([0, 1, 2, 3, 0, 1], jnp.int32)
    p["val_objs"] = jnp.array([0, 0, 1, 1, 2, 2], jnp.int32)
    return p


# ------------------------------ forward (val) ------------------------------

def trident_val_forward(img_local, img_global, p):
    b, t, cin = img_local.shape

    # faa: fold eval-BN into per-channel scale/bias (fused with conv + ReLU
    # inside the kernel).  Activations pre-cast to bf16 for the MXU.
    bn_scale = p["bn_gamma"] * jax.lax.rsqrt(p["bn_var"] + BN_EPS)
    scale = bn_scale.reshape(1, -1)
    bias = ((p["faa_b"] - p["bn_mean"]) * bn_scale + p["bn_beta"]).reshape(1, -1)
    x = img_local.reshape(b * t, cin).astype(jnp.bfloat16)

    # compose_word_embeddings(mode='val'): embedding lookups (host glue)
    attr_table = p["word_embed"][:NUM_ATTRS]
    obj_table = p["word_embed"][NUM_ATTRS:NUM_ATTRS + NUM_OBJS]
    attr_emb = jnp.take(attr_table, p["val_attrs"], axis=0)
    obj_emb = jnp.take(obj_table, p["val_objs"], axis=0)
    concept_in = jnp.concatenate([obj_emb, attr_emb], axis=-1)     # (P, 2*WD)

    # selection matrix folding "mean over local heads" and "mean over tokens"
    # into a single tiny matmul inside the fused kernel (constant under jit)
    sel = (jnp.kron(jnp.eye(b, dtype=jnp.float32),
                    jnp.ones((1, t), jnp.float32))
           / float(LOCAL_FEATURE_NUM * t))                         # (B, B*T)

    # ONE fused kernel: faa + local attn + global masks + image embedder
    # + compose linear + cosine classifier (scale=False)
    pred = pallas_trident_val(
        x, p["faa_w"], scale, bias, sel, img_global, p["global_masks"],
        p["local_w"], p["local_b"].reshape(1, -1),
        p["ie_w"], p["ie_b"].reshape(1, -1),
        concept_in, p["compose_w"], p["compose_b"].reshape(1, -1))  # (B, P)
    return pred


# ------------------------------ pure-JAX reference ------------------------------

def trident_val_reference(img_local, img_global, p):
    bn_scale = p["bn_gamma"] / jnp.sqrt(p["bn_var"] + BN_EPS)
    bias = (p["faa_b"] - p["bn_mean"]) * bn_scale + p["bn_beta"]
    feat = jax.nn.relu(
        jnp.einsum("btc,cd->btd", img_local.astype(jnp.bfloat16), p["faa_w"],
                   preferred_element_type=jnp.float32) * bn_scale + bias)
    att = jax.nn.sigmoid(jnp.einsum("btd,ld->btl", feat, p["local_w"])
                         + p["local_b"])
    local = jnp.einsum("btl,btd->bld", att, feat) / feat.shape[1]
    glob = img_global[:, None, :] * jax.nn.relu(p["global_masks"])[None]
    img_cat = jnp.concatenate([local.mean(1), glob.mean(1)], axis=-1)
    img_emb = jnp.dot(img_cat.astype(jnp.bfloat16), p["ie_w"],
                      preferred_element_type=jnp.float32) + p["ie_b"]
    attr_emb = p["word_embed"][:NUM_ATTRS][p["val_attrs"]]
    obj_emb = p["word_embed"][NUM_ATTRS:NUM_ATTRS + NUM_OBJS][p["val_objs"]]
    concept = (jnp.concatenate([obj_emb, attr_emb], -1) @ p["compose_w"]
               + p["compose_b"])
    imn = img_emb / jnp.maximum(
        jnp.linalg.norm(img_emb, axis=-1, keepdims=True), 1e-12)
    con = concept / jnp.maximum(
        jnp.linalg.norm(concept, axis=-1, keepdims=True), 1e-12)
    return imn @ con.T


# ------------------------------ main ------------------------------

if __name__ == "__main__":
    key = jax.random.PRNGKey(0)
    k_par, k_loc, k_glb = jax.random.split(key, 3)
    params = init_params(k_par)

    # synthetic backbone outputs (see TODO(synk) at top)
    img_local = jax.random.normal(k_loc, (B, T, C_IN), jnp.float32)
    img_global = jax.random.normal(k_glb, (B, EMB_DIM), jnp.float32)

    pred = jax.jit(trident_val_forward)(img_local, img_global, params)
    pred = jax.block_until_ready(pred)

    ref = trident_val_reference(img_local, img_global, params)
    assert pred.shape == (B, N_PAIRS)
    assert jnp.allclose(pred, ref, atol=1e-2, rtol=1e-2), "mismatch vs reference"

    print("KERNEL_OK")
</pallas_src>

<mosaic_0001>
module attributes {stable_mosaic.version = 11 : i64} {
  func.func @_trident_kernel(%arg0: i32, %arg1: memref<16x4096xbf16, #tpu.memory_space<vmem>>, %arg2: memref<4096x512xbf16, #tpu.memory_space<vmem>>, %arg3: memref<1x512xf32, #tpu.memory_space<vmem>>, %arg4: memref<1x512xf32, #tpu.memory_space<vmem>>, %arg5: memref<2x16xf32, #tpu.memory_space<vmem>>, %arg6: memref<2x1024xf32, #tpu.memory_space<vmem>>, %arg7: memref<4x1024xf32, #tpu.memory_space<vmem>>, %arg8: memref<3x1024xf32, #tpu.memory_space<vmem>>, %arg9: memref<1x3xf32, #tpu.memory_space<vmem>>, %arg10: memref<2048x1024xbf16, #tpu.memory_space<vmem>>, %arg11: memref<1x1024xf32, #tpu.memory_space<vmem>>, %arg12: memref<6x64xf32, #tpu.memory_space<vmem>>, %arg13: memref<64x1024xf32, #tpu.memory_space<vmem>>, %arg14: memref<1x1024xf32, #tpu.memory_space<vmem>>, %arg15: memref<2x6xf32, #tpu.memory_space<vmem>>, %arg16: memref<2x16x512xf32, #tpu.memory_space<vmem>>) attributes {dimension_semantics = [#tpu.dimension_semantics<arbitrary>], iteration_bounds = array<i64: 2>, scalar_prefetch = 0 : i64, scratch_operands = 1 : i64, tpu.core_type = #tpu.core_type<tc>, window_params = [{pipeline_mode = #tpu.pipeline_mode<synchronous>, transform_indices = @transform_0, window_bounds = array<i64: 16, 4096>}, {transform_indices = @transform_1, window_bounds = array<i64: 4096, 512>}, {transform_indices = @transform_2, window_bounds = array<i64: 1, 512>}, {transform_indices = @transform_3, window_bounds = array<i64: 1, 512>}, {pipeline_mode = #tpu.pipeline_mode<synchronous>, transform_indices = @transform_4, window_bounds = array<i64: 2, 16>}, {pipeline_mode = #tpu.pipeline_mode<synchronous>, transform_indices = @transform_5, window_bounds = array<i64: 2, 1024>}, {pipeline_mode = #tpu.pipeline_mode<synchronous>, transform_indices = @transform_6, window_bounds = array<i64: 4, 1024>}, {pipeline_mode = #tpu.pipeline_mode<synchronous>, transform_indices = @transform_7, window_bounds = array<i64: 3, 1024>}, {pipeline_mode = #tpu.pipeline_mode<synchronous>, transform_indices = @transform_8, window_bounds = array<i64: 1, 3>}, {pipeline_mode = #tpu.pipeline_mode<synchronous>, transform_indices = @transform_9, window_bounds = array<i64: 2048, 1024>}, {pipeline_mode = #tpu.pipeline_mode<synchronous>, transform_indices = @transform_10, window_bounds = array<i64: 1, 1024>}, {pipeline_mode = #tpu.pipeline_mode<synchronous>, transform_indices = @transform_11, window_bounds = array<i64: 6, 64>}, {pipeline_mode = #tpu.pipeline_mode<synchronous>, transform_indices = @transform_12, window_bounds = array<i64: 64, 1024>}, {pipeline_mode = #tpu.pipeline_mode<synchronous>, transform_indices = @transform_13, window_bounds = array<i64: 1, 1024>}, {pipeline_mode = #tpu.pipeline_mode<synchronous>, transform_indices = @transform_14, window_bounds = array<i64: 2, 6>}]} {
    %c0 = arith.constant 0 : index
    %c0_0 = arith.constant 0 : index
    %0 = vector.load %arg1[%c0, %c0_0] : memref<16x4096xbf16, #tpu.memory_space<vmem>>, vector<16x4096xbf16>
    %c0_1 = arith.constant 0 : index
    %c0_2 = arith.constant 0 : index
    %1 = vector.load %arg2[%c0_1, %c0_2] : memref<4096x512xbf16, #tpu.memory_space<vmem>>, vector<4096x512xbf16>
    %cst = arith.constant dense<0.000000e+00> : vector<16x512xf32>
    %2 = tpu.matmul %0, %1, %cst {dimension_numbers = #tpu.dot_dimension_numbers<[1], [0], [0], [1], [0, 0, 1, 1], [], []>} : vector<16x4096xbf16>, vector<4096x512xbf16>, vector<16x512xf32> -> vector<16x512xf32>
    %c0_3 = arith.constant 0 : index
    %c0_4 = arith.constant 0 : index
    %3 = vector.load %arg3[%c0_3, %c0_4] : memref<1x512xf32, #tpu.memory_space<vmem>>, vector<1x512xf32>
    %4 = vector.broadcast %3 : vector<1x512xf32> to vector<16x512xf32>
    %5 = arith.mulf %2, %4 : vector<16x512xf32>
    %c0_5 = arith.constant 0 : index
    %c0_6 = arith.constant 0 : index
    %6 = vector.load %arg4[%c0_5, %c0_6] : memref<1x512xf32, #tpu.memory_space<vmem>>, vector<1x512xf32>
    %7 = vector.broadcast %6 : vector<1x512xf32> to vector<16x512xf32>
    %8 = arith.addf %5, %7 : vector<16x512xf32>
    %cst_7 = arith.constant 0.000000e+00 : f32
    %9 = vector.broadcast %cst_7 : f32 to vector<16x512xf32>
    %10 = arith.maximumf %8, %9 : vector<16x512xf32>
    %11 = arith.index_cast %arg0 : i32 to index
    %c0_8 = arith.constant 0 : index
    %c0_9 = arith.constant 0 : index
    %12 = vector.load %arg16[%11, %c0_8, %c0_9] : memref<2x16x512xf32, #tpu.memory_space<vmem>>, vector<1x16x512xf32>
    %13 = vector.shape_cast %12 : vector<1x16x512xf32> to vector<16x512xf32>
    %14 = vector.shape_cast %10 : vector<16x512xf32> to vector<1x16x512xf32>
    tpu.vector_store %arg16[%11, %c0_8, %c0_9], %14 {strides = array<i32>} : memref<2x16x512xf32, #tpu.memory_space<vmem>>, vector<1x16x512xf32>,
    %c1_i32 = arith.constant 1 : i32
    %15 = arith.cmpi eq, %arg0, %c1_i32 : i32
    %16 = arith.extui %15 : i1 to i32
    %c0_i32 = arith.constant 0 : i32
    %17 = arith.cmpi ne, %16, %c0_i32 : i32
    scf.if %17 {
      %c0_10 = arith.constant 0 : index
      %c0_11 = arith.constant 0 : index
      %c0_12 = arith.constant 0 : index
      %18 = vector.load %arg16[%c0_10, %c0_11, %c0_12] : memref<2x16x512xf32, #tpu.memory_space<vmem>>, vector<1x16x512xf32>
      %19 = vector.shape_cast %18 : vector<1x16x512xf32> to vector<16x512xf32>
      %c1 = arith.constant 1 : index
      %c0_13 = arith.constant 0 : index
      %c0_14 = arith.constant 0 : index
      %20 = vector.load %arg16[%c1, %c0_13, %c0_14] : memref<2x16x512xf32, #tpu.memory_space<vmem>>, vector<1x16x512xf32>
      %21 = vector.shape_cast %20 : vector<1x16x512xf32> to vector<16x512xf32>
      %22 = tpu.concatenate %19, %21 in 1 : vector<16x512xf32>, vector<16x512xf32> -> vector<16x1024xf32>
      %c0_15 = arith.constant 0 : index
      %c0_16 = arith.constant 0 : index
      %23 = vector.load %arg8[%c0_15, %c0_16] : memref<3x1024xf32, #tpu.memory_space<vmem>>, vector<3x1024xf32>
      %cst_17 = arith.constant dense<0.000000e+00> : vector<16x3xf32>
      %24 = tpu.matmul %22, %23, %cst_17 {dimension_numbers = #tpu.dot_dimension_numbers<[1], [1], [0], [0], [0, 0, 1, 0], [], []>} : vector<16x1024xf32>, vector<3x1024xf32>, vector<16x3xf32> -> vector<16x3xf32>
      %c0_18 = arith.constant 0 : index
      %c0_19 = arith.constant 0 : index
      %25 = vector.load %arg9[%c0_18, %c0_19] : memref<1x3xf32, #tpu.memory_space<vmem>>, vector<1x3xf32>
      %26 = vector.broadcast %25 : vector<1x3xf32> to vector<16x3xf32>
      %27 = arith.addf %24, %26 : vector<16x3xf32>
      %28 = arith.negf %27 : vector<16x3xf32>
      %29 = math.exp %28 : vector<16x3xf32>
      %cst_20 = arith.constant 1.000000e+00 : f32
      %30 = vector.broadcast %cst_20 : f32 to vector<16x3xf32>
      %31 = arith.addf %30, %29 : vector<16x3xf32>
      %32 = arith.divf %30, %31 : vector<16x3xf32>
      %cst_21 = arith.constant dense<0.000000e+00> : vector<16xf32>
      %33 = vector.multi_reduction <add>, %32, %cst_21 [1] : vector<16x3xf32> to vector<16xf32>
      %34 = vector.shape_cast %33 : vector<16xf32> to vector<16x1xf32>
      %c0_22 = arith.constant 0 : index
      %c0_23 = arith.constant 0 : index
      %35 = vector.load %arg5[%c0_22, %c0_23] : memref<2x16xf32, #tpu.memory_space<vmem>>, vector<2x16xf32>
      %36 = vector.broadcast %34 : vector<16x1xf32> to vector<16x1024xf32>
      %37 = arith.mulf %36, %22 : vector<16x1024xf32>
      %cst_24 = arith.constant dense<0.000000e+00> : vector<2x1024xf32>
      %38 = tpu.matmul %35, %37, %cst_24 {dimension_numbers = #tpu.dot_dimension_numbers<[1], [0], [0], [1], [0, 0, 1, 1], [], []>} : vector<2x16xf32>, vector<16x1024xf32>, vector<2x1024xf32> -> vector<2x1024xf32>
      %c0_25 = arith.constant 0 : index
      %c0_26 = arith.constant 0 : index
      %39 = vector.load %arg7[%c0_25, %c0_26] : memref<4x1024xf32, #tpu.memory_space<vmem>>, vector<4x1024xf32>
      %cst_27 = arith.constant 0.000000e+00 : f32
      %40 = vector.broadcast %cst_27 : f32 to vector<4x1024xf32>
      %41 = arith.maximumf %39, %40 : vector<4x1024xf32>
      %cst_28 = arith.constant dense<0.000000e+00> : vector<1024xf32>
      %42 = vector.multi_reduction <add>, %41, %cst_28 [0] : vector<4x1024xf32> to vector<1024xf32>
      %43 = vector.shape_cast %42 : vector<1024xf32> to vector<1x1024xf32>
      %cst_29 = arith.constant 4.000000e+00 : f32
      %44 = vector.broadcast %cst_29 : f32 to vector<1x1024xf32>
      %45 = arith.divf %43, %44 : vector<1x1024xf32>
      %c0_30 = arith.constant 0 : index
      %c0_31 = arith.constant 0 : index
      %46 = vector.load %arg6[%c0_30, %c0_31] : memref<2x1024xf32, #tpu.memory_space<vmem>>, vector<2x1024xf32>
      %47 = vector.broadcast %45 : vector<1x1024xf32> to vector<2x1024xf32>
      %48 = arith.mulf %46, %47 : vector<2x1024xf32>
      %49 = tpu.concatenate %38, %48 in 1 : vector<2x1024xf32>, vector<2x1024xf32> -> vector<2x2048xf32>
      %50 = arith.truncf %49 : vector<2x2048xf32> to vector<2x2048xbf16>
      %c0_32 = arith.constant 0 : index
      %c0_33 = arith.constant 0 : index
      %51 = vector.load %arg10[%c0_32, %c0_33] : memref<2048x1024xbf16, #tpu.memory_space<vmem>>, vector<2048x1024xbf16>
      %cst_34 = arith.constant dense<0.000000e+00> : vector<2x1024xf32>
      %52 = tpu.matmul %50, %51, %cst_34 {dimension_numbers = #tpu.dot_dimension_numbers<[1], [0], [0], [1], [0, 0, 1, 1], [], []>} : vector<2x2048xbf16>, vector<2048x1024xbf16>, vector<2x1024xf32> -> vector<2x1024xf32>
      %c0_35 = arith.constant 0 : index
      %c0_36 = arith.constant 0 : index
      %53 = vector.load %arg11[%c0_35, %c0_36] : memref<1x1024xf32, #tpu.memory_space<vmem>>, vector<1x1024xf32>
      %54 = vector.broadcast %53 : vector<1x1024xf32> to vector<2x1024xf32>
      %55 = arith.addf %52, %54 : vector<2x1024xf32>
      %c0_37 = arith.constant 0 : index
      %c0_38 = arith.constant 0 : index
      %56 = vector.load %arg12[%c0_37, %c0_38] : memref<6x64xf32, #tpu.memory_space<vmem>>, vector<6x64xf32>
      %c0_39 = arith.constant 0 : index
      %c0_40 = arith.constant 0 : index
      %57 = vector.load %arg13[%c0_39, %c0_40] : memref<64x1024xf32, #tpu.memory_space<vmem>>, vector<64x1024xf32>
      %cst_41 = arith.constant dense<0.000000e+00> : vector<6x1024xf32>
      %58 = tpu.matmul %56, %57, %cst_41 {dimension_numbers = #tpu.dot_dimension_numbers<[1], [0], [0], [1], [0, 0, 1, 1], [], []>} : vector<6x64xf32>, vector<64x1024xf32>, vector<6x1024xf32> -> vector<6x1024xf32>
      %c0_42 = arith.constant 0 : index
      %c0_43 = arith.constant 0 : index
      %59 = vector.load %arg14[%c0_42, %c0_43] : memref<1x1024xf32, #tpu.memory_space<vmem>>, vector<1x1024xf32>
      %60 = vector.broadcast %59 : vector<1x1024xf32> to vector<6x1024xf32>
      %61 = arith.addf %58, %60 : vector<6x1024xf32>
      %62 = arith.mulf %55, %55 : vector<2x1024xf32>
      %cst_44 = arith.constant dense<0.000000e+00> : vector<2xf32>
      %63 = vector.multi_reduction <add>, %62, %cst_44 [1] : vector<2x1024xf32> to vector<2xf32>
      %64 = vector.shape_cast %63 : vector<2xf32> to vector<2x1xf32>
      %cst_45 = arith.constant 1.000000e-24 : f32
      %65 = vector.broadcast %cst_45 : f32 to vector<2x1xf32>
      %66 = arith.maximumf %64, %65 : vector<2x1xf32>
      %67 = math.rsqrt %66 : vector<2x1xf32>
      %68 = vector.broadcast %67 : vector<2x1xf32> to vector<2x1024xf32>
      %69 = arith.mulf %55, %68 : vector<2x1024xf32>
      %70 = arith.mulf %61, %61 : vector<6x1024xf32>
      %cst_46 = arith.constant dense<0.000000e+00> : vector<6xf32>
      %71 = vector.multi_reduction <add>, %70, %cst_46 [1] : vector<6x1024xf32> to vector<6xf32>
      %72 = vector.shape_cast %71 : vector<6xf32> to vector<6x1xf32>
      %cst_47 = arith.constant 1.000000e-24 : f32
      %73 = vector.broadcast %cst_47 : f32 to vector<6x1xf32>
      %74 = arith.maximumf %72, %73 : vector<6x1xf32>
      %75 = math.rsqrt %74 : vector<6x1xf32>
      %76 = vector.broadcast %75 : vector<6x1xf32> to vector<6x1024xf32>
      %77 = arith.mulf %61, %76 : vector<6x1024xf32>
      %cst_48 = arith.constant dense<0.000000e+00> : vector<2x6xf32>
      %78 = tpu.matmul %69, %77, %cst_48 {dimension_numbers = #tpu.dot_dimension_numbers<[1], [1], [0], [0], [0, 0, 1, 0], [], []>} : vector<2x1024xf32>, vector<6x1024xf32>, vector<2x6xf32> -> vector<2x6xf32>
      %c0_49 = arith.constant 0 : index
      %c0_50 = arith.constant 0 : index
      %79 = vector.load %arg15[%c0_49, %c0_50] : memref<2x6xf32, #tpu.memory_space<vmem>>, vector<2x6xf32>
      tpu.vector_store %arg15[%c0_49, %c0_50], %78 {strides = array<i32>} : memref<2x6xf32, #tpu.memory_space<vmem>>, vector<2x6xf32>,
    } else {
    }
    return
  }
  func.func @transform_0(%arg0: i32) -> (i32, i32) {
    %c0_i32 = arith.constant 0 : i32
    %c0_i32_0 = arith.constant 0 : i32
    %c0_i32_1 = arith.constant 0 : i32
    return %c0_i32, %c0_i32_0 : i32, i32
  }
  func.func @transform_1(%arg0: i32) -> (i32, i32) {
    %c0_i32 = arith.constant 0 : i32
    %c0_i32_0 = arith.constant 0 : i32
    return %c0_i32, %arg0 : i32, i32
  }
  func.func @transform_2(%arg0: i32) -> (i32, i32) {
    %c0_i32 = arith.constant 0 : i32
    %c0_i32_0 = arith.constant 0 : i32
    return %c0_i32, %arg0 : i32, i32
  }
  func.func @transform_3(%arg0: i32) -> (i32, i32) {
    %c0_i32 = arith.constant 0 : i32
    %c0_i32_0 = arith.constant 0 : i32
    return %c0_i32, %arg0 : i32, i32
  }
  func.func @transform_4(%arg0: i32) -> (i32, i32) {
    %c0_i32 = arith.constant 0 : i32
    %c0_i32_0 = arith.constant 0 : i32
    %c0_i32_1 = arith.constant 0 : i32
    return %c0_i32, %c0_i32_0 : i32, i32
  }
  func.func @transform_5(%arg0: i32) -> (i32, i32) {
    %c0_i32 = arith.constant 0 : i32
    %c0_i32_0 = arith.constant 0 : i32
    %c0_i32_1 = arith.constant 0 : i32
    return %c0_i32, %c0_i32_0 : i32, i32
  }
  func.func @transform_6(%arg0: i32) -> (i32, i32) {
    %c0_i32 = arith.constant 0 : i32
    %c0_i32_0 = arith.constant 0 : i32
    %c0_i32_1 = arith.constant 0 : i32
    return %c0_i32, %c0_i32_0 : i32, i32
  }
  func.func @transform_7(%arg0: i32) -> (i32, i32) {
    %c0_i32 = arith.constant 0 : i32
    %c0_i32_0 = arith.constant 0 : i32
    %c0_i32_1 = arith.constant 0 : i32
    return %c0_i32, %c0_i32_0 : i32, i32
  }
  func.func @transform_8(%arg0: i32) -> (i32, i32) {
    %c0_i32 = arith.constant 0 : i32
    %c0_i32_0 = arith.constant 0 : i32
    %c0_i32_1 = arith.constant 0 : i32
    return %c0_i32, %c0_i32_0 : i32, i32
  }
  func.func @transform_9(%arg0: i32) -> (i32, i32) {
    %c0_i32 = arith.constant 0 : i32
    %c0_i32_0 = arith.constant 0 : i32
    %c0_i32_1 = arith.constant 0 : i32
    return %c0_i32, %c0_i32_0 : i32, i32
  }
  func.func @transform_10(%arg0: i32) -> (i32, i32) {
    %c0_i32 = arith.constant 0 : i32
    %c0_i32_0 = arith.constant 0 : i32
    %c0_i32_1 = arith.constant 0 : i32
    return %c0_i32, %c0_i32_0 : i32, i32
  }
  func.func @transform_11(%arg0: i32) -> (i32, i32) {
    %c0_i32 = arith.constant 0 : i32
    %c0_i32_0 = arith.constant 0 : i32
    %c0_i32_1 = arith.constant 0 : i32
    return %c0_i32, %c0_i32_0 : i32, i32
  }
  func.func @transform_12(%arg0: i32) -> (i32, i32) {
    %c0_i32 = arith.constant 0 : i32
    %c0_i32_0 = arith.constant 0 : i32
    %c0_i32_1 = arith.constant 0 : i32
    return %c0_i32, %c0_i32_0 : i32, i32
  }
  func.func @transform_13(%arg0: i32) -> (i32, i32) {
    %c0_i32 = arith.constant 0 : i32
    %c0_i32_0 = arith.constant 0 : i32
    %c0_i32_1 = arith.constant 0 : i32
    return %c0_i32, %c0_i32_0 : i32, i32
  }
  func.func @transform_14(%arg0: i32) -> (i32, i32) {
    %c0_i32 = arith.constant 0 : i32
    %c0_i32_0 = arith.constant 0 : i32
    %c0_i32_1 = arith.constant 0 : i32
    return %c0_i32, %c0_i32_0 : i32, i32
  }
}

</mosaic_0001>

<bundles_post_ra>
// kernel: trident_val_forward.1
= control target key start
LH: loop header
LB: loop body
LE: loop exit
PB: predicated region body
PF: predicated region fallthrough
CT: control target
= control target key end

     0   :  { %s24069_s0 = inlined_call_operand.vmem [shape: bf16[16,4096], index: 0, kind: input, shape index: {}]   ;;  %s24070_s1 = inlined_call_operand.hbm [shape: bf16[4096,1024], index: 1, kind: input, shape index: {}]   ;;  %s24071_s2 = inlined_call_operand.vmem [shape: f32[1,1024], index: 2, kind: input, shape index: {}]   ;;  %s24072_s3 = inlined_call_operand.vmem [shape: f32[1,1024], index: 3, kind: input, shape index: {}]   ;;  %s24073_s4 = inlined_call_operand.vmem [shape: f32[2,16], index: 4, kind: input, shape index: {}]   ;;  %s24074_s5 = inlined_call_operand.hbm [shape: f32[2,1024], index: 5, kind: input, shape index: {}]   ;;  %s24075_s6 = inlined_call_operand.hbm [shape: f32[4,1024], index: 6, kind: input, shape index: {}]   ;;  %s24076_s7 = inlined_call_operand.hbm [shape: f32[3,1024], index: 7, kind: input, shape index: {}]   ;;  %s24077_s8 = inlined_call_operand.hbm [shape: f32[1,3], index: 8, kind: input, shape index: {}]   ;;  %s24078_s9 = inlined_call_operand.hbm [shape: bf16[2048,1024], index: 9, kind: input, shape index: {}]   ;;  %s24079_s10 = inlined_call_operand.hbm [shape: f32[1,1024], index: 10, kind: input, shape index: {}]   ;;  %s24080_s11 = inlined_call_operand.vmem [shape: f32[6,64], index: 11, kind: input, shape index: {}]   ;;  %s24081_s12 = inlined_call_operand.hbm [shape: f32[64,1024], index: 12, kind: input, shape index: {}]   ;;  %s24082_s13 = inlined_call_operand.hbm [shape: f32[1,1024], index: 13, kind: input, shape index: {}]   ;;  %s24083_s14 = inlined_call_operand.hbm [shape: f32[2,6], index: 14, kind: output, shape index: {}]  }
   0x1   :  { %24094 = sst [smem:[#allocation31_spill]] %s24074_s5 }
   0x2   :  { %24095 = sst [smem:[#allocation32_spill]] %s24075_s6 }
   0x3   :  { %24096 = sst [smem:[#allocation33_spill]] %s24076_s7 }
   0x4   :  { %24097 = sst [smem:[#allocation34_spill]] %s24078_s9 }
   0x5   :  { %19 = vsyncpa [#allocation4], 0 }
   0x6   :  { %21 = vsyncpa [#allocation4 + $0x1], 0 }
   0x7   :  { %22 = vsyncpa [#allocation7], 0 }
   0x8   :  { %23 = vsyncpa [#allocation10], 0 }
   0x9   :  { %24 = vsyncpa [#allocation13], 0 }
   0xa   :  { %25 = vsyncpa [#allocation16], 0 }
   0xb   :  { %26 = vsyncpa [#allocation5], 0  ;;  %s21897_s29 = smov 0   ;;  %s21899_s30 = smov 0  }
   0xc   :  { %s21901_s15 = smov 0   ;;  %s21903_s16 = smov 0  }
   0xd LB: > { %s21804_s17 = smov [#allocation6]   ;;  %s21918_s19 = sadd.s32 4294967295, %s21802_s16   ;;  %s21802_s16 = sphi %s21903_s16, %s24135_s16   ;;  %s21798_s15 = sphi %s21901_s15, %s24134_s15   ;;  %s21794_s30 = sphi %s21899_s30, %s24133_s30   ;;  %s21790_s29 = sphi %s21897_s29, %s24132_s29  }
   0xe   : > { %s386_s18 = sshll.u32 %s21804_s17, 4  ;;  %p17671_p0 = scmp.ge.s32.totalorder %s21802_s16, 1  ;;  %s387_s18 = int_to_ptr.vmem [resolvable:$true] %s386_s18 }
   0xf   : > { %p24084_p1 = scmp.eq.s32.totalorder %s21918_s19, 0  ;;  %p367_p2 = scmp.lt.s32.totalorder %s21802_s16, 3 }
  0x10   : > { %s21805_s21 = smov [#allocation9]   ;;  %s21806_s23 = smov [#allocation12]  }
  0x11   : > { %p21923_p3 = pnand %p17671_p0, %p367_p2  ;;  %s408_s22 = sshll.u32 %s21805_s21, 4  ;;  %s409_s22 = int_to_ptr.vmem [resolvable:$true] %s408_s22 }
  0x12   : > { %s429_s24 = sshll.u32 %s21806_s23, 4  ;;  %s21499_s27 = scalar_lea.vmem %s387_s18, 256  ;;  %s21935_s24 = int_to_ptr.vmem [resolvable:$true] %s429_s24 }
  0x13   : > { %s24098_s20 = scalar_select %p21923_p3, 1, 0 }
  0x14   : > { %p19834_p4 = pneg %p21923_p3  ;;  %p21500_p7 = scmp.ne.s32.totalorder %s387_s18, %s21499_s27 }
  0x15   : > { %p21507_p10 = scmp.lt.s32.totalorder %s387_s18, %s387_s18  ;;  %p21508_p11 = scmp.lt.s32.totalorder %s21499_s27, %s21499_s27 }
  0x16   : > { %p21931_p5 = pnand %p19834_p4, %p24084_p1 }
  0x17   : > { %p21509_p12 = por %p21508_p11, %p21507_p10 }
  0x18   : > { %p21939_p6 = pneg %p21931_p5 }
  0x1a   : > { %p21502_p8 = pnand %p21500_p7, %p21939_p6 }
  0x1c   : > { %p21503_p9 = pneg %p21502_p8 }
  0x1e   : > { %p21510_p13 = pnand %p21509_p12, %p21503_p9 }
  0x20   : > { %21513 = shalt.err (!%p21510_p13)
}
  0x21   : > { %s24101_s5 = sld [smem:[#allocation31_spill]]  ;;  %s21525_s21 = scalar_lea.vmem %s409_s22, 512 }
  0x22   : > { %p21526_p0 = scmp.ne.s32.totalorder %s409_s22, %s21525_s21  ;;  %p21533_p1 = scmp.lt.s32.totalorder %s409_s22, %s409_s22 }
  0x23   : > { %p21534_p7 = scmp.lt.s32.totalorder %s21525_s21, %s21525_s21 }
  0x24   : > { %p21528_p2 = pnand %p21526_p0, %p21939_p6 }
  0x25   : > { %p21535_p8 = por %p21534_p7, %p21533_p1 }
  0x26   : > { %p21529_p4 = pneg %p21528_p2 }
  0x27   : > { %19837 = dma.hbm_to_vmem [thread:$0]  (!%p21931_p5), %s24101_s5, 256, %s387_s18, [#allocation7]  }
  0x28   : > { %p21536_p3 = pnand %p21535_p8, %p21529_p4 }
  0x2a   : > { %21539 = shalt.err (!%p21536_p3)
}
  0x2b   : > { %s24102_s7 = sld [smem:[#allocation33_spill]]  ;;  %s21551_s18 = scalar_lea.vmem %s21935_s24, 131072 }
  0x2c   : > { %p21552_p9 = scmp.ne.s32.totalorder %s21935_s24, %s21551_s18  ;;  %p21559_p12 = scmp.lt.s32.totalorder %s21935_s24, %s21935_s24 }
  0x2d   : > { %p21560_p1 = scmp.lt.s32.totalorder %s21551_s18, %s21551_s18 }
  0x2e   : > { %p21554_p10 = pnand %p21552_p9, %p21939_p6 }
  0x2f   : > { %p21561_p13 = por %p21560_p1, %p21559_p12 }
  0x30   : > { %p21555_p11 = pneg %p21554_p10 }
  0x31   : > { %19843 = dma.hbm_to_vmem [thread:$0]  (!%p21931_p5), %s24102_s7, 512, %s409_s22, [#allocation10]  }
  0x32   : > { %p21562_p3 = pnand %p21561_p13, %p21555_p11 }
  0x34   : > { %21565 = shalt.err (!%p21562_p3)
}
  0x35   : > { %s24086_s28 = smov 512   ;;  %s21808_s17 = smov 32  }
  0x36   : > { %s24103_s9 = sld [smem:[#allocation34_spill]]  ;;  %s21809_s23 = smov [#allocation15]  }
  0x37   : > { %s456_s27 = sshll.u32 %s21809_s23, 4  ;;  %s457_s27 = int_to_ptr.vmem [resolvable:$true] %s456_s27 }
  0x38   : > { %s21577_s5 = scalar_lea.vmem %s457_s27, 8192  ;;  %p21585_p7 = scmp.lt.s32.totalorder %s457_s27, %s457_s27 }
  0x39   : > { %p21578_p0 = scmp.ne.s32.totalorder %s457_s27, %s21577_s5  ;;  %p21586_p8 = scmp.lt.s32.totalorder %s21577_s5, %s21577_s5 }
  0x3b   : > { %p21580_p2 = pnand %p21578_p0, %p21939_p6  ;;  %p21587_p9 = por %p21586_p8, %p21585_p7 }
  0x3c   : > { %19849 = dma.hbm_to_vmem [thread:$0]  (!%p21931_p5), %s24103_s9, 131072, %s21935_s24, [#allocation13], %s24086_s28, %s24086_s28, %s21808_s17  }
  0x3d   : > { %p21581_p4 = pneg %p21580_p2 }
  0x3f   : > { %p21588_p10 = pnand %p21587_p9, %p21581_p4 }
  0x41   : > { %21591 = shalt.err (!%p21588_p10)
}
  0x42   : > { %s21810_s18 = smov 1024   ;;  %s21811_s7 = smov 64  }
  0x43   : > { %19855 = dma.hbm_to_vmem [thread:$0]  (!%p21931_p5), %s24081_s12, 8192, %s457_s27, [#allocation16], %s21810_s18, %s21810_s18, %s21811_s7  }
  0x44   : > { %s21812_s17 = smov [#allocation8]   ;;  %s21813_s23 = smov [#allocation11]  }
  0x45   : > { %s397_s21 = sshll.u32 %s21812_s17, 4  ;;  %s419_s28 = sshll.u32 %s21813_s23, 4  ;;  %s398_s21 = int_to_ptr.vmem [resolvable:$true] %s397_s21  ;;  %s420_s28 = int_to_ptr.vmem [resolvable:$true] %s419_s28 }
  0x46   : > { %s21603_s9 = scalar_lea.vmem %s398_s21, 512  ;;  %p21611_p13 = scmp.lt.s32.totalorder %s398_s21, %s398_s21 }
  0x47   : > { %p21604_p11 = scmp.ne.s32.totalorder %s398_s21, %s21603_s9  ;;  %p21612_p3 = scmp.lt.s32.totalorder %s21603_s9, %s21603_s9 }
  0x49   : > { %p21606_p12 = pnand %p21604_p11, %p21939_p6  ;;  %p21613_p0 = por %p21612_p3, %p21611_p13 }
  0x4b   : > { %p21607_p1 = pneg %p21606_p12 }
  0x4d   : > { %p21614_p2 = pnand %p21613_p0, %p21607_p1 }
  0x4f   : > { %21617 = shalt.err (!%p21614_p2)
}
  0x50   : > { %s24104_s6 = sld [smem:[#allocation32_spill]]  ;;  %s21629_s27 = scalar_lea.vmem %s420_s28, 16 }
  0x51   : > { %p21630_p4 = scmp.ne.s32.totalorder %s420_s28, %s21629_s27  ;;  %s21636_s18 = scalar_lea.vmem %s420_s28, 32 }
  0x52   : > { %p21637_p9 = scmp.lt.s32.totalorder %s420_s28, %s420_s28  ;;  %p21638_p10 = scmp.lt.s32.totalorder %s21636_s18, %s21629_s27 }
  0x53   : > { %p21632_p7 = pnand %p21630_p4, %p21939_p6 }
  0x54   : > { %p21639_p11 = por %p21638_p10, %p21637_p9 }
  0x55   : > { %p21633_p8 = pneg %p21632_p7 }
  0x56   : > { %19840 = dma.hbm_to_vmem [thread:$0]  (!%p21931_p5), %s24104_s6, 512, %s398_s21, [#allocation7]  }
  0x57   : > { %p21640_p12 = pnand %p21639_p11, %p21633_p8 }
  0x59   : > { %21643 = shalt.err (!%p21640_p12)
}
  0x5a   : > { %19846 = dma.hbm_to_vmem [thread:$0]  (!%p21931_p5), %s24077_s8, 16, %s420_s28, [#allocation10]  }
  0x5b   : > { %s21814_s24 = smov [#allocation14]   ;;  %s21815_s21 = smov [#allocation17]  }
  0x5c   : > { %s443_s17 = sshll.u32 %s21814_s24, 4  ;;  %s470_s23 = sshll.u32 %s21815_s21, 4  ;;  %s444_s17 = int_to_ptr.vmem [resolvable:$true] %s443_s17  ;;  %s471_s23 = int_to_ptr.vmem [resolvable:$true] %s470_s23 }
  0x5d   : > { %s21655_s5 = scalar_lea.vmem %s444_s17, 128  ;;  %p21663_p0 = scmp.lt.s32.totalorder %s444_s17, %s444_s17 }
  0x5e   : > { %p21656_p1 = scmp.ne.s32.totalorder %s444_s17, %s21655_s5  ;;  %p21664_p2 = scmp.lt.s32.totalorder %s21655_s5, %s21655_s5 }
  0x60   : > { %p21658_p13 = pnand %p21656_p1, %p21939_p6  ;;  %p21665_p4 = por %p21664_p2, %p21663_p0 }
  0x62   : > { %p21659_p3 = pneg %p21658_p13 }
  0x64   : > { %p21666_p7 = pnand %p21665_p4, %p21659_p3 }
  0x66   : > { %21669 = shalt.err (!%p21666_p7)
}
  0x67   : > { %19852 = dma.hbm_to_vmem [thread:$0]  (!%p21931_p5), %s24079_s10, 128, %s444_s17, [#allocation13]  }
  0x68   : > { %s21681_s27 = scalar_lea.vmem %s471_s23, 128  ;;  %p21689_p11 = scmp.lt.s32.totalorder %s471_s23, %s471_s23 }
  0x69   : > { %p21682_p8 = scmp.ne.s32.totalorder %s471_s23, %s21681_s27  ;;  %p21690_p12 = scmp.lt.s32.totalorder %s21681_s27, %s21681_s27 }
  0x6b   : > { %p21684_p9 = pnand %p21682_p8, %p21939_p6  ;;  %p21691_p1 = por %p21690_p12, %p21689_p11 }
  0x6d   : > { %p21685_p10 = pneg %p21684_p9 }
  0x6f   : > { %p21692_p13 = pnand %p21691_p1, %p21685_p10 }
  0x71   : > { %21695 = shalt.err (!%p21692_p13)
}
  0x72   : > { %19858 = dma.hbm_to_vmem [thread:$0]  (!%p21931_p5), %s24082_s13, 128, %s471_s23, [#allocation16]  }
  0x73   : > { %s22007_s26 = sadd.s32 1, %s21802_s16   ;;  %s60_s25 = sadd.s32 1, %s21798_s15 }
  0x74   : > { %s57_s22 = ssub.s32 %s21802_s16, %s22007_s26  ;;  %p67_p6 = scmp.ne.s32.totalorder %s21798_s15, %s21794_s30 }
  0x75   : > { %p58_p3 = scmp.eq.s32.totalorder %s57_s22, 0  ;;  %p68_p0 = scmp.eq.s32.totalorder %s21802_s16, 0 }
  0x76   : > { %p73_p2 = scmp.ne.s32.totalorder %s21794_s30, %s21790_s29  ;;  %p19871_p4 = scmp.lt.s32.totalorder %s21802_s16, 2 }
  0x77   : > { %s22019_s24 = scalar_select %p58_p3, %s21798_s15, %s60_s25  }
  0x78   : > { %p69_p7 = por %p68_p0, %p67_p6  ;;  %p24105_p8 = scmp.eq.s32.totalorder %s21918_s19, 0 }
  0x79   : > { %s481_s21 = sand.u32 1, %s21798_s15   ;;  %s19794_s23 = sshll.u32 %s21802_s16, 8 }
  0x7a   : > { %p22023_p9 = por %p24105_p8, %p73_p2  ;;  %s17681_s5 = sshll.u32 %s481_s21, 13 }
  0x7b   : > { %s22032_s27 = scalar_lea.hbm %s24070_s1, %s19794_s23  ;;  %s485_s29 = scalar_lea.vmem [#allocation3], %s17681_s5 }
  0x7c   : > { %s24106_s17 = scalar_select %p22023_p9, 1, 0 }
  0x7d   : > { %s492_s18 = sshll.u32 %s485_s29, 4  ;;  %p22034_p5 = pnand %p19871_p4, %p69_p7  ;;  %s22038_s18 = int_to_ptr.vmem [resolvable:$true] %s492_s18 }
  0x7e   : > { %s22040_s25 = scalar_lea.sflag [#allocation4], %s481_s21  ;;  %s21696_s16 = scalar_lea.hbm %s22032_s27, 131072 }
  0x7f   : > { %p21697_p10 = scmp.ne.s32.totalorder %s22032_s27, %s21696_s16  ;;  %p21698_p11 = pneg %p22034_p5 }
  0x80   : > { %s21701_s5 = scalar_lea.hbm %s24070_s1, 262144  ;;  %p21702_p13 = scmp.lt.s32.totalorder %s22032_s27, %s24070_s1 }
  0x81   : > { %p21699_p12 = pnand %p21698_p11, %p21697_p10  ;;  %p21703_p6 = scmp.lt.s32.totalorder %s21701_s5, %s21696_s16 }
  0x83   : > { %p21700_p1 = pneg %p21699_p12  ;;  %p21704_p3 = por %p21703_p6, %p21702_p13 }
  0x85   : > { %p21705_p0 = pnand %p21704_p3, %p21700_p1 }
  0x87   : > { %21708 = shalt.err (!%p21705_p0)
}
  0x88   : > { %s21709_s21 = scalar_lea.vmem %s22038_s18, 131072  ;;  %s21816_s29 = smov [#allocation3]  }
  0x89   : > { %p21710_p2 = scmp.ne.s32.totalorder %s22038_s18, %s21709_s21  ;;  %s21714_s6 = sshll.u32 %s21816_s29, 4  ;;  %s21715_s6 = int_to_ptr.vmem [resolvable:$false] %s21714_s6 }
  0x8a   : > { %s21716_s22 = scalar_lea.vmem %s21715_s6, 262144  ;;  %p21717_p8 = scmp.lt.s32.totalorder %s22038_s18, %s21715_s6 }
  0x8b   : > { %p21712_p4 = pnand %p21710_p2, %p21698_p11  ;;  %p21718_p10 = scmp.lt.s32.totalorder %s21716_s22, %s21709_s21 }
  0x8d   : > { %p21713_p7 = pneg %p21712_p4  ;;  %p21719_p12 = por %p21718_p10, %p21717_p8 }
  0x8f   : > { %p21720_p9 = pnand %p21719_p12, %p21713_p7 }
  0x91   : > { %21723 = shalt.err (!%p21720_p9)
}
  0x92   : > { %s21817_s16 = smov 256   ;;  %s21818_s23 = smov 16  }
  0x93   : > { %s24108_s5 = smov 512   ;;  %p24109_p11 = scmp.ne.s32.totalorder %s24098_s20, 0 }
  0x94   : > { %19862 = dma.hbm_to_vmem [thread:$0]  (!%p22034_p5), %s22032_s27, 131072, %s22038_s18, %s22040_s25, %s24108_s5, %s21817_s16, %s21818_s23  }
  0x95   : > { %520 = sbr.rel (%p24109_p11) target bundleno = 3577 (0xdf9), region = 76 }
  0x9a   : > { %s522_s7 = sand.u32 1, %s21794_s30   ;;  %p24110_p9 = scmp.ne.s32.totalorder %s24106_s17, 0 }
  0x9b   : > { %s17685_s6 = sshll.u32 %s522_s7, 13  ;;  %s523_s28 = scalar_lea.sflag [#allocation4], %s522_s7 }
  0x9c   : > { %s22065_s21 = scalar_lea.vmem [#allocation3], %s17685_s6 }
  0x9d   : > { %21765 = dma.done.wait (%p24110_p9), %s523_s28, 131072  }
  0x9e   : > { %21767 = vsyncadd (%p24110_p9), %s523_s28, 4294836224  ;;  %p24111_p1 = scmp.eq.s32.totalorder %s21918_s19, 0 }
  0xa0   : > { %21769 = dma.done.wait (%p24111_p1), [#allocation7], 768   ;;  %p24112_p5 = pmov %p24111_p1 }
  0xa1   : > { %p24113_p13 = pmov %p24111_p1 }
  0xa2   : > { %21771 = vsyncadd (%p24112_p5), [#allocation7], 4294966528 }
  0xa3   : > { %21773 = dma.done.wait (%p24113_p13), [#allocation10], 528   ;;  %p24114_p6 = pmov %p24111_p1 }
  0xa4   : > { %p24115_p3 = pmov %p24111_p1 }
  0xa5   : > { %21775 = vsyncadd (%p24114_p6), [#allocation10], 4294966768 }
  0xa6   : > { %21777 = dma.done.wait (%p24115_p3), [#allocation13], 131200   ;;  %p24116_p0 = pmov %p24111_p1 }
  0xa8   : > { %21779 = vsyncadd (%p24116_p0), [#allocation13], 4294836096  ;;  %p24117_p2 = pmov %p24116_p0 }
  0xa9   : > { %p24118_p4 = pmov %p24116_p0 }
  0xaa   : > { %21781 = dma.done.wait (%p24117_p2), [#allocation16], 8320  }
  0xab   : > { %21783 = vsyncadd (%p24118_p4), [#allocation16], 4294958976  ;;  %v19931_v0 = vld [vmem:[%s22065_s21 + $0xe4] ss:$16 sps:$4 sm:$0xff]   ;;  %v19935_v2 = vld [vmem:[%s22065_s21 + $0xe0] ss:$16 sps:$4 sm:$0xff]  }
  0xac   : > { %v19933_v1 = vld [vmem:[%s22065_s21 + $0x2e4] ss:$16 sps:$4 sm:$0xff]   ;;  %6953 = vmatprep.subr.bf16.mxu0 %v19931_v0  ;;  %v19936_v3 = vld [vmem:[%s22065_s21 + $0x2e0] ss:$16 sps:$4 sm:$0xff]   ;;  %v618_v50 = vld [vmem:[%s24069_s0 + $0x8] sm:$0xff]  ;;  %s17694_s16 = sshll.u32 %s21918_s19, 2 }
  0xad   : > { %6996 = vmatprep.subr.bf16.mxu1 %v19933_v1  ;;  %v19937_v4 = vld [vmem:[%s22065_s21 + $0xc4] ss:$16 sps:$4 sm:$0xff]   ;;  %6954 = vmatpush1.bf16.msra.mxu0 %v19935_v2  ;;  %v19941_v6 = vld [vmem:[%s22065_s21 + $0xc0] ss:$16 sps:$4 sm:$0xff]   ;;  %v634_v51 = vld [vmem:[%s24069_s0 + $0x88] sm:$0xff]  ;;  %p23226_p7 = scmp.lt.s32.totalorder %s17694_s16, 7 }
  0xae   : > { %6997 = vmatpush1.bf16.msra.mxu1 %v19936_v3  ;;  %v19939_v5 = vld [vmem:[%s22065_s21 + $0x2c4] ss:$16 sps:$4 sm:$0xff]   ;;  %6955 = vmatprep.subr.bf16.mxu0 %v19937_v4  ;;  %v19942_v7 = vld [vmem:[%s22065_s21 + $0x2c0] ss:$16 sps:$4 sm:$0xff]   ;;  %v22151_v55 = vcombine.high %v618_v50, %v634_v51  ;;  %s19795_s27 = sshll.u32 %s21918_s19, 6  ;;  %p18754_p8 = scmp.ne.s32.totalorder %s21918_s19, 1 }
  0xaf   : > { %6998 = vmatprep.subr.bf16.mxu1 %v19939_v5  ;;  %v19943_v8 = vld [vmem:[%s22065_s21 + $0xa4] ss:$16 sps:$4 sm:$0xff]   ;;  %v19947_v10 = vld [vmem:[%s22065_s21 + $0xa0] ss:$16 sps:$4 sm:$0xff]   ;;  %s24137_s16 = smov (!%p23226_p7, %s17694_s16), 7  ;;  %s23298_s18 = scalar_lea.vmem [#allocation2], %s19795_s27 }
  0xb0   : > { %v19945_v9 = vld [vmem:[%s22065_s21 + $0x2a4] ss:$16 sps:$4 sm:$0xff]   ;;  %v19948_v11 = vld [vmem:[%s22065_s21 + $0x2a0] ss:$16 sps:$4 sm:$0xff]   ;;  %7028 = vmatprep.mubr.bf16.mxu1 %v22151_v55  ;;  %s23254_s6 = scalar_lea.vmem %s24071_s2, %s24137_s16  ;;  %s23262_s17 = scalar_lea.vmem %s24072_s3, %s24137_s16 }
  0xb1   : > { %6956 = vmatpush1.bf16.msra.mxu0 %v19941_v6  ;;  %v19949_v12 = vld [vmem:[%s22065_s21 + $0x84] ss:$16 sps:$4 sm:$0xff]   ;;  %v19953_v14 = vld [vmem:[%s22065_s21 + $0x80] ss:$16 sps:$4 sm:$0xff]  }
  0xb2   : > { %6999 = vmatpush1.bf16.msra.mxu1 %v19942_v7  ;;  %6957 = vmatprep.subr.bf16.mxu0 %v19943_v8  ;;  %v19951_v13 = vld [vmem:[%s22065_s21 + $0x284] ss:$16 sps:$4 sm:$0xff]   ;;  %v19954_v15 = vld [vmem:[%s22065_s21 + $0x280] ss:$16 sps:$4 sm:$0xff]  }
  0xb3   : > { %7000 = vmatprep.subr.bf16.mxu1 %v19945_v9  ;;  %v19955_v16 = vld [vmem:[%s22065_s21 + $0x64] ss:$16 sps:$4 sm:$0xff]   ;;  %v19959_v18 = vld [vmem:[%s22065_s21 + $0x60] ss:$16 sps:$4 sm:$0xff]   ;;  %v22173_v9 = vcombine.low %v618_v50, %v634_v51 }
  0xb4   : > { %v19957_v17 = vld [vmem:[%s22065_s21 + $0x264] ss:$16 sps:$4 sm:$0xff]   ;;  %v19960_v19 = vld [vmem:[%s22065_s21 + $0x260] ss:$16 sps:$4 sm:$0xff]  }
  0xb5   : > { %6958 = vmatpush1.bf16.msra.mxu0 %v19947_v10  ;;  %v19961_v20 = vld [vmem:[%s22065_s21 + $0x44] ss:$16 sps:$4 sm:$0xff]   ;;  %v19965_v22 = vld [vmem:[%s22065_s21 + $0x40] ss:$16 sps:$4 sm:$0xff]  }
  0xb6   : > { %7001 = vmatpush1.bf16.msra.mxu1 %v19948_v11  ;;  %6959 = vmatprep.subr.bf16.mxu0 %v19949_v12  ;;  %v19963_v21 = vld [vmem:[%s22065_s21 + $0x244] ss:$16 sps:$4 sm:$0xff]   ;;  %v19966_v23 = vld [vmem:[%s22065_s21 + $0x240] ss:$16 sps:$4 sm:$0xff]  }
  0xb7   : > { %7002 = vmatprep.subr.bf16.mxu1 %v19951_v13  ;;  %v19967_v24 = vld [vmem:[%s22065_s21 + $0x24] ss:$16 sps:$4 sm:$0xff]   ;;  %v19971_v26 = vld [vmem:[%s22065_s21 + $0x20] ss:$16 sps:$4 sm:$0xff]  }
  0xb8   : > { %v19969_v25 = vld [vmem:[%s22065_s21 + $0x224] ss:$16 sps:$4 sm:$0xff]   ;;  %v19972_v27 = vld [vmem:[%s22065_s21 + $0x220] ss:$16 sps:$4 sm:$0xff]  }
  0xb9   : > { %6960 = vmatpush1.bf16.msra.mxu0 %v19953_v14  ;;  %v19973_v28 = vld [vmem:[%s22065_s21 + $0x4] ss:$16 sps:$4 sm:$0xff]   ;;  %v19977_v30 = vld [vmem:[%s22065_s21] ss:$16 sps:$4 sm:$0xff]  }
  0xba   : > { %7003 = vmatpush1.bf16.msra.mxu1 %v19954_v15  ;;  %6961 = vmatprep.subr.bf16.mxu0 %v19955_v16  ;;  %v19975_v29 = vld [vmem:[%s22065_s21 + $0x204] ss:$16 sps:$4 sm:$0xff]   ;;  %v19978_v31 = vld [vmem:[%s22065_s21 + $0x200] ss:$16 sps:$4 sm:$0xff]  }
  0xbb   : > { %7004 = vmatprep.subr.bf16.mxu1 %v19957_v17  ;;  %v19979_v32 = vld [vmem:[%s22065_s21 + $0x1e4] ss:$16 sps:$4 sm:$0xff]   ;;  %v19983_v34 = vld [vmem:[%s22065_s21 + $0x1e0] ss:$16 sps:$4 sm:$0xff]  }
  0xbc   : > { %v19981_v33 = vld [vmem:[%s22065_s21 + $0x3e4] ss:$16 sps:$4 sm:$0xff]   ;;  %v19984_v35 = vld [vmem:[%s22065_s21 + $0x3e0] ss:$16 sps:$4 sm:$0xff]  }
  0xbd   : > { %6962 = vmatpush1.bf16.msra.mxu0 %v19959_v18  ;;  %v19985_v36 = vld [vmem:[%s22065_s21 + $0x1c4] ss:$16 sps:$4 sm:$0xff]   ;;  %v19989_v38 = vld [vmem:[%s22065_s21 + $0x1c0] ss:$16 sps:$4 sm:$0xff]  }
  0xbe   : > { %7005 = vmatpush1.bf16.msra.mxu1 %v19960_v19  ;;  %6963 = vmatprep.subr.bf16.mxu0 %v19961_v20  ;;  %v19987_v37 = vld [vmem:[%s22065_s21 + $0x3c4] ss:$16 sps:$4 sm:$0xff]   ;;  %v19990_v39 = vld [vmem:[%s22065_s21 + $0x3c0] ss:$16 sps:$4 sm:$0xff]  }
  0xbf   : > { %7006 = vmatprep.subr.bf16.mxu1 %v19963_v21  ;;  %v19991_v40 = vld [vmem:[%s22065_s21 + $0x1a4] ss:$16 sps:$4 sm:$0xff]   ;;  %v19995_v42 = vld [vmem:[%s22065_s21 + $0x1a0] ss:$16 sps:$4 sm:$0xff]  }
  0xc0   : > { %v19993_v41 = vld [vmem:[%s22065_s21 + $0x3a4] ss:$16 sps:$4 sm:$0xff]   ;;  %v19996_v43 = vld [vmem:[%s22065_s21 + $0x3a0] ss:$16 sps:$4 sm:$0xff]  }
  0xc1   : > { %6964 = vmatpush1.bf16.msra.mxu0 %v19965_v22  ;;  %v19997_v44 = vld [vmem:[%s22065_s21 + $0x184] ss:$16 sps:$4 sm:$0xff]   ;;  %v20001_v46 = vld [vmem:[%s22065_s21 + $0x180] ss:$16 sps:$4 sm:$0xff]  }
  0xc2   : > { %7007 = vmatpush1.bf16.msra.mxu1 %v19966_v23  ;;  %6965 = vmatprep.subr.bf16.mxu0 %v19967_v24  ;;  %v19999_v45 = vld [vmem:[%s22065_s21 + $0x384] ss:$16 sps:$4 sm:$0xff]   ;;  %v20002_v47 = vld [vmem:[%s22065_s21 + $0x380] ss:$16 sps:$4 sm:$0xff]  }
  0xc3   : > { %7008 = vmatprep.subr.bf16.mxu1 %v19969_v25  ;;  %v617_v48 = vld [vmem:[%s24069_s0] sm:$0xff] }
  0xc4   : > { %v633_v49 = vld [vmem:[%s24069_s0 + $0x80] sm:$0xff] }
  0xc5   : > { %6966 = vmatpush1.bf16.msra.mxu0 %v19971_v26  ;;  %v20003_v52 = vld [vmem:[%s22065_s21 + $0x164] ss:$16 sps:$4 sm:$0xff]   ;;  %v22148_v53 = vcombine.high %v617_v48, %v633_v49  ;;  %v20007_v56 = vld [vmem:[%s22065_s21 + $0x160] ss:$16 sps:$4 sm:$0xff]   ;;  %v22171_v8 = vcombine.low %v617_v48, %v633_v49 }
  0xc6   : > { %7009 = vmatpush1.bf16.msra.mxu1 %v19972_v27  ;;  %6967 = vmatprep.subr.bf16.mxu0 %v19973_v28  ;;  %v20005_v54 = vld [vmem:[%s22065_s21 + $0x364] ss:$16 sps:$4 sm:$0xff]   ;;  %v20008_v57 = vld [vmem:[%s22065_s21 + $0x360] ss:$16 sps:$4 sm:$0xff]  }
  0xc7   : > { %7010 = vmatprep.subr.bf16.mxu1 %v19975_v29  ;;  %6985 = vmatprep.mubr.bf16.mxu0 %v22148_v53  ;;  %v20009_v58 = vld [vmem:[%s22065_s21 + $0x144] ss:$16 sps:$4 sm:$0xff]   ;;  %v20013_v60 = vld [vmem:[%s22065_s21 + $0x140] ss:$16 sps:$4 sm:$0xff]  }
  0xc8   : > { %v20011_v59 = vld [vmem:[%s22065_s21 + $0x344] ss:$16 sps:$4 sm:$0xff]   ;;  %v20014_v61 = vld [vmem:[%s22065_s21 + $0x340] ss:$16 sps:$4 sm:$0xff]  }
  0xc9   : > { %6968 = vmatpush1.bf16.msra.mxu0 %v19977_v30  ;;  %v20015_v62 = vld [vmem:[%s22065_s21 + $0x124] ss:$16 sps:$4 sm:$0xff]   ;;  %v20019_v0 = vld [vmem:[%s22065_s21 + $0x120] ss:$16 sps:$4 sm:$0xff]  }
  0xca   : > { %7011 = vmatpush1.bf16.msra.mxu1 %v19978_v31  ;;  %6969 = vmatprep.subr.bf16.mxu0 %v19979_v32  ;;  %v20017_v63 = vld [vmem:[%s22065_s21 + $0x324] ss:$16 sps:$4 sm:$0xff]   ;;  %v20020_v1 = vld [vmem:[%s22065_s21 + $0x320] ss:$16 sps:$4 sm:$0xff]  }
  0xcb   : > { %7012 = vmatprep.subr.bf16.mxu1 %v19981_v33  ;;  %v20021_v2 = vld [vmem:[%s22065_s21 + $0x104] ss:$16 sps:$4 sm:$0xff]   ;;  %v20025_v4 = vld [vmem:[%s22065_s21 + $0x100] ss:$16 sps:$4 sm:$0xff]  }
  0xcc   : > { %v20023_v3 = vld [vmem:[%s22065_s21 + $0x304] ss:$16 sps:$4 sm:$0xff]   ;;  %v20026_v5 = vld [vmem:[%s22065_s21 + $0x300] ss:$16 sps:$4 sm:$0xff]  }
  0xcd   : > { %6970 = vmatpush2.bf16.msra.mxu0 %v19983_v34  ;;  %v20029_v6 = vld [vmem:[%s22065_s21 + $0x4e4] ss:$16 sps:$4 sm:$0xff]   ;;  %v20027_v10 = vld [vmem:[%s22065_s21 + $0x4e0] ss:$16 sps:$4 sm:$0xff]  }
  0xce   : > { %7013 = vmatpush2.bf16.msra.mxu1 %v19984_v35  ;;  %6971 = vmatprep.subr.bf16.mxu0 %v19985_v36  ;;  %v20032_v7 = vld [vmem:[%s22065_s21 + $0x6e4] ss:$16 sps:$4 sm:$0xff]   ;;  %v20030_v11 = vld [vmem:[%s22065_s21 + $0x6e0] ss:$16 sps:$4 sm:$0xff]  }
  0xcf   : > { %7014 = vmatprep.subr.bf16.mxu1 %v19987_v37  ;;  %v20035_v12 = vld [vmem:[%s22065_s21 + $0x4c4] ss:$16 sps:$4 sm:$0xff]   ;;  %v20033_v14 = vld [vmem:[%s22065_s21 + $0x4c0] ss:$16 sps:$4 sm:$0xff]  }
  0xd0   : > { %v20038_v13 = vld [vmem:[%s22065_s21 + $0x6c4] ss:$16 sps:$4 sm:$0xff]   ;;  %v20036_v15 = vld [vmem:[%s22065_s21 + $0x6c0] ss:$16 sps:$4 sm:$0xff]  }
  0xd1   : > { %6972 = vmatpush2.bf16.msra.mxu0 %v19989_v38  ;;  %v20041_v16 = vld [vmem:[%s22065_s21 + $0x4a4] ss:$16 sps:$4 sm:$0xff]   ;;  %v20039_v18 = vld [vmem:[%s22065_s21 + $0x4a0] ss:$16 sps:$4 sm:$0xff]   ;;  %v22216_v38 = vld [vmem:[%s24069_s0 + $0x18] sm:$0xff] }
  0xd2   : > { %7015 = vmatpush2.bf16.msra.mxu1 %v19990_v39  ;;  %6973 = vmatprep.subr.bf16.mxu0 %v19991_v40  ;;  %v20044_v17 = vld [vmem:[%s22065_s21 + $0x6a4] ss:$16 sps:$4 sm:$0xff]   ;;  %v20042_v19 = vld [vmem:[%s22065_s21 + $0x6a0] ss:$16 sps:$4 sm:$0xff]   ;;  %v22221_v39 = vld [vmem:[%s24069_s0 + $0x98] sm:$0xff] }
  0xd3   : > { %7016 = vmatprep.subr.bf16.mxu1 %v19993_v41  ;;  %v20047_v20 = vld [vmem:[%s22065_s21 + $0x484] ss:$16 sps:$4 sm:$0xff]   ;;  %v20045_v22 = vld [vmem:[%s22065_s21 + $0x480] ss:$16 sps:$4 sm:$0xff]  }
  0xd4   : > { %v20050_v21 = vld [vmem:[%s22065_s21 + $0x684] ss:$16 sps:$4 sm:$0xff]   ;;  %v20048_v23 = vld [vmem:[%s22065_s21 + $0x680] ss:$16 sps:$4 sm:$0xff]  }
  0xd5   : > { %6974 = vmatpush2.bf16.msra.mxu0 %v19995_v42  ;;  %v20053_v24 = vld [vmem:[%s22065_s21 + $0x464] ss:$16 sps:$4 sm:$0xff]   ;;  %v20051_v26 = vld [vmem:[%s22065_s21 + $0x460] ss:$16 sps:$4 sm:$0xff]  }
  0xd6   : > { %7017 = vmatpush2.bf16.msra.mxu1 %v19996_v43  ;;  %6975 = vmatprep.subr.bf16.mxu0 %v19997_v44  ;;  %v20056_v25 = vld [vmem:[%s22065_s21 + $0x664] ss:$16 sps:$4 sm:$0xff]   ;;  %v20054_v27 = vld [vmem:[%s22065_s21 + $0x660] ss:$16 sps:$4 sm:$0xff]   ;;  %v22231_v43 = vcombine.high %v22216_v38, %v22221_v39 }
  0xd7   : > { %7018 = vmatprep.subr.bf16.mxu1 %v19999_v45  ;;  %v20059_v28 = vld [vmem:[%s22065_s21 + $0x444] ss:$16 sps:$4 sm:$0xff]   ;;  %v20057_v30 = vld [vmem:[%s22065_s21 + $0x440] ss:$16 sps:$4 sm:$0xff]  }
  0xd8   : > { %v20062_v29 = vld [vmem:[%s22065_s21 + $0x644] ss:$16 sps:$4 sm:$0xff]   ;;  %v20060_v31 = vld [vmem:[%s22065_s21 + $0x640] ss:$16 sps:$4 sm:$0xff]  }
  0xd9   : > { %6976 = vmatpush2.bf16.msra.mxu0 %v20001_v46  ;;  %v20065_v32 = vld [vmem:[%s22065_s21 + $0x424] ss:$16 sps:$4 sm:$0xff]   ;;  %v20063_v34 = vld [vmem:[%s22065_s21 + $0x420] ss:$16 sps:$4 sm:$0xff]  }
  0xda   : > { %7019 = vmatpush2.bf16.msra.mxu1 %v20002_v47  ;;  %6977 = vmatprep.subr.bf16.mxu0 %v20003_v52  ;;  %v20068_v33 = vld [vmem:[%s22065_s21 + $0x624] ss:$16 sps:$4 sm:$0xff]   ;;  %v20066_v35 = vld [vmem:[%s22065_s21 + $0x620] ss:$16 sps:$4 sm:$0xff]  }
  0xdb   : > { %7020 = vmatprep.subr.bf16.mxu1 %v20005_v54  ;;  %v22206_v36 = vld [vmem:[%s24069_s0 + $0x10] sm:$0xff] }
  0xdc   : > { %v22211_v37 = vld [vmem:[%s24069_s0 + $0x90] sm:$0xff] }
  0xdd   : > { %6978 = vmatpush2.bf16.msra.mxu0 %v20007_v56  ;;  %v20071_v40 = vld [vmem:[%s22065_s21 + $0x404] ss:$16 sps:$4 sm:$0xff]   ;;  %v22226_v41 = vcombine.high %v22206_v36, %v22211_v37  ;;  %v20069_v44 = vld [vmem:[%s22065_s21 + $0x400] ss:$16 sps:$4 sm:$0xff]  }
  0xde   : > { %7021 = vmatpush2.bf16.msra.mxu1 %v20008_v57  ;;  %6979 = vmatprep.subr.bf16.mxu0 %v20009_v58  ;;  %v20074_v42 = vld [vmem:[%s22065_s21 + $0x604] ss:$16 sps:$4 sm:$0xff]   ;;  %v20072_v45 = vld [vmem:[%s22065_s21 + $0x600] ss:$16 sps:$4 sm:$0xff]  }
  0xdf   : > { %7022 = vmatprep.subr.bf16.mxu1 %v20011_v59  ;;  %v20077_v46 = vld [vmem:[%s22065_s21 + $0x5e4] ss:$16 sps:$4 sm:$0xff]   ;;  %v20075_v48 = vld [vmem:[%s22065_s21 + $0x5e0] ss:$16 sps:$4 sm:$0xff]  }
  0xe0   : > { %v20080_v47 = vld [vmem:[%s22065_s21 + $0x7e4] ss:$16 sps:$4 sm:$0xff]   ;;  %v20078_v49 = vld [vmem:[%s22065_s21 + $0x7e0] ss:$16 sps:$4 sm:$0xff]  }
  0xe1   : > { %6980 = vmatpush2.bf16.msra.mxu0 %v20013_v60  ;;  %v20083_v50 = vld [vmem:[%s22065_s21 + $0x5c4] ss:$16 sps:$4 sm:$0xff]   ;;  %v20081_v52 = vld [vmem:[%s22065_s21 + $0x5c0] ss:$16 sps:$4 sm:$0xff]  }
  0xe2   : > { %7023 = vmatpush2.bf16.msra.mxu1 %v20014_v61  ;;  %6981 = vmatprep.subr.bf16.mxu0 %v20015_v62  ;;  %v20086_v51 = vld [vmem:[%s22065_s21 + $0x7c4] ss:$16 sps:$4 sm:$0xff]   ;;  %v20084_v54 = vld [vmem:[%s22065_s21 + $0x7c0] ss:$16 sps:$4 sm:$0xff]  }
  0xe3   : > { %7024 = vmatprep.subr.bf16.mxu1 %v20017_v63  ;;  %v20089_v56 = vld [vmem:[%s22065_s21 + $0x5a4] ss:$16 sps:$4 sm:$0xff]   ;;  %v20087_v58 = vld [vmem:[%s22065_s21 + $0x5a0] ss:$16 sps:$4 sm:$0xff]  }
  0xe4   : > { %v20092_v57 = vld [vmem:[%s22065_s21 + $0x7a4] ss:$16 sps:$4 sm:$0xff]   ;;  %v20090_v59 = vld [vmem:[%s22065_s21 + $0x7a0] ss:$16 sps:$4 sm:$0xff]  }
  0xe5   : > { %6982 = vmatpush2.bf16.msra.mxu0 %v20019_v0  ;;  %v20095_v60 = vld [vmem:[%s22065_s21 + $0x584] ss:$16 sps:$4 sm:$0xff]   ;;  %v20093_v62 = vld [vmem:[%s22065_s21 + $0x580] ss:$16 sps:$4 sm:$0xff]  }
  0xe6   : > { %7025 = vmatpush2.bf16.msra.mxu1 %v20020_v1  ;;  %6983 = vmatprep.subr.bf16.mxu0 %v20021_v2  ;;  %v20098_v61 = vld [vmem:[%s22065_s21 + $0x784] ss:$16 sps:$4 sm:$0xff]   ;;  %v20096_v63 = vld [vmem:[%s22065_s21 + $0x780] ss:$16 sps:$4 sm:$0xff]  }
  0xe7   : > { %7026 = vmatprep.subr.bf16.mxu1 %v20023_v3  ;;  %v20101_v0 = vld [vmem:[%s22065_s21 + $0x564] ss:$16 sps:$4 sm:$0xff]   ;;  %v20099_v2 = vld [vmem:[%s22065_s21 + $0x560] ss:$16 sps:$4 sm:$0xff]  }
  0xe8   : > { %v20104_v1 = vld [vmem:[%s22065_s21 + $0x764] ss:$16 sps:$4 sm:$0xff]   ;;  %v20102_v3 = vld [vmem:[%s22065_s21 + $0x760] ss:$16 sps:$4 sm:$0xff]  }
  0xe9   : > { %6984 = vmatpush2.bf16.msra.mxu0 %v20025_v4  ;;  %v20107_v4 = vld [vmem:[%s22065_s21 + $0x544] ss:$16 sps:$4 sm:$0xff]  }
  0xea   : > { %7027 = vmatpush2.bf16.msra.mxu1 %v20026_v5  ;;  %7039 = vmatprep.subr.bf16.mxu0 %v20029_v6  ;;  %v20110_v5 = vld [vmem:[%s22065_s21 + $0x744] ss:$16 sps:$4 sm:$0xff]   ;;  %v20105_v6 = vld [vmem:[%s22065_s21 + $0x540] ss:$16 sps:$4 sm:$0xff]  }
  0xeb   : > { %7082 = vmatprep.subr.bf16.mxu1 %v20032_v7  ;;  %v20108_v7 = vld [vmem:[%s22065_s21 + $0x740] ss:$16 sps:$4 sm:$0xff]  }
  0xec   : > { %6986 = vmatmul.mubr.bf16.vlgmr.msra.gmra.mxu0 %v22171_v8 }
  0xed   : > { %7029 = vmatmul.mubr.bf16.vlgmr.msra.gmra.mxu1 %v22173_v9  ;;  %7040 = vmatpush1.bf16.msra.mxu0 %v20027_v10  ;;  %v20113_v10 = vld [vmem:[%s22065_s21 + $0x524] ss:$16 sps:$4 sm:$0xff]  }
  0xee   : > { %7083 = vmatpush1.bf16.msra.mxu1 %v20030_v11  ;;  %7041 = vmatprep.subr.bf16.mxu0 %v20035_v12  ;;  %v20116_v11 = vld [vmem:[%s22065_s21 + $0x724] ss:$16 sps:$4 sm:$0xff]   ;;  %v20111_v12 = vld [vmem:[%s22065_s21 + $0x520] ss:$16 sps:$4 sm:$0xff]  }
  0xef   : > { %7084 = vmatprep.subr.bf16.mxu1 %v20038_v13  ;;  %7071 = vmatprep.mubr.bf16.mxu0 %v22226_v41  ;;  %v20114_v13 = vld [vmem:[%s22065_s21 + $0x720] ss:$16 sps:$4 sm:$0xff]  }
  0xf0   : > { %7114 = vmatprep.mubr.bf16.mxu1 %v22231_v43 }
  0xf1   : > { %7042 = vmatpush1.bf16.msra.mxu0 %v20033_v14  ;;  %v20119_v14 = vld [vmem:[%s22065_s21 + $0x504] ss:$16 sps:$4 sm:$0xff]  }
  0xf2   : > { %7085 = vmatpush1.bf16.msra.mxu1 %v20036_v15  ;;  %7043 = vmatprep.subr.bf16.mxu0 %v20041_v16  ;;  %v20122_v15 = vld [vmem:[%s22065_s21 + $0x704] ss:$16 sps:$4 sm:$0xff]   ;;  %v20117_v16 = vld [vmem:[%s22065_s21 + $0x500] ss:$16 sps:$4 sm:$0xff]  }
  0xf3   : > { %7086 = vmatprep.subr.bf16.mxu1 %v20044_v17  ;;  %v20120_v17 = vld [vmem:[%s22065_s21 + $0x700] ss:$16 sps:$4 sm:$0xff]  }
  0xf5   : > { %7044 = vmatpush1.bf16.msra.mxu0 %v20039_v18  ;;  %v20125_v18 = vld [vmem:[%s22065_s21 + $0x8e4] ss:$16 sps:$4 sm:$0xff]  }
  0xf6   : > { %7087 = vmatpush1.bf16.msra.mxu1 %v20042_v19  ;;  %7045 = vmatprep.subr.bf16.mxu0 %v20047_v20  ;;  %v20128_v19 = vld [vmem:[%s22065_s21 + $0xae4] ss:$16 sps:$4 sm:$0xff]   ;;  %v22273_v20 = vcombine.low %v22206_v36, %v22211_v37  ;;  %v20135_v36 = vld [vmem:[%s22065_s21 + $0x8a0] ss:$16 sps:$4 sm:$0xff]  }
  0xf7   : > { %7088 = vmatprep.subr.bf16.mxu1 %v20050_v21  ;;  %v22277_v21 = vcombine.low %v22216_v38, %v22221_v39  ;;  %v20138_v37 = vld [vmem:[%s22065_s21 + $0xaa0] ss:$16 sps:$4 sm:$0xff]   ;;  %v20143_v38 = vld [vmem:[%s22065_s21 + $0x884] ss:$16 sps:$4 sm:$0xff]  }
  0xf8   : > { %v20146_v39 = vld [vmem:[%s22065_s21 + $0xa84] ss:$16 sps:$4 sm:$0xff]  }
  0xf9   : > { %7046 = vmatpush1.bf16.msra.mxu0 %v20045_v22  ;;  %v20123_v22 = vld [vmem:[%s22065_s21 + $0x8e0] ss:$16 sps:$4 sm:$0xff]  }
  0xfa   : > { %7089 = vmatpush1.bf16.msra.mxu1 %v20048_v23  ;;  %7047 = vmatprep.subr.bf16.mxu0 %v20053_v24  ;;  %v20126_v23 = vld [vmem:[%s22065_s21 + $0xae0] ss:$16 sps:$4 sm:$0xff]   ;;  %v20131_v24 = vld [vmem:[%s22065_s21 + $0x8c4] ss:$16 sps:$4 sm:$0xff]  }
  0xfb   : > { %7090 = vmatprep.subr.bf16.mxu1 %v20056_v25  ;;  %v20134_v25 = vld [vmem:[%s22065_s21 + $0xac4] ss:$16 sps:$4 sm:$0xff]  }
  0xfd   : > { %7048 = vmatpush1.bf16.msra.mxu0 %v20051_v26  ;;  %v20129_v26 = vld [vmem:[%s22065_s21 + $0x8c0] ss:$16 sps:$4 sm:$0xff]  }
  0xfe   : > { %7091 = vmatpush1.bf16.msra.mxu1 %v20054_v27  ;;  %7049 = vmatprep.subr.bf16.mxu0 %v20059_v28  ;;  %v20132_v27 = vld [vmem:[%s22065_s21 + $0xac0] ss:$16 sps:$4 sm:$0xff]  }
  0xff   : > { %7092 = vmatprep.subr.bf16.mxu1 %v20062_v29  ;;  %v22288_v28 = vld [vmem:[%s24069_s0 + $0x20] sm:$0xff] }
 0x100   : > { %v22295_v29 = vld [vmem:[%s24069_s0 + $0xa0] sm:$0xff] }
 0x101   : > { %7050 = vmatpush1.bf16.msra.mxu0 %v20057_v30  ;;  %v22300_v30 = vld [vmem:[%s24069_s0 + $0x28] sm:$0xff] }
 0x102   : > { %7093 = vmatpush1.bf16.msra.mxu1 %v20060_v31  ;;  %7051 = vmatprep.subr.bf16.mxu0 %v20065_v32  ;;  %v22305_v31 = vld [vmem:[%s24069_s0 + $0xa8] sm:$0xff]  ;;  %v20137_v32 = vld [vmem:[%s22065_s21 + $0x8a4] ss:$16 sps:$4 sm:$0xff]  }
 0x103   : > { %7094 = vmatprep.subr.bf16.mxu1 %v20068_v33  ;;  %v22310_v33 = vcombine.high %v22288_v28, %v22295_v29 }
 0x105   : > { %7052 = vmatpush1.bf16.msra.mxu0 %v20063_v34  ;;  %v20140_v34 = vld [vmem:[%s22065_s21 + $0xaa4] ss:$16 sps:$4 sm:$0xff]  }
 0x106   : > { %7095 = vmatpush1.bf16.msra.mxu1 %v20066_v35  ;;  %7053 = vmatprep.subr.bf16.mxu0 %v20071_v40  ;;  %v22315_v35 = vcombine.high %v22300_v30, %v22305_v31  ;;  %v20141_v40 = vld [vmem:[%s22065_s21 + $0x880] ss:$16 sps:$4 sm:$0xff]  }
 0x107   : > { %7096 = vmatprep.subr.bf16.mxu1 %v20074_v42  ;;  %v20144_v42 = vld [vmem:[%s22065_s21 + $0xa80] ss:$16 sps:$4 sm:$0xff]  }
 0x109   : > { %7054 = vmatpush1.bf16.msra.mxu0 %v20069_v44  ;;  %v20149_v44 = vld [vmem:[%s22065_s21 + $0x864] ss:$16 sps:$4 sm:$0xff]  }
 0x10a   : > { %7097 = vmatpush1.bf16.msra.mxu1 %v20072_v45  ;;  %7055 = vmatprep.subr.bf16.mxu0 %v20077_v46  ;;  %v20152_v45 = vld [vmem:[%s22065_s21 + $0xa64] ss:$16 sps:$4 sm:$0xff]   ;;  %v20147_v46 = vld [vmem:[%s22065_s21 + $0x860] ss:$16 sps:$4 sm:$0xff]  }
 0x10b   : > { %7098 = vmatprep.subr.bf16.mxu1 %v20080_v47  ;;  %v20150_v47 = vld [vmem:[%s22065_s21 + $0xa60] ss:$16 sps:$4 sm:$0xff]  }
 0x10d   : > { %7056 = vmatpush2.bf16.msra.mxu0 %v20075_v48  ;;  %v20155_v48 = vld [vmem:[%s22065_s21 + $0x844] ss:$16 sps:$4 sm:$0xff]  }
 0x10e   : > { %7099 = vmatpush2.bf16.msra.mxu1 %v20078_v49  ;;  %7057 = vmatprep.subr.bf16.mxu0 %v20083_v50  ;;  %v20158_v49 = vld [vmem:[%s22065_s21 + $0xa44] ss:$16 sps:$4 sm:$0xff]   ;;  %v20153_v50 = vld [vmem:[%s22065_s21 + $0x840] ss:$16 sps:$4 sm:$0xff]  }
 0x10f   : > { %7100 = vmatprep.subr.bf16.mxu1 %v20086_v51  ;;  %v20156_v51 = vld [vmem:[%s22065_s21 + $0xa40] ss:$16 sps:$4 sm:$0xff]  }
 0x111   : > { %7058 = vmatpush2.bf16.msra.mxu0 %v20081_v52  ;;  %v20161_v52 = vld [vmem:[%s22065_s21 + $0x824] ss:$16 sps:$4 sm:$0xff]  }
 0x112   : > { %7101 = vmatpush2.bf16.msra.mxu1 %v20084_v54  ;;  %7059 = vmatprep.subr.bf16.mxu0 %v20089_v56  ;;  %v20164_v54 = vld [vmem:[%s22065_s21 + $0xa24] ss:$16 sps:$4 sm:$0xff]   ;;  %v20159_v56 = vld [vmem:[%s22065_s21 + $0x820] ss:$16 sps:$4 sm:$0xff]  }
 0x113   : > { %7102 = vmatprep.subr.bf16.mxu1 %v20092_v57  ;;  %v20162_v57 = vld [vmem:[%s22065_s21 + $0xa20] ss:$16 sps:$4 sm:$0xff]  }
 0x115   : > { %7060 = vmatpush2.bf16.msra.mxu0 %v20087_v58  ;;  %v20167_v58 = vld [vmem:[%s22065_s21 + $0x804] ss:$16 sps:$4 sm:$0xff]  }
 0x116   : > { %7103 = vmatpush2.bf16.msra.mxu1 %v20090_v59  ;;  %7061 = vmatprep.subr.bf16.mxu0 %v20095_v60  ;;  %v20170_v59 = vld [vmem:[%s22065_s21 + $0xa04] ss:$16 sps:$4 sm:$0xff]   ;;  %v20165_v60 = vld [vmem:[%s22065_s21 + $0x800] ss:$16 sps:$4 sm:$0xff]  }
 0x117   : > { %7104 = vmatprep.subr.bf16.mxu1 %v20098_v61  ;;  %v20168_v61 = vld [vmem:[%s22065_s21 + $0xa00] ss:$16 sps:$4 sm:$0xff]  }
 0x119   : > { %7062 = vmatpush2.bf16.msra.mxu0 %v20093_v62  ;;  %v20173_v62 = vld [vmem:[%s22065_s21 + $0x9e4] ss:$16 sps:$4 sm:$0xff]  }
 0x11a   : > { %7105 = vmatpush2.bf16.msra.mxu1 %v20096_v63  ;;  %7063 = vmatprep.subr.bf16.mxu0 %v20101_v0  ;;  %v20176_v63 = vld [vmem:[%s22065_s21 + $0xbe4] ss:$16 sps:$4 sm:$0xff]   ;;  %v20171_v0 = vld [vmem:[%s22065_s21 + $0x9e0] ss:$16 sps:$4 sm:$0xff]  }
 0x11b   : > { %7106 = vmatprep.subr.bf16.mxu1 %v20104_v1  ;;  %v20174_v1 = vld [vmem:[%s22065_s21 + $0xbe0] ss:$16 sps:$4 sm:$0xff]  }
 0x11d   : > { %7064 = vmatpush2.bf16.msra.mxu0 %v20099_v2  ;;  %v20179_v2 = vld [vmem:[%s22065_s21 + $0x9c4] ss:$16 sps:$4 sm:$0xff]  }
 0x11e   : > { %7107 = vmatpush2.bf16.msra.mxu1 %v20102_v3  ;;  %7065 = vmatprep.subr.bf16.mxu0 %v20107_v4  ;;  %v20182_v3 = vld [vmem:[%s22065_s21 + $0xbc4] ss:$16 sps:$4 sm:$0xff]   ;;  %v20177_v4 = vld [vmem:[%s22065_s21 + $0x9c0] ss:$16 sps:$4 sm:$0xff]  }
 0x11f   : > { %7108 = vmatprep.subr.bf16.mxu1 %v20110_v5  ;;  %v20180_v5 = vld [vmem:[%s22065_s21 + $0xbc0] ss:$16 sps:$4 sm:$0xff]  }
 0x121   : > { %7066 = vmatpush2.bf16.msra.mxu0 %v20105_v6  ;;  %v20185_v6 = vld [vmem:[%s22065_s21 + $0x9a4] ss:$16 sps:$4 sm:$0xff]  }
 0x122   : > { %7109 = vmatpush2.bf16.msra.mxu1 %v20108_v7  ;;  %7067 = vmatprep.subr.bf16.mxu0 %v20113_v10  ;;  %v20188_v7 = vld [vmem:[%s22065_s21 + $0xba4] ss:$16 sps:$4 sm:$0xff]   ;;  %v20183_v10 = vld [vmem:[%s22065_s21 + $0x9a0] ss:$16 sps:$4 sm:$0xff]  }
 0x123   : > { %7110 = vmatprep.subr.bf16.mxu1 %v20116_v11  ;;  %v20186_v11 = vld [vmem:[%s22065_s21 + $0xba0] ss:$16 sps:$4 sm:$0xff]  }
 0x125   : > { %7068 = vmatpush2.bf16.msra.mxu0 %v20111_v12  ;;  %v20191_v12 = vld [vmem:[%s22065_s21 + $0x984] ss:$16 sps:$4 sm:$0xff]  }
 0x126   : > { %7111 = vmatpush2.bf16.msra.mxu1 %v20114_v13  ;;  %7069 = vmatprep.subr.bf16.mxu0 %v20119_v14  ;;  %v20194_v13 = vld [vmem:[%s22065_s21 + $0xb84] ss:$16 sps:$4 sm:$0xff]   ;;  %v20189_v14 = vld [vmem:[%s22065_s21 + $0x980] ss:$16 sps:$4 sm:$0xff]  }
 0x127   : > { %7112 = vmatprep.subr.bf16.mxu1 %v20122_v15  ;;  %v20192_v15 = vld [vmem:[%s22065_s21 + $0xb80] ss:$16 sps:$4 sm:$0xff]  }
 0x129   : > { %7070 = vmatpush2.bf16.msra.mxu0 %v20117_v16  ;;  %v20197_v16 = vld [vmem:[%s22065_s21 + $0x964] ss:$16 sps:$4 sm:$0xff]  }
 0x12a   : > { %7113 = vmatpush2.bf16.msra.mxu1 %v20120_v17  ;;  %7125 = vmatprep.subr.bf16.mxu0 %v20125_v18  ;;  %v20200_v17 = vld [vmem:[%s22065_s21 + $0xb64] ss:$16 sps:$4 sm:$0xff]   ;;  %v20195_v18 = vld [vmem:[%s22065_s21 + $0x960] ss:$16 sps:$4 sm:$0xff]  }
 0x12b   : > { %7168 = vmatprep.subr.bf16.mxu1 %v20128_v19  ;;  %v20198_v19 = vld [vmem:[%s22065_s21 + $0xb60] ss:$16 sps:$4 sm:$0xff]  }
 0x12c   : > { %7072 = vmatmul.mubr.bf16.vlgmr.msra.gmra.mxu0 %v22273_v20 }
 0x12d   : > { %7115 = vmatmul.mubr.bf16.vlgmr.msra.gmra.mxu1 %v22277_v21  ;;  %7126 = vmatpush1.bf16.msra.mxu0 %v20123_v22  ;;  %v20203_v22 = vld [vmem:[%s22065_s21 + $0x944] ss:$16 sps:$4 sm:$0xff]  }
 0x12e   : > { %7169 = vmatpush1.bf16.msra.mxu1 %v20126_v23  ;;  %7127 = vmatprep.subr.bf16.mxu0 %v20131_v24  ;;  %v20206_v23 = vld [vmem:[%s22065_s21 + $0xb44] ss:$16 sps:$4 sm:$0xff]   ;;  %v20201_v24 = vld [vmem:[%s22065_s21 + $0x940] ss:$16 sps:$4 sm:$0xff]  }
 0x12f   : > { %7170 = vmatprep.subr.bf16.mxu1 %v20134_v25  ;;  %7157 = vmatprep.mubr.bf16.mxu0 %v22310_v33  ;;  %v20204_v25 = vld [vmem:[%s22065_s21 + $0xb40] ss:$16 sps:$4 sm:$0xff]  }
 0x130   : > { %7200 = vmatprep.mubr.bf16.mxu1 %v22315_v35 }
 0x131   : > { %7128 = vmatpush1.bf16.msra.mxu0 %v20129_v26  ;;  %v20209_v26 = vld [vmem:[%s22065_s21 + $0x924] ss:$16 sps:$4 sm:$0xff]  }
 0x132   : > { %7171 = vmatpush1.bf16.msra.mxu1 %v20132_v27  ;;  %7129 = vmatprep.subr.bf16.mxu0 %v20137_v32  ;;  %v20212_v27 = vld [vmem:[%s22065_s21 + $0xb24] ss:$16 sps:$4 sm:$0xff]   ;;  %v20207_v32 = vld [vmem:[%s22065_s21 + $0x920] ss:$16 sps:$4 sm:$0xff]  }
 0x133   : > { %7172 = vmatprep.subr.bf16.mxu1 %v20140_v34  ;;  %v20210_v34 = vld [vmem:[%s22065_s21 + $0xb20] ss:$16 sps:$4 sm:$0xff]  }
 0x135   : > { %7130 = vmatpush1.bf16.msra.mxu0 %v20135_v36  ;;  %v20215_v36 = vld [vmem:[%s22065_s21 + $0x904] ss:$16 sps:$4 sm:$0xff]  }
 0x136   : > { %7173 = vmatpush1.bf16.msra.mxu1 %v20138_v37  ;;  %7131 = vmatprep.subr.bf16.mxu0 %v20143_v38  ;;  %v20218_v37 = vld [vmem:[%s22065_s21 + $0xb04] ss:$16 sps:$4 sm:$0xff]   ;;  %v20213_v38 = vld [vmem:[%s22065_s21 + $0x900] ss:$16 sps:$4 sm:$0xff]  }
 0x137   : > { %7174 = vmatprep.subr.bf16.mxu1 %v20146_v39  ;;  %v20216_v39 = vld [vmem:[%s22065_s21 + $0xb00] ss:$16 sps:$4 sm:$0xff]  }
 0x139   : > { %7132 = vmatpush1.bf16.msra.mxu0 %v20141_v40  ;;  %v20221_v40 = vld [vmem:[%s22065_s21 + $0xce4] ss:$16 sps:$4 sm:$0xff]  }
 0x13a   : > { %7175 = vmatpush1.bf16.msra.mxu1 %v20144_v42  ;;  %7133 = vmatprep.subr.bf16.mxu0 %v20149_v44  ;;  %v20224_v42 = vld [vmem:[%s22065_s21 + $0xee4] ss:$16 sps:$4 sm:$0xff]   ;;  %v20219_v44 = vld [vmem:[%s22065_s21 + $0xce0] ss:$16 sps:$4 sm:$0xff]  }
 0x13b   : > { %7176 = vmatprep.subr.bf16.mxu1 %v20152_v45  ;;  %v20222_v45 = vld [vmem:[%s22065_s21 + $0xee0] ss:$16 sps:$4 sm:$0xff]  }
 0x13d   : > { %7134 = vmatpush1.bf16.msra.mxu0 %v20147_v46  ;;  %v22380_v46 = vld [vmem:[%s24069_s0 + $0x30] sm:$0xff] }
 0x13e   : > { %7177 = vmatpush1.bf16.msra.mxu1 %v20150_v47  ;;  %7135 = vmatprep.subr.bf16.mxu0 %v20155_v48  ;;  %v22385_v47 = vld [vmem:[%s24069_s0 + $0xb0] sm:$0xff]  ;;  %v22389_v48 = vcombine.low %v22288_v28, %v22295_v29 }
 0x13f   : > { %7178 = vmatprep.subr.bf16.mxu1 %v20158_v49  ;;  %v22393_v49 = vcombine.low %v22300_v30, %v22305_v31  ;;  %v20227_v28 = vld [vmem:[%s22065_s21 + $0xcc4] ss:$16 sps:$4 sm:$0xff]   ;;  %v22409_v30 = vcombine.high %v22380_v46, %v22385_v47 }
 0x140   : > { %v20230_v29 = vld [vmem:[%s22065_s21 + $0xec4] ss:$16 sps:$4 sm:$0xff]  }
 0x141   : > { %7136 = vmatpush1.bf16.msra.mxu0 %v20153_v50  ;;  %v22398_v50 = vld [vmem:[%s24069_s0 + $0x38] sm:$0xff] }
 0x142   : > { %7179 = vmatpush1.bf16.msra.mxu1 %v20156_v51  ;;  %7137 = vmatprep.subr.bf16.mxu0 %v20161_v52  ;;  %v22403_v51 = vld [vmem:[%s24069_s0 + $0xb8] sm:$0xff]  ;;  %v20225_v52 = vld [vmem:[%s22065_s21 + $0xcc0] ss:$16 sps:$4 sm:$0xff]  }
 0x143   : > { %7180 = vmatprep.subr.bf16.mxu1 %v20164_v54  ;;  %v22413_v31 = vcombine.high %v22398_v50, %v22403_v51  ;;  %v20228_v54 = vld [vmem:[%s22065_s21 + $0xec0] ss:$16 sps:$4 sm:$0xff]  }
 0x145   : > { %7138 = vmatpush1.bf16.msra.mxu0 %v20159_v56  ;;  %v20233_v56 = vld [vmem:[%s22065_s21 + $0xca4] ss:$16 sps:$4 sm:$0xff]  }
 0x146   : > { %7181 = vmatpush1.bf16.msra.mxu1 %v20162_v57  ;;  %7139 = vmatprep.subr.bf16.mxu0 %v20167_v58  ;;  %v20236_v57 = vld [vmem:[%s22065_s21 + $0xea4] ss:$16 sps:$4 sm:$0xff]   ;;  %v20231_v58 = vld [vmem:[%s22065_s21 + $0xca0] ss:$16 sps:$4 sm:$0xff]  }
 0x147   : > { %7182 = vmatprep.subr.bf16.mxu1 %v20170_v59  ;;  %v20234_v59 = vld [vmem:[%s22065_s21 + $0xea0] ss:$16 sps:$4 sm:$0xff]  }
 0x149   : > { %7140 = vmatpush1.bf16.msra.mxu0 %v20165_v60  ;;  %v20239_v60 = vld [vmem:[%s22065_s21 + $0xc84] ss:$16 sps:$4 sm:$0xff]  }
 0x14a   : > { %7183 = vmatpush1.bf16.msra.mxu1 %v20168_v61  ;;  %7141 = vmatprep.subr.bf16.mxu0 %v20173_v62  ;;  %v20242_v61 = vld [vmem:[%s22065_s21 + $0xe84] ss:$16 sps:$4 sm:$0xff]   ;;  %v20237_v62 = vld [vmem:[%s22065_s21 + $0xc80] ss:$16 sps:$4 sm:$0xff]  }
 0x14b   : > { %7184 = vmatprep.subr.bf16.mxu1 %v20176_v63  ;;  %v20240_v63 = vld [vmem:[%s22065_s21 + $0xe80] ss:$16 sps:$4 sm:$0xff]  }
 0x14d   : > { %7142 = vmatpush2.bf16.msra.mxu0 %v20171_v0  ;;  %v20245_v0 = vld [vmem:[%s22065_s21 + $0xc64] ss:$16 sps:$4 sm:$0xff]  }
 0x14e   : > { %7185 = vmatpush2.bf16.msra.mxu1 %v20174_v1  ;;  %7143 = vmatprep.subr.bf16.mxu0 %v20179_v2  ;;  %v20248_v1 = vld [vmem:[%s22065_s21 + $0xe64] ss:$16 sps:$4 sm:$0xff]   ;;  %v20243_v2 = vld [vmem:[%s22065_s21 + $0xc60] ss:$16 sps:$4 sm:$0xff]  }
 0x14f   : > { %7186 = vmatprep.subr.bf16.mxu1 %v20182_v3  ;;  %v20246_v3 = vld [vmem:[%s22065_s21 + $0xe60] ss:$16 sps:$4 sm:$0xff]  }
 0x151   : > { %7144 = vmatpush2.bf16.msra.mxu0 %v20177_v4  ;;  %v20251_v4 = vld [vmem:[%s22065_s21 + $0xc44] ss:$16 sps:$4 sm:$0xff]  }
 0x152   : > { %7187 = vmatpush2.bf16.msra.mxu1 %v20180_v5  ;;  %7145 = vmatprep.subr.bf16.mxu0 %v20185_v6  ;;  %v20254_v5 = vld [vmem:[%s22065_s21 + $0xe44] ss:$16 sps:$4 sm:$0xff]   ;;  %v20249_v6 = vld [vmem:[%s22065_s21 + $0xc40] ss:$16 sps:$4 sm:$0xff]  }
 0x153   : > { %7188 = vmatprep.subr.bf16.mxu1 %v20188_v7  ;;  %v20252_v7 = vld [vmem:[%s22065_s21 + $0xe40] ss:$16 sps:$4 sm:$0xff]  }
 0x155   : > { %7146 = vmatpush2.bf16.msra.mxu0 %v20183_v10  ;;  %v20257_v10 = vld [vmem:[%s22065_s21 + $0xc24] ss:$16 sps:$4 sm:$0xff]  }
 0x156   : > { %7189 = vmatpush2.bf16.msra.mxu1 %v20186_v11  ;;  %7147 = vmatprep.subr.bf16.mxu0 %v20191_v12  ;;  %v20260_v11 = vld [vmem:[%s22065_s21 + $0xe24] ss:$16 sps:$4 sm:$0xff]   ;;  %v20255_v12 = vld [vmem:[%s22065_s21 + $0xc20] ss:$16 sps:$4 sm:$0xff]  }
 0x157   : > { %7190 = vmatprep.subr.bf16.mxu1 %v20194_v13  ;;  %v20258_v13 = vld [vmem:[%s22065_s21 + $0xe20] ss:$16 sps:$4 sm:$0xff]  }
 0x159   : > { %7148 = vmatpush2.bf16.msra.mxu0 %v20189_v14  ;;  %v20263_v14 = vld [vmem:[%s22065_s21 + $0xc04] ss:$16 sps:$4 sm:$0xff]  }
 0x15a   : > { %7191 = vmatpush2.bf16.msra.mxu1 %v20192_v15  ;;  %7149 = vmatprep.subr.bf16.mxu0 %v20197_v16  ;;  %v20266_v15 = vld [vmem:[%s22065_s21 + $0xe04] ss:$16 sps:$4 sm:$0xff]   ;;  %v20261_v16 = vld [vmem:[%s22065_s21 + $0xc00] ss:$16 sps:$4 sm:$0xff]  }
 0x15b   : > { %7192 = vmatprep.subr.bf16.mxu1 %v20200_v17  ;;  %v20264_v17 = vld [vmem:[%s22065_s21 + $0xe00] ss:$16 sps:$4 sm:$0xff]  }
 0x15d   : > { %7150 = vmatpush2.bf16.msra.mxu0 %v20195_v18  ;;  %v20269_v18 = vld [vmem:[%s22065_s21 + $0xde4] ss:$16 sps:$4 sm:$0xff]  }
 0x15e   : > { %7193 = vmatpush2.bf16.msra.mxu1 %v20198_v19  ;;  %7151 = vmatprep.subr.bf16.mxu0 %v20203_v22  ;;  %v20272_v19 = vld [vmem:[%s22065_s21 + $0xfe4] ss:$16 sps:$4 sm:$0xff]   ;;  %v20267_v22 = vld [vmem:[%s22065_s21 + $0xde0] ss:$16 sps:$4 sm:$0xff]  }
 0x15f   : > { %7194 = vmatprep.subr.bf16.mxu1 %v20206_v23  ;;  %v20270_v23 = vld [vmem:[%s22065_s21 + $0xfe0] ss:$16 sps:$4 sm:$0xff]  }
 0x161   : > { %7152 = vmatpush2.bf16.msra.mxu0 %v20201_v24  ;;  %v20275_v24 = vld [vmem:[%s22065_s21 + $0xdc4] ss:$16 sps:$4 sm:$0xff]  }
 0x162   : > { %7195 = vmatpush2.bf16.msra.mxu1 %v20204_v25  ;;  %7153 = vmatprep.subr.bf16.mxu0 %v20209_v26  ;;  %v20278_v25 = vld [vmem:[%s22065_s21 + $0xfc4] ss:$16 sps:$4 sm:$0xff]   ;;  %v20273_v26 = vld [vmem:[%s22065_s21 + $0xdc0] ss:$16 sps:$4 sm:$0xff]  }
 0x163   : > { %7196 = vmatprep.subr.bf16.mxu1 %v20212_v27  ;;  %v20276_v27 = vld [vmem:[%s22065_s21 + $0xfc0] ss:$16 sps:$4 sm:$0xff]  }
 0x165   : > { %7154 = vmatpush2.bf16.msra.mxu0 %v20207_v32  ;;  %v20281_v32 = vld [vmem:[%s22065_s21 + $0xda4] ss:$16 sps:$4 sm:$0xff]  }
 0x166   : > { %7197 = vmatpush2.bf16.msra.mxu1 %v20210_v34  ;;  %7155 = vmatprep.subr.bf16.mxu0 %v20215_v36  ;;  %v20284_v34 = vld [vmem:[%s22065_s21 + $0xfa4] ss:$16 sps:$4 sm:$0xff]   ;;  %v20279_v36 = vld [vmem:[%s22065_s21 + $0xda0] ss:$16 sps:$4 sm:$0xff]  }
 0x167   : > { %7198 = vmatprep.subr.bf16.mxu1 %v20218_v37  ;;  %v20282_v37 = vld [vmem:[%s22065_s21 + $0xfa0] ss:$16 sps:$4 sm:$0xff]  }
 0x169   : > { %7156 = vmatpush2.bf16.msra.mxu0 %v20213_v38  ;;  %v20287_v38 = vld [vmem:[%s22065_s21 + $0xd84] ss:$16 sps:$4 sm:$0xff]  }
 0x16a   : > { %7199 = vmatpush2.bf16.msra.mxu1 %v20216_v39  ;;  %7211 = vmatprep.subr.bf16.mxu0 %v20221_v40  ;;  %v20290_v39 = vld [vmem:[%s22065_s21 + $0xf84] ss:$16 sps:$4 sm:$0xff]   ;;  %v20285_v40 = vld [vmem:[%s22065_s21 + $0xd80] ss:$16 sps:$4 sm:$0xff]  }
 0x16b   : > { %7254 = vmatprep.subr.bf16.mxu1 %v20224_v42  ;;  %v20288_v42 = vld [vmem:[%s22065_s21 + $0xf80] ss:$16 sps:$4 sm:$0xff]  }
 0x16c   : > { %7158 = vmatmul.mubr.bf16.vlgmr.msra.gmra.mxu0 %v22389_v48 }
 0x16d   : > { %7201 = vmatmul.mubr.bf16.vlgmr.msra.gmra.mxu1 %v22393_v49  ;;  %7212 = vmatpush1.bf16.msra.mxu0 %v20219_v44  ;;  %v20293_v44 = vld [vmem:[%s22065_s21 + $0xd64] ss:$16 sps:$4 sm:$0xff]  }
 0x16e   : > { %7255 = vmatpush1.bf16.msra.mxu1 %v20222_v45  ;;  %7213 = vmatprep.subr.bf16.mxu0 %v20227_v28  ;;  %v20296_v45 = vld [vmem:[%s22065_s21 + $0xf64] ss:$16 sps:$4 sm:$0xff]   ;;  %v20291_v28 = vld [vmem:[%s22065_s21 + $0xd60] ss:$16 sps:$4 sm:$0xff]  }
 0x16f   : > { %7256 = vmatprep.subr.bf16.mxu1 %v20230_v29  ;;  %7243 = vmatprep.mubr.bf16.mxu0 %v22409_v30  ;;  %v20294_v29 = vld [vmem:[%s22065_s21 + $0xf60] ss:$16 sps:$4 sm:$0xff]  }
 0x170   : > { %7286 = vmatprep.mubr.bf16.mxu1 %v22413_v31 }
 0x171   : > { %7214 = vmatpush1.bf16.msra.mxu0 %v20225_v52  ;;  %v20299_v52 = vld [vmem:[%s22065_s21 + $0xd44] ss:$16 sps:$4 sm:$0xff]  }
 0x172   : > { %7257 = vmatpush1.bf16.msra.mxu1 %v20228_v54  ;;  %7215 = vmatprep.subr.bf16.mxu0 %v20233_v56  ;;  %v20302_v54 = vld [vmem:[%s22065_s21 + $0xf44] ss:$16 sps:$4 sm:$0xff]   ;;  %v20297_v56 = vld [vmem:[%s22065_s21 + $0xd40] ss:$16 sps:$4 sm:$0xff]  }
 0x173   : > { %7258 = vmatprep.subr.bf16.mxu1 %v20236_v57  ;;  %v20300_v57 = vld [vmem:[%s22065_s21 + $0xf40] ss:$16 sps:$4 sm:$0xff]  }
 0x175   : > { %7216 = vmatpush1.bf16.msra.mxu0 %v20231_v58  ;;  %v20305_v58 = vld [vmem:[%s22065_s21 + $0xd24] ss:$16 sps:$4 sm:$0xff]  }
 0x176   : > { %7259 = vmatpush1.bf16.msra.mxu1 %v20234_v59  ;;  %7217 = vmatprep.subr.bf16.mxu0 %v20239_v60  ;;  %v20308_v59 = vld [vmem:[%s22065_s21 + $0xf24] ss:$16 sps:$4 sm:$0xff]   ;;  %v20303_v60 = vld [vmem:[%s22065_s21 + $0xd20] ss:$16 sps:$4 sm:$0xff]  }
 0x177   : > { %7260 = vmatprep.subr.bf16.mxu1 %v20242_v61  ;;  %v20306_v61 = vld [vmem:[%s22065_s21 + $0xf20] ss:$16 sps:$4 sm:$0xff]  }
 0x179   : > { %7218 = vmatpush1.bf16.msra.mxu0 %v20237_v62  ;;  %v20311_v62 = vld [vmem:[%s22065_s21 + $0xd04] ss:$16 sps:$4 sm:$0xff]  }
 0x17a   : > { %7261 = vmatpush1.bf16.msra.mxu1 %v20240_v63  ;;  %7219 = vmatprep.subr.bf16.mxu0 %v20245_v0  ;;  %v20314_v63 = vld [vmem:[%s22065_s21 + $0xf04] ss:$16 sps:$4 sm:$0xff]   ;;  %v20309_v0 = vld [vmem:[%s22065_s21 + $0xd00] ss:$16 sps:$4 sm:$0xff]  }
 0x17b   : > { %7262 = vmatprep.subr.bf16.mxu1 %v20248_v1  ;;  %v20312_v1 = vld [vmem:[%s22065_s21 + $0xf00] ss:$16 sps:$4 sm:$0xff]  }
 0x17d   : > { %7220 = vmatpush1.bf16.msra.mxu0 %v20243_v2  ;;  %v20317_v2 = vld [vmem:[%s22065_s21 + $0x10e4] ss:$16 sps:$4 sm:$0xff]  }
 0x17e   : > { %7263 = vmatpush1.bf16.msra.mxu1 %v20246_v3  ;;  %7221 = vmatprep.subr.bf16.mxu0 %v20251_v4  ;;  %v20320_v3 = vld [vmem:[%s22065_s21 + $0x12e4] ss:$16 sps:$4 sm:$0xff]   ;;  %v20315_v4 = vld [vmem:[%s22065_s21 + $0x10e0] ss:$16 sps:$4 sm:$0xff]  }
 0x17f   : > { %7264 = vmatprep.subr.bf16.mxu1 %v20254_v5  ;;  %v20318_v5 = vld [vmem:[%s22065_s21 + $0x12e0] ss:$16 sps:$4 sm:$0xff]  }
 0x181   : > { %7222 = vmatpush1.bf16.msra.mxu0 %v20249_v6  ;;  %v22484_v6 = vld [vmem:[%s24069_s0 + $0x40] sm:$0xff] }
 0x182   : > { %7265 = vmatpush1.bf16.msra.mxu1 %v20252_v7  ;;  %7223 = vmatprep.subr.bf16.mxu0 %v20257_v10  ;;  %v22489_v7 = vld [vmem:[%s24069_s0 + $0xc0] sm:$0xff]  ;;  %v22493_v10 = vcombine.low %v22380_v46, %v22385_v47 }
 0x183   : > { %7266 = vmatprep.subr.bf16.mxu1 %v20260_v11  ;;  %v22497_v11 = vcombine.low %v22398_v50, %v22403_v51  ;;  %v20323_v46 = vld [vmem:[%s22065_s21 + $0x10c4] ss:$16 sps:$4 sm:$0xff]   ;;  %v22513_v50 = vcombine.high %v22484_v6, %v22489_v7 }
 0x184   : > { %v20326_v47 = vld [vmem:[%s22065_s21 + $0x12c4] ss:$16 sps:$4 sm:$0xff]  }
 0x185   : > { %7224 = vmatpush1.bf16.msra.mxu0 %v20255_v12  ;;  %v22502_v12 = vld [vmem:[%s24069_s0 + $0x48] sm:$0xff] }
 0x186   : > { %7267 = vmatpush1.bf16.msra.mxu1 %v20258_v13  ;;  %7225 = vmatprep.subr.bf16.mxu0 %v20263_v14  ;;  %v22507_v13 = vld [vmem:[%s24069_s0 + $0xc8] sm:$0xff]  ;;  %v20321_v14 = vld [vmem:[%s22065_s21 + $0x10c0] ss:$16 sps:$4 sm:$0xff]  }
 0x187   : > { %7268 = vmatprep.subr.bf16.mxu1 %v20266_v15  ;;  %v22517_v51 = vcombine.high %v22502_v12, %v22507_v13  ;;  %v20324_v15 = vld [vmem:[%s22065_s21 + $0x12c0] ss:$16 sps:$4 sm:$0xff]  }
 0x189   : > { %7226 = vmatpush1.bf16.msra.mxu0 %v20261_v16  ;;  %v20329_v16 = vld [vmem:[%s22065_s21 + $0x10a4] ss:$16 sps:$4 sm:$0xff]  }
 0x18a   : > { %7269 = vmatpush1.bf16.msra.mxu1 %v20264_v17  ;;  %7227 = vmatprep.subr.bf16.mxu0 %v20269_v18  ;;  %v20332_v17 = vld [vmem:[%s22065_s21 + $0x12a4] ss:$16 sps:$4 sm:$0xff]   ;;  %v20327_v18 = vld [vmem:[%s22065_s21 + $0x10a0] ss:$16 sps:$4 sm:$0xff]  }
 0x18b   : > { %7270 = vmatprep.subr.bf16.mxu1 %v20272_v19  ;;  %v20330_v19 = vld [vmem:[%s22065_s21 + $0x12a0] ss:$16 sps:$4 sm:$0xff]  }
 0x18d   : > { %7228 = vmatpush2.bf16.msra.mxu0 %v20267_v22  ;;  %v20335_v22 = vld [vmem:[%s22065_s21 + $0x1084] ss:$16 sps:$4 sm:$0xff]  }
 0x18e   : > { %7271 = vmatpush2.bf16.msra.mxu1 %v20270_v23  ;;  %7229 = vmatprep.subr.bf16.mxu0 %v20275_v24  ;;  %v20338_v23 = vld [vmem:[%s22065_s21 + $0x1284] ss:$16 sps:$4 sm:$0xff]   ;;  %v20333_v24 = vld [vmem:[%s22065_s21 + $0x1080] ss:$16 sps:$4 sm:$0xff]  }
 0x18f   : > { %7272 = vmatprep.subr.bf16.mxu1 %v20278_v25  ;;  %v20336_v25 = vld [vmem:[%s22065_s21 + $0x1280] ss:$16 sps:$4 sm:$0xff]  }
 0x191   : > { %7230 = vmatpush2.bf16.msra.mxu0 %v20273_v26  ;;  %v20341_v26 = vld [vmem:[%s22065_s21 + $0x1064] ss:$16 sps:$4 sm:$0xff]  }
 0x192   : > { %7273 = vmatpush2.bf16.msra.mxu1 %v20276_v27  ;;  %7231 = vmatprep.subr.bf16.mxu0 %v20281_v32  ;;  %v20344_v27 = vld [vmem:[%s22065_s21 + $0x1264] ss:$16 sps:$4 sm:$0xff]   ;;  %v20339_v32 = vld [vmem:[%s22065_s21 + $0x1060] ss:$16 sps:$4 sm:$0xff]  }
 0x193   : > { %7274 = vmatprep.subr.bf16.mxu1 %v20284_v34  ;;  %v20342_v34 = vld [vmem:[%s22065_s21 + $0x1260] ss:$16 sps:$4 sm:$0xff]  }
 0x195   : > { %7232 = vmatpush2.bf16.msra.mxu0 %v20279_v36  ;;  %v20347_v36 = vld [vmem:[%s22065_s21 + $0x1044] ss:$16 sps:$4 sm:$0xff]  }
 0x196   : > { %7275 = vmatpush2.bf16.msra.mxu1 %v20282_v37  ;;  %7233 = vmatprep.subr.bf16.mxu0 %v20287_v38  ;;  %v20350_v37 = vld [vmem:[%s22065_s21 + $0x1244] ss:$16 sps:$4 sm:$0xff]   ;;  %v20345_v38 = vld [vmem:[%s22065_s21 + $0x1040] ss:$16 sps:$4 sm:$0xff]  }
 0x197   : > { %7276 = vmatprep.subr.bf16.mxu1 %v20290_v39  ;;  %v20348_v39 = vld [vmem:[%s22065_s21 + $0x1240] ss:$16 sps:$4 sm:$0xff]  }
 0x199   : > { %7234 = vmatpush2.bf16.msra.mxu0 %v20285_v40  ;;  %v20353_v40 = vld [vmem:[%s22065_s21 + $0x1024] ss:$16 sps:$4 sm:$0xff]  }
 0x19a   : > { %7277 = vmatpush2.bf16.msra.mxu1 %v20288_v42  ;;  %7235 = vmatprep.subr.bf16.mxu0 %v20293_v44  ;;  %v20356_v42 = vld [vmem:[%s22065_s21 + $0x1224] ss:$16 sps:$4 sm:$0xff]   ;;  %v20351_v44 = vld [vmem:[%s22065_s21 + $0x1020] ss:$16 sps:$4 sm:$0xff]  }
 0x19b   : > { %7278 = vmatprep.subr.bf16.mxu1 %v20296_v45  ;;  %v20354_v45 = vld [vmem:[%s22065_s21 + $0x1220] ss:$16 sps:$4 sm:$0xff]  }
 0x19d   : > { %7236 = vmatpush2.bf16.msra.mxu0 %v20291_v28  ;;  %v20359_v28 = vld [vmem:[%s22065_s21 + $0x1004] ss:$16 sps:$4 sm:$0xff]  }
 0x19e   : > { %7279 = vmatpush2.bf16.msra.mxu1 %v20294_v29  ;;  %7237 = vmatprep.subr.bf16.mxu0 %v20299_v52  ;;  %v20362_v29 = vld [vmem:[%s22065_s21 + $0x1204] ss:$16 sps:$4 sm:$0xff]   ;;  %v20357_v52 = vld [vmem:[%s22065_s21 + $0x1000] ss:$16 sps:$4 sm:$0xff]  }
 0x19f   : > { %7280 = vmatprep.subr.bf16.mxu1 %v20302_v54  ;;  %v20360_v54 = vld [vmem:[%s22065_s21 + $0x1200] ss:$16 sps:$4 sm:$0xff]  }
 0x1a1   : > { %7238 = vmatpush2.bf16.msra.mxu0 %v20297_v56  ;;  %v20365_v56 = vld [vmem:[%s22065_s21 + $0x11e4] ss:$16 sps:$4 sm:$0xff]  }
 0x1a2   : > { %7281 = vmatpush2.bf16.msra.mxu1 %v20300_v57  ;;  %7239 = vmatprep.subr.bf16.mxu0 %v20305_v58  ;;  %v20368_v57 = vld [vmem:[%s22065_s21 + $0x13e4] ss:$16 sps:$4 sm:$0xff]   ;;  %v20363_v58 = vld [vmem:[%s22065_s21 + $0x11e0] ss:$16 sps:$4 sm:$0xff]  }
 0x1a3   : > { %7282 = vmatprep.subr.bf16.mxu1 %v20308_v59  ;;  %v20366_v59 = vld [vmem:[%s22065_s21 + $0x13e0] ss:$16 sps:$4 sm:$0xff]  }
 0x1a5   : > { %7240 = vmatpush2.bf16.msra.mxu0 %v20303_v60  ;;  %v20371_v60 = vld [vmem:[%s22065_s21 + $0x11c4] ss:$16 sps:$4 sm:$0xff]  }
 0x1a6   : > { %7283 = vmatpush2.bf16.msra.mxu1 %v20306_v61  ;;  %7241 = vmatprep.subr.bf16.mxu0 %v20311_v62  ;;  %v20374_v61 = vld [vmem:[%s22065_s21 + $0x13c4] ss:$16 sps:$4 sm:$0xff]   ;;  %v20369_v62 = vld [vmem:[%s22065_s21 + $0x11c0] ss:$16 sps:$4 sm:$0xff]  }
 0x1a7   : > { %7284 = vmatprep.subr.bf16.mxu1 %v20314_v63  ;;  %v20372_v63 = vld [vmem:[%s22065_s21 + $0x13c0] ss:$16 sps:$4 sm:$0xff]  }
 0x1a9   : > { %7242 = vmatpush2.bf16.msra.mxu0 %v20309_v0  ;;  %v20377_v0 = vld [vmem:[%s22065_s21 + $0x11a4] ss:$16 sps:$4 sm:$0xff]  }
 0x1aa   : > { %7285 = vmatpush2.bf16.msra.mxu1 %v20312_v1  ;;  %7297 = vmatprep.subr.bf16.mxu0 %v20317_v2  ;;  %v20380_v1 = vld [vmem:[%s22065_s21 + $0x13a4] ss:$16 sps:$4 sm:$0xff]   ;;  %v20375_v2 = vld [vmem:[%s22065_s21 + $0x11a0] ss:$16 sps:$4 sm:$0xff]  }
 0x1ab   : > { %7340 = vmatprep.subr.bf16.mxu1 %v20320_v3  ;;  %v20378_v3 = vld [vmem:[%s22065_s21 + $0x13a0] ss:$16 sps:$4 sm:$0xff]  }
 0x1ac   : > { %7244 = vmatmul.mubr.bf16.vlgmr.msra.gmra.mxu0 %v22493_v10 }
 0x1ad   : > { %7287 = vmatmul.mubr.bf16.vlgmr.msra.gmra.mxu1 %v22497_v11  ;;  %7298 = vmatpush1.bf16.msra.mxu0 %v20315_v4  ;;  %v20383_v4 = vld [vmem:[%s22065_s21 + $0x1184] ss:$16 sps:$4 sm:$0xff]  }
 0x1ae   : > { %7341 = vmatpush1.bf16.msra.mxu1 %v20318_v5  ;;  %7299 = vmatprep.subr.bf16.mxu0 %v20323_v46  ;;  %v20386_v5 = vld [vmem:[%s22065_s21 + $0x1384] ss:$16 sps:$4 sm:$0xff]   ;;  %v20381_v46 = vld [vmem:[%s22065_s21 + $0x1180] ss:$16 sps:$4 sm:$0xff]  }
 0x1af   : > { %7342 = vmatprep.subr.bf16.mxu1 %v20326_v47  ;;  %7329 = vmatprep.mubr.bf16.mxu0 %v22513_v50  ;;  %v20384_v47 = vld [vmem:[%s22065_s21 + $0x1380] ss:$16 sps:$4 sm:$0xff]  }
 0x1b0   : > { %7372 = vmatprep.mubr.bf16.mxu1 %v22517_v51 }
 0x1b1   : > { %7300 = vmatpush1.bf16.msra.mxu0 %v20321_v14  ;;  %v20389_v14 = vld [vmem:[%s22065_s21 + $0x1164] ss:$16 sps:$4 sm:$0xff]  }
 0x1b2   : > { %7343 = vmatpush1.bf16.msra.mxu1 %v20324_v15  ;;  %7301 = vmatprep.subr.bf16.mxu0 %v20329_v16  ;;  %v20392_v15 = vld [vmem:[%s22065_s21 + $0x1364] ss:$16 sps:$4 sm:$0xff]   ;;  %v20387_v16 = vld [vmem:[%s22065_s21 + $0x1160] ss:$16 sps:$4 sm:$0xff]  }
 0x1b3   : > { %7344 = vmatprep.subr.bf16.mxu1 %v20332_v17  ;;  %v20390_v17 = vld [vmem:[%s22065_s21 + $0x1360] ss:$16 sps:$4 sm:$0xff]  }
 0x1b5   : > { %7302 = vmatpush1.bf16.msra.mxu0 %v20327_v18  ;;  %v20395_v18 = vld [vmem:[%s22065_s21 + $0x1144] ss:$16 sps:$4 sm:$0xff]  }
 0x1b6   : > { %7345 = vmatpush1.bf16.msra.mxu1 %v20330_v19  ;;  %7303 = vmatprep.subr.bf16.mxu0 %v20335_v22  ;;  %v20398_v19 = vld [vmem:[%s22065_s21 + $0x1344] ss:$16 sps:$4 sm:$0xff]   ;;  %v20393_v22 = vld [vmem:[%s22065_s21 + $0x1140] ss:$16 sps:$4 sm:$0xff]  }
 0x1b7   : > { %7346 = vmatprep.subr.bf16.mxu1 %v20338_v23  ;;  %v20396_v23 = vld [vmem:[%s22065_s21 + $0x1340] ss:$16 sps:$4 sm:$0xff]  }
 0x1b9   : > { %7304 = vmatpush1.bf16.msra.mxu0 %v20333_v24  ;;  %v20401_v24 = vld [vmem:[%s22065_s21 + $0x1124] ss:$16 sps:$4 sm:$0xff]  }
 0x1ba   : > { %7347 = vmatpush1.bf16.msra.mxu1 %v20336_v25  ;;  %7305 = vmatprep.subr.bf16.mxu0 %v20341_v26  ;;  %v20404_v25 = vld [vmem:[%s22065_s21 + $0x1324] ss:$16 sps:$4 sm:$0xff]   ;;  %v20399_v26 = vld [vmem:[%s22065_s21 + $0x1120] ss:$16 sps:$4 sm:$0xff]  }
 0x1bb   : > { %7348 = vmatprep.subr.bf16.mxu1 %v20344_v27  ;;  %v20402_v27 = vld [vmem:[%s22065_s21 + $0x1320] ss:$16 sps:$4 sm:$0xff]  }
 0x1bd   : > { %7306 = vmatpush1.bf16.msra.mxu0 %v20339_v32  ;;  %v20407_v32 = vld [vmem:[%s22065_s21 + $0x1104] ss:$16 sps:$4 sm:$0xff]  }
 0x1be   : > { %7349 = vmatpush1.bf16.msra.mxu1 %v20342_v34  ;;  %7307 = vmatprep.subr.bf16.mxu0 %v20347_v36  ;;  %v20410_v34 = vld [vmem:[%s22065_s21 + $0x1304] ss:$16 sps:$4 sm:$0xff]   ;;  %v20405_v36 = vld [vmem:[%s22065_s21 + $0x1100] ss:$16 sps:$4 sm:$0xff]  }
 0x1bf   : > { %7350 = vmatprep.subr.bf16.mxu1 %v20350_v37  ;;  %v20408_v37 = vld [vmem:[%s22065_s21 + $0x1300] ss:$16 sps:$4 sm:$0xff]  }
 0x1c1   : > { %7308 = vmatpush1.bf16.msra.mxu0 %v20345_v38  ;;  %v20413_v38 = vld [vmem:[%s22065_s21 + $0x14e4] ss:$16 sps:$4 sm:$0xff]  }
 0x1c2   : > { %7351 = vmatpush1.bf16.msra.mxu1 %v20348_v39  ;;  %7309 = vmatprep.subr.bf16.mxu0 %v20353_v40  ;;  %v20416_v39 = vld [vmem:[%s22065_s21 + $0x16e4] ss:$16 sps:$4 sm:$0xff]  }
 0x1c3   : > { %7352 = vmatprep.subr.bf16.mxu1 %v20356_v42  ;;  %v22586_v40 = vld [vmem:[%s24069_s0 + $0x50] sm:$0xff] }
 0x1c4   : > { %v20411_v42 = vld [vmem:[%s22065_s21 + $0x14e0] ss:$16 sps:$4 sm:$0xff]  }
 0x1c5   : > { %7310 = vmatpush1.bf16.msra.mxu0 %v20351_v44  ;;  %v22591_v44 = vcombine.low %v22484_v6, %v22489_v7  ;;  %v20414_v6 = vld [vmem:[%s22065_s21 + $0x16e0] ss:$16 sps:$4 sm:$0xff]   ;;  %v20419_v7 = vld [vmem:[%s22065_s21 + $0x14c4] ss:$16 sps:$4 sm:$0xff]  }
 0x1c6   : > { %7353 = vmatpush1.bf16.msra.mxu1 %v20354_v45  ;;  %7311 = vmatprep.subr.bf16.mxu0 %v20359_v28  ;;  %v22595_v45 = vcombine.low %v22502_v12, %v22507_v13  ;;  %v22600_v28 = vld [vmem:[%s24069_s0 + $0xd0] sm:$0xff] }
 0x1c7   : > { %7354 = vmatprep.subr.bf16.mxu1 %v20362_v29  ;;  %v22605_v29 = vld [vmem:[%s24069_s0 + $0x58] sm:$0xff]  ;;  %v20422_v12 = vld [vmem:[%s22065_s21 + $0x16c4] ss:$16 sps:$4 sm:$0xff]   ;;  %v20417_v13 = vld [vmem:[%s22065_s21 + $0x14c0] ss:$16 sps:$4 sm:$0xff]  }
 0x1c9   : > { %7312 = vmatpush1.bf16.msra.mxu0 %v20357_v52  ;;  %v22610_v52 = vld [vmem:[%s24069_s0 + $0xd8] sm:$0xff] }
 0x1ca   : > { %7355 = vmatpush1.bf16.msra.mxu1 %v20360_v54  ;;  %7313 = vmatprep.subr.bf16.mxu0 %v20365_v56  ;;  %v20420_v54 = vld [vmem:[%s22065_s21 + $0x16c0] ss:$16 sps:$4 sm:$0xff]   ;;  %v22619_v56 = vcombine.high %v22586_v40, %v22600_v28 }
 0x1cb   : > { %7356 = vmatprep.subr.bf16.mxu1 %v20368_v57  ;;  %v22623_v57 = vcombine.high %v22605_v29, %v22610_v52 }
 0x1cd   : > { %7314 = vmatpush2.bf16.msra.mxu0 %v20363_v58  ;;  %v20425_v58 = vld [vmem:[%s22065_s21 + $0x14a4] ss:$16 sps:$4 sm:$0xff]  }
 0x1ce   : > { %7357 = vmatpush2.bf16.msra.mxu1 %v20366_v59  ;;  %7315 = vmatprep.subr.bf16.mxu0 %v20371_v60  ;;  %v20428_v59 = vld [vmem:[%s22065_s21 + $0x16a4] ss:$16 sps:$4 sm:$0xff]   ;;  %v20423_v60 = vld [vmem:[%s22065_s21 + $0x14a0] ss:$16 sps:$4 sm:$0xff]  }
 0x1cf   : > { %7358 = vmatprep.subr.bf16.mxu1 %v20374_v61  ;;  %v20426_v61 = vld [vmem:[%s22065_s21 + $0x16a0] ss:$16 sps:$4 sm:$0xff]  }
 0x1d1   : > { %7316 = vmatpush2.bf16.msra.mxu0 %v20369_v62  ;;  %v20431_v62 = vld [vmem:[%s22065_s21 + $0x1484] ss:$16 sps:$4 sm:$0xff]  }
 0x1d2   : > { %7359 = vmatpush2.bf16.msra.mxu1 %v20372_v63  ;;  %7317 = vmatprep.subr.bf16.mxu0 %v20377_v0  ;;  %v20434_v63 = vld [vmem:[%s22065_s21 + $0x1684] ss:$16 sps:$4 sm:$0xff]   ;;  %v20429_v0 = vld [vmem:[%s22065_s21 + $0x1480] ss:$16 sps:$4 sm:$0xff]  }
 0x1d3   : > { %7360 = vmatprep.subr.bf16.mxu1 %v20380_v1  ;;  %v20432_v1 = vld [vmem:[%s22065_s21 + $0x1680] ss:$16 sps:$4 sm:$0xff]  }
 0x1d5   : > { %7318 = vmatpush2.bf16.msra.mxu0 %v20375_v2  ;;  %v20437_v2 = vld [vmem:[%s22065_s21 + $0x1464] ss:$16 sps:$4 sm:$0xff]  }
 0x1d6   : > { %7361 = vmatpush2.bf16.msra.mxu1 %v20378_v3  ;;  %7319 = vmatprep.subr.bf16.mxu0 %v20383_v4  ;;  %v20440_v3 = vld [vmem:[%s22065_s21 + $0x1664] ss:$16 sps:$4 sm:$0xff]   ;;  %v20435_v4 = vld [vmem:[%s22065_s21 + $0x1460] ss:$16 sps:$4 sm:$0xff]  }
 0x1d7   : > { %7362 = vmatprep.subr.bf16.mxu1 %v20386_v5  ;;  %v20438_v5 = vld [vmem:[%s22065_s21 + $0x1660] ss:$16 sps:$4 sm:$0xff]  }
 0x1d9   : > { %7320 = vmatpush2.bf16.msra.mxu0 %v20381_v46  ;;  %v20443_v46 = vld [vmem:[%s22065_s21 + $0x1444] ss:$16 sps:$4 sm:$0xff]  }
 0x1da   : > { %7363 = vmatpush2.bf16.msra.mxu1 %v20384_v47  ;;  %7321 = vmatprep.subr.bf16.mxu0 %v20389_v14  ;;  %v20446_v47 = vld [vmem:[%s22065_s21 + $0x1644] ss:$16 sps:$4 sm:$0xff]   ;;  %v20441_v14 = vld [vmem:[%s22065_s21 + $0x1440] ss:$16 sps:$4 sm:$0xff]  }
 0x1db   : > { %7364 = vmatprep.subr.bf16.mxu1 %v20392_v15  ;;  %v20444_v15 = vld [vmem:[%s22065_s21 + $0x1640] ss:$16 sps:$4 sm:$0xff]  }
 0x1dd   : > { %7322 = vmatpush2.bf16.msra.mxu0 %v20387_v16  ;;  %v20449_v16 = vld [vmem:[%s22065_s21 + $0x1424] ss:$16 sps:$4 sm:$0xff]  }
 0x1de   : > { %7365 = vmatpush2.bf16.msra.mxu1 %v20390_v17  ;;  %7323 = vmatprep.subr.bf16.mxu0 %v20395_v18  ;;  %v20452_v17 = vld [vmem:[%s22065_s21 + $0x1624] ss:$16 sps:$4 sm:$0xff]   ;;  %v20447_v18 = vld [vmem:[%s22065_s21 + $0x1420] ss:$16 sps:$4 sm:$0xff]  }
 0x1df   : > { %7366 = vmatprep.subr.bf16.mxu1 %v20398_v19  ;;  %v20450_v19 = vld [vmem:[%s22065_s21 + $0x1620] ss:$16 sps:$4 sm:$0xff]  }
 0x1e1   : > { %7324 = vmatpush2.bf16.msra.mxu0 %v20393_v22  ;;  %v20455_v22 = vld [vmem:[%s22065_s21 + $0x1404] ss:$16 sps:$4 sm:$0xff]  }
 0x1e2   : > { %7367 = vmatpush2.bf16.msra.mxu1 %v20396_v23  ;;  %7325 = vmatprep.subr.bf16.mxu0 %v20401_v24  ;;  %v20458_v23 = vld [vmem:[%s22065_s21 + $0x1604] ss:$16 sps:$4 sm:$0xff]   ;;  %v20453_v24 = vld [vmem:[%s22065_s21 + $0x1400] ss:$16 sps:$4 sm:$0xff]  }
 0x1e3   : > { %7368 = vmatprep.subr.bf16.mxu1 %v20404_v25  ;;  %v20456_v25 = vld [vmem:[%s22065_s21 + $0x1600] ss:$16 sps:$4 sm:$0xff]  }
 0x1e5   : > { %7326 = vmatpush2.bf16.msra.mxu0 %v20399_v26  ;;  %v20461_v26 = vld [vmem:[%s22065_s21 + $0x15e4] ss:$16 sps:$4 sm:$0xff]  }
 0x1e6   : > { %7369 = vmatpush2.bf16.msra.mxu1 %v20402_v27  ;;  %7327 = vmatprep.subr.bf16.mxu0 %v20407_v32  ;;  %v20464_v27 = vld [vmem:[%s22065_s21 + $0x17e4] ss:$16 sps:$4 sm:$0xff]   ;;  %v20459_v32 = vld [vmem:[%s22065_s21 + $0x15e0] ss:$16 sps:$4 sm:$0xff]  }
 0x1e7   : > { %7370 = vmatprep.subr.bf16.mxu1 %v20410_v34  ;;  %v20462_v34 = vld [vmem:[%s22065_s21 + $0x17e0] ss:$16 sps:$4 sm:$0xff]  }
 0x1e9   : > { %7328 = vmatpush2.bf16.msra.mxu0 %v20405_v36  ;;  %v20467_v36 = vld [vmem:[%s22065_s21 + $0x15c4] ss:$16 sps:$4 sm:$0xff]  }
 0x1ea   : > { %7371 = vmatpush2.bf16.msra.mxu1 %v20408_v37  ;;  %7383 = vmatprep.subr.bf16.mxu0 %v20413_v38  ;;  %v20470_v37 = vld [vmem:[%s22065_s21 + $0x17c4] ss:$16 sps:$4 sm:$0xff]   ;;  %v20465_v38 = vld [vmem:[%s22065_s21 + $0x15c0] ss:$16 sps:$4 sm:$0xff]  }
 0x1eb   : > { %7426 = vmatprep.subr.bf16.mxu1 %v20416_v39  ;;  %v20468_v39 = vld [vmem:[%s22065_s21 + $0x17c0] ss:$16 sps:$4 sm:$0xff]  }
 0x1ec   : > { %7330 = vmatmul.mubr.bf16.vlgmr.msra.gmra.mxu0 %v22591_v44 }
 0x1ed   : > { %7373 = vmatmul.mubr.bf16.vlgmr.msra.gmra.mxu1 %v22595_v45  ;;  %7384 = vmatpush1.bf16.msra.mxu0 %v20411_v42  ;;  %v20473_v42 = vld [vmem:[%s22065_s21 + $0x15a4] ss:$16 sps:$4 sm:$0xff]  }
 0x1ee   : > { %7427 = vmatpush1.bf16.msra.mxu1 %v20414_v6  ;;  %7385 = vmatprep.subr.bf16.mxu0 %v20419_v7  ;;  %v20476_v6 = vld [vmem:[%s22065_s21 + $0x17a4] ss:$16 sps:$4 sm:$0xff]   ;;  %v20471_v7 = vld [vmem:[%s22065_s21 + $0x15a0] ss:$16 sps:$4 sm:$0xff]  }
 0x1ef   : > { %7428 = vmatprep.subr.bf16.mxu1 %v20422_v12  ;;  %7415 = vmatprep.mubr.bf16.mxu0 %v22619_v56  ;;  %v20474_v12 = vld [vmem:[%s22065_s21 + $0x17a0] ss:$16 sps:$4 sm:$0xff]  }
 0x1f0   : > { %7458 = vmatprep.mubr.bf16.mxu1 %v22623_v57 }
 0x1f1   : > { %7386 = vmatpush1.bf16.msra.mxu0 %v20417_v13  ;;  %v20479_v13 = vld [vmem:[%s22065_s21 + $0x1584] ss:$16 sps:$4 sm:$0xff]  }
 0x1f2   : > { %7429 = vmatpush1.bf16.msra.mxu1 %v20420_v54  ;;  %7387 = vmatprep.subr.bf16.mxu0 %v20425_v58  ;;  %v20482_v54 = vld [vmem:[%s22065_s21 + $0x1784] ss:$16 sps:$4 sm:$0xff]   ;;  %v20477_v58 = vld [vmem:[%s22065_s21 + $0x1580] ss:$16 sps:$4 sm:$0xff]  }
 0x1f3   : > { %7430 = vmatprep.subr.bf16.mxu1 %v20428_v59  ;;  %v20480_v59 = vld [vmem:[%s22065_s21 + $0x1780] ss:$16 sps:$4 sm:$0xff]  }
 0x1f5   : > { %7388 = vmatpush1.bf16.msra.mxu0 %v20423_v60  ;;  %v20485_v60 = vld [vmem:[%s22065_s21 + $0x1564] ss:$16 sps:$4 sm:$0xff]  }
 0x1f6   : > { %7431 = vmatpush1.bf16.msra.mxu1 %v20426_v61  ;;  %7389 = vmatprep.subr.bf16.mxu0 %v20431_v62  ;;  %v20488_v61 = vld [vmem:[%s22065_s21 + $0x1764] ss:$16 sps:$4 sm:$0xff]   ;;  %v20483_v62 = vld [vmem:[%s22065_s21 + $0x1560] ss:$16 sps:$4 sm:$0xff]  }
 0x1f7   : > { %7432 = vmatprep.subr.bf16.mxu1 %v20434_v63  ;;  %v20486_v63 = vld [vmem:[%s22065_s21 + $0x1760] ss:$16 sps:$4 sm:$0xff]  }
 0x1f9   : > { %7390 = vmatpush1.bf16.msra.mxu0 %v20429_v0  ;;  %v20491_v0 = vld [vmem:[%s22065_s21 + $0x1544] ss:$16 sps:$4 sm:$0xff]  }
 0x1fa   : > { %7433 = vmatpush1.bf16.msra.mxu1 %v20432_v1  ;;  %7391 = vmatprep.subr.bf16.mxu0 %v20437_v2  ;;  %v20494_v1 = vld [vmem:[%s22065_s21 + $0x1744] ss:$16 sps:$4 sm:$0xff]   ;;  %v20489_v2 = vld [vmem:[%s22065_s21 + $0x1540] ss:$16 sps:$4 sm:$0xff]  }
 0x1fb   : > { %7434 = vmatprep.subr.bf16.mxu1 %v20440_v3  ;;  %v20492_v3 = vld [vmem:[%s22065_s21 + $0x1740] ss:$16 sps:$4 sm:$0xff]  }
 0x1fd   : > { %7392 = vmatpush1.bf16.msra.mxu0 %v20435_v4  ;;  %v20497_v4 = vld [vmem:[%s22065_s21 + $0x1524] ss:$16 sps:$4 sm:$0xff]  }
 0x1fe   : > { %7435 = vmatpush1.bf16.msra.mxu1 %v20438_v5  ;;  %7393 = vmatprep.subr.bf16.mxu0 %v20443_v46  ;;  %v20500_v5 = vld [vmem:[%s22065_s21 + $0x1724] ss:$16 sps:$4 sm:$0xff]   ;;  %v20495_v46 = vld [vmem:[%s22065_s21 + $0x1520] ss:$16 sps:$4 sm:$0xff]  }
 0x1ff   : > { %7436 = vmatprep.subr.bf16.mxu1 %v20446_v47  ;;  %v20498_v47 = vld [vmem:[%s22065_s21 + $0x1720] ss:$16 sps:$4 sm:$0xff]  }
 0x201   : > { %7394 = vmatpush1.bf16.msra.mxu0 %v20441_v14  ;;  %v20503_v14 = vld [vmem:[%s22065_s21 + $0x1504] ss:$16 sps:$4 sm:$0xff]  }
 0x202   : > { %7437 = vmatpush1.bf16.msra.mxu1 %v20444_v15  ;;  %7395 = vmatprep.subr.bf16.mxu0 %v20449_v16  ;;  %v20506_v15 = vld [vmem:[%s22065_s21 + $0x1704] ss:$16 sps:$4 sm:$0xff]   ;;  %v20501_v16 = vld [vmem:[%s22065_s21 + $0x1500] ss:$16 sps:$4 sm:$0xff]  }
 0x203   : > { %7438 = vmatprep.subr.bf16.mxu1 %v20452_v17  ;;  %v20504_v17 = vld [vmem:[%s22065_s21 + $0x1700] ss:$16 sps:$4 sm:$0xff]  }
 0x205   : > { %7396 = vmatpush1.bf16.msra.mxu0 %v20447_v18  ;;  %v20509_v18 = vld [vmem:[%s22065_s21 + $0x18e4] ss:$16 sps:$4 sm:$0xff]  }
 0x206   : > { %7439 = vmatpush1.bf16.msra.mxu1 %v20450_v19  ;;  %7397 = vmatprep.subr.bf16.mxu0 %v20455_v22  ;;  %v20512_v19 = vld [vmem:[%s22065_s21 + $0x1ae4] ss:$16 sps:$4 sm:$0xff]  }
 0x207   : > { %7440 = vmatprep.subr.bf16.mxu1 %v20458_v23  ;;  %v22690_v22 = vld [vmem:[%s24069_s0 + $0x60] sm:$0xff] }
 0x208   : > { %v20507_v23 = vld [vmem:[%s22065_s21 + $0x18e0] ss:$16 sps:$4 sm:$0xff]  }
 0x209   : > { %7398 = vmatpush1.bf16.msra.mxu0 %v20453_v24  ;;  %v22695_v24 = vcombine.low %v22586_v40, %v22600_v28  ;;  %v20510_v40 = vld [vmem:[%s22065_s21 + $0x1ae0] ss:$16 sps:$4 sm:$0xff]   ;;  %v20515_v28 = vld [vmem:[%s22065_s21 + $0x18c4] ss:$16 sps:$4 sm:$0xff]  }
 0x20a   : > { %7441 = vmatpush1.bf16.msra.mxu1 %v20456_v25  ;;  %7399 = vmatprep.subr.bf16.mxu0 %v20461_v26  ;;  %v22699_v25 = vcombine.low %v22605_v29, %v22610_v52  ;;  %v22704_v26 = vld [vmem:[%s24069_s0 + $0xe0] sm:$0xff] }
 0x20b   : > { %7442 = vmatprep.subr.bf16.mxu1 %v20464_v27  ;;  %v22709_v27 = vld [vmem:[%s24069_s0 + $0x68] sm:$0xff]  ;;  %v20518_v29 = vld [vmem:[%s22065_s21 + $0x1ac4] ss:$16 sps:$4 sm:$0xff]   ;;  %v20513_v52 = vld [vmem:[%s22065_s21 + $0x18c0] ss:$16 sps:$4 sm:$0xff]  }
 0x20d   : > { %7400 = vmatpush2.bf16.msra.mxu0 %v20459_v32  ;;  %v22714_v32 = vld [vmem:[%s24069_s0 + $0xe8] sm:$0xff] }
 0x20e   : > { %7443 = vmatpush2.bf16.msra.mxu1 %v20462_v34  ;;  %7401 = vmatprep.subr.bf16.mxu0 %v20467_v36  ;;  %v20516_v34 = vld [vmem:[%s22065_s21 + $0x1ac0] ss:$16 sps:$4 sm:$0xff]   ;;  %v22723_v36 = vcombine.high %v22690_v22, %v22704_v26 }
 0x20f   : > { %7444 = vmatprep.subr.bf16.mxu1 %v20470_v37  ;;  %v22727_v37 = vcombine.high %v22709_v27, %v22714_v32 }
 0x211   : > { %7402 = vmatpush2.bf16.msra.mxu0 %v20465_v38  ;;  %v20521_v38 = vld [vmem:[%s22065_s21 + $0x18a4] ss:$16 sps:$4 sm:$0xff]  }
 0x212   : > { %7445 = vmatpush2.bf16.msra.mxu1 %v20468_v39  ;;  %7403 = vmatprep.subr.bf16.mxu0 %v20473_v42  ;;  %v20524_v39 = vld [vmem:[%s22065_s21 + $0x1aa4] ss:$16 sps:$4 sm:$0xff]   ;;  %v20519_v42 = vld [vmem:[%s22065_s21 + $0x18a0] ss:$16 sps:$4 sm:$0xff]  }
 0x213   : > { %7446 = vmatprep.subr.bf16.mxu1 %v20476_v6  ;;  %v20522_v6 = vld [vmem:[%s22065_s21 + $0x1aa0] ss:$16 sps:$4 sm:$0xff]  }
 0x215   : > { %7404 = vmatpush2.bf16.msra.mxu0 %v20471_v7  ;;  %v20527_v7 = vld [vmem:[%s22065_s21 + $0x1884] ss:$16 sps:$4 sm:$0xff]  }
 0x216   : > { %7447 = vmatpush2.bf16.msra.mxu1 %v20474_v12  ;;  %7405 = vmatprep.subr.bf16.mxu0 %v20479_v13  ;;  %v20530_v12 = vld [vmem:[%s22065_s21 + $0x1a84] ss:$16 sps:$4 sm:$0xff]   ;;  %v20525_v13 = vld [vmem:[%s22065_s21 + $0x1880] ss:$16 sps:$4 sm:$0xff]  }
 0x217   : > { %7448 = vmatprep.subr.bf16.mxu1 %v20482_v54  ;;  %v20528_v54 = vld [vmem:[%s22065_s21 + $0x1a80] ss:$16 sps:$4 sm:$0xff]  }
 0x219   : > { %7406 = vmatpush2.bf16.msra.mxu0 %v20477_v58  ;;  %v20533_v58 = vld [vmem:[%s22065_s21 + $0x1864] ss:$16 sps:$4 sm:$0xff]  }
 0x21a   : > { %7449 = vmatpush2.bf16.msra.mxu1 %v20480_v59  ;;  %7407 = vmatprep.subr.bf16.mxu0 %v20485_v60  ;;  %v20536_v59 = vld [vmem:[%s22065_s21 + $0x1a64] ss:$16 sps:$4 sm:$0xff]   ;;  %v20531_v60 = vld [vmem:[%s22065_s21 + $0x1860] ss:$16 sps:$4 sm:$0xff]  }
 0x21b   : > { %7450 = vmatprep.subr.bf16.mxu1 %v20488_v61  ;;  %v20534_v61 = vld [vmem:[%s22065_s21 + $0x1a60] ss:$16 sps:$4 sm:$0xff]  }
 0x21d   : > { %7408 = vmatpush2.bf16.msra.mxu0 %v20483_v62  ;;  %v20539_v62 = vld [vmem:[%s22065_s21 + $0x1844] ss:$16 sps:$4 sm:$0xff]  }
 0x21e   : > { %7451 = vmatpush2.bf16.msra.mxu1 %v20486_v63  ;;  %7409 = vmatprep.subr.bf16.mxu0 %v20491_v0  ;;  %v20542_v63 = vld [vmem:[%s22065_s21 + $0x1a44] ss:$16 sps:$4 sm:$0xff]   ;;  %v20537_v0 = vld [vmem:[%s22065_s21 + $0x1840] ss:$16 sps:$4 sm:$0xff]  }
 0x21f   : > { %7452 = vmatprep.subr.bf16.mxu1 %v20494_v1  ;;  %v20540_v1 = vld [vmem:[%s22065_s21 + $0x1a40] ss:$16 sps:$4 sm:$0xff]  }
 0x221   : > { %7410 = vmatpush2.bf16.msra.mxu0 %v20489_v2  ;;  %v20545_v2 = vld [vmem:[%s22065_s21 + $0x1824] ss:$16 sps:$4 sm:$0xff]  }
 0x222   : > { %7453 = vmatpush2.bf16.msra.mxu1 %v20492_v3  ;;  %7411 = vmatprep.subr.bf16.mxu0 %v20497_v4  ;;  %v20548_v3 = vld [vmem:[%s22065_s21 + $0x1a24] ss:$16 sps:$4 sm:$0xff]   ;;  %v20543_v4 = vld [vmem:[%s22065_s21 + $0x1820] ss:$16 sps:$4 sm:$0xff]  }
 0x223   : > { %7454 = vmatprep.subr.bf16.mxu1 %v20500_v5  ;;  %v20546_v5 = vld [vmem:[%s22065_s21 + $0x1a20] ss:$16 sps:$4 sm:$0xff]  }
 0x225   : > { %7412 = vmatpush2.bf16.msra.mxu0 %v20495_v46  ;;  %v20551_v46 = vld [vmem:[%s22065_s21 + $0x1804] ss:$16 sps:$4 sm:$0xff]  }
 0x226   : > { %7455 = vmatpush2.bf16.msra.mxu1 %v20498_v47  ;;  %7413 = vmatprep.subr.bf16.mxu0 %v20503_v14  ;;  %v20554_v47 = vld [vmem:[%s22065_s21 + $0x1a04] ss:$16 sps:$4 sm:$0xff]   ;;  %v20549_v14 = vld [vmem:[%s22065_s21 + $0x1800] ss:$16 sps:$4 sm:$0xff]  }
 0x227   : > { %7456 = vmatprep.subr.bf16.mxu1 %v20506_v15  ;;  %v20552_v15 = vld [vmem:[%s22065_s21 + $0x1a00] ss:$16 sps:$4 sm:$0xff]  }
 0x229   : > { %7414 = vmatpush2.bf16.msra.mxu0 %v20501_v16  ;;  %v20557_v16 = vld [vmem:[%s22065_s21 + $0x19e4] ss:$16 sps:$4 sm:$0xff]  }
 0x22a   : > { %7457 = vmatpush2.bf16.msra.mxu1 %v20504_v17  ;;  %7469 = vmatprep.subr.bf16.mxu0 %v20509_v18  ;;  %v20560_v17 = vld [vmem:[%s22065_s21 + $0x1be4] ss:$16 sps:$4 sm:$0xff]   ;;  %v20555_v18 = vld [vmem:[%s22065_s21 + $0x19e0] ss:$16 sps:$4 sm:$0xff]  }
 0x22b   : > { %7512 = vmatprep.subr.bf16.mxu1 %v20512_v19  ;;  %v20558_v19 = vld [vmem:[%s22065_s21 + $0x1be0] ss:$16 sps:$4 sm:$0xff]  }
 0x22c   : > { %7416 = vmatmul.mubr.bf16.vlgmr.msra.gmra.mxu0 %v22695_v24 }
 0x22d   : > { %7459 = vmatmul.mubr.bf16.vlgmr.msra.gmra.mxu1 %v22699_v25  ;;  %7470 = vmatpush1.bf16.msra.mxu0 %v20507_v23  ;;  %v20563_v23 = vld [vmem:[%s22065_s21 + $0x19c4] ss:$16 sps:$4 sm:$0xff]  }
 0x22e   : > { %7513 = vmatpush1.bf16.msra.mxu1 %v20510_v40  ;;  %7471 = vmatprep.subr.bf16.mxu0 %v20515_v28  ;;  %v20566_v40 = vld [vmem:[%s22065_s21 + $0x1bc4] ss:$16 sps:$4 sm:$0xff]   ;;  %v20561_v28 = vld [vmem:[%s22065_s21 + $0x19c0] ss:$16 sps:$4 sm:$0xff]  }
 0x22f   : > { %7514 = vmatprep.subr.bf16.mxu1 %v20518_v29  ;;  %7501 = vmatprep.mubr.bf16.mxu0 %v22723_v36  ;;  %v20564_v29 = vld [vmem:[%s22065_s21 + $0x1bc0] ss:$16 sps:$4 sm:$0xff]  }
 0x230   : > { %7544 = vmatprep.mubr.bf16.mxu1 %v22727_v37 }
 0x231   : > { %7472 = vmatpush1.bf16.msra.mxu0 %v20513_v52  ;;  %v20569_v52 = vld [vmem:[%s22065_s21 + $0x19a4] ss:$16 sps:$4 sm:$0xff]  }
 0x232   : > { %7515 = vmatpush1.bf16.msra.mxu1 %v20516_v34  ;;  %7473 = vmatprep.subr.bf16.mxu0 %v20521_v38  ;;  %v20572_v34 = vld [vmem:[%s22065_s21 + $0x1ba4] ss:$16 sps:$4 sm:$0xff]   ;;  %v20567_v38 = vld [vmem:[%s22065_s21 + $0x19a0] ss:$16 sps:$4 sm:$0xff]  }
 0x233   : > { %7516 = vmatprep.subr.bf16.mxu1 %v20524_v39  ;;  %v20570_v39 = vld [vmem:[%s22065_s21 + $0x1ba0] ss:$16 sps:$4 sm:$0xff]  }
 0x235   : > { %7474 = vmatpush1.bf16.msra.mxu0 %v20519_v42  ;;  %v20575_v42 = vld [vmem:[%s22065_s21 + $0x1984] ss:$16 sps:$4 sm:$0xff]  }
 0x236   : > { %7517 = vmatpush1.bf16.msra.mxu1 %v20522_v6  ;;  %7475 = vmatprep.subr.bf16.mxu0 %v20527_v7  ;;  %v20578_v6 = vld [vmem:[%s22065_s21 + $0x1b84] ss:$16 sps:$4 sm:$0xff]   ;;  %v20573_v7 = vld [vmem:[%s22065_s21 + $0x1980] ss:$16 sps:$4 sm:$0xff]  }
 0x237   : > { %7518 = vmatprep.subr.bf16.mxu1 %v20530_v12  ;;  %v20576_v12 = vld [vmem:[%s22065_s21 + $0x1b80] ss:$16 sps:$4 sm:$0xff]  }
 0x239   : > { %7476 = vmatpush1.bf16.msra.mxu0 %v20525_v13  ;;  %v20581_v13 = vld [vmem:[%s22065_s21 + $0x1964] ss:$16 sps:$4 sm:$0xff]  }
 0x23a   : > { %7519 = vmatpush1.bf16.msra.mxu1 %v20528_v54  ;;  %7477 = vmatprep.subr.bf16.mxu0 %v20533_v58  ;;  %v20584_v54 = vld [vmem:[%s22065_s21 + $0x1b64] ss:$16 sps:$4 sm:$0xff]   ;;  %v20579_v58 = vld [vmem:[%s22065_s21 + $0x1960] ss:$16 sps:$4 sm:$0xff]  }
 0x23b   : > { %7520 = vmatprep.subr.bf16.mxu1 %v20536_v59  ;;  %v20582_v59 = vld [vmem:[%s22065_s21 + $0x1b60] ss:$16 sps:$4 sm:$0xff]  }
 0x23d   : > { %7478 = vmatpush1.bf16.msra.mxu0 %v20531_v60  ;;  %v20587_v60 = vld [vmem:[%s22065_s21 + $0x1944] ss:$16 sps:$4 sm:$0xff]  }
 0x23e   : > { %7521 = vmatpush1.bf16.msra.mxu1 %v20534_v61  ;;  %7479 = vmatprep.subr.bf16.mxu0 %v20539_v62  ;;  %v20590_v61 = vld [vmem:[%s22065_s21 + $0x1b44] ss:$16 sps:$4 sm:$0xff]   ;;  %v20585_v62 = vld [vmem:[%s22065_s21 + $0x1940] ss:$16 sps:$4 sm:$0xff]  }
 0x23f   : > { %7522 = vmatprep.subr.bf16.mxu1 %v20542_v63  ;;  %v20588_v63 = vld [vmem:[%s22065_s21 + $0x1b40] ss:$16 sps:$4 sm:$0xff]  }
 0x241   : > { %7480 = vmatpush1.bf16.msra.mxu0 %v20537_v0  ;;  %v20593_v0 = vld [vmem:[%s22065_s21 + $0x1924] ss:$16 sps:$4 sm:$0xff]  }
 0x242   : > { %7523 = vmatpush1.bf16.msra.mxu1 %v20540_v1  ;;  %7481 = vmatprep.subr.bf16.mxu0 %v20545_v2  ;;  %v20596_v1 = vld [vmem:[%s22065_s21 + $0x1b24] ss:$16 sps:$4 sm:$0xff]   ;;  %v20591_v2 = vld [vmem:[%s22065_s21 + $0x1920] ss:$16 sps:$4 sm:$0xff]  }
 0x243   : > { %7524 = vmatprep.subr.bf16.mxu1 %v20548_v3  ;;  %v20594_v3 = vld [vmem:[%s22065_s21 + $0x1b20] ss:$16 sps:$4 sm:$0xff]  }
 0x245   : > { %7482 = vmatpush1.bf16.msra.mxu0 %v20543_v4  ;;  %v20599_v4 = vld [vmem:[%s22065_s21 + $0x1904] ss:$16 sps:$4 sm:$0xff]  }
 0x246   : > { %7525 = vmatpush1.bf16.msra.mxu1 %v20546_v5  ;;  %7483 = vmatprep.subr.bf16.mxu0 %v20551_v46  ;;  %v20602_v5 = vld [vmem:[%s22065_s21 + $0x1b04] ss:$16 sps:$4 sm:$0xff]   ;;  %v20597_v46 = vld [vmem:[%s22065_s21 + $0x1900] ss:$16 sps:$4 sm:$0xff]  }
 0x247   : > { %7526 = vmatprep.subr.bf16.mxu1 %v20554_v47  ;;  %v20600_v47 = vld [vmem:[%s22065_s21 + $0x1b00] ss:$16 sps:$4 sm:$0xff]  }
 0x249   : > { %7484 = vmatpush1.bf16.msra.mxu0 %v20549_v14  ;;  %v20605_v14 = vld [vmem:[%s22065_s21 + $0x1ce4] ss:$16 sps:$4 sm:$0xff]  }
 0x24a   : > { %7527 = vmatpush1.bf16.msra.mxu1 %v20552_v15  ;;  %7485 = vmatprep.subr.bf16.mxu0 %v20557_v16  ;;  %v20608_v15 = vld [vmem:[%s22065_s21 + $0x1ee4] ss:$16 sps:$4 sm:$0xff]  }
 0x24b   : > { %7528 = vmatprep.subr.bf16.mxu1 %v20560_v17  ;;  %v22794_v16 = vld [vmem:[%s24069_s0 + $0x70] sm:$0xff] }
 0x24c   : > { %v22799_v17 = vld [vmem:[%s24069_s0 + $0xf0] sm:$0xff] }
 0x24d   : > { %7486 = vmatpush2.bf16.msra.mxu0 %v20555_v18  ;;  %v22804_v18 = vld [vmem:[%s24069_s0 + $0x78] sm:$0xff] }
 0x24e   : > { %7529 = vmatpush2.bf16.msra.mxu1 %v20558_v19  ;;  %7487 = vmatprep.subr.bf16.mxu0 %v20563_v23  ;;  %v22809_v19 = vld [vmem:[%s24069_s0 + $0xf8] sm:$0xff]  ;;  %v20603_v23 = vld [vmem:[%s22065_s21 + $0x1ce0] ss:$16 sps:$4 sm:$0xff]  }
 0x24f   : > { %7530 = vmatprep.subr.bf16.mxu1 %v20566_v40  ;;  %v20606_v40 = vld [vmem:[%s22065_s21 + $0x1ee0] ss:$16 sps:$4 sm:$0xff]  }
 0x251   : > { %7488 = vmatpush2.bf16.msra.mxu0 %v20561_v28  ;;  %v22815_v28 = vcombine.low %v22690_v22, %v22704_v26  ;;  %v22827_v22 = vcombine.high %v22794_v16, %v22799_v17  ;;  %v22831_v26 = vcombine.high %v22804_v18, %v22809_v19 }
 0x252   : > { %7531 = vmatpush2.bf16.msra.mxu1 %v20564_v29  ;;  %7489 = vmatprep.subr.bf16.mxu0 %v20569_v52  ;;  %v22819_v29 = vcombine.low %v22709_v27, %v22714_v32  ;;  %v20611_v52 = vld [vmem:[%s22065_s21 + $0x1cc4] ss:$16 sps:$4 sm:$0xff]  }
 0x253   : > { %7532 = vmatprep.subr.bf16.mxu1 %v20572_v34  ;;  %24119 = vst [vmem:[#allocation25_spill] sm:$0xff] %v22815_v28  ;;  %v20614_v34 = vld [vmem:[%s22065_s21 + $0x1ec4] ss:$16 sps:$4 sm:$0xff]   ;;  %24121 = vst [vmem:[#allocation27_spill] sm:$0xff] %v22827_v22 }
 0x254   : > { %24120 = vst [vmem:[#allocation26_spill] sm:$0xff] %v22819_v29  ;;  %24122 = vst [vmem:[#allocation28_spill] sm:$0xff] %v22831_v26  ;;  %v20617_v27 = vld [vmem:[%s22065_s21 + $0x1ca4] ss:$16 sps:$4 sm:$0xff]  }
 0x255   : > { %7490 = vmatpush2.bf16.msra.mxu0 %v20567_v38  ;;  %v20609_v38 = vld [vmem:[%s22065_s21 + $0x1cc0] ss:$16 sps:$4 sm:$0xff]   ;;  %v20620_v32 = vld [vmem:[%s22065_s21 + $0x1ea4] ss:$16 sps:$4 sm:$0xff]  }
 0x256   : > { %7533 = vmatpush2.bf16.msra.mxu1 %v20570_v39  ;;  %7491 = vmatprep.subr.bf16.mxu0 %v20575_v42  ;;  %v20612_v39 = vld [vmem:[%s22065_s21 + $0x1ec0] ss:$16 sps:$4 sm:$0xff]  }
 0x257   : > { %7534 = vmatprep.subr.bf16.mxu1 %v20578_v6  ;;  %v20615_v42 = vld [vmem:[%s22065_s21 + $0x1ca0] ss:$16 sps:$4 sm:$0xff]  }
 0x258   : > { %v20618_v6 = vld [vmem:[%s22065_s21 + $0x1ea0] ss:$16 sps:$4 sm:$0xff]  }
 0x259   : > { %7492 = vmatpush2.bf16.msra.mxu0 %v20573_v7  ;;  %v20623_v7 = vld [vmem:[%s22065_s21 + $0x1c84] ss:$16 sps:$4 sm:$0xff]  }
 0x25a   : > { %7535 = vmatpush2.bf16.msra.mxu1 %v20576_v12  ;;  %7493 = vmatprep.subr.bf16.mxu0 %v20581_v13  ;;  %v20626_v12 = vld [vmem:[%s22065_s21 + $0x1e84] ss:$16 sps:$4 sm:$0xff]   ;;  %v20621_v13 = vld [vmem:[%s22065_s21 + $0x1c80] ss:$16 sps:$4 sm:$0xff]  }
 0x25b   : > { %7536 = vmatprep.subr.bf16.mxu1 %v20584_v54  ;;  %v20624_v54 = vld [vmem:[%s22065_s21 + $0x1e80] ss:$16 sps:$4 sm:$0xff]  }
 0x25d   : > { %7494 = vmatpush2.bf16.msra.mxu0 %v20579_v58  ;;  %v20629_v58 = vld [vmem:[%s22065_s21 + $0x1c64] ss:$16 sps:$4 sm:$0xff]  }
 0x25e   : > { %7537 = vmatpush2.bf16.msra.mxu1 %v20582_v59  ;;  %7495 = vmatprep.subr.bf16.mxu0 %v20587_v60  ;;  %v20632_v59 = vld [vmem:[%s22065_s21 + $0x1e64] ss:$16 sps:$4 sm:$0xff]   ;;  %v20627_v60 = vld [vmem:[%s22065_s21 + $0x1c60] ss:$16 sps:$4 sm:$0xff]  }
 0x25f   : > { %7538 = vmatprep.subr.bf16.mxu1 %v20590_v61  ;;  %v20630_v61 = vld [vmem:[%s22065_s21 + $0x1e60] ss:$16 sps:$4 sm:$0xff]  }
 0x261   : > { %7496 = vmatpush2.bf16.msra.mxu0 %v20585_v62  ;;  %v20635_v62 = vld [vmem:[%s22065_s21 + $0x1c44] ss:$16 sps:$4 sm:$0xff]  }
 0x262   : > { %7539 = vmatpush2.bf16.msra.mxu1 %v20588_v63  ;;  %7497 = vmatprep.subr.bf16.mxu0 %v20593_v0  ;;  %v20638_v63 = vld [vmem:[%s22065_s21 + $0x1e44] ss:$16 sps:$4 sm:$0xff]   ;;  %v20633_v0 = vld [vmem:[%s22065_s21 + $0x1c40] ss:$16 sps:$4 sm:$0xff]  }
 0x263   : > { %7540 = vmatprep.subr.bf16.mxu1 %v20596_v1  ;;  %v20636_v1 = vld [vmem:[%s22065_s21 + $0x1e40] ss:$16 sps:$4 sm:$0xff]  }
 0x265   : > { %7498 = vmatpush2.bf16.msra.mxu0 %v20591_v2  ;;  %v20641_v2 = vld [vmem:[%s22065_s21 + $0x1c24] ss:$16 sps:$4 sm:$0xff]  }
 0x266   : > { %7541 = vmatpush2.bf16.msra.mxu1 %v20594_v3  ;;  %7499 = vmatprep.subr.bf16.mxu0 %v20599_v4  ;;  %v20644_v3 = vld [vmem:[%s22065_s21 + $0x1e24] ss:$16 sps:$4 sm:$0xff]   ;;  %v20639_v4 = vld [vmem:[%s22065_s21 + $0x1c20] ss:$16 sps:$4 sm:$0xff]  }
 0x267   : > { %7542 = vmatprep.subr.bf16.mxu1 %v20602_v5  ;;  %v20642_v5 = vld [vmem:[%s22065_s21 + $0x1e20] ss:$16 sps:$4 sm:$0xff]  }
 0x269   : > { %7500 = vmatpush2.bf16.msra.mxu0 %v20597_v46  ;;  %v20647_v46 = vld [vmem:[%s22065_s21 + $0x1c04] ss:$16 sps:$4 sm:$0xff]  }
 0x26a   : > { %7543 = vmatpush2.bf16.msra.mxu1 %v20600_v47  ;;  %7555 = vmatprep.subr.bf16.mxu0 %v20605_v14  ;;  %v20650_v47 = vld [vmem:[%s22065_s21 + $0x1e04] ss:$16 sps:$4 sm:$0xff]   ;;  %v20645_v14 = vld [vmem:[%s22065_s21 + $0x1c00] ss:$16 sps:$4 sm:$0xff]  }
 0x26b   : > { %7598 = vmatprep.subr.bf16.mxu1 %v20608_v15  ;;  %v20648_v15 = vld [vmem:[%s22065_s21 + $0x1e00] ss:$16 sps:$4 sm:$0xff]  }
 0x26c   : > { %7502 = vmatmul.mubr.bf16.vlgmr.msra.gmra.mxu0 %v22815_v28 }
 0x26d   : > { %7545 = vmatmul.mubr.bf16.vlgmr.msra.gmra.mxu1 %v22819_v29  ;;  %7556 = vmatpush1.bf16.msra.mxu0 %v20603_v23  ;;  %v20653_v23 = vld [vmem:[%s22065_s21 + $0x1de4] ss:$16 sps:$4 sm:$0xff]  }
 0x26e   : > { %7599 = vmatpush1.bf16.msra.mxu1 %v20606_v40  ;;  %7557 = vmatprep.subr.bf16.mxu0 %v20611_v52  ;;  %v20656_v40 = vld [vmem:[%s22065_s21 + $0x1fe4] ss:$16 sps:$4 sm:$0xff]   ;;  %v20651_v52 = vld [vmem:[%s22065_s21 + $0x1de0] ss:$16 sps:$4 sm:$0xff]  }
 0x26f   : > { %7600 = vmatprep.subr.bf16.mxu1 %v20614_v34  ;;  %7587 = vmatprep.mubr.bf16.mxu0 %v22827_v22  ;;  %v20654_v34 = vld [vmem:[%s22065_s21 + $0x1fe0] ss:$16 sps:$4 sm:$0xff]   ;;  %v20944_v22 = vld [vmem:[%s22065_s21 + $0xbec] ss:$16 sps:$4 sm:$0xff]  }
 0x270   : > { %7630 = vmatprep.mubr.bf16.mxu1 %v22831_v26  ;;  %v20936_v26 = vld [vmem:[%s22065_s21 + $0xa08] ss:$16 sps:$4 sm:$0xff]  }
 0x271   : > { %7558 = vmatpush1.bf16.msra.mxu0 %v20609_v38  ;;  %v20659_v38 = vld [vmem:[%s22065_s21 + $0x1dc4] ss:$16 sps:$4 sm:$0xff]  }
 0x272   : > { %7601 = vmatpush1.bf16.msra.mxu1 %v20612_v39  ;;  %7559 = vmatprep.subr.bf16.mxu0 %v20617_v27  ;;  %v20662_v39 = vld [vmem:[%s22065_s21 + $0x1fc4] ss:$16 sps:$4 sm:$0xff]   ;;  %v20657_v27 = vld [vmem:[%s22065_s21 + $0x1dc0] ss:$16 sps:$4 sm:$0xff]  }
 0x273   : > { %7602 = vmatprep.subr.bf16.mxu1 %v20620_v32  ;;  %v20660_v32 = vld [vmem:[%s22065_s21 + $0x1fc0] ss:$16 sps:$4 sm:$0xff]  }
 0x275   : > { %7560 = vmatpush1.bf16.msra.mxu0 %v20615_v42  ;;  %v20665_v42 = vld [vmem:[%s22065_s21 + $0x1da4] ss:$16 sps:$4 sm:$0xff]  }
 0x276   : > { %7603 = vmatpush1.bf16.msra.mxu1 %v20618_v6  ;;  %7561 = vmatprep.subr.bf16.mxu0 %v20623_v7  ;;  %v20668_v6 = vld [vmem:[%s22065_s21 + $0x1fa4] ss:$16 sps:$4 sm:$0xff]   ;;  %v20663_v7 = vld [vmem:[%s22065_s21 + $0x1da0] ss:$16 sps:$4 sm:$0xff]  }
 0x277   : > { %7604 = vmatprep.subr.bf16.mxu1 %v20626_v12  ;;  %v20666_v12 = vld [vmem:[%s22065_s21 + $0x1fa0] ss:$16 sps:$4 sm:$0xff]  }
 0x279   : > { %7562 = vmatpush1.bf16.msra.mxu0 %v20621_v13  ;;  %v20671_v13 = vld [vmem:[%s22065_s21 + $0x1d84] ss:$16 sps:$4 sm:$0xff]  }
 0x27a   : > { %7605 = vmatpush1.bf16.msra.mxu1 %v20624_v54  ;;  %7563 = vmatprep.subr.bf16.mxu0 %v20629_v58  ;;  %v20674_v54 = vld [vmem:[%s22065_s21 + $0x1f84] ss:$16 sps:$4 sm:$0xff]   ;;  %v20669_v58 = vld [vmem:[%s22065_s21 + $0x1d80] ss:$16 sps:$4 sm:$0xff]  }
 0x27b   : > { %7606 = vmatprep.subr.bf16.mxu1 %v20632_v59  ;;  %v20672_v59 = vld [vmem:[%s22065_s21 + $0x1f80] ss:$16 sps:$4 sm:$0xff]  }
 0x27d   : > { %7564 = vmatpush1.bf16.msra.mxu0 %v20627_v60  ;;  %v20677_v60 = vld [vmem:[%s22065_s21 + $0x1d64] ss:$16 sps:$4 sm:$0xff]  }
 0x27e   : > { %7607 = vmatpush1.bf16.msra.mxu1 %v20630_v61  ;;  %7565 = vmatprep.subr.bf16.mxu0 %v20635_v62  ;;  %v20680_v61 = vld [vmem:[%s22065_s21 + $0x1f64] ss:$16 sps:$4 sm:$0xff]   ;;  %v20675_v62 = vld [vmem:[%s22065_s21 + $0x1d60] ss:$16 sps:$4 sm:$0xff]  }
 0x27f   : > { %7608 = vmatprep.subr.bf16.mxu1 %v20638_v63  ;;  %v20678_v63 = vld [vmem:[%s22065_s21 + $0x1f60] ss:$16 sps:$4 sm:$0xff]  }
 0x281   : > { %7566 = vmatpush1.bf16.msra.mxu0 %v20633_v0  ;;  %v20683_v0 = vld [vmem:[%s22065_s21 + $0x1d44] ss:$16 sps:$4 sm:$0xff]  }
 0x282   : > { %7609 = vmatpush1.bf16.msra.mxu1 %v20636_v1  ;;  %7567 = vmatprep.subr.bf16.mxu0 %v20641_v2  ;;  %v20686_v1 = vld [vmem:[%s22065_s21 + $0x1f44] ss:$16 sps:$4 sm:$0xff]   ;;  %v20681_v2 = vld [vmem:[%s22065_s21 + $0x1d40] ss:$16 sps:$4 sm:$0xff]  }
 0x283   : > { %7610 = vmatprep.subr.bf16.mxu1 %v20644_v3  ;;  %v20684_v3 = vld [vmem:[%s22065_s21 + $0x1f40] ss:$16 sps:$4 sm:$0xff]  }
 0x285   : > { %7568 = vmatpush1.bf16.msra.mxu0 %v20639_v4  ;;  %v20689_v4 = vld [vmem:[%s22065_s21 + $0x1d24] ss:$16 sps:$4 sm:$0xff]  }
 0x286   : > { %7611 = vmatpush1.bf16.msra.mxu1 %v20642_v5  ;;  %7569 = vmatprep.subr.bf16.mxu0 %v20647_v46  ;;  %v20692_v5 = vld [vmem:[%s22065_s21 + $0x1f24] ss:$16 sps:$4 sm:$0xff]   ;;  %v20687_v46 = vld [vmem:[%s22065_s21 + $0x1d20] ss:$16 sps:$4 sm:$0xff]  }
 0x287   : > { %7612 = vmatprep.subr.bf16.mxu1 %v20650_v47  ;;  %v20690_v47 = vld [vmem:[%s22065_s21 + $0x1f20] ss:$16 sps:$4 sm:$0xff]  }
 0x289   : > { %7570 = vmatpush1.bf16.msra.mxu0 %v20645_v14  ;;  %v20695_v14 = vld [vmem:[%s22065_s21 + $0x1d04] ss:$16 sps:$4 sm:$0xff]  }
 0x28a   : > { %7613 = vmatpush1.bf16.msra.mxu1 %v20648_v15  ;;  %7571 = vmatprep.subr.bf16.mxu0 %v20653_v23  ;;  %v20698_v15 = vld [vmem:[%s22065_s21 + $0x1f04] ss:$16 sps:$4 sm:$0xff]   ;;  %v20693_v23 = vld [vmem:[%s22065_s21 + $0x1d00] ss:$16 sps:$4 sm:$0xff]  }
 0x28b   : > { %7614 = vmatprep.subr.bf16.mxu1 %v20656_v40  ;;  %v20696_v40 = vld [vmem:[%s22065_s21 + $0x1f00] ss:$16 sps:$4 sm:$0xff]  }
 0x28d   : > { %7572 = vmatpush2.bf16.msra.mxu0 %v20651_v52  ;;  %v20701_v52 = vld [vmem:[%s22065_s21 + $0xec] ss:$16 sps:$4 sm:$0xff]  }
 0x28e   : > { %7615 = vmatpush2.bf16.msra.mxu1 %v20654_v34  ;;  %7573 = vmatprep.subr.bf16.mxu0 %v20659_v38  ;;  %v20704_v34 = vld [vmem:[%s22065_s21 + $0x2ec] ss:$16 sps:$4 sm:$0xff]   ;;  %v20699_v38 = vld [vmem:[%s22065_s21 + $0xe8] ss:$16 sps:$4 sm:$0xff]  }
 0x28f   : > { %7616 = vmatprep.subr.bf16.mxu1 %v20662_v39  ;;  %v20702_v39 = vld [vmem:[%s22065_s21 + $0x2e8] ss:$16 sps:$4 sm:$0xff]  }
 0x291   : > { %7574 = vmatpush2.bf16.msra.mxu0 %v20657_v27  ;;  %v22899_v27 = vcombine.low %v22794_v16, %v22799_v17  ;;  %v20713_v16 = vld [vmem:[%s22065_s21 + $0xac] ss:$16 sps:$4 sm:$0xff]  }
 0x292   : > { %7617 = vmatpush2.bf16.msra.mxu1 %v20660_v32  ;;  %7575 = vmatprep.subr.bf16.mxu0 %v20665_v42  ;;  %v22903_v32 = vcombine.low %v22804_v18, %v22809_v19  ;;  %v20707_v42 = vld [vmem:[%s22065_s21 + $0xcc] ss:$16 sps:$4 sm:$0xff]   ;;  %v20711_v18 = vld [vmem:[%s22065_s21 + $0xa8] ss:$16 sps:$4 sm:$0xff]  }
 0x293   : > { %7618 = vmatprep.subr.bf16.mxu1 %v20668_v6  ;;  %24123 = vst [vmem:[#allocation29_spill] sm:$0xff] %v22899_v27  ;;  %v20710_v6 = vld [vmem:[%s22065_s21 + $0x2cc] ss:$16 sps:$4 sm:$0xff]   ;;  %v20714_v19 = vld [vmem:[%s22065_s21 + $0x2a8] ss:$16 sps:$4 sm:$0xff]  }
 0x294   : > { %24124 = vst [vmem:[#allocation30_spill] sm:$0xff] %v22903_v32  ;;  %v20716_v17 = vld [vmem:[%s22065_s21 + $0x2ac] ss:$16 sps:$4 sm:$0xff]  }
 0x295   : > { %7576 = vmatpush2.bf16.msra.mxu0 %v20663_v7  ;;  %v20705_v7 = vld [vmem:[%s22065_s21 + $0xc8] ss:$16 sps:$4 sm:$0xff]  }
 0x296   : > { %7619 = vmatpush2.bf16.msra.mxu1 %v20666_v12  ;;  %7577 = vmatprep.subr.bf16.mxu0 %v20671_v13  ;;  %v20708_v12 = vld [vmem:[%s22065_s21 + $0x2c8] ss:$16 sps:$4 sm:$0xff]   ;;  %v20719_v13 = vld [vmem:[%s22065_s21 + $0x8c] ss:$16 sps:$4 sm:$0xff]  }
 0x297   : > { %7620 = vmatprep.subr.bf16.mxu1 %v20674_v54  ;;  %v20722_v54 = vld [vmem:[%s22065_s21 + $0x28c] ss:$16 sps:$4 sm:$0xff]  }
 0x299   : > { %7578 = vmatpush2.bf16.msra.mxu0 %v20669_v58  ;;  %v20717_v58 = vld [vmem:[%s22065_s21 + $0x88] ss:$16 sps:$4 sm:$0xff]  }
 0x29a   : > { %7621 = vmatpush2.bf16.msra.mxu1 %v20672_v59  ;;  %7579 = vmatprep.subr.bf16.mxu0 %v20677_v60  ;;  %v20720_v59 = vld [vmem:[%s22065_s21 + $0x288] ss:$16 sps:$4 sm:$0xff]  }
 0x29b   : > { %7622 = vmatprep.subr.bf16.mxu1 %v20680_v61  ;;  %v20723_v60 = vld [vmem:[%s22065_s21 + $0x68] ss:$16 sps:$4 sm:$0xff]  }
 0x29c   : > { %v20726_v61 = vld [vmem:[%s22065_s21 + $0x268] ss:$16 sps:$4 sm:$0xff]  }
 0x29d   : > { %7580 = vmatpush2.bf16.msra.mxu0 %v20675_v62  ;;  %v20731_v62 = vld [vmem:[%s22065_s21 + $0x4c] ss:$16 sps:$4 sm:$0xff]  }
 0x29e   : > { %7623 = vmatpush2.bf16.msra.mxu1 %v20678_v63  ;;  %7581 = vmatprep.subr.bf16.mxu0 %v20683_v0  ;;  %v20734_v63 = vld [vmem:[%s22065_s21 + $0x24c] ss:$16 sps:$4 sm:$0xff]   ;;  %v20729_v0 = vld [vmem:[%s22065_s21 + $0x48] ss:$16 sps:$4 sm:$0xff]  }
 0x29f   : > { %7624 = vmatprep.subr.bf16.mxu1 %v20686_v1  ;;  %v20732_v1 = vld [vmem:[%s22065_s21 + $0x248] ss:$16 sps:$4 sm:$0xff]  }
 0x2a1   : > { %7582 = vmatpush2.bf16.msra.mxu0 %v20681_v2  ;;  %v20737_v2 = vld [vmem:[%s22065_s21 + $0x2c] ss:$16 sps:$4 sm:$0xff]  }
 0x2a2   : > { %7625 = vmatpush2.bf16.msra.mxu1 %v20684_v3  ;;  %7583 = vmatprep.subr.bf16.mxu0 %v20689_v4  ;;  %v20740_v3 = vld [vmem:[%s22065_s21 + $0x22c] ss:$16 sps:$4 sm:$0xff]   ;;  %v20735_v4 = vld [vmem:[%s22065_s21 + $0x28] ss:$16 sps:$4 sm:$0xff]  }
 0x2a3   : > { %7626 = vmatprep.subr.bf16.mxu1 %v20692_v5  ;;  %v20738_v5 = vld [vmem:[%s22065_s21 + $0x228] ss:$16 sps:$4 sm:$0xff]  }
 0x2a5   : > { %7584 = vmatpush2.bf16.msra.mxu0 %v20687_v46  ;;  %v20743_v46 = vld [vmem:[%s22065_s21 + $0xc] ss:$16 sps:$4 sm:$0xff]  }
 0x2a6   : > { %7627 = vmatpush2.bf16.msra.mxu1 %v20690_v47  ;;  %7585 = vmatprep.subr.bf16.mxu0 %v20695_v14  ;;  %v20746_v47 = vld [vmem:[%s22065_s21 + $0x20c] ss:$16 sps:$4 sm:$0xff]   ;;  %v20741_v14 = vld [vmem:[%s22065_s21 + $0x8] ss:$16 sps:$4 sm:$0xff]  }
 0x2a7   : > { %7628 = vmatprep.subr.bf16.mxu1 %v20698_v15  ;;  %v20744_v15 = vld [vmem:[%s22065_s21 + $0x208] ss:$16 sps:$4 sm:$0xff]  }
 0x2a9   : > { %7586 = vmatpush2.bf16.msra.mxu0 %v20693_v23  ;;  %v20749_v23 = vld [vmem:[%s22065_s21 + $0x1ec] ss:$16 sps:$4 sm:$0xff]  }
 0x2aa   : > { %7629 = vmatpush2.bf16.msra.mxu1 %v20696_v40  ;;  %7641 = vmatprep.subr.bf16.mxu0 %v20701_v52  ;;  %v20752_v40 = vld [vmem:[%s22065_s21 + $0x3ec] ss:$16 sps:$4 sm:$0xff]   ;;  %v20747_v52 = vld [vmem:[%s22065_s21 + $0x1e8] ss:$16 sps:$4 sm:$0xff]  }
 0x2ab   : > { %7684 = vmatprep.subr.bf16.mxu1 %v20704_v34  ;;  %v20750_v34 = vld [vmem:[%s22065_s21 + $0x3e8] ss:$16 sps:$4 sm:$0xff]  }
 0x2ac   : > { %7588 = vmatmul.mubr.bf16.vlgmr.msra.gmra.mxu0 %v22899_v27  ;;  %v20933_v27 = vld [vmem:[%s22065_s21 + $0x808] ss:$16 sps:$4 sm:$0xff]  }
 0x2ad   : > { %7631 = vmatmul.mubr.bf16.vlgmr.msra.gmra.mxu1 %v22903_v32  ;;  %7642 = vmatpush1.bf16.msra.mxu0 %v20699_v38  ;;  %v20755_v38 = vld [vmem:[%s22065_s21 + $0x1cc] ss:$16 sps:$4 sm:$0xff]  }
 0x2ae   : > { %7685 = vmatpush1.bf16.msra.mxu1 %v20702_v39  ;;  %7643 = vmatprep.subr.bf16.mxu0 %v20707_v42  ;;  %v20758_v39 = vld [vmem:[%s22065_s21 + $0x3cc] ss:$16 sps:$4 sm:$0xff]   ;;  %v20753_v42 = vld [vmem:[%s22065_s21 + $0x1c8] ss:$16 sps:$4 sm:$0xff]  }
 0x2af   : > { %7686 = vmatprep.subr.bf16.mxu1 %v20710_v6  ;;  %7673 = vmatprep.mubr.bf16.mxu0 %v22148_v53  ;;  %v20725_v53 = vld [vmem:[%s22065_s21 + $0x6c] ss:$16 sps:$4 sm:$0xff]   ;;  %v20756_v6 = vld [vmem:[%s22065_s21 + $0x3c8] ss:$16 sps:$4 sm:$0xff]  }
 0x2b0   : > { %7716 = vmatprep.mubr.bf16.mxu1 %v22151_v55  ;;  %v20728_v55 = vld [vmem:[%s22065_s21 + $0x26c] ss:$16 sps:$4 sm:$0xff]  }
 0x2b1   : > { %7644 = vmatpush1.bf16.msra.mxu0 %v20705_v7  ;;  %v20761_v7 = vld [vmem:[%s22065_s21 + $0x1ac] ss:$16 sps:$4 sm:$0xff]  }
 0x2b2   : > { %7687 = vmatpush1.bf16.msra.mxu1 %v20708_v12  ;;  %7645 = vmatprep.subr.bf16.mxu0 %v20713_v16  ;;  %v20764_v12 = vld [vmem:[%s22065_s21 + $0x3ac] ss:$16 sps:$4 sm:$0xff]   ;;  %v20759_v16 = vld [vmem:[%s22065_s21 + $0x1a8] ss:$16 sps:$4 sm:$0xff]  }
 0x2b3   : > { %7688 = vmatprep.subr.bf16.mxu1 %v20716_v17  ;;  %v20762_v17 = vld [vmem:[%s22065_s21 + $0x3a8] ss:$16 sps:$4 sm:$0xff]  }
 0x2b5   : > { %7646 = vmatpush1.bf16.msra.mxu0 %v20711_v18  ;;  %v20767_v18 = vld [vmem:[%s22065_s21 + $0x18c] ss:$16 sps:$4 sm:$0xff]  }
 0x2b6   : > { %7689 = vmatpush1.bf16.msra.mxu1 %v20714_v19  ;;  %7647 = vmatprep.subr.bf16.mxu0 %v20719_v13  ;;  %v20770_v19 = vld [vmem:[%s22065_s21 + $0x38c] ss:$16 sps:$4 sm:$0xff]   ;;  %v20765_v13 = vld [vmem:[%s22065_s21 + $0x188] ss:$16 sps:$4 sm:$0xff]  }
 0x2b7   : > { %7690 = vmatprep.subr.bf16.mxu1 %v20722_v54  ;;  %v20768_v54 = vld [vmem:[%s22065_s21 + $0x388] ss:$16 sps:$4 sm:$0xff]  }
 0x2b9   : > { %7648 = vmatpush1.bf16.msra.mxu0 %v20717_v58  ;;  %v20773_v58 = vld [vmem:[%s22065_s21 + $0x16c] ss:$16 sps:$4 sm:$0xff]  }
 0x2ba   : > { %7691 = vmatpush1.bf16.msra.mxu1 %v20720_v59  ;;  %7649 = vmatprep.subr.bf16.mxu0 %v20725_v53  ;;  %v20776_v59 = vld [vmem:[%s22065_s21 + $0x36c] ss:$16 sps:$4 sm:$0xff]   ;;  %v20771_v53 = vld [vmem:[%s22065_s21 + $0x168] ss:$16 sps:$4 sm:$0xff]  }
 0x2bb   : > { %7692 = vmatprep.subr.bf16.mxu1 %v20728_v55  ;;  %v20774_v55 = vld [vmem:[%s22065_s21 + $0x368] ss:$16 sps:$4 sm:$0xff]  }
 0x2bd   : > { %7650 = vmatpush1.bf16.msra.mxu0 %v20723_v60  ;;  %v20779_v60 = vld [vmem:[%s22065_s21 + $0x14c] ss:$16 sps:$4 sm:$0xff]  }
 0x2be   : > { %7693 = vmatpush1.bf16.msra.mxu1 %v20726_v61  ;;  %7651 = vmatprep.subr.bf16.mxu0 %v20731_v62  ;;  %v20782_v61 = vld [vmem:[%s22065_s21 + $0x34c] ss:$16 sps:$4 sm:$0xff]   ;;  %v20777_v62 = vld [vmem:[%s22065_s21 + $0x148] ss:$16 sps:$4 sm:$0xff]  }
 0x2bf   : > { %7694 = vmatprep.subr.bf16.mxu1 %v20734_v63  ;;  %v20780_v63 = vld [vmem:[%s22065_s21 + $0x348] ss:$16 sps:$4 sm:$0xff]  }
 0x2c1   : > { %7652 = vmatpush1.bf16.msra.mxu0 %v20729_v0  ;;  %v20785_v0 = vld [vmem:[%s22065_s21 + $0x12c] ss:$16 sps:$4 sm:$0xff]  }
 0x2c2   : > { %7695 = vmatpush1.bf16.msra.mxu1 %v20732_v1  ;;  %7653 = vmatprep.subr.bf16.mxu0 %v20737_v2  ;;  %v20788_v1 = vld [vmem:[%s22065_s21 + $0x32c] ss:$16 sps:$4 sm:$0xff]   ;;  %v20783_v2 = vld [vmem:[%s22065_s21 + $0x128] ss:$16 sps:$4 sm:$0xff]  }
 0x2c3   : > { %7696 = vmatprep.subr.bf16.mxu1 %v20740_v3  ;;  %v20786_v3 = vld [vmem:[%s22065_s21 + $0x328] ss:$16 sps:$4 sm:$0xff]  }
 0x2c5   : > { %7654 = vmatpush1.bf16.msra.mxu0 %v20735_v4  ;;  %v20791_v4 = vld [vmem:[%s22065_s21 + $0x10c] ss:$16 sps:$4 sm:$0xff]  }
 0x2c6   : > { %7697 = vmatpush1.bf16.msra.mxu1 %v20738_v5  ;;  %7655 = vmatprep.subr.bf16.mxu0 %v20743_v46  ;;  %v20794_v5 = vld [vmem:[%s22065_s21 + $0x30c] ss:$16 sps:$4 sm:$0xff]   ;;  %v20789_v46 = vld [vmem:[%s22065_s21 + $0x108] ss:$16 sps:$4 sm:$0xff]  }
 0x2c7   : > { %7698 = vmatprep.subr.bf16.mxu1 %v20746_v47  ;;  %v20792_v47 = vld [vmem:[%s22065_s21 + $0x308] ss:$16 sps:$4 sm:$0xff]  }
 0x2c9   : > { %7656 = vmatpush1.bf16.msra.mxu0 %v20741_v14  ;;  %v20797_v14 = vld [vmem:[%s22065_s21 + $0x4ec] ss:$16 sps:$4 sm:$0xff]  }
 0x2ca   : > { %7699 = vmatpush1.bf16.msra.mxu1 %v20744_v15  ;;  %7657 = vmatprep.subr.bf16.mxu0 %v20749_v23  ;;  %v20800_v15 = vld [vmem:[%s22065_s21 + $0x6ec] ss:$16 sps:$4 sm:$0xff]   ;;  %v20795_v23 = vld [vmem:[%s22065_s21 + $0x4e8] ss:$16 sps:$4 sm:$0xff]  }
 0x2cb   : > { %7700 = vmatprep.subr.bf16.mxu1 %v20752_v40  ;;  %v20798_v40 = vld [vmem:[%s22065_s21 + $0x6e8] ss:$16 sps:$4 sm:$0xff]  }
 0x2cd   : > { %7658 = vmatpush2.bf16.msra.mxu0 %v20747_v52  ;;  %v20803_v52 = vld [vmem:[%s22065_s21 + $0x4cc] ss:$16 sps:$4 sm:$0xff]  }
 0x2ce   : > { %7701 = vmatpush2.bf16.msra.mxu1 %v20750_v34  ;;  %7659 = vmatprep.subr.bf16.mxu0 %v20755_v38  ;;  %v20806_v34 = vld [vmem:[%s22065_s21 + $0x6cc] ss:$16 sps:$4 sm:$0xff]   ;;  %v20801_v38 = vld [vmem:[%s22065_s21 + $0x4c8] ss:$16 sps:$4 sm:$0xff]  }
 0x2cf   : > { %7702 = vmatprep.subr.bf16.mxu1 %v20758_v39  ;;  %v20804_v39 = vld [vmem:[%s22065_s21 + $0x6c8] ss:$16 sps:$4 sm:$0xff]  }
 0x2d1   : > { %7660 = vmatpush2.bf16.msra.mxu0 %v20753_v42  ;;  %v20809_v42 = vld [vmem:[%s22065_s21 + $0x4ac] ss:$16 sps:$4 sm:$0xff]  }
 0x2d2   : > { %7703 = vmatpush2.bf16.msra.mxu1 %v20756_v6  ;;  %7661 = vmatprep.subr.bf16.mxu0 %v20761_v7  ;;  %v20812_v6 = vld [vmem:[%s22065_s21 + $0x6ac] ss:$16 sps:$4 sm:$0xff]   ;;  %v20807_v7 = vld [vmem:[%s22065_s21 + $0x4a8] ss:$16 sps:$4 sm:$0xff]  }
 0x2d3   : > { %7704 = vmatprep.subr.bf16.mxu1 %v20764_v12  ;;  %v20818_v12 = vld [vmem:[%s22065_s21 + $0x68c] ss:$16 sps:$4 sm:$0xff]  }
 0x2d5   : > { %7662 = vmatpush2.bf16.msra.mxu0 %v20759_v16  ;;  %v20813_v16 = vld [vmem:[%s22065_s21 + $0x488] ss:$16 sps:$4 sm:$0xff]  }
 0x2d6   : > { %7705 = vmatpush2.bf16.msra.mxu1 %v20762_v17  ;;  %7663 = vmatprep.subr.bf16.mxu0 %v20767_v18  ;;  %v20816_v17 = vld [vmem:[%s22065_s21 + $0x688] ss:$16 sps:$4 sm:$0xff]  }
 0x2d7   : > { %7706 = vmatprep.subr.bf16.mxu1 %v20770_v19  ;;  %v20819_v18 = vld [vmem:[%s22065_s21 + $0x468] ss:$16 sps:$4 sm:$0xff]  }
 0x2d8   : > { %v20822_v19 = vld [vmem:[%s22065_s21 + $0x668] ss:$16 sps:$4 sm:$0xff]  }
 0x2d9   : > { %7664 = vmatpush2.bf16.msra.mxu0 %v20765_v13  ;;  %v20827_v13 = vld [vmem:[%s22065_s21 + $0x44c] ss:$16 sps:$4 sm:$0xff]  }
 0x2da   : > { %7707 = vmatpush2.bf16.msra.mxu1 %v20768_v54  ;;  %7665 = vmatprep.subr.bf16.mxu0 %v20773_v58  ;;  %v20830_v54 = vld [vmem:[%s22065_s21 + $0x64c] ss:$16 sps:$4 sm:$0xff]   ;;  %v20825_v58 = vld [vmem:[%s22065_s21 + $0x448] ss:$16 sps:$4 sm:$0xff]  }
 0x2db   : > { %7708 = vmatprep.subr.bf16.mxu1 %v20776_v59  ;;  %v20828_v59 = vld [vmem:[%s22065_s21 + $0x648] ss:$16 sps:$4 sm:$0xff]  }
 0x2dd   : > { %7666 = vmatpush2.bf16.msra.mxu0 %v20771_v53  ;;  %v20833_v53 = vld [vmem:[%s22065_s21 + $0x42c] ss:$16 sps:$4 sm:$0xff]  }
 0x2de   : > { %7709 = vmatpush2.bf16.msra.mxu1 %v20774_v55  ;;  %7667 = vmatprep.subr.bf16.mxu0 %v20779_v60  ;;  %v20836_v55 = vld [vmem:[%s22065_s21 + $0x62c] ss:$16 sps:$4 sm:$0xff]   ;;  %v20831_v60 = vld [vmem:[%s22065_s21 + $0x428] ss:$16 sps:$4 sm:$0xff]  }
 0x2df   : > { %7710 = vmatprep.subr.bf16.mxu1 %v20782_v61  ;;  %v20834_v61 = vld [vmem:[%s22065_s21 + $0x628] ss:$16 sps:$4 sm:$0xff]  }
 0x2e1   : > { %7668 = vmatpush2.bf16.msra.mxu0 %v20777_v62  ;;  %v20839_v62 = vld [vmem:[%s22065_s21 + $0x40c] ss:$16 sps:$4 sm:$0xff]  }
 0x2e2   : > { %7711 = vmatpush2.bf16.msra.mxu1 %v20780_v63  ;;  %7669 = vmatprep.subr.bf16.mxu0 %v20785_v0  ;;  %v20842_v63 = vld [vmem:[%s22065_s21 + $0x60c] ss:$16 sps:$4 sm:$0xff]   ;;  %v20837_v0 = vld [vmem:[%s22065_s21 + $0x408] ss:$16 sps:$4 sm:$0xff]  }
 0x2e3   : > { %7712 = vmatprep.subr.bf16.mxu1 %v20788_v1  ;;  %v20840_v1 = vld [vmem:[%s22065_s21 + $0x608] ss:$16 sps:$4 sm:$0xff]  }
 0x2e5   : > { %7670 = vmatpush2.bf16.msra.mxu0 %v20783_v2  ;;  %v20845_v2 = vld [vmem:[%s22065_s21 + $0x5ec] ss:$16 sps:$4 sm:$0xff]  }
 0x2e6   : > { %7713 = vmatpush2.bf16.msra.mxu1 %v20786_v3  ;;  %7671 = vmatprep.subr.bf16.mxu0 %v20791_v4  ;;  %v20848_v3 = vld [vmem:[%s22065_s21 + $0x7ec] ss:$16 sps:$4 sm:$0xff]   ;;  %v23007_v4 = vpop.f32.mrf.mxu0 }
 0x2e7   : > { %7714 = vmatprep.subr.bf16.mxu1 %v20794_v5  ;;  %v20843_v5 = vld [vmem:[%s22065_s21 + $0x5e8] ss:$16 sps:$4 sm:$0xff]  }
 0x2e9   : > { %7672 = vmatpush2.bf16.msra.mxu0 %v20789_v46  ;;  %v20846_v46 = vld [vmem:[%s22065_s21 + $0x7e8] ss:$16 sps:$4 sm:$0xff]  }
 0x2ea   : > { %7715 = vmatpush2.bf16.msra.mxu1 %v20792_v47  ;;  %7727 = vmatprep.subr.bf16.mxu0 %v20797_v14  ;;  %v23011_v47 = vpop.f32.mrf.mxu1  ;;  %v20851_v14 = vld [vmem:[%s22065_s21 + $0x5cc] ss:$16 sps:$4 sm:$0xff]  }
 0x2eb   : > { %7770 = vmatprep.subr.bf16.mxu1 %v20800_v15  ;;  %v20854_v15 = vld [vmem:[%s22065_s21 + $0x7cc] ss:$16 sps:$4 sm:$0xff]  }
 0x2ec   : > { %7674 = vmatmul.mubr.bf16.vlgmr.msra.gmra.mxu0 %v22171_v8  ;;  %v20810_v8 = vld [vmem:[%s22065_s21 + $0x6a8] ss:$16 sps:$4 sm:$0xff]  }
 0x2ed   : > { %7717 = vmatmul.mubr.bf16.vlgmr.msra.gmra.mxu1 %v22173_v9  ;;  %7728 = vmatpush1.bf16.msra.mxu0 %v20795_v23  ;;  %v20815_v9 = vld [vmem:[%s22065_s21 + $0x48c] ss:$16 sps:$4 sm:$0xff]   ;;  %v23015_v23 = vpop.f32.mrf.mxu0 }
 0x2ee   : > { %7771 = vmatpush1.bf16.msra.mxu1 %v20798_v40  ;;  %7729 = vmatprep.subr.bf16.mxu0 %v20803_v52  ;;  %v20849_v40 = vld [vmem:[%s22065_s21 + $0x5c8] ss:$16 sps:$4 sm:$0xff]  }
 0x2ef   : > { %7772 = vmatprep.subr.bf16.mxu1 %v20806_v34  ;;  %7759 = vmatprep.mubr.bf16.mxu0 %v22226_v41  ;;  %v20821_v41 = vld [vmem:[%s22065_s21 + $0x46c] ss:$16 sps:$4 sm:$0xff]   ;;  %v20852_v52 = vld [vmem:[%s22065_s21 + $0x7c8] ss:$16 sps:$4 sm:$0xff]   ;;  %v23019_v34 = vpop.f32.mrf.mxu1 }
 0x2f0   : > { %7802 = vmatprep.mubr.bf16.mxu1 %v22231_v43  ;;  %v20824_v43 = vld [vmem:[%s22065_s21 + $0x66c] ss:$16 sps:$4 sm:$0xff]  }
 0x2f1   : > { %7730 = vmatpush1.bf16.msra.mxu0 %v20801_v38  ;;  %v20857_v38 = vld [vmem:[%s22065_s21 + $0x5ac] ss:$16 sps:$4 sm:$0xff]  }
 0x2f2   : > { %7773 = vmatpush1.bf16.msra.mxu1 %v20804_v39  ;;  %7731 = vmatprep.subr.bf16.mxu0 %v20809_v42  ;;  %v20860_v39 = vld [vmem:[%s22065_s21 + $0x7ac] ss:$16 sps:$4 sm:$0xff]   ;;  %v23023_v42 = vpop.f32.mrf.mxu0 }
 0x2f3   : > { %7774 = vmatprep.subr.bf16.mxu1 %v20812_v6  ;;  %v20855_v6 = vld [vmem:[%s22065_s21 + $0x5a8] ss:$16 sps:$4 sm:$0xff]  }
 0x2f5   : > { %7732 = vmatpush1.bf16.msra.mxu0 %v20807_v7  ;;  %v20858_v7 = vld [vmem:[%s22065_s21 + $0x7a8] ss:$16 sps:$4 sm:$0xff]  }
 0x2f6   : > { %7775 = vmatpush1.bf16.msra.mxu1 %v20810_v8  ;;  %7733 = vmatprep.subr.bf16.mxu0 %v20815_v9  ;;  %v23027_v8 = vpop.f32.mrf.mxu1  ;;  %v20863_v9 = vld [vmem:[%s22065_s21 + $0x58c] ss:$16 sps:$4 sm:$0xff]  }
 0x2f7   : > { %7776 = vmatprep.subr.bf16.mxu1 %v20818_v12  ;;  %v20866_v12 = vld [vmem:[%s22065_s21 + $0x78c] ss:$16 sps:$4 sm:$0xff]  }
 0x2f9   : > { %7734 = vmatpush1.bf16.msra.mxu0 %v20813_v16  ;;  %v23031_v16 = vpop.f32.mrf.mxu0 }
 0x2fa   : > { %7777 = vmatpush1.bf16.msra.mxu1 %v20816_v17  ;;  %7735 = vmatprep.subr.bf16.mxu0 %v20821_v41  ;;  %v20861_v17 = vld [vmem:[%s22065_s21 + $0x588] ss:$16 sps:$4 sm:$0xff]  }
 0x2fb   : > { %7778 = vmatprep.subr.bf16.mxu1 %v20824_v43  ;;  %v20864_v41 = vld [vmem:[%s22065_s21 + $0x788] ss:$16 sps:$4 sm:$0xff]   ;;  %v23035_v43 = vpop.f32.mrf.mxu1 }
 0x2fd   : > { %7736 = vmatpush1.bf16.msra.mxu0 %v20819_v18  ;;  %v20869_v18 = vld [vmem:[%s22065_s21 + $0x56c] ss:$16 sps:$4 sm:$0xff]  }
 0x2fe   : > { %7779 = vmatpush1.bf16.msra.mxu1 %v20822_v19  ;;  %7737 = vmatprep.subr.bf16.mxu0 %v20827_v13  ;;  %v20872_v19 = vld [vmem:[%s22065_s21 + $0x76c] ss:$16 sps:$4 sm:$0xff]   ;;  %v23039_v13 = vpop.f32.mrf.mxu0 }
 0x2ff   : > { %7780 = vmatprep.subr.bf16.mxu1 %v20830_v54  ;;  %v23041_v54 = vpop.f32.mrf.mxu1 }
 0x301   : > { %7738 = vmatpush1.bf16.msra.mxu0 %v20825_v58  ;;  %v20867_v58 = vld [vmem:[%s22065_s21 + $0x568] ss:$16 sps:$4 sm:$0xff]  }
 0x302   : > { %7781 = vmatpush1.bf16.msra.mxu1 %v20828_v59  ;;  %7739 = vmatprep.subr.bf16.mxu0 %v20833_v53  ;;  %v20870_v59 = vld [vmem:[%s22065_s21 + $0x768] ss:$16 sps:$4 sm:$0xff]   ;;  %v20875_v53 = vld [vmem:[%s22065_s21 + $0x54c] ss:$16 sps:$4 sm:$0xff]  }
 0x303   : > { %7782 = vmatprep.subr.bf16.mxu1 %v20836_v55  ;;  %v20878_v55 = vld [vmem:[%s22065_s21 + $0x74c] ss:$16 sps:$4 sm:$0xff]  }
 0x305   : > { %7740 = vmatpush1.bf16.msra.mxu0 %v20831_v60  ;;  %v23047_v60 = vpop.f32.mrf.mxu0 }
 0x306   : > { %7783 = vmatpush1.bf16.msra.mxu1 %v20834_v61  ;;  %7741 = vmatprep.subr.bf16.mxu0 %v20839_v62  ;;  %v23049_v61 = vpop.f32.mrf.mxu1  ;;  %v20873_v62 = vld [vmem:[%s22065_s21 + $0x548] ss:$16 sps:$4 sm:$0xff]  }
 0x307   : > { %7784 = vmatprep.subr.bf16.mxu1 %v20842_v63  ;;  %v20876_v63 = vld [vmem:[%s22065_s21 + $0x748] ss:$16 sps:$4 sm:$0xff]  }
 0x309   : > { %7742 = vmatpush1.bf16.msra.mxu0 %v20837_v0  ;;  %v20881_v0 = vld [vmem:[%s22065_s21 + $0x52c] ss:$16 sps:$4 sm:$0xff]  }
 0x30a   : > { %7785 = vmatpush1.bf16.msra.mxu1 %v20840_v1  ;;  %7743 = vmatprep.subr.bf16.mxu0 %v20845_v2  ;;  %v20884_v1 = vld [vmem:[%s22065_s21 + $0x72c] ss:$16 sps:$4 sm:$0xff]   ;;  %v23055_v2 = vpop.f32.mrf.mxu0 }
 0x30b   : > { %7786 = vmatprep.subr.bf16.mxu1 %v20848_v3  ;;  %v23057_v3 = vpop.f32.mrf.mxu1 }
 0x30d   : > { %7744 = vmatpush2.bf16.msra.mxu0 %v20843_v5  ;;  %v20879_v5 = vld [vmem:[%s22065_s21 + $0x528] ss:$16 sps:$4 sm:$0xff]  }
 0x30e   : > { %7787 = vmatpush2.bf16.msra.mxu1 %v20846_v46  ;;  %7745 = vmatprep.subr.bf16.mxu0 %v20851_v14  ;;  %v20882_v46 = vld [vmem:[%s22065_s21 + $0x728] ss:$16 sps:$4 sm:$0xff]   ;;  %v20887_v14 = vld [vmem:[%s22065_s21 + $0x50c] ss:$16 sps:$4 sm:$0xff]  }
 0x30f   : > { %7788 = vmatprep.subr.bf16.mxu1 %v20854_v15  ;;  %v20890_v15 = vld [vmem:[%s22065_s21 + $0x70c] ss:$16 sps:$4 sm:$0xff]  }
 0x311   : > { %7746 = vmatpush2.bf16.msra.mxu0 %v20849_v40  ;;  %v23063_v40 = vpop.f32.mrf.mxu0 }
 0x312   : > { %7789 = vmatpush2.bf16.msra.mxu1 %v20852_v52  ;;  %7747 = vmatprep.subr.bf16.mxu0 %v20857_v38  ;;  %v23065_v52 = vpop.f32.mrf.mxu1 }
 0x313   : > { %7790 = vmatprep.subr.bf16.mxu1 %v20860_v39  ;;  %v23067_v38 = vpop.f32.mrf.mxu0  ;;  %v20885_v39 = vld [vmem:[%s22065_s21 + $0x508] ss:$16 sps:$4 sm:$0xff]  }
 0x315   : > { %7748 = vmatpush2.bf16.msra.mxu0 %v20855_v6  ;;  %v20888_v6 = vld [vmem:[%s22065_s21 + $0x708] ss:$16 sps:$4 sm:$0xff]  }
 0x316   : > { %7791 = vmatpush2.bf16.msra.mxu1 %v20858_v7  ;;  %7749 = vmatprep.subr.bf16.mxu0 %v20863_v9  ;;  %v23071_v7 = vpop.f32.mrf.mxu1  ;;  %v20893_v9 = vld [vmem:[%s22065_s21 + $0x8ec] ss:$16 sps:$4 sm:$0xff]  }
 0x317   : > { %7792 = vmatprep.subr.bf16.mxu1 %v20866_v12  ;;  %v20896_v12 = vld [vmem:[%s22065_s21 + $0xaec] ss:$16 sps:$4 sm:$0xff]  }
 0x319   : > { %7750 = vmatpush2.bf16.msra.mxu0 %v20861_v17  ;;  %v23075_v17 = vpop.f32.mrf.mxu0 }
 0x31a   : > { %7793 = vmatpush2.bf16.msra.mxu1 %v20864_v41  ;;  %7751 = vmatprep.subr.bf16.mxu0 %v20869_v18  ;;  %v20891_v41 = vld [vmem:[%s22065_s21 + $0x8e8] ss:$16 sps:$4 sm:$0xff]  }
 0x31b   : > { %7794 = vmatprep.subr.bf16.mxu1 %v20872_v19  ;;  %v20894_v18 = vld [vmem:[%s22065_s21 + $0xae8] ss:$16 sps:$4 sm:$0xff]   ;;  %v23079_v19 = vpop.f32.mrf.mxu1 }
 0x31d   : > { %7752 = vmatpush2.bf16.msra.mxu0 %v20867_v58  ;;  %v20899_v58 = vld [vmem:[%s22065_s21 + $0x8cc] ss:$16 sps:$4 sm:$0xff]  }
 0x31e   : > { %7795 = vmatpush2.bf16.msra.mxu1 %v20870_v59  ;;  %7753 = vmatprep.subr.bf16.mxu0 %v20875_v53  ;;  %v20902_v59 = vld [vmem:[%s22065_s21 + $0xacc] ss:$16 sps:$4 sm:$0xff]   ;;  %v23085_v53 = vpop.f32.mrf.mxu0 }
 0x31f   : > { %7796 = vmatprep.subr.bf16.mxu1 %v20878_v55  ;;  %v20897_v55 = vld [vmem:[%s22065_s21 + $0x8c8] ss:$16 sps:$4 sm:$0xff]  }
 0x321   : > { %7754 = vmatpush2.bf16.msra.mxu0 %v20873_v62  ;;  %v20900_v62 = vld [vmem:[%s22065_s21 + $0xac8] ss:$16 sps:$4 sm:$0xff]  }
 0x322   : > { %7797 = vmatpush2.bf16.msra.mxu1 %v20876_v63  ;;  %7755 = vmatprep.subr.bf16.mxu0 %v20881_v0  ;;  %v23089_v63 = vpop.f32.mrf.mxu1  ;;  %v20905_v0 = vld [vmem:[%s22065_s21 + $0x8ac] ss:$16 sps:$4 sm:$0xff]  }
 0x323   : > { %7798 = vmatprep.subr.bf16.mxu1 %v20884_v1  ;;  %v20908_v1 = vld [vmem:[%s22065_s21 + $0xaac] ss:$16 sps:$4 sm:$0xff]  }
 0x325   : > { %7756 = vmatpush2.bf16.msra.mxu0 %v20879_v5  ;;  %v20906_v5 = vld [vmem:[%s22065_s21 + $0xaa8] ss:$16 sps:$4 sm:$0xff]  }
 0x326   : > { %7799 = vmatpush2.bf16.msra.mxu1 %v20882_v46  ;;  %7757 = vmatprep.subr.bf16.mxu0 %v20887_v14  ;;  %v23099_v46 = vpop.f32.mrf.mxu1  ;;  %v20911_v14 = vld [vmem:[%s22065_s21 + $0x88c] ss:$16 sps:$4 sm:$0xff]  }
 0x327   : > { %7800 = vmatprep.subr.bf16.mxu1 %v20890_v15  ;;  %v20914_v15 = vld [vmem:[%s22065_s21 + $0xa8c] ss:$16 sps:$4 sm:$0xff]  }
 0x329   : > { %7758 = vmatpush2.bf16.msra.mxu0 %v20885_v39  ;;  %v20909_v39 = vld [vmem:[%s22065_s21 + $0x888] ss:$16 sps:$4 sm:$0xff]  }
 0x32a   : > { %7801 = vmatpush2.bf16.msra.mxu1 %v20888_v6  ;;  %7813 = vmatprep.subr.bf16.mxu0 %v20893_v9  ;;  %v20912_v6 = vld [vmem:[%s22065_s21 + $0xa88] ss:$16 sps:$4 sm:$0xff]   ;;  %v20917_v9 = vld [vmem:[%s22065_s21 + $0x86c] ss:$16 sps:$4 sm:$0xff]  }
 0x32b   : > { %7856 = vmatprep.subr.bf16.mxu1 %v20896_v12  ;;  %v20920_v12 = vld [vmem:[%s22065_s21 + $0xa6c] ss:$16 sps:$4 sm:$0xff]  }
 0x32c   : > { %7760 = vmatmul.mubr.bf16.vlgmr.msra.gmra.mxu0 %v22273_v20  ;;  %v23095_v20 = vpop.f32.mrf.mxu0 }
 0x32d   : > { %7803 = vmatmul.mubr.bf16.vlgmr.msra.gmra.mxu1 %v22277_v21  ;;  %7814 = vmatpush1.bf16.msra.mxu0 %v20891_v41  ;;  %v20903_v21 = vld [vmem:[%s22065_s21 + $0x8a8] ss:$16 sps:$4 sm:$0xff]  }
 0x32e   : > { %7857 = vmatpush1.bf16.msra.mxu1 %v20894_v18  ;;  %7815 = vmatprep.subr.bf16.mxu0 %v20899_v58  ;;  %v20915_v58 = vld [vmem:[%s22065_s21 + $0x868] ss:$16 sps:$4 sm:$0xff]  }
 0x32f   : > { %7858 = vmatprep.subr.bf16.mxu1 %v20902_v59  ;;  %7845 = vmatprep.mubr.bf16.mxu0 %v22310_v33  ;;  %v23103_v33 = vpop.f32.mrf.mxu0  ;;  %v20918_v59 = vld [vmem:[%s22065_s21 + $0xa68] ss:$16 sps:$4 sm:$0xff]  }
 0x330   : > { %7888 = vmatprep.mubr.bf16.mxu1 %v22315_v35  ;;  %v23105_v35 = vpop.f32.mrf.mxu1 }
 0x331   : > { %7816 = vmatpush1.bf16.msra.mxu0 %v20897_v55  ;;  %v23111_v41 = vpop.f32.mrf.mxu0  ;;  %v20923_v55 = vld [vmem:[%s22065_s21 + $0x84c] ss:$16 sps:$4 sm:$0xff]  }
 0x332   : > { %7859 = vmatpush1.bf16.msra.mxu1 %v20900_v62  ;;  %7817 = vmatprep.subr.bf16.mxu0 %v20905_v0  ;;  %v23113_v18 = vpop.f32.mrf.mxu1  ;;  %v20926_v62 = vld [vmem:[%s22065_s21 + $0xa4c] ss:$16 sps:$4 sm:$0xff]  }
 0x333   : > { %7860 = vmatprep.subr.bf16.mxu1 %v20908_v1  ;;  %v23119_v0 = vpop.f32.mrf.mxu0 }
 0x334   : > { %v23121_v1 = vpop.f32.mrf.mxu1 }
 0x335   : > { %7818 = vmatpush1.bf16.msra.mxu0 %v20903_v21  ;;  %v20921_v21 = vld [vmem:[%s22065_s21 + $0x848] ss:$16 sps:$4 sm:$0xff]  }
 0x336   : > { %7861 = vmatpush1.bf16.msra.mxu1 %v20906_v5  ;;  %7819 = vmatprep.subr.bf16.mxu0 %v20911_v14  ;;  %v20924_v5 = vld [vmem:[%s22065_s21 + $0xa48] ss:$16 sps:$4 sm:$0xff]   ;;  %v20929_v14 = vld [vmem:[%s22065_s21 + $0x82c] ss:$16 sps:$4 sm:$0xff]  }
 0x337   : > { %7862 = vmatprep.subr.bf16.mxu1 %v20914_v15  ;;  %v20932_v15 = vld [vmem:[%s22065_s21 + $0xa2c] ss:$16 sps:$4 sm:$0xff]  }
 0x339   : > { %7820 = vmatpush1.bf16.msra.mxu0 %v20909_v39  ;;  %v23127_v39 = vpop.f32.mrf.mxu0 }
 0x33a   : > { %7863 = vmatpush1.bf16.msra.mxu1 %v20912_v6  ;;  %7821 = vmatprep.subr.bf16.mxu0 %v20917_v9  ;;  %v23129_v6 = vpop.f32.mrf.mxu1 }
 0x33b   : > { %7864 = vmatprep.subr.bf16.mxu1 %v20920_v12  ;;  %v23131_v9 = vpop.f32.mrf.mxu0  ;;  %v20927_v12 = vld [vmem:[%s22065_s21 + $0x828] ss:$16 sps:$4 sm:$0xff]  }
 0x33d   : > { %7822 = vmatpush1.bf16.msra.mxu0 %v20915_v58  ;;  %v20930_v58 = vld [vmem:[%s22065_s21 + $0xa28] ss:$16 sps:$4 sm:$0xff]   ;;  %v23139_v32 = vpop.f32.mrf.mxu0 }
 0x33e   : > { %7865 = vmatpush1.bf16.msra.mxu1 %v20918_v59  ;;  %7823 = vmatprep.subr.bf16.mxu0 %v20923_v55  ;;  %v23135_v59 = vpop.f32.mrf.mxu1  ;;  %v20935_v55 = vld [vmem:[%s22065_s21 + $0x80c] ss:$16 sps:$4 sm:$0xff]  }
 0x33f   : > { %7866 = vmatprep.subr.bf16.mxu1 %v20926_v62  ;;  %v20938_v62 = vld [vmem:[%s22065_s21 + $0xa0c] ss:$16 sps:$4 sm:$0xff]   ;;  %v23152_v29 = vpop.f32.mrf.mxu0 }
 0x341   : > { %7824 = vmatpush1.bf16.msra.mxu0 %v20921_v21  ;;  %v23143_v21 = vpop.f32.mrf.mxu1 }
 0x342   : > { %7867 = vmatpush1.bf16.msra.mxu1 %v20924_v5  ;;  %7825 = vmatprep.subr.bf16.mxu0 %v20929_v14  ;;  %v20941_v5 = vld [vmem:[%s22065_s21 + $0x9ec] ss:$16 sps:$4 sm:$0xff]   ;;  %v7031_v14 = vadd.f32 %v23011_v47, %v23007_v4  ;;  %v7035_v47 = vadd.f32 %v23027_v8, %v23023_v42 }
 0x343   : > { %7868 = vmatprep.subr.bf16.mxu1 %v20932_v15  ;;  %v7033_v15 = vadd.f32 %v23019_v34, %v23015_v23  ;;  %v23156_v28 = vpop.f32.mrf.mxu1  ;;  %v20950_v4 = vld [vmem:[%s22065_s21 + $0xbcc] ss:$16 sps:$4 sm:$0xff]  }
 0x344   : > { %v7078_v34 = vadd.f32 %v23055_v2, %v7035_v47  ;;  %v20953_v8 = vld [vmem:[%s22065_s21 + $0x9ac] ss:$16 sps:$4 sm:$0xff]  }
 0x345   : > { %7826 = vmatpush1.bf16.msra.mxu0 %v20927_v12  ;;  %v7074_v12 = vadd.f32 %v23039_v13, %v7031_v14  ;;  %v7076_v23 = vadd.f32 %v23047_v60, %v7033_v15  ;;  %v23167_v13 = vpop.f32.mrf.mxu0  ;;  %v23172_v42 = vpop.f32.mrf.mxu1 }
 0x346   : > { %7869 = vmatpush1.bf16.msra.mxu1 %v20930_v58  ;;  %7827 = vmatprep.subr.bf16.mxu0 %v20935_v55  ;;  %v20939_v58 = vld [vmem:[%s22065_s21 + $0x9e8] ss:$16 sps:$4 sm:$0xff]   ;;  %v7121_v15 = vadd.f32 %v23057_v3, %v7078_v34 }
 0x347   : > { %7870 = vmatprep.subr.bf16.mxu1 %v20938_v62  ;;  %v20942_v55 = vld [vmem:[%s22065_s21 + $0xbe8] ss:$16 sps:$4 sm:$0xff]   ;;  %v20947_v62 = vld [vmem:[%s22065_s21 + $0x9cc] ss:$16 sps:$4 sm:$0xff]   ;;  %v23178_v60 = vpop.f32.mrf.mxu0  ;;  %v23180_v2 = vpop.f32.mrf.mxu1 }
 0x348   : > { %v7164_v3 = vadd.f32 %v23085_v53, %v7121_v15  ;;  %v20968_v53 = vld [vmem:[%s22065_s21 + $0xb6c] ss:$16 sps:$4 sm:$0xff]  }
 0x349   : > { %7828 = vmatpush1.bf16.msra.mxu0 %v20933_v27  ;;  %v7117_v27 = vadd.f32 %v23041_v54, %v7074_v12  ;;  %v20951_v12 = vld [vmem:[%s22065_s21 + $0x9a8] ss:$16 sps:$4 sm:$0xff]   ;;  %v23194_v47 = vpop.f32.mrf.mxu1 }
 0x34a   : > { %7871 = vmatpush1.bf16.msra.mxu1 %v20936_v26  ;;  %7829 = vmatprep.subr.bf16.mxu0 %v20941_v5  ;;  %v7037_v26 = vadd.f32 %v23035_v43, %v23031_v16  ;;  %v20948_v5 = vld [vmem:[%s22065_s21 + $0xbc8] ss:$16 sps:$4 sm:$0xff]   ;;  %v20956_v16 = vld [vmem:[%s22065_s21 + $0xbac] ss:$16 sps:$4 sm:$0xff]   ;;  %v7119_v43 = vadd.f32 %v23049_v61, %v7076_v23 }
 0x34b   : > { %7872 = vmatprep.subr.bf16.mxu1 %v20944_v22  ;;  %v20945_v22 = vld [vmem:[%s22065_s21 + $0x9c8] ss:$16 sps:$4 sm:$0xff]   ;;  %v7160_v54 = vadd.f32 %v23067_v38, %v7117_v27  ;;  %v20959_v61 = vld [vmem:[%s22065_s21 + $0x98c] ss:$16 sps:$4 sm:$0xff]  }
 0x34c   : > { %v7080_v14 = vadd.f32 %v23063_v40, %v7037_v26  ;;  %v7162_v40 = vadd.f32 %v23075_v17, %v7119_v43  ;;  %v20962_v38 = vld [vmem:[%s22065_s21 + $0xb8c] ss:$16 sps:$4 sm:$0xff]   ;;  %v20957_v26 = vld [vmem:[%s22065_s21 + $0x988] ss:$16 sps:$4 sm:$0xff]  }
 0x34d   : > { %7830 = vmatpush2.bf16.msra.mxu0 %v20939_v58  ;;  %v20954_v58 = vld [vmem:[%s22065_s21 + $0xba8] ss:$16 sps:$4 sm:$0xff]  }
 0x34e   : > { %7873 = vmatpush2.bf16.msra.mxu1 %v20942_v55  ;;  %7831 = vmatprep.subr.bf16.mxu0 %v20947_v62  ;;  %v7123_v55 = vadd.f32 %v23065_v52, %v7080_v14  ;;  %v7203_v62 = vadd.f32 %v23071_v7, %v7160_v54  ;;  %v7205_v23 = vadd.f32 %v23079_v19, %v7162_v40  ;;  %v20960_v27 = vld [vmem:[%s22065_s21 + $0xb88] ss:$16 sps:$4 sm:$0xff]   ;;  %v20965_v7 = vld [vmem:[%s22065_s21 + $0x96c] ss:$16 sps:$4 sm:$0xff]  }
 0x34f   : > { %7874 = vmatprep.subr.bf16.mxu1 %v20950_v4  ;;  %v23191_v4 = vpop.f32.mrf.mxu0 }
 0x350   : > { %v7166_v17 = vadd.f32 %v23095_v20, %v7123_v55  ;;  %v7246_v52 = vadd.f32 %v23103_v33, %v7203_v62  ;;  %v7207_v20 = vadd.f32 %v23089_v63, %v7164_v3  ;;  %v7248_v34 = vadd.f32 %v23111_v41, %v7205_v23  ;;  %v23205_v33 = vpop.f32.mrf.mxu1  ;;  %v20971_v63 = vld [vmem:[%s22065_s21 + $0x94c] ss:$16 sps:$4 sm:$0xff]   ;;  %v20978_v23 = vld [vmem:[%s22065_s21 + $0xb28] ss:$16 sps:$4 sm:$0xff]  }
 0x351   : > { %7832 = vmatpush2.bf16.msra.mxu0 %v20945_v22  ;;  %v7421_v22 = vpop.f32.mrf.mxu0  ;;  %v20974_v41 = vld [vmem:[%s22065_s21 + $0xb4c] ss:$16 sps:$4 sm:$0xff]  }
 0x352   : > { %7875 = vmatpush2.bf16.msra.mxu1 %v20948_v5  ;;  %7833 = vmatprep.subr.bf16.mxu0 %v20953_v8  ;;  %v7209_v19 = vadd.f32 %v23099_v46, %v7166_v17  ;;  %v7289_v5 = vadd.f32 %v23105_v35, %v7246_v52  ;;  %v7250_v14 = vadd.f32 %v23119_v0, %v7207_v20  ;;  %v20963_v8 = vld [vmem:[%s22065_s21 + $0x968] ss:$16 sps:$4 sm:$0xff]   ;;  %v7466_v0 = vpop.f32.mrf.mxu1  ;;  %v8331_v52 = vlaneseq }
 0x353   : > { %7876 = vmatprep.subr.bf16.mxu1 %v20956_v16  ;;  %v20966_v16 = vld [vmem:[%s22065_s21 + $0xb68] ss:$16 sps:$4 sm:$0xff]   ;;  %v7291_v46 = vadd.f32 %v23113_v18, %v7248_v34  ;;  %v7423_v35 = vpop.f32.mrf.mxu0 }
 0x354   : > { %v7252_v43 = vadd.f32 %v23127_v39, %v7209_v19  ;;  %v7332_v54 = vadd.f32 %v23131_v9, %v7289_v5  ;;  %v7293_v15 = vadd.f32 %v23121_v1, %v7250_v14  ;;  %v7546_v55 = vpop.f32.mrf.mxu1  ;;  %v20977_v9 = vld [vmem:[%s22065_s21 + $0x92c] ss:$16 sps:$4 sm:$0xff]   ;;  %v20975_v17 = vld [vmem:[%s22065_s21 + $0x928] ss:$16 sps:$4 sm:$0xff]   ;;  %v23249_v19 = vshrl.u32 %v8331_v52, 7 }
 0x355   : > { %7834 = vmatpush2.bf16.msra.mxu0 %v20951_v12  ;;  %v7334_v40 = vadd.f32 %v23139_v32, %v7291_v46  ;;  %v7503_v39 = vpop.f32.mrf.mxu0  ;;  %v20969_v12 = vld [vmem:[%s22065_s21 + $0x948] ss:$16 sps:$4 sm:$0xff]  }
 0x356   : > { %7877 = vmatpush2.bf16.msra.mxu1 %v20954_v58  ;;  %7835 = vmatprep.subr.bf16.mxu0 %v20959_v61  ;;  %v20972_v58 = vld [vmem:[%s22065_s21 + $0xb48] ss:$16 sps:$4 sm:$0xff]   ;;  %v7295_v18 = vadd.f32 %v23129_v6, %v7252_v43  ;;  %v20980_v61 = vld [vmem:[%s22065_s21 + $0xb2c] ss:$16 sps:$4 sm:$0xff]   ;;  %v7375_v32 = vadd.f32 %v23135_v59, %v7332_v54  ;;  %v7336_v1 = vadd.f32 %v23152_v29, %v7293_v15 }
 0x357   : > { %7878 = vmatprep.subr.bf16.mxu1 %v20962_v38  ;;  %v7377_v38 = vadd.f32 %v23143_v21, %v7334_v40  ;;  %v7505_v3 = vpop.f32.mrf.mxu0  ;;  %v20983_v59 = vld [vmem:[%s22065_s21 + $0x90c] ss:$16 sps:$4 sm:$0xff]   ;;  %v20981_v20 = vld [vmem:[%s22065_s21 + $0x908] ss:$16 sps:$4 sm:$0xff]  }
 0x358   : > { %v7338_v6 = vadd.f32 %v23167_v13, %v7295_v18  ;;  %v7418_v62 = vadd.f32 %v23178_v60, %v7375_v32  ;;  %v7379_v29 = vadd.f32 %v23156_v28, %v7336_v1  ;;  %v20984_v34 = vld [vmem:[%s22065_s21 + $0xb08] ss:$16 sps:$4 sm:$0xff]   ;;  %v20989_v28 = vld [vmem:[%s22065_s21 + $0xcec] ss:$16 sps:$4 sm:$0xff]  }
 0x359   : > { %7836 = vmatpush2.bf16.msra.mxu0 %v20957_v26  ;;  %v7548_v26 = vpop.f32.mrf.mxu1  ;;  %v7420_v21 = vadd.f32 %v23191_v4, %v7377_v38  ;;  %v20995_v15 = vld [vmem:[%s22065_s21 + $0xccc] ss:$16 sps:$4 sm:$0xff]   ;;  %v20993_v1 = vld [vmem:[%s22065_s21 + $0xcc8] ss:$16 sps:$4 sm:$0xff]  }
 0x35a   : > { %7879 = vmatpush2.bf16.msra.mxu1 %v20960_v27  ;;  %7837 = vmatprep.subr.bf16.mxu0 %v20965_v7  ;;  %v20986_v27 = vld [vmem:[%s22065_s21 + $0xb0c] ss:$16 sps:$4 sm:$0xff]   ;;  %v7381_v13 = vadd.f32 %v23172_v42, %v7338_v6  ;;  %v7461_v60 = vadd.f32 %v23180_v2, %v7418_v62  ;;  %v7422_v7 = vadd.f32 %v7421_v22, %v7379_v29  ;;  %v20987_v22 = vld [vmem:[%s22065_s21 + $0xce8] ss:$16 sps:$4 sm:$0xff]  }
 0x35b   : > { %7880 = vmatprep.subr.bf16.mxu1 %v20968_v53  ;;  %v7507_v53 = vpop.f32.mrf.mxu0  ;;  %v7550_v14 = vpop.f32.mrf.mxu1  ;;  %v20992_v42 = vld [vmem:[%s22065_s21 + $0xeec] ss:$16 sps:$4 sm:$0xff]   ;;  %v7463_v2 = vadd.f32 %v23194_v47, %v7420_v21  ;;  %v20990_v47 = vld [vmem:[%s22065_s21 + $0xee8] ss:$16 sps:$4 sm:$0xff]  }
 0x35c   : > { %v7424_v5 = vadd.f32 %v7423_v35, %v7381_v13  ;;  %v7504_v4 = vadd.f32 %v7503_v39, %v7461_v60  ;;  %v23272_v35 = vsub.s32 1, %v23249_v19  ;;  %v20996_v6 = vld [vmem:[%s22065_s21 + $0xec8] ss:$16 sps:$4 sm:$0xff]  }
 0x35d   : > { %7838 = vmatpush2.bf16.msra.mxu0 %v20963_v8  ;;  %v7465_v8 = vadd.f32 %v23205_v33, %v7422_v7  ;;  %v7509_v43 = vpop.f32.mrf.mxu0  ;;  %v7552_v54 = vpop.f32.mrf.mxu1  ;;  %v20998_v33 = vld [vmem:[%s22065_s21 + $0xecc] ss:$16 sps:$4 sm:$0xff]   ;;  %v20999_v7 = vld [vmem:[%s22065_s21 + $0xca8] ss:$16 sps:$4 sm:$0xff]  }
 0x35e   : > { %7881 = vmatpush2.bf16.msra.mxu1 %v20966_v16  ;;  %7839 = vmatprep.subr.bf16.mxu0 %v20971_v63  ;;  %v7506_v16 = vadd.f32 %v7505_v3, %v7463_v2  ;;  %v8329_v63 = vld [vmem:[%s23254_s6] sm:$0xf]  ;;  %v7467_v46 = vadd.f32 %v7466_v0, %v7424_v5  ;;  %v7547_v40 = vadd.f32 %v7546_v55, %v7504_v4 }
 0x35f   : > { %7882 = vmatprep.subr.bf16.mxu1 %v20974_v41  ;;  %v23268_v41 = vsub.s32 0, %v23249_v19  ;;  %v7508_v39 = vadd.f32 %v7507_v53, %v7465_v8  ;;  %v8338_v3 = vrot.slane %v8329_v63, %v23272_v35  ;;  %v21002_v53 = vld [vmem:[%s22065_s21 + $0xea8] ss:$16 sps:$4 sm:$0xff]  }
 0x360   : > { %v7549_v0 = vadd.f32 %v7548_v26, %v7506_v16  ;;  %v21005_v16 = vld [vmem:[%s22065_s21 + $0xc88] ss:$16 sps:$4 sm:$0xff]  }
 0x361   : > { %7840 = vmatpush2.bf16.msra.mxu0 %v20969_v12  ;;  %v8359_v12 = vld [vmem:[%s23262_s17] sm:$0xf]  ;;  %v8334_v32 = vrot.slane %v8329_v63, %v23268_v41  ;;  %v21013_v63 = vld [vmem:[%s22065_s21 + $0xc6c] ss:$16 sps:$4 sm:$0xff]  }
 0x362   : > { %7883 = vmatpush2.bf16.msra.mxu1 %v20972_v58  ;;  %7841 = vmatprep.subr.bf16.mxu0 %v20977_v9  ;;  %v7510_v58 = vadd.f32 %v7509_v43, %v7467_v46  ;;  %v8364_v55 = vrot.slane %v8359_v12, %v23268_v41  ;;  %v21008_v43 = vld [vmem:[%s22065_s21 + $0xe88] ss:$16 sps:$4 sm:$0xff]  }
 0x363   : > { %7884 = vmatprep.subr.bf16.mxu1 %v20980_v61 }
 0x364   : > { %v7553_v26 = vadd.f32 %v7552_v54, %v7510_v58  ;;  %v21019_v58 = vld [vmem:[%s22065_s21 + $0xc4c] ss:$16 sps:$4 sm:$0xff]  }
 0x365   : > { %7842 = vmatpush2.bf16.msra.mxu0 %v20975_v17  ;;  %v21004_v17 = vld [vmem:[%s22065_s21 + $0xeac] ss:$16 sps:$4 sm:$0xff]  }
 0x366   : > { %7885 = vmatpush2.bf16.msra.mxu1 %v20978_v23  ;;  %7843 = vmatprep.subr.bf16.mxu0 %v20983_v59  ;;  %v8368_v59 = vrot.slane %v8359_v12, %v23272_v35  ;;  %v21014_v12 = vld [vmem:[%s22065_s21 + $0xe68] ss:$16 sps:$4 sm:$0xff]  }
 0x367   : > { %7886 = vmatprep.subr.bf16.mxu1 %v20986_v27 }
 0x369   : > { %7844 = vmatpush2.bf16.msra.mxu0 %v20981_v20 }
 0x36a   : > { %7887 = vmatpush2.bf16.msra.mxu1 %v20984_v34  ;;  %7899 = vmatprep.subr.bf16.mxu0 %v20989_v28 }
 0x36b   : > { %7942 = vmatprep.subr.bf16.mxu1 %v20992_v42 }
 0x36c   : > { %v7589_v18 = vpop.f32.mrf.mxu0  ;;  %7846 = vmatmul.mubr.bf16.vlgmr.msra.gmra.mxu0 %v22389_v48  ;;  %v21001_v48 = vld [vmem:[%s22065_s21 + $0xcac] ss:$16 sps:$4 sm:$0xff]  }
 0x36d   : > { %v7632_v9 = vpop.f32.mrf.mxu1  ;;  %7889 = vmatmul.mubr.bf16.vlgmr.msra.gmra.mxu1 %v22393_v49  ;;  %v7590_v61 = vadd.f32 %v7589_v18, %v7547_v40  ;;  %7900 = vmatpush1.bf16.msra.mxu0 %v20987_v22  ;;  %v7551_v49 = vadd.f32 %v7550_v14, %v7508_v39  ;;  %v21011_v39 = vld [vmem:[%s22065_s21 + $0xc68] ss:$16 sps:$4 sm:$0xff]   ;;  %v21022_v18 = vld [vmem:[%s22065_s21 + $0xe4c] ss:$16 sps:$4 sm:$0xff]  }
 0x36e   : > { %7943 = vmatpush1.bf16.msra.mxu1 %v20990_v47  ;;  %v7591_v38 = vpop.f32.mrf.mxu0  ;;  %7901 = vmatprep.subr.bf16.mxu0 %v20995_v15  ;;  %v21016_v47 = vld [vmem:[%s22065_s21 + $0xe6c] ss:$16 sps:$4 sm:$0xff]  }
 0x36f   : > { %v7634_v62 = vpop.f32.mrf.mxu1  ;;  %7944 = vmatprep.subr.bf16.mxu1 %v20998_v33  ;;  %v7633_v23 = vadd.f32 %v7632_v9, %v7590_v61  ;;  %v7592_v52 = vadd.f32 %v7591_v38, %v7549_v0  ;;  %7931 = vmatprep.mubr.bf16.mxu0 %v22409_v30  ;;  %v21007_v30 = vld [vmem:[%s22065_s21 + $0xc8c] ss:$16 sps:$4 sm:$0xff]   ;;  %v21017_v0 = vld [vmem:[%s22065_s21 + $0xc48] ss:$16 sps:$4 sm:$0xff]  }
 0x370   : > { %7974 = vmatprep.mubr.bf16.mxu1 %v22413_v31  ;;  %v7593_v27 = vpop.f32.mrf.mxu0  ;;  %v21010_v31 = vld [vmem:[%s22065_s21 + $0xe8c] ss:$16 sps:$4 sm:$0xff]   ;;  %v21020_v61 = vld [vmem:[%s22065_s21 + $0xe48] ss:$16 sps:$4 sm:$0xff]  }
 0x371   : > { %v7636_v29 = vpop.f32.mrf.mxu1  ;;  %v8351_v21 = vmul.f32 %v8334_v32, %v7633_v23  ;;  %v7635_v13 = vadd.f32 %v7634_v62, %v7592_v52  ;;  %v7594_v60 = vadd.f32 %v7593_v27, %v7551_v49  ;;  %7902 = vmatpush1.bf16.msra.mxu0 %v20993_v1  ;;  %v21028_v1 = vld [vmem:[%s22065_s21 + $0xe2c] ss:$16 sps:$4 sm:$0xff]   ;;  %v21035_v23 = vld [vmem:[%s22065_s21 + $0xde8] ss:$16 sps:$4 sm:$0xff]  }
 0x372   : > { %7945 = vmatpush1.bf16.msra.mxu1 %v20996_v6  ;;  %v7595_v20 = vpop.f32.mrf.mxu0  ;;  %7903 = vmatprep.subr.bf16.mxu0 %v21001_v48  ;;  %v21023_v6 = vld [vmem:[%s22065_s21 + $0xc28] ss:$16 sps:$4 sm:$0xff]   ;;  %v21031_v38 = vld [vmem:[%s22065_s21 + $0xc0c] ss:$16 sps:$4 sm:$0xff]  }
 0x373   : > { %7946 = vmatprep.subr.bf16.mxu1 %v21004_v17  ;;  %v8381_v34 = vadd.f32 %v8364_v55, %v8351_v21  ;;  %v8352_v5 = vmul.f32 %v8338_v3, %v7635_v13  ;;  %v7637_v14 = vadd.f32 %v7636_v29, %v7594_v60  ;;  %v7596_v28 = vadd.f32 %v7595_v20, %v7553_v26  ;;  %v7638_v42 = vpop.f32.mrf.mxu1  ;;  %v21034_v62 = vld [vmem:[%s22065_s21 + $0xe0c] ss:$16 sps:$4 sm:$0xff]   ;;  %v21032_v48 = vld [vmem:[%s22065_s21 + $0xe08] ss:$16 sps:$4 sm:$0xff]  }
 0x374   : > { %v21037_v17 = vld [vmem:[%s22065_s21 + $0xdec] ss:$16 sps:$4 sm:$0xff]   ;;  %v21038_v52 = vld [vmem:[%s22065_s21 + $0xfe8] ss:$16 sps:$4 sm:$0xff]  }
 0x375   : > { %v8389_v2 = vmax.f32 %v8381_v34, 0.0  ;;  %v8382_v4 = vadd.f32 %v8368_v59, %v8352_v5  ;;  %v8355_v22 = vmul.f32 %v8334_v32, %v7637_v14  ;;  %v7639_v8 = vadd.f32 %v7638_v42, %v7596_v28  ;;  %7904 = vmatpush1.bf16.msra.mxu0 %v20999_v7  ;;  %v21025_v32 = vld [vmem:[%s22065_s21 + $0xc2c] ss:$16 sps:$4 sm:$0xff]   ;;  %v21041_v27 = vld [vmem:[%s22065_s21 + $0xdc8] ss:$16 sps:$4 sm:$0xff]  }
 0x376   : > { %7947 = vmatpush1.bf16.msra.mxu1 %v21002_v53  ;;  %7905 = vmatprep.subr.bf16.mxu0 %v21007_v30  ;;  %v21040_v49 = vld [vmem:[%s22065_s21 + $0xfec] ss:$16 sps:$4 sm:$0xff]   ;;  %v21044_v29 = vld [vmem:[%s22065_s21 + $0xfc8] ss:$16 sps:$4 sm:$0xff]  }
 0x377   : > { %7948 = vmatprep.subr.bf16.mxu1 %v21010_v31  ;;  %8400 = vst [vmem:[%s23298_s18] sm:$0xff] %v8389_v2  ;;  %v8390_v46 = vmax.f32 %v8382_v4, 0.0  ;;  %v8385_v54 = vadd.f32 %v8364_v55, %v8355_v22  ;;  %v8356_v15 = vmul.f32 %v8338_v3, %v7639_v8  ;;  %v21026_v55 = vld [vmem:[%s22065_s21 + $0xe28] ss:$16 sps:$4 sm:$0xff]   ;;  %v21043_v26 = vld [vmem:[%s22065_s21 + $0xdcc] ss:$16 sps:$4 sm:$0xff]  }
 0x378   : > { %v21029_v3 = vld [vmem:[%s22065_s21 + $0xc08] ss:$16 sps:$4 sm:$0xff]   ;;  %v21049_v21 = vld [vmem:[%s22065_s21 + $0xdac] ss:$16 sps:$4 sm:$0xff]  }
 0x379   : > { %8401 = vst [vmem:[%s23298_s18 + $0x8] sm:$0xff] %v8390_v46  ;;  %v8393_v33 = vmax.f32 %v8385_v54, 0.0  ;;  %v8386_v40 = vadd.f32 %v8368_v59, %v8356_v15  ;;  %7906 = vmatpush1.bf16.msra.mxu0 %v21005_v16  ;;  %v21046_v59 = vld [vmem:[%s22065_s21 + $0xfcc] ss:$16 sps:$4 sm:$0xff]   ;;  %v21047_v60 = vld [vmem:[%s22065_s21 + $0xda8] ss:$16 sps:$4 sm:$0xff]  }
 0x37a   : > { %7949 = vmatpush1.bf16.msra.mxu1 %v21008_v43  ;;  %7907 = vmatprep.subr.bf16.mxu0 %v21013_v63  ;;  %v21052_v13 = vld [vmem:[%s22065_s21 + $0xfac] ss:$16 sps:$4 sm:$0xff]   ;;  %v21050_v7 = vld [vmem:[%s22065_s21 + $0xfa8] ss:$16 sps:$4 sm:$0xff]  }
 0x37b   : > { %7950 = vmatprep.subr.bf16.mxu1 %v21016_v47  ;;  %8404 = vst [vmem:[%s23298_s18 + $0x20] sm:$0xff] %v8393_v33  ;;  %v8394_v9 = vmax.f32 %v8386_v40, 0.0  ;;  %v21055_v53 = vld [vmem:[%s22065_s21 + $0xd8c] ss:$16 sps:$4 sm:$0xff]   ;;  %v21053_v30 = vld [vmem:[%s22065_s21 + $0xd88] ss:$16 sps:$4 sm:$0xff]  }
 0x37c   : > { %v21058_v20 = vld [vmem:[%s22065_s21 + $0xf8c] ss:$16 sps:$4 sm:$0xff]   ;;  %v21056_v31 = vld [vmem:[%s22065_s21 + $0xf88] ss:$16 sps:$4 sm:$0xff]  }
 0x37d   : > { %8405 = vst [vmem:[%s23298_s18 + $0x28] sm:$0xff] %v8394_v9  ;;  %7908 = vmatpush1.bf16.msra.mxu0 %v21011_v39  ;;  %v21061_v34 = vld [vmem:[%s22065_s21 + $0xd6c] ss:$16 sps:$4 sm:$0xff]   ;;  %v21059_v14 = vld [vmem:[%s22065_s21 + $0xd68] ss:$16 sps:$4 sm:$0xff]  }
 0x37e   : > { %7951 = vmatpush1.bf16.msra.mxu1 %v21014_v12  ;;  %7909 = vmatprep.subr.bf16.mxu0 %v21019_v58  ;;  %v21064_v5 = vld [vmem:[%s22065_s21 + $0xf6c] ss:$16 sps:$4 sm:$0xff]   ;;  %v21062_v28 = vld [vmem:[%s22065_s21 + $0xf68] ss:$16 sps:$4 sm:$0xff]  }
 0x37f   : > { %7952 = vmatprep.subr.bf16.mxu1 %v21022_v18  ;;  %v21067_v42 = vld [vmem:[%s22065_s21 + $0xd4c] ss:$16 sps:$4 sm:$0xff]   ;;  %v21065_v4 = vld [vmem:[%s22065_s21 + $0xd48] ss:$16 sps:$4 sm:$0xff]  }
 0x380   : > { %v21070_v2 = vld [vmem:[%s22065_s21 + $0xf4c] ss:$16 sps:$4 sm:$0xff]   ;;  %v21068_v22 = vld [vmem:[%s22065_s21 + $0xf48] ss:$16 sps:$4 sm:$0xff]  }
 0x381   : > { %7910 = vmatpush1.bf16.msra.mxu0 %v21017_v0  ;;  %v21073_v8 = vld [vmem:[%s22065_s21 + $0xd2c] ss:$16 sps:$4 sm:$0xff]   ;;  %v21071_v43 = vld [vmem:[%s22065_s21 + $0xd28] ss:$16 sps:$4 sm:$0xff]  }
 0x382   : > { %7953 = vmatpush1.bf16.msra.mxu1 %v21020_v61  ;;  %7911 = vmatprep.subr.bf16.mxu0 %v21025_v32  ;;  %v21076_v16 = vld [vmem:[%s22065_s21 + $0xf2c] ss:$16 sps:$4 sm:$0xff]   ;;  %v21074_v63 = vld [vmem:[%s22065_s21 + $0xf28] ss:$16 sps:$4 sm:$0xff]  }
 0x383   : > { %7954 = vmatprep.subr.bf16.mxu1 %v21028_v1  ;;  %v21079_v47 = vld [vmem:[%s22065_s21 + $0xd0c] ss:$16 sps:$4 sm:$0xff]   ;;  %v21077_v54 = vld [vmem:[%s22065_s21 + $0xd08] ss:$16 sps:$4 sm:$0xff]  }
 0x384   : > { %v21082_v46 = vld [vmem:[%s22065_s21 + $0xf0c] ss:$16 sps:$4 sm:$0xff]   ;;  %v21080_v15 = vld [vmem:[%s22065_s21 + $0xf08] ss:$16 sps:$4 sm:$0xff]  }
 0x385   : > { %7912 = vmatpush1.bf16.msra.mxu0 %v21023_v6  ;;  %v21085_v33 = vld [vmem:[%s22065_s21 + $0x10ec] ss:$16 sps:$4 sm:$0xff]   ;;  %v21083_v39 = vld [vmem:[%s22065_s21 + $0x10e8] ss:$16 sps:$4 sm:$0xff]  }
 0x386   : > { %7955 = vmatpush1.bf16.msra.mxu1 %v21026_v55  ;;  %7913 = vmatprep.subr.bf16.mxu0 %v21031_v38  ;;  %v21088_v40 = vld [vmem:[%s22065_s21 + $0x12ec] ss:$16 sps:$4 sm:$0xff]   ;;  %v21086_v12 = vld [vmem:[%s22065_s21 + $0x12e8] ss:$16 sps:$4 sm:$0xff]  }
 0x387   : > { %7956 = vmatprep.subr.bf16.mxu1 %v21034_v62  ;;  %v21091_v58 = vld [vmem:[%s22065_s21 + $0x10cc] ss:$16 sps:$4 sm:$0xff]   ;;  %v21089_v9 = vld [vmem:[%s22065_s21 + $0x10c8] ss:$16 sps:$4 sm:$0xff]  }
 0x388   : > { %v21094_v18 = vld [vmem:[%s22065_s21 + $0x12cc] ss:$16 sps:$4 sm:$0xff]   ;;  %v21092_v0 = vld [vmem:[%s22065_s21 + $0x12c8] ss:$16 sps:$4 sm:$0xff]  }
 0x389   : > { %7914 = vmatpush1.bf16.msra.mxu0 %v21029_v3  ;;  %v21097_v61 = vld [vmem:[%s22065_s21 + $0x10ac] ss:$16 sps:$4 sm:$0xff]   ;;  %v21101_v55 = vld [vmem:[%s22065_s21 + $0x1088] ss:$16 sps:$4 sm:$0xff]  }
 0x38a   : > { %7957 = vmatpush1.bf16.msra.mxu1 %v21032_v48  ;;  %7915 = vmatprep.subr.bf16.mxu0 %v21037_v17  ;;  %v21100_v32 = vld [vmem:[%s22065_s21 + $0x12ac] ss:$16 sps:$4 sm:$0xff]   ;;  %v21107_v62 = vld [vmem:[%s22065_s21 + $0x1068] ss:$16 sps:$4 sm:$0xff]  }
 0x38b   : > { %7958 = vmatprep.subr.bf16.mxu1 %v21040_v49  ;;  %v21103_v1 = vld [vmem:[%s22065_s21 + $0x108c] ss:$16 sps:$4 sm:$0xff]   ;;  %v21110_v3 = vld [vmem:[%s22065_s21 + $0x1268] ss:$16 sps:$4 sm:$0xff]  }
 0x38c   : > { %v21106_v6 = vld [vmem:[%s22065_s21 + $0x128c] ss:$16 sps:$4 sm:$0xff]   ;;  %v21113_v49 = vld [vmem:[%s22065_s21 + $0x1048] ss:$16 sps:$4 sm:$0xff]  }
 0x38d   : > { %7916 = vmatpush2.bf16.msra.mxu0 %v21035_v23  ;;  %v21112_v38 = vld [vmem:[%s22065_s21 + $0x126c] ss:$16 sps:$4 sm:$0xff]   ;;  %v21116_v23 = vld [vmem:[%s22065_s21 + $0x1248] ss:$16 sps:$4 sm:$0xff]  }
 0x38e   : > { %7959 = vmatpush2.bf16.msra.mxu1 %v21038_v52  ;;  %7917 = vmatprep.subr.bf16.mxu0 %v21043_v26  ;;  %v21115_v48 = vld [vmem:[%s22065_s21 + $0x104c] ss:$16 sps:$4 sm:$0xff]  }
 0x38f   : > { %7960 = vmatprep.subr.bf16.mxu1 %v21046_v59  ;;  %v21118_v17 = vld [vmem:[%s22065_s21 + $0x124c] ss:$16 sps:$4 sm:$0xff]   ;;  %v21119_v59 = vld [vmem:[%s22065_s21 + $0x1028] ss:$16 sps:$4 sm:$0xff]  }
 0x390   : > { %v21121_v52 = vld [vmem:[%s22065_s21 + $0x102c] ss:$16 sps:$4 sm:$0xff]  }
 0x391   : > { %7918 = vmatpush2.bf16.msra.mxu0 %v21041_v27  ;;  %v21124_v26 = vld [vmem:[%s22065_s21 + $0x122c] ss:$16 sps:$4 sm:$0xff]   ;;  %v21122_v27 = vld [vmem:[%s22065_s21 + $0x1228] ss:$16 sps:$4 sm:$0xff]  }
 0x392   : > { %7961 = vmatpush2.bf16.msra.mxu1 %v21044_v29  ;;  %7919 = vmatprep.subr.bf16.mxu0 %v21049_v21  ;;  %v21127_v29 = vld [vmem:[%s22065_s21 + $0x100c] ss:$16 sps:$4 sm:$0xff]  }
 0x393   : > { %7962 = vmatprep.subr.bf16.mxu1 %v21052_v13  ;;  %v21130_v21 = vld [vmem:[%s22065_s21 + $0x120c] ss:$16 sps:$4 sm:$0xff]   ;;  %v21125_v13 = vld [vmem:[%s22065_s21 + $0x1008] ss:$16 sps:$4 sm:$0xff]  }
 0x395   : > { %7920 = vmatpush2.bf16.msra.mxu0 %v21047_v60  ;;  %v21128_v60 = vld [vmem:[%s22065_s21 + $0x1208] ss:$16 sps:$4 sm:$0xff]  }
 0x396   : > { %7963 = vmatpush2.bf16.msra.mxu1 %v21050_v7  ;;  %7921 = vmatprep.subr.bf16.mxu0 %v21055_v53  ;;  %v21133_v7 = vld [vmem:[%s22065_s21 + $0x11ec] ss:$16 sps:$4 sm:$0xff]  }
 0x397   : > { %7964 = vmatprep.subr.bf16.mxu1 %v21058_v20  ;;  %v21136_v53 = vld [vmem:[%s22065_s21 + $0x13ec] ss:$16 sps:$4 sm:$0xff]   ;;  %v21131_v20 = vld [vmem:[%s22065_s21 + $0x11e8] ss:$16 sps:$4 sm:$0xff]  }
 0x399   : > { %7922 = vmatpush2.bf16.msra.mxu0 %v21053_v30  ;;  %v21134_v30 = vld [vmem:[%s22065_s21 + $0x13e8] ss:$16 sps:$4 sm:$0xff]  }
 0x39a   : > { %7965 = vmatpush2.bf16.msra.mxu1 %v21056_v31  ;;  %7923 = vmatprep.subr.bf16.mxu0 %v21061_v34  ;;  %v21139_v31 = vld [vmem:[%s22065_s21 + $0x11cc] ss:$16 sps:$4 sm:$0xff]  }
 0x39b   : > { %7966 = vmatprep.subr.bf16.mxu1 %v21064_v5  ;;  %v21142_v34 = vld [vmem:[%s22065_s21 + $0x13cc] ss:$16 sps:$4 sm:$0xff]   ;;  %v21137_v5 = vld [vmem:[%s22065_s21 + $0x11c8] ss:$16 sps:$4 sm:$0xff]  }
 0x39d   : > { %7924 = vmatpush2.bf16.msra.mxu0 %v21059_v14  ;;  %v21140_v14 = vld [vmem:[%s22065_s21 + $0x13c8] ss:$16 sps:$4 sm:$0xff]  }
 0x39e   : > { %7967 = vmatpush2.bf16.msra.mxu1 %v21062_v28  ;;  %7925 = vmatprep.subr.bf16.mxu0 %v21067_v42  ;;  %v21145_v28 = vld [vmem:[%s22065_s21 + $0x11ac] ss:$16 sps:$4 sm:$0xff]  }
 0x39f   : > { %7968 = vmatprep.subr.bf16.mxu1 %v21070_v2  ;;  %v21148_v42 = vld [vmem:[%s22065_s21 + $0x13ac] ss:$16 sps:$4 sm:$0xff]   ;;  %v21143_v2 = vld [vmem:[%s22065_s21 + $0x11a8] ss:$16 sps:$4 sm:$0xff]  }
 0x3a1   : > { %7926 = vmatpush2.bf16.msra.mxu0 %v21065_v4  ;;  %v21146_v4 = vld [vmem:[%s22065_s21 + $0x13a8] ss:$16 sps:$4 sm:$0xff]  }
 0x3a2   : > { %7969 = vmatpush2.bf16.msra.mxu1 %v21068_v22  ;;  %7927 = vmatprep.subr.bf16.mxu0 %v21073_v8  ;;  %v21151_v22 = vld [vmem:[%s22065_s21 + $0x118c] ss:$16 sps:$4 sm:$0xff]  }
 0x3a3   : > { %7970 = vmatprep.subr.bf16.mxu1 %v21076_v16  ;;  %v21154_v8 = vld [vmem:[%s22065_s21 + $0x138c] ss:$16 sps:$4 sm:$0xff]   ;;  %v21149_v16 = vld [vmem:[%s22065_s21 + $0x1188] ss:$16 sps:$4 sm:$0xff]  }
 0x3a5   : > { %7928 = vmatpush2.bf16.msra.mxu0 %v21071_v43  ;;  %v21152_v43 = vld [vmem:[%s22065_s21 + $0x1388] ss:$16 sps:$4 sm:$0xff]  }
 0x3a6   : > { %7971 = vmatpush2.bf16.msra.mxu1 %v21074_v63  ;;  %7929 = vmatprep.subr.bf16.mxu0 %v21079_v47  ;;  %v21157_v63 = vld [vmem:[%s22065_s21 + $0x116c] ss:$16 sps:$4 sm:$0xff]  }
 0x3a7   : > { %7972 = vmatprep.subr.bf16.mxu1 %v21082_v46  ;;  %v21160_v47 = vld [vmem:[%s22065_s21 + $0x136c] ss:$16 sps:$4 sm:$0xff]   ;;  %v21155_v46 = vld [vmem:[%s22065_s21 + $0x1168] ss:$16 sps:$4 sm:$0xff]  }
 0x3a9   : > { %7930 = vmatpush2.bf16.msra.mxu0 %v21077_v54  ;;  %v21158_v54 = vld [vmem:[%s22065_s21 + $0x1368] ss:$16 sps:$4 sm:$0xff]  }
 0x3aa   : > { %7973 = vmatpush2.bf16.msra.mxu1 %v21080_v15  ;;  %7985 = vmatprep.subr.bf16.mxu0 %v21085_v33  ;;  %v21163_v15 = vld [vmem:[%s22065_s21 + $0x114c] ss:$16 sps:$4 sm:$0xff]  }
 0x3ab   : > { %8028 = vmatprep.subr.bf16.mxu1 %v21088_v40  ;;  %v21166_v33 = vld [vmem:[%s22065_s21 + $0x134c] ss:$16 sps:$4 sm:$0xff]   ;;  %v21161_v40 = vld [vmem:[%s22065_s21 + $0x1148] ss:$16 sps:$4 sm:$0xff]  }
 0x3ac   : > { %7932 = vmatmul.mubr.bf16.vlgmr.msra.gmra.mxu0 %v22493_v10  ;;  %v21095_v10 = vld [vmem:[%s22065_s21 + $0x10a8] ss:$16 sps:$4 sm:$0xff]  }
 0x3ad   : > { %7975 = vmatmul.mubr.bf16.vlgmr.msra.gmra.mxu1 %v22497_v11  ;;  %7986 = vmatpush1.bf16.msra.mxu0 %v21083_v39  ;;  %v21098_v11 = vld [vmem:[%s22065_s21 + $0x12a8] ss:$16 sps:$4 sm:$0xff]  }
 0x3ae   : > { %8029 = vmatpush1.bf16.msra.mxu1 %v21086_v12  ;;  %7987 = vmatprep.subr.bf16.mxu0 %v21091_v58  ;;  %v21164_v39 = vld [vmem:[%s22065_s21 + $0x1348] ss:$16 sps:$4 sm:$0xff]   ;;  %v21169_v12 = vld [vmem:[%s22065_s21 + $0x112c] ss:$16 sps:$4 sm:$0xff]  }
 0x3af   : > { %8030 = vmatprep.subr.bf16.mxu1 %v21094_v18  ;;  %8017 = vmatprep.mubr.bf16.mxu0 %v22513_v50  ;;  %v21104_v50 = vld [vmem:[%s22065_s21 + $0x1288] ss:$16 sps:$4 sm:$0xff]   ;;  %v21172_v58 = vld [vmem:[%s22065_s21 + $0x132c] ss:$16 sps:$4 sm:$0xff]  }
 0x3b0   : > { %8060 = vmatprep.mubr.bf16.mxu1 %v22517_v51  ;;  %v21109_v51 = vld [vmem:[%s22065_s21 + $0x106c] ss:$16 sps:$4 sm:$0xff]   ;;  %v21167_v18 = vld [vmem:[%s22065_s21 + $0x1128] ss:$16 sps:$4 sm:$0xff]  }
 0x3b1   : > { %7988 = vmatpush1.bf16.msra.mxu0 %v21089_v9  ;;  %v21170_v9 = vld [vmem:[%s22065_s21 + $0x1328] ss:$16 sps:$4 sm:$0xff]  }
 0x3b2   : > { %8031 = vmatpush1.bf16.msra.mxu1 %v21092_v0  ;;  %7989 = vmatprep.subr.bf16.mxu0 %v21097_v61  ;;  %v21175_v0 = vld [vmem:[%s22065_s21 + $0x110c] ss:$16 sps:$4 sm:$0xff]  }
 0x3b3   : > { %8032 = vmatprep.subr.bf16.mxu1 %v21100_v32  ;;  %v21178_v61 = vld [vmem:[%s22065_s21 + $0x130c] ss:$16 sps:$4 sm:$0xff]   ;;  %v21173_v32 = vld [vmem:[%s22065_s21 + $0x1108] ss:$16 sps:$4 sm:$0xff]  }
 0x3b5   : > { %7990 = vmatpush1.bf16.msra.mxu0 %v21095_v10  ;;  %v21176_v10 = vld [vmem:[%s22065_s21 + $0x1308] ss:$16 sps:$4 sm:$0xff]  }
 0x3b6   : > { %8033 = vmatpush1.bf16.msra.mxu1 %v21098_v11  ;;  %7991 = vmatprep.subr.bf16.mxu0 %v21103_v1  ;;  %v21181_v11 = vld [vmem:[%s22065_s21 + $0x14ec] ss:$16 sps:$4 sm:$0xff]  }
 0x3b7   : > { %8034 = vmatprep.subr.bf16.mxu1 %v21106_v6  ;;  %v21184_v1 = vld [vmem:[%s22065_s21 + $0x16ec] ss:$16 sps:$4 sm:$0xff]   ;;  %v21179_v6 = vld [vmem:[%s22065_s21 + $0x14e8] ss:$16 sps:$4 sm:$0xff]  }
 0x3b9   : > { %7992 = vmatpush1.bf16.msra.mxu0 %v21101_v55  ;;  %v21182_v55 = vld [vmem:[%s22065_s21 + $0x16e8] ss:$16 sps:$4 sm:$0xff]  }
 0x3ba   : > { %8035 = vmatpush1.bf16.msra.mxu1 %v21104_v50  ;;  %7993 = vmatprep.subr.bf16.mxu0 %v21109_v51  ;;  %v21187_v50 = vld [vmem:[%s22065_s21 + $0x14cc] ss:$16 sps:$4 sm:$0xff]  }
 0x3bb   : > { %8036 = vmatprep.subr.bf16.mxu1 %v21112_v38  ;;  %v21190_v51 = vld [vmem:[%s22065_s21 + $0x16cc] ss:$16 sps:$4 sm:$0xff]   ;;  %v21185_v38 = vld [vmem:[%s22065_s21 + $0x14c8] ss:$16 sps:$4 sm:$0xff]  }
 0x3bd   : > { %7994 = vmatpush1.bf16.msra.mxu0 %v21107_v62  ;;  %v21188_v62 = vld [vmem:[%s22065_s21 + $0x16c8] ss:$16 sps:$4 sm:$0xff]  }
 0x3be   : > { %8037 = vmatpush1.bf16.msra.mxu1 %v21110_v3  ;;  %7995 = vmatprep.subr.bf16.mxu0 %v21115_v48  ;;  %v21193_v3 = vld [vmem:[%s22065_s21 + $0x14ac] ss:$16 sps:$4 sm:$0xff]  }
 0x3bf   : > { %8038 = vmatprep.subr.bf16.mxu1 %v21118_v17  ;;  %v21196_v48 = vld [vmem:[%s22065_s21 + $0x16ac] ss:$16 sps:$4 sm:$0xff]  }
 0x3c0   : > { %v21199_v17 = vld [vmem:[%s22065_s21 + $0x148c] ss:$16 sps:$4 sm:$0xff]  }
 0x3c1   : > { %7996 = vmatpush1.bf16.msra.mxu0 %v21113_v49  ;;  %v21202_v49 = vld [vmem:[%s22065_s21 + $0x168c] ss:$16 sps:$4 sm:$0xff]  }
 0x3c2   : > { %8039 = vmatpush1.bf16.msra.mxu1 %v21116_v23  ;;  %7997 = vmatprep.subr.bf16.mxu0 %v21121_v52  ;;  %v21197_v23 = vld [vmem:[%s22065_s21 + $0x1488] ss:$16 sps:$4 sm:$0xff]   ;;  %v21208_v52 = vld [vmem:[%s22065_s21 + $0x166c] ss:$16 sps:$4 sm:$0xff]  }
 0x3c3   : > { %8040 = vmatprep.subr.bf16.mxu1 %v21124_v26  ;;  %v21203_v26 = vld [vmem:[%s22065_s21 + $0x1468] ss:$16 sps:$4 sm:$0xff]  }
 0x3c5   : > { %7998 = vmatpush1.bf16.msra.mxu0 %v21119_v59  ;;  %v21206_v59 = vld [vmem:[%s22065_s21 + $0x1668] ss:$16 sps:$4 sm:$0xff]  }
 0x3c6   : > { %8041 = vmatpush1.bf16.msra.mxu1 %v21122_v27  ;;  %7999 = vmatprep.subr.bf16.mxu0 %v21127_v29  ;;  %v21211_v27 = vld [vmem:[%s22065_s21 + $0x144c] ss:$16 sps:$4 sm:$0xff]  }
 0x3c7   : > { %8042 = vmatprep.subr.bf16.mxu1 %v21130_v21  ;;  %v21214_v29 = vld [vmem:[%s22065_s21 + $0x164c] ss:$16 sps:$4 sm:$0xff]   ;;  %v21209_v21 = vld [vmem:[%s22065_s21 + $0x1448] ss:$16 sps:$4 sm:$0xff]  }
 0x3c9   : > { %8000 = vmatpush1.bf16.msra.mxu0 %v21125_v13  ;;  %v21212_v13 = vld [vmem:[%s22065_s21 + $0x1648] ss:$16 sps:$4 sm:$0xff]  }
 0x3ca   : > { %8043 = vmatpush1.bf16.msra.mxu1 %v21128_v60  ;;  %8001 = vmatprep.subr.bf16.mxu0 %v21133_v7  ;;  %v21217_v60 = vld [vmem:[%s22065_s21 + $0x142c] ss:$16 sps:$4 sm:$0xff]  }
 0x3cb   : > { %8044 = vmatprep.subr.bf16.mxu1 %v21136_v53  ;;  %v21220_v7 = vld [vmem:[%s22065_s21 + $0x162c] ss:$16 sps:$4 sm:$0xff]   ;;  %v21215_v53 = vld [vmem:[%s22065_s21 + $0x1428] ss:$16 sps:$4 sm:$0xff]  }
 0x3cd   : > { %8002 = vmatpush2.bf16.msra.mxu0 %v21131_v20  ;;  %v21218_v20 = vld [vmem:[%s22065_s21 + $0x1628] ss:$16 sps:$4 sm:$0xff]  }
 0x3ce   : > { %8045 = vmatpush2.bf16.msra.mxu1 %v21134_v30  ;;  %8003 = vmatprep.subr.bf16.mxu0 %v21139_v31  ;;  %v21223_v30 = vld [vmem:[%s22065_s21 + $0x140c] ss:$16 sps:$4 sm:$0xff]  }
 0x3cf   : > { %8046 = vmatprep.subr.bf16.mxu1 %v21142_v34  ;;  %v21226_v31 = vld [vmem:[%s22065_s21 + $0x160c] ss:$16 sps:$4 sm:$0xff]   ;;  %v21221_v34 = vld [vmem:[%s22065_s21 + $0x1408] ss:$16 sps:$4 sm:$0xff]  }
 0x3d1   : > { %8004 = vmatpush2.bf16.msra.mxu0 %v21137_v5  ;;  %v21224_v5 = vld [vmem:[%s22065_s21 + $0x1608] ss:$16 sps:$4 sm:$0xff]  }
 0x3d2   : > { %8047 = vmatpush2.bf16.msra.mxu1 %v21140_v14  ;;  %8005 = vmatprep.subr.bf16.mxu0 %v21145_v28  ;;  %v21229_v14 = vld [vmem:[%s22065_s21 + $0x15ec] ss:$16 sps:$4 sm:$0xff]  }
 0x3d3   : > { %8048 = vmatprep.subr.bf16.mxu1 %v21148_v42  ;;  %v21232_v28 = vld [vmem:[%s22065_s21 + $0x17ec] ss:$16 sps:$4 sm:$0xff]   ;;  %v21227_v42 = vld [vmem:[%s22065_s21 + $0x15e8] ss:$16 sps:$4 sm:$0xff]  }
 0x3d5   : > { %8006 = vmatpush2.bf16.msra.mxu0 %v21143_v2  ;;  %v21230_v2 = vld [vmem:[%s22065_s21 + $0x17e8] ss:$16 sps:$4 sm:$0xff]  }
 0x3d6   : > { %8049 = vmatpush2.bf16.msra.mxu1 %v21146_v4  ;;  %8007 = vmatprep.subr.bf16.mxu0 %v21151_v22  ;;  %v21235_v4 = vld [vmem:[%s22065_s21 + $0x15cc] ss:$16 sps:$4 sm:$0xff]  }
 0x3d7   : > { %8050 = vmatprep.subr.bf16.mxu1 %v21154_v8  ;;  %v21238_v22 = vld [vmem:[%s22065_s21 + $0x17cc] ss:$16 sps:$4 sm:$0xff]   ;;  %v21233_v8 = vld [vmem:[%s22065_s21 + $0x15c8] ss:$16 sps:$4 sm:$0xff]  }
 0x3d9   : > { %8008 = vmatpush2.bf16.msra.mxu0 %v21149_v16  ;;  %v21236_v16 = vld [vmem:[%s22065_s21 + $0x17c8] ss:$16 sps:$4 sm:$0xff]  }
 0x3da   : > { %8051 = vmatpush2.bf16.msra.mxu1 %v21152_v43  ;;  %8009 = vmatprep.subr.bf16.mxu0 %v21157_v63  ;;  %v21241_v43 = vld [vmem:[%s22065_s21 + $0x15ac] ss:$16 sps:$4 sm:$0xff]  }
 0x3db   : > { %8052 = vmatprep.subr.bf16.mxu1 %v21160_v47  ;;  %v21244_v63 = vld [vmem:[%s22065_s21 + $0x17ac] ss:$16 sps:$4 sm:$0xff]   ;;  %v21239_v47 = vld [vmem:[%s22065_s21 + $0x15a8] ss:$16 sps:$4 sm:$0xff]  }
 0x3dd   : > { %8010 = vmatpush2.bf16.msra.mxu0 %v21155_v46  ;;  %v21242_v46 = vld [vmem:[%s22065_s21 + $0x17a8] ss:$16 sps:$4 sm:$0xff]  }
 0x3de   : > { %8053 = vmatpush2.bf16.msra.mxu1 %v21158_v54  ;;  %8011 = vmatprep.subr.bf16.mxu0 %v21163_v15  ;;  %v21247_v54 = vld [vmem:[%s22065_s21 + $0x158c] ss:$16 sps:$4 sm:$0xff]  }
 0x3df   : > { %8054 = vmatprep.subr.bf16.mxu1 %v21166_v33  ;;  %v21250_v15 = vld [vmem:[%s22065_s21 + $0x178c] ss:$16 sps:$4 sm:$0xff]   ;;  %v21245_v33 = vld [vmem:[%s22065_s21 + $0x1588] ss:$16 sps:$4 sm:$0xff]  }
 0x3e1   : > { %8012 = vmatpush2.bf16.msra.mxu0 %v21161_v40  ;;  %v21248_v40 = vld [vmem:[%s22065_s21 + $0x1788] ss:$16 sps:$4 sm:$0xff]  }
 0x3e2   : > { %8055 = vmatpush2.bf16.msra.mxu1 %v21164_v39  ;;  %8013 = vmatprep.subr.bf16.mxu0 %v21169_v12  ;;  %v21253_v39 = vld [vmem:[%s22065_s21 + $0x156c] ss:$16 sps:$4 sm:$0xff]  }
 0x3e3   : > { %8056 = vmatprep.subr.bf16.mxu1 %v21172_v58  ;;  %v21256_v12 = vld [vmem:[%s22065_s21 + $0x176c] ss:$16 sps:$4 sm:$0xff]   ;;  %v21251_v58 = vld [vmem:[%s22065_s21 + $0x1568] ss:$16 sps:$4 sm:$0xff]  }
 0x3e5   : > { %8014 = vmatpush2.bf16.msra.mxu0 %v21167_v18  ;;  %v21254_v18 = vld [vmem:[%s22065_s21 + $0x1768] ss:$16 sps:$4 sm:$0xff]  }
 0x3e6   : > { %8057 = vmatpush2.bf16.msra.mxu1 %v21170_v9  ;;  %8015 = vmatprep.subr.bf16.mxu0 %v21175_v0  ;;  %v21259_v9 = vld [vmem:[%s22065_s21 + $0x154c] ss:$16 sps:$4 sm:$0xff]  }
 0x3e7   : > { %8058 = vmatprep.subr.bf16.mxu1 %v21178_v61  ;;  %v21262_v0 = vld [vmem:[%s22065_s21 + $0x174c] ss:$16 sps:$4 sm:$0xff]   ;;  %v21257_v61 = vld [vmem:[%s22065_s21 + $0x1548] ss:$16 sps:$4 sm:$0xff]  }
 0x3e9   : > { %8016 = vmatpush2.bf16.msra.mxu0 %v21173_v32  ;;  %v21260_v32 = vld [vmem:[%s22065_s21 + $0x1748] ss:$16 sps:$4 sm:$0xff]  }
 0x3ea   : > { %8059 = vmatpush2.bf16.msra.mxu1 %v21176_v10  ;;  %8071 = vmatprep.subr.bf16.mxu0 %v21181_v11  ;;  %v21265_v10 = vld [vmem:[%s22065_s21 + $0x152c] ss:$16 sps:$4 sm:$0xff]  }
 0x3eb   : > { %8114 = vmatprep.subr.bf16.mxu1 %v21184_v1  ;;  %v21268_v11 = vld [vmem:[%s22065_s21 + $0x172c] ss:$16 sps:$4 sm:$0xff]   ;;  %v21263_v1 = vld [vmem:[%s22065_s21 + $0x1528] ss:$16 sps:$4 sm:$0xff]  }
 0x3ec   : > { %8018 = vmatmul.mubr.bf16.vlgmr.msra.gmra.mxu0 %v22591_v44  ;;  %v21191_v44 = vld [vmem:[%s22065_s21 + $0x14a8] ss:$16 sps:$4 sm:$0xff]  }
 0x3ed   : > { %8061 = vmatmul.mubr.bf16.vlgmr.msra.gmra.mxu1 %v22595_v45  ;;  %8072 = vmatpush1.bf16.msra.mxu0 %v21179_v6  ;;  %v21194_v45 = vld [vmem:[%s22065_s21 + $0x16a8] ss:$16 sps:$4 sm:$0xff]  }
 0x3ee   : > { %8115 = vmatpush1.bf16.msra.mxu1 %v21182_v55  ;;  %8073 = vmatprep.subr.bf16.mxu0 %v21187_v50  ;;  %v21266_v6 = vld [vmem:[%s22065_s21 + $0x1728] ss:$16 sps:$4 sm:$0xff]   ;;  %v21271_v55 = vld [vmem:[%s22065_s21 + $0x150c] ss:$16 sps:$4 sm:$0xff]  }
 0x3ef   : > { %8116 = vmatprep.subr.bf16.mxu1 %v21190_v51  ;;  %8103 = vmatprep.mubr.bf16.mxu0 %v22619_v56  ;;  %v21200_v56 = vld [vmem:[%s22065_s21 + $0x1688] ss:$16 sps:$4 sm:$0xff]   ;;  %v21274_v50 = vld [vmem:[%s22065_s21 + $0x170c] ss:$16 sps:$4 sm:$0xff]  }
 0x3f0   : > { %8146 = vmatprep.mubr.bf16.mxu1 %v22623_v57  ;;  %v21205_v57 = vld [vmem:[%s22065_s21 + $0x146c] ss:$16 sps:$4 sm:$0xff]   ;;  %v21269_v51 = vld [vmem:[%s22065_s21 + $0x1508] ss:$16 sps:$4 sm:$0xff]  }
 0x3f1   : > { %8074 = vmatpush1.bf16.msra.mxu0 %v21185_v38  ;;  %v21272_v38 = vld [vmem:[%s22065_s21 + $0x1708] ss:$16 sps:$4 sm:$0xff]  }
 0x3f2   : > { %8117 = vmatpush1.bf16.msra.mxu1 %v21188_v62  ;;  %8075 = vmatprep.subr.bf16.mxu0 %v21193_v3  ;;  %v21277_v62 = vld [vmem:[%s22065_s21 + $0x18ec] ss:$16 sps:$4 sm:$0xff]  }
 0x3f3   : > { %8118 = vmatprep.subr.bf16.mxu1 %v21196_v48  ;;  %v21280_v3 = vld [vmem:[%s22065_s21 + $0x1aec] ss:$16 sps:$4 sm:$0xff]   ;;  %v21275_v48 = vld [vmem:[%s22065_s21 + $0x18e8] ss:$16 sps:$4 sm:$0xff]  }
 0x3f5   : > { %8076 = vmatpush1.bf16.msra.mxu0 %v21191_v44  ;;  %v21278_v44 = vld [vmem:[%s22065_s21 + $0x1ae8] ss:$16 sps:$4 sm:$0xff]  }
 0x3f6   : > { %8119 = vmatpush1.bf16.msra.mxu1 %v21194_v45  ;;  %8077 = vmatprep.subr.bf16.mxu0 %v21199_v17  ;;  %v21283_v45 = vld [vmem:[%s22065_s21 + $0x18cc] ss:$16 sps:$4 sm:$0xff]  }
 0x3f7   : > { %8120 = vmatprep.subr.bf16.mxu1 %v21202_v49  ;;  %v21286_v17 = vld [vmem:[%s22065_s21 + $0x1acc] ss:$16 sps:$4 sm:$0xff]   ;;  %v21281_v49 = vld [vmem:[%s22065_s21 + $0x18c8] ss:$16 sps:$4 sm:$0xff]  }
 0x3f9   : > { %8078 = vmatpush1.bf16.msra.mxu0 %v21197_v23  ;;  %v21284_v23 = vld [vmem:[%s22065_s21 + $0x1ac8] ss:$16 sps:$4 sm:$0xff]  }
 0x3fa   : > { %8121 = vmatpush1.bf16.msra.mxu1 %v21200_v56  ;;  %8079 = vmatprep.subr.bf16.mxu0 %v21205_v57  ;;  %v21289_v56 = vld [vmem:[%s22065_s21 + $0x18ac] ss:$16 sps:$4 sm:$0xff]  }
 0x3fb   : > { %8122 = vmatprep.subr.bf16.mxu1 %v21208_v52  ;;  %v21292_v57 = vld [vmem:[%s22065_s21 + $0x1aac] ss:$16 sps:$4 sm:$0xff]  }
 0x3fc   : > { %v21295_v52 = vld [vmem:[%s22065_s21 + $0x188c] ss:$16 sps:$4 sm:$0xff]  }
 0x3fd   : > { %8080 = vmatpush1.bf16.msra.mxu0 %v21203_v26  ;;  %v21298_v26 = vld [vmem:[%s22065_s21 + $0x1a8c] ss:$16 sps:$4 sm:$0xff]  }
 0x3fe   : > { %8123 = vmatpush1.bf16.msra.mxu1 %v21206_v59  ;;  %8081 = vmatprep.subr.bf16.mxu0 %v21211_v27  ;;  %v21293_v59 = vld [vmem:[%s22065_s21 + $0x1888] ss:$16 sps:$4 sm:$0xff]   ;;  %v21304_v27 = vld [vmem:[%s22065_s21 + $0x1a6c] ss:$16 sps:$4 sm:$0xff]  }
 0x3ff   : > { %8124 = vmatprep.subr.bf16.mxu1 %v21214_v29  ;;  %v21299_v29 = vld [vmem:[%s22065_s21 + $0x1868] ss:$16 sps:$4 sm:$0xff]  }
 0x401   : > { %8082 = vmatpush1.bf16.msra.mxu0 %v21209_v21  ;;  %v21302_v21 = vld [vmem:[%s22065_s21 + $0x1a68] ss:$16 sps:$4 sm:$0xff]  }
 0x402   : > { %8125 = vmatpush1.bf16.msra.mxu1 %v21212_v13  ;;  %8083 = vmatprep.subr.bf16.mxu0 %v21217_v60  ;;  %v21307_v13 = vld [vmem:[%s22065_s21 + $0x184c] ss:$16 sps:$4 sm:$0xff]  }
 0x403   : > { %8126 = vmatprep.subr.bf16.mxu1 %v21220_v7  ;;  %v21310_v60 = vld [vmem:[%s22065_s21 + $0x1a4c] ss:$16 sps:$4 sm:$0xff]   ;;  %v21305_v7 = vld [vmem:[%s22065_s21 + $0x1848] ss:$16 sps:$4 sm:$0xff]  }
 0x405   : > { %8084 = vmatpush1.bf16.msra.mxu0 %v21215_v53  ;;  %v21308_v53 = vld [vmem:[%s22065_s21 + $0x1a48] ss:$16 sps:$4 sm:$0xff]  }
 0x406   : > { %8127 = vmatpush1.bf16.msra.mxu1 %v21218_v20  ;;  %8085 = vmatprep.subr.bf16.mxu0 %v21223_v30  ;;  %v21313_v20 = vld [vmem:[%s22065_s21 + $0x182c] ss:$16 sps:$4 sm:$0xff]  }
 0x407   : > { %8128 = vmatprep.subr.bf16.mxu1 %v21226_v31  ;;  %v21316_v30 = vld [vmem:[%s22065_s21 + $0x1a2c] ss:$16 sps:$4 sm:$0xff]   ;;  %v21311_v31 = vld [vmem:[%s22065_s21 + $0x1828] ss:$16 sps:$4 sm:$0xff]  }
 0x409   : > { %8086 = vmatpush1.bf16.msra.mxu0 %v21221_v34  ;;  %v21314_v34 = vld [vmem:[%s22065_s21 + $0x1a28] ss:$16 sps:$4 sm:$0xff]  }
 0x40a   : > { %8129 = vmatpush1.bf16.msra.mxu1 %v21224_v5  ;;  %8087 = vmatprep.subr.bf16.mxu0 %v21229_v14  ;;  %v21319_v5 = vld [vmem:[%s22065_s21 + $0x180c] ss:$16 sps:$4 sm:$0xff]  }
 0x40b   : > { %8130 = vmatprep.subr.bf16.mxu1 %v21232_v28  ;;  %v21322_v14 = vld [vmem:[%s22065_s21 + $0x1a0c] ss:$16 sps:$4 sm:$0xff]   ;;  %v21317_v28 = vld [vmem:[%s22065_s21 + $0x1808] ss:$16 sps:$4 sm:$0xff]  }
 0x40d   : > { %8088 = vmatpush2.bf16.msra.mxu0 %v21227_v42  ;;  %v21320_v42 = vld [vmem:[%s22065_s21 + $0x1a08] ss:$16 sps:$4 sm:$0xff]  }
 0x40e   : > { %8131 = vmatpush2.bf16.msra.mxu1 %v21230_v2  ;;  %8089 = vmatprep.subr.bf16.mxu0 %v21235_v4  ;;  %v21325_v2 = vld [vmem:[%s22065_s21 + $0x19ec] ss:$16 sps:$4 sm:$0xff]  }
 0x40f   : > { %8132 = vmatprep.subr.bf16.mxu1 %v21238_v22  ;;  %v21328_v4 = vld [vmem:[%s22065_s21 + $0x1bec] ss:$16 sps:$4 sm:$0xff]   ;;  %v21323_v22 = vld [vmem:[%s22065_s21 + $0x19e8] ss:$16 sps:$4 sm:$0xff]  }
 0x411   : > { %8090 = vmatpush2.bf16.msra.mxu0 %v21233_v8  ;;  %v21326_v8 = vld [vmem:[%s22065_s21 + $0x1be8] ss:$16 sps:$4 sm:$0xff]  }
 0x412   : > { %8133 = vmatpush2.bf16.msra.mxu1 %v21236_v16  ;;  %8091 = vmatprep.subr.bf16.mxu0 %v21241_v43  ;;  %v21331_v16 = vld [vmem:[%s22065_s21 + $0x19cc] ss:$16 sps:$4 sm:$0xff]  }
 0x413   : > { %8134 = vmatprep.subr.bf16.mxu1 %v21244_v63  ;;  %v21334_v43 = vld [vmem:[%s22065_s21 + $0x1bcc] ss:$16 sps:$4 sm:$0xff]   ;;  %v21329_v63 = vld [vmem:[%s22065_s21 + $0x19c8] ss:$16 sps:$4 sm:$0xff]  }
 0x415   : > { %8092 = vmatpush2.bf16.msra.mxu0 %v21239_v47  ;;  %v21332_v47 = vld [vmem:[%s22065_s21 + $0x1bc8] ss:$16 sps:$4 sm:$0xff]  }
 0x416   : > { %8135 = vmatpush2.bf16.msra.mxu1 %v21242_v46  ;;  %8093 = vmatprep.subr.bf16.mxu0 %v21247_v54  ;;  %v21337_v46 = vld [vmem:[%s22065_s21 + $0x19ac] ss:$16 sps:$4 sm:$0xff]  }
 0x417   : > { %8136 = vmatprep.subr.bf16.mxu1 %v21250_v15  ;;  %v21340_v54 = vld [vmem:[%s22065_s21 + $0x1bac] ss:$16 sps:$4 sm:$0xff]   ;;  %v21335_v15 = vld [vmem:[%s22065_s21 + $0x19a8] ss:$16 sps:$4 sm:$0xff]  }
 0x419   : > { %8094 = vmatpush2.bf16.msra.mxu0 %v21245_v33  ;;  %v21338_v33 = vld [vmem:[%s22065_s21 + $0x1ba8] ss:$16 sps:$4 sm:$0xff]  }
 0x41a   : > { %8137 = vmatpush2.bf16.msra.mxu1 %v21248_v40  ;;  %8095 = vmatprep.subr.bf16.mxu0 %v21253_v39  ;;  %v21343_v40 = vld [vmem:[%s22065_s21 + $0x198c] ss:$16 sps:$4 sm:$0xff]  }
 0x41b   : > { %8138 = vmatprep.subr.bf16.mxu1 %v21256_v12  ;;  %v21346_v39 = vld [vmem:[%s22065_s21 + $0x1b8c] ss:$16 sps:$4 sm:$0xff]   ;;  %v21341_v12 = vld [vmem:[%s22065_s21 + $0x1988] ss:$16 sps:$4 sm:$0xff]  }
 0x41d   : > { %8096 = vmatpush2.bf16.msra.mxu0 %v21251_v58  ;;  %v21344_v58 = vld [vmem:[%s22065_s21 + $0x1b88] ss:$16 sps:$4 sm:$0xff]  }
 0x41e   : > { %8139 = vmatpush2.bf16.msra.mxu1 %v21254_v18  ;;  %8097 = vmatprep.subr.bf16.mxu0 %v21259_v9  ;;  %v21349_v18 = vld [vmem:[%s22065_s21 + $0x196c] ss:$16 sps:$4 sm:$0xff]  }
 0x41f   : > { %8140 = vmatprep.subr.bf16.mxu1 %v21262_v0  ;;  %v21352_v9 = vld [vmem:[%s22065_s21 + $0x1b6c] ss:$16 sps:$4 sm:$0xff]   ;;  %v21347_v0 = vld [vmem:[%s22065_s21 + $0x1968] ss:$16 sps:$4 sm:$0xff]  }
 0x421   : > { %8098 = vmatpush2.bf16.msra.mxu0 %v21257_v61  ;;  %v21350_v61 = vld [vmem:[%s22065_s21 + $0x1b68] ss:$16 sps:$4 sm:$0xff]  }
 0x422   : > { %8141 = vmatpush2.bf16.msra.mxu1 %v21260_v32  ;;  %8099 = vmatprep.subr.bf16.mxu0 %v21265_v10  ;;  %v21355_v32 = vld [vmem:[%s22065_s21 + $0x194c] ss:$16 sps:$4 sm:$0xff]  }
 0x423   : > { %8142 = vmatprep.subr.bf16.mxu1 %v21268_v11  ;;  %v21358_v10 = vld [vmem:[%s22065_s21 + $0x1b4c] ss:$16 sps:$4 sm:$0xff]   ;;  %v21353_v11 = vld [vmem:[%s22065_s21 + $0x1948] ss:$16 sps:$4 sm:$0xff]  }
 0x425   : > { %8100 = vmatpush2.bf16.msra.mxu0 %v21263_v1  ;;  %v21356_v1 = vld [vmem:[%s22065_s21 + $0x1b48] ss:$16 sps:$4 sm:$0xff]  }
 0x426   : > { %8143 = vmatpush2.bf16.msra.mxu1 %v21266_v6  ;;  %8101 = vmatprep.subr.bf16.mxu0 %v21271_v55  ;;  %v21361_v6 = vld [vmem:[%s22065_s21 + $0x192c] ss:$16 sps:$4 sm:$0xff]  }
 0x427   : > { %8144 = vmatprep.subr.bf16.mxu1 %v21274_v50  ;;  %v21364_v55 = vld [vmem:[%s22065_s21 + $0x1b2c] ss:$16 sps:$4 sm:$0xff]   ;;  %v21359_v50 = vld [vmem:[%s22065_s21 + $0x1928] ss:$16 sps:$4 sm:$0xff]  }
 0x429   : > { %8102 = vmatpush2.bf16.msra.mxu0 %v21269_v51  ;;  %v21362_v51 = vld [vmem:[%s22065_s21 + $0x1b28] ss:$16 sps:$4 sm:$0xff]  }
 0x42a   : > { %8145 = vmatpush2.bf16.msra.mxu1 %v21272_v38  ;;  %8157 = vmatprep.subr.bf16.mxu0 %v21277_v62  ;;  %v21367_v38 = vld [vmem:[%s22065_s21 + $0x190c] ss:$16 sps:$4 sm:$0xff]  }
 0x42b   : > { %8200 = vmatprep.subr.bf16.mxu1 %v21280_v3  ;;  %v21370_v62 = vld [vmem:[%s22065_s21 + $0x1b0c] ss:$16 sps:$4 sm:$0xff]   ;;  %v21365_v3 = vld [vmem:[%s22065_s21 + $0x1908] ss:$16 sps:$4 sm:$0xff]  }
 0x42c   : > { %8104 = vmatmul.mubr.bf16.vlgmr.msra.gmra.mxu0 %v22695_v24  ;;  %v21287_v24 = vld [vmem:[%s22065_s21 + $0x18a8] ss:$16 sps:$4 sm:$0xff]  }
 0x42d   : > { %8147 = vmatmul.mubr.bf16.vlgmr.msra.gmra.mxu1 %v22699_v25  ;;  %8158 = vmatpush1.bf16.msra.mxu0 %v21275_v48  ;;  %v21290_v25 = vld [vmem:[%s22065_s21 + $0x1aa8] ss:$16 sps:$4 sm:$0xff]  }
 0x42e   : > { %8201 = vmatpush1.bf16.msra.mxu1 %v21278_v44  ;;  %8159 = vmatprep.subr.bf16.mxu0 %v21283_v45  ;;  %v21368_v48 = vld [vmem:[%s22065_s21 + $0x1b08] ss:$16 sps:$4 sm:$0xff]   ;;  %v21373_v44 = vld [vmem:[%s22065_s21 + $0x1cec] ss:$16 sps:$4 sm:$0xff]  }
 0x42f   : > { %8202 = vmatprep.subr.bf16.mxu1 %v21286_v17  ;;  %8189 = vmatprep.mubr.bf16.mxu0 %v22723_v36  ;;  %v21296_v36 = vld [vmem:[%s22065_s21 + $0x1a88] ss:$16 sps:$4 sm:$0xff]   ;;  %v21376_v45 = vld [vmem:[%s22065_s21 + $0x1eec] ss:$16 sps:$4 sm:$0xff]  }
 0x430   : > { %8232 = vmatprep.mubr.bf16.mxu1 %v22727_v37  ;;  %v21301_v37 = vld [vmem:[%s22065_s21 + $0x186c] ss:$16 sps:$4 sm:$0xff]   ;;  %v21371_v17 = vld [vmem:[%s22065_s21 + $0x1ce8] ss:$16 sps:$4 sm:$0xff]  }
 0x431   : > { %8160 = vmatpush1.bf16.msra.mxu0 %v21281_v49  ;;  %v21374_v49 = vld [vmem:[%s22065_s21 + $0x1ee8] ss:$16 sps:$4 sm:$0xff]  }
 0x432   : > { %8203 = vmatpush1.bf16.msra.mxu1 %v21284_v23  ;;  %8161 = vmatprep.subr.bf16.mxu0 %v21289_v56  ;;  %v21379_v23 = vld [vmem:[%s22065_s21 + $0x1ccc] ss:$16 sps:$4 sm:$0xff]  }
 0x433   : > { %8204 = vmatprep.subr.bf16.mxu1 %v21292_v57  ;;  %v21382_v56 = vld [vmem:[%s22065_s21 + $0x1ecc] ss:$16 sps:$4 sm:$0xff]   ;;  %v24126_v57 = vld [vmem:[#allocation25_spill] sm:$0xff] }
 0x435   : > { %8162 = vmatpush1.bf16.msra.mxu0 %v21287_v24  ;;  %v24127_v24 = vld [vmem:[#allocation26_spill] sm:$0xff] }
 0x436   : > { %8205 = vmatpush1.bf16.msra.mxu1 %v21290_v25  ;;  %8163 = vmatprep.subr.bf16.mxu0 %v21295_v52  ;;  %v21377_v25 = vld [vmem:[%s22065_s21 + $0x1cc8] ss:$16 sps:$4 sm:$0xff]  }
 0x437   : > { %8206 = vmatprep.subr.bf16.mxu1 %v21298_v26  ;;  %v21380_v52 = vld [vmem:[%s22065_s21 + $0x1ec8] ss:$16 sps:$4 sm:$0xff]   ;;  %v21385_v26 = vld [vmem:[%s22065_s21 + $0x1cac] ss:$16 sps:$4 sm:$0xff]  }
 0x439   : > { %8164 = vmatpush1.bf16.msra.mxu0 %v21293_v59  ;;  %v21388_v59 = vld [vmem:[%s22065_s21 + $0x1eac] ss:$16 sps:$4 sm:$0xff]  }
 0x43a   : > { %8207 = vmatpush1.bf16.msra.mxu1 %v21296_v36  ;;  %8165 = vmatprep.subr.bf16.mxu0 %v21301_v37  ;;  %v24128_v36 = vld [vmem:[#allocation27_spill] sm:$0xff]  ;;  %v24129_v37 = vld [vmem:[#allocation28_spill] sm:$0xff] }
 0x43b   : > { %8208 = vmatprep.subr.bf16.mxu1 %v21304_v27  ;;  %v21383_v27 = vld [vmem:[%s22065_s21 + $0x1ca8] ss:$16 sps:$4 sm:$0xff]  }
 0x43d   : > { %8166 = vmatpush1.bf16.msra.mxu0 %v21299_v29  ;;  %v21386_v29 = vld [vmem:[%s22065_s21 + $0x1ea8] ss:$16 sps:$4 sm:$0xff]  }
 0x43e   : > { %8209 = vmatpush1.bf16.msra.mxu1 %v21302_v21  ;;  %8167 = vmatprep.subr.bf16.mxu0 %v21307_v13  ;;  %v21391_v21 = vld [vmem:[%s22065_s21 + $0x1c8c] ss:$16 sps:$4 sm:$0xff]  }
 0x43f   : > { %8210 = vmatprep.subr.bf16.mxu1 %v21310_v60  ;;  %v21394_v13 = vld [vmem:[%s22065_s21 + $0x1e8c] ss:$16 sps:$4 sm:$0xff]   ;;  %v21389_v60 = vld [vmem:[%s22065_s21 + $0x1c88] ss:$16 sps:$4 sm:$0xff]  }
 0x441   : > { %8168 = vmatpush1.bf16.msra.mxu0 %v21305_v7  ;;  %v21392_v7 = vld [vmem:[%s22065_s21 + $0x1e88] ss:$16 sps:$4 sm:$0xff]  }
 0x442   : > { %8211 = vmatpush1.bf16.msra.mxu1 %v21308_v53  ;;  %8169 = vmatprep.subr.bf16.mxu0 %v21313_v20  ;;  %v21397_v53 = vld [vmem:[%s22065_s21 + $0x1c6c] ss:$16 sps:$4 sm:$0xff]  }
 0x443   : > { %8212 = vmatprep.subr.bf16.mxu1 %v21316_v30  ;;  %v21400_v20 = vld [vmem:[%s22065_s21 + $0x1e6c] ss:$16 sps:$4 sm:$0xff]   ;;  %v21395_v30 = vld [vmem:[%s22065_s21 + $0x1c68] ss:$16 sps:$4 sm:$0xff]  }
 0x445   : > { %8170 = vmatpush1.bf16.msra.mxu0 %v21311_v31  ;;  %v21398_v31 = vld [vmem:[%s22065_s21 + $0x1e68] ss:$16 sps:$4 sm:$0xff]  }
 0x446   : > { %8213 = vmatpush1.bf16.msra.mxu1 %v21314_v34  ;;  %8171 = vmatprep.subr.bf16.mxu0 %v21319_v5  ;;  %v21403_v34 = vld [vmem:[%s22065_s21 + $0x1c4c] ss:$16 sps:$4 sm:$0xff]  }
 0x447   : > { %8214 = vmatprep.subr.bf16.mxu1 %v21322_v14  ;;  %v21406_v5 = vld [vmem:[%s22065_s21 + $0x1e4c] ss:$16 sps:$4 sm:$0xff]   ;;  %v21401_v14 = vld [vmem:[%s22065_s21 + $0x1c48] ss:$16 sps:$4 sm:$0xff]  }
 0x449   : > { %8172 = vmatpush1.bf16.msra.mxu0 %v21317_v28  ;;  %v21404_v28 = vld [vmem:[%s22065_s21 + $0x1e48] ss:$16 sps:$4 sm:$0xff]  }
 0x44a   : > { %8215 = vmatpush1.bf16.msra.mxu1 %v21320_v42  ;;  %8173 = vmatprep.subr.bf16.mxu0 %v21325_v2  ;;  %v21409_v42 = vld [vmem:[%s22065_s21 + $0x1c2c] ss:$16 sps:$4 sm:$0xff]  }
 0x44b   : > { %8216 = vmatprep.subr.bf16.mxu1 %v21328_v4  ;;  %v21412_v2 = vld [vmem:[%s22065_s21 + $0x1e2c] ss:$16 sps:$4 sm:$0xff]   ;;  %v21407_v4 = vld [vmem:[%s22065_s21 + $0x1c28] ss:$16 sps:$4 sm:$0xff]  }
 0x44d   : > { %8174 = vmatpush2.bf16.msra.mxu0 %v21323_v22  ;;  %v21410_v22 = vld [vmem:[%s22065_s21 + $0x1e28] ss:$16 sps:$4 sm:$0xff]  }
 0x44e   : > { %8217 = vmatpush2.bf16.msra.mxu1 %v21326_v8  ;;  %8175 = vmatprep.subr.bf16.mxu0 %v21331_v16  ;;  %v21415_v8 = vld [vmem:[%s22065_s21 + $0x1c0c] ss:$16 sps:$4 sm:$0xff]  }
 0x44f   : > { %8218 = vmatprep.subr.bf16.mxu1 %v21334_v43  ;;  %v21418_v16 = vld [vmem:[%s22065_s21 + $0x1e0c] ss:$16 sps:$4 sm:$0xff]   ;;  %v21413_v43 = vld [vmem:[%s22065_s21 + $0x1c08] ss:$16 sps:$4 sm:$0xff]  }
 0x451   : > { %8176 = vmatpush2.bf16.msra.mxu0 %v21329_v63  ;;  %v21416_v63 = vld [vmem:[%s22065_s21 + $0x1e08] ss:$16 sps:$4 sm:$0xff]  }
 0x452   : > { %8219 = vmatpush2.bf16.msra.mxu1 %v21332_v47  ;;  %8177 = vmatprep.subr.bf16.mxu0 %v21337_v46  ;;  %v21421_v47 = vld [vmem:[%s22065_s21 + $0x1dec] ss:$16 sps:$4 sm:$0xff]  }
 0x453   : > { %8220 = vmatprep.subr.bf16.mxu1 %v21340_v54  ;;  %v21424_v46 = vld [vmem:[%s22065_s21 + $0x1fec] ss:$16 sps:$4 sm:$0xff]   ;;  %v21419_v54 = vld [vmem:[%s22065_s21 + $0x1de8] ss:$16 sps:$4 sm:$0xff]  }
 0x455   : > { %8178 = vmatpush2.bf16.msra.mxu0 %v21335_v15  ;;  %v21422_v15 = vld [vmem:[%s22065_s21 + $0x1fe8] ss:$16 sps:$4 sm:$0xff]  }
 0x456   : > { %8221 = vmatpush2.bf16.msra.mxu1 %v21338_v33  ;;  %8179 = vmatprep.subr.bf16.mxu0 %v21343_v40  ;;  %v21427_v33 = vld [vmem:[%s22065_s21 + $0x1dcc] ss:$16 sps:$4 sm:$0xff]  }
 0x457   : > { %8222 = vmatprep.subr.bf16.mxu1 %v21346_v39  ;;  %v21430_v40 = vld [vmem:[%s22065_s21 + $0x1fcc] ss:$16 sps:$4 sm:$0xff]   ;;  %v21425_v39 = vld [vmem:[%s22065_s21 + $0x1dc8] ss:$16 sps:$4 sm:$0xff]  }
 0x459   : > { %8180 = vmatpush2.bf16.msra.mxu0 %v21341_v12  ;;  %v21428_v12 = vld [vmem:[%s22065_s21 + $0x1fc8] ss:$16 sps:$4 sm:$0xff]  }
 0x45a   : > { %8223 = vmatpush2.bf16.msra.mxu1 %v21344_v58  ;;  %8181 = vmatprep.subr.bf16.mxu0 %v21349_v18  ;;  %v21433_v58 = vld [vmem:[%s22065_s21 + $0x1dac] ss:$16 sps:$4 sm:$0xff]  }
 0x45b   : > { %8224 = vmatprep.subr.bf16.mxu1 %v21352_v9  ;;  %v21436_v18 = vld [vmem:[%s22065_s21 + $0x1fac] ss:$16 sps:$4 sm:$0xff]   ;;  %v21431_v9 = vld [vmem:[%s22065_s21 + $0x1da8] ss:$16 sps:$4 sm:$0xff]  }
 0x45d   : > { %8182 = vmatpush2.bf16.msra.mxu0 %v21347_v0  ;;  %v21434_v0 = vld [vmem:[%s22065_s21 + $0x1fa8] ss:$16 sps:$4 sm:$0xff]  }
 0x45e   : > { %8225 = vmatpush2.bf16.msra.mxu1 %v21350_v61  ;;  %8183 = vmatprep.subr.bf16.mxu0 %v21355_v32  ;;  %v21439_v61 = vld [vmem:[%s22065_s21 + $0x1d8c] ss:$16 sps:$4 sm:$0xff]  }
 0x45f   : > { %8226 = vmatprep.subr.bf16.mxu1 %v21358_v10  ;;  %v21442_v32 = vld [vmem:[%s22065_s21 + $0x1f8c] ss:$16 sps:$4 sm:$0xff]   ;;  %v21437_v10 = vld [vmem:[%s22065_s21 + $0x1d88] ss:$16 sps:$4 sm:$0xff]  }
 0x461   : > { %8184 = vmatpush2.bf16.msra.mxu0 %v21353_v11  ;;  %v21440_v11 = vld [vmem:[%s22065_s21 + $0x1f88] ss:$16 sps:$4 sm:$0xff]  }
 0x462   : > { %8227 = vmatpush2.bf16.msra.mxu1 %v21356_v1  ;;  %8185 = vmatprep.subr.bf16.mxu0 %v21361_v6  ;;  %v21445_v1 = vld [vmem:[%s22065_s21 + $0x1d6c] ss:$16 sps:$4 sm:$0xff]  }
 0x463   : > { %8228 = vmatprep.subr.bf16.mxu1 %v21364_v55  ;;  %v21448_v6 = vld [vmem:[%s22065_s21 + $0x1f6c] ss:$16 sps:$4 sm:$0xff]   ;;  %v21443_v55 = vld [vmem:[%s22065_s21 + $0x1d68] ss:$16 sps:$4 sm:$0xff]  }
 0x465   : > { %8186 = vmatpush2.bf16.msra.mxu0 %v21359_v50  ;;  %v21446_v50 = vld [vmem:[%s22065_s21 + $0x1f68] ss:$16 sps:$4 sm:$0xff]  }
 0x466   : > { %8229 = vmatpush2.bf16.msra.mxu1 %v21362_v51  ;;  %8187 = vmatprep.subr.bf16.mxu0 %v21367_v38  ;;  %v21451_v51 = vld [vmem:[%s22065_s21 + $0x1d4c] ss:$16 sps:$4 sm:$0xff]  }
 0x467   : > { %8230 = vmatprep.subr.bf16.mxu1 %v21370_v62  ;;  %v21454_v38 = vld [vmem:[%s22065_s21 + $0x1f4c] ss:$16 sps:$4 sm:$0xff]   ;;  %v21449_v62 = vld [vmem:[%s22065_s21 + $0x1d48] ss:$16 sps:$4 sm:$0xff]  }
 0x469   : > { %8188 = vmatpush2.bf16.msra.mxu0 %v21365_v3  ;;  %v21452_v3 = vld [vmem:[%s22065_s21 + $0x1f48] ss:$16 sps:$4 sm:$0xff]  }
 0x46a   : > { %8231 = vmatpush2.bf16.msra.mxu1 %v21368_v48  ;;  %8243 = vmatprep.subr.bf16.mxu0 %v21373_v44  ;;  %v21457_v48 = vld [vmem:[%s22065_s21 + $0x1d2c] ss:$16 sps:$4 sm:$0xff]  }
 0x46b   : > { %8286 = vmatprep.subr.bf16.mxu1 %v21376_v45  ;;  %v21460_v44 = vld [vmem:[%s22065_s21 + $0x1f2c] ss:$16 sps:$4 sm:$0xff]   ;;  %v21455_v45 = vld [vmem:[%s22065_s21 + $0x1d28] ss:$16 sps:$4 sm:$0xff]  }
 0x46c   : > { %8190 = vmatmul.mubr.bf16.vlgmr.msra.gmra.mxu0 %v24126_v57  ;;  %v21464_v57 = vld [vmem:[%s22065_s21 + $0x1f08] ss:$16 sps:$4 sm:$0xff]  }
 0x46d   : > { %8233 = vmatmul.mubr.bf16.vlgmr.msra.gmra.mxu1 %v24127_v24  ;;  %8244 = vmatpush1.bf16.msra.mxu0 %v21371_v17  ;;  %v21458_v17 = vld [vmem:[%s22065_s21 + $0x1f28] ss:$16 sps:$4 sm:$0xff]  }
 0x46e   : > { %8287 = vmatpush1.bf16.msra.mxu1 %v21374_v49  ;;  %8245 = vmatprep.subr.bf16.mxu0 %v21379_v23  ;;  %v21463_v49 = vld [vmem:[%s22065_s21 + $0x1d0c] ss:$16 sps:$4 sm:$0xff]   ;;  %v24130_v24 = vld [vmem:[#allocation29_spill] sm:$0xff] }
 0x46f   : > { %8288 = vmatprep.subr.bf16.mxu1 %v21382_v56  ;;  %8275 = vmatprep.mubr.bf16.mxu0 %v24128_v36  ;;  %v21466_v23 = vld [vmem:[%s22065_s21 + $0x1f0c] ss:$16 sps:$4 sm:$0xff]   ;;  %v21461_v56 = vld [vmem:[%s22065_s21 + $0x1d08] ss:$16 sps:$4 sm:$0xff]  }
 0x470   : > { %8318 = vmatprep.mubr.bf16.mxu1 %v24129_v37 }
 0x471   : > { %8246 = vmatpush1.bf16.msra.mxu0 %v21377_v25  ;;  %v24131_v25 = vld [vmem:[#allocation30_spill] sm:$0xff] }
 0x472   : > { %8289 = vmatpush1.bf16.msra.mxu1 %v21380_v52  ;;  %8247 = vmatprep.subr.bf16.mxu0 %v21385_v26  ;;  %v7675_v52 = vpop.f32.mrf.mxu0  ;;  %v7718_v26 = vpop.f32.mrf.mxu1 }
 0x473   : > { %8290 = vmatprep.subr.bf16.mxu1 %v21388_v59 }
 0x474   : > { %v7677_v59 = vpop.f32.mrf.mxu0  ;;  %v7720_v36 = vpop.f32.mrf.mxu1 }
 0x475   : > { %8248 = vmatpush1.bf16.msra.mxu0 %v21383_v27 }
 0x476   : > { %8291 = vmatpush1.bf16.msra.mxu1 %v21386_v29  ;;  %8249 = vmatprep.subr.bf16.mxu0 %v21391_v21  ;;  %v7679_v37 = vpop.f32.mrf.mxu0  ;;  %v7722_v27 = vpop.f32.mrf.mxu1 }
 0x477   : > { %8292 = vmatprep.subr.bf16.mxu1 %v21394_v13 }
 0x478   : > { %v7681_v29 = vpop.f32.mrf.mxu0  ;;  %v7724_v21 = vpop.f32.mrf.mxu1 }
 0x479   : > { %8250 = vmatpush1.bf16.msra.mxu0 %v21389_v60 }
 0x47a   : > { %8293 = vmatpush1.bf16.msra.mxu1 %v21392_v7  ;;  %8251 = vmatprep.subr.bf16.mxu0 %v21397_v53  ;;  %v7761_v13 = vpop.f32.mrf.mxu0  ;;  %v7804_v60 = vpop.f32.mrf.mxu1 }
 0x47b   : > { %8294 = vmatprep.subr.bf16.mxu1 %v21400_v20 }
 0x47c   : > { %v7763_v7 = vpop.f32.mrf.mxu0  ;;  %v7806_v53 = vpop.f32.mrf.mxu1 }
 0x47d   : > { %8252 = vmatpush1.bf16.msra.mxu0 %v21395_v30 }
 0x47e   : > { %8295 = vmatpush1.bf16.msra.mxu1 %v21398_v31  ;;  %8253 = vmatprep.subr.bf16.mxu0 %v21403_v34  ;;  %v7765_v20 = vpop.f32.mrf.mxu0  ;;  %v7808_v30 = vpop.f32.mrf.mxu1 }
 0x47f   : > { %8296 = vmatprep.subr.bf16.mxu1 %v21406_v5 }
 0x480   : > { %v7767_v31 = vpop.f32.mrf.mxu0  ;;  %v7810_v34 = vpop.f32.mrf.mxu1 }
 0x481   : > { %8254 = vmatpush1.bf16.msra.mxu0 %v21401_v14 }
 0x482   : > { %8297 = vmatpush1.bf16.msra.mxu1 %v21404_v28  ;;  %8255 = vmatprep.subr.bf16.mxu0 %v21409_v42  ;;  %v7847_v5 = vpop.f32.mrf.mxu0  ;;  %v7890_v14 = vpop.f32.mrf.mxu1 }
 0x483   : > { %8298 = vmatprep.subr.bf16.mxu1 %v21412_v2 }
 0x484   : > { %v7849_v28 = vpop.f32.mrf.mxu0  ;;  %v7892_v42 = vpop.f32.mrf.mxu1 }
 0x485   : > { %8256 = vmatpush1.bf16.msra.mxu0 %v21407_v4 }
 0x486   : > { %8299 = vmatpush1.bf16.msra.mxu1 %v21410_v22  ;;  %8257 = vmatprep.subr.bf16.mxu0 %v21415_v8  ;;  %v7851_v2 = vpop.f32.mrf.mxu0  ;;  %v7894_v4 = vpop.f32.mrf.mxu1 }
 0x487   : > { %8300 = vmatprep.subr.bf16.mxu1 %v21418_v16 }
 0x488   : > { %v7853_v22 = vpop.f32.mrf.mxu0  ;;  %v7896_v8 = vpop.f32.mrf.mxu1 }
 0x489   : > { %8258 = vmatpush1.bf16.msra.mxu0 %v21413_v43 }
 0x48a   : > { %8301 = vmatpush1.bf16.msra.mxu1 %v21416_v63  ;;  %8259 = vmatprep.subr.bf16.mxu0 %v21421_v47  ;;  %v7933_v16 = vpop.f32.mrf.mxu0  ;;  %v7976_v43 = vpop.f32.mrf.mxu1 }
 0x48b   : > { %8302 = vmatprep.subr.bf16.mxu1 %v21424_v46 }
 0x48c   : > { %v7935_v63 = vpop.f32.mrf.mxu0  ;;  %v7978_v47 = vpop.f32.mrf.mxu1 }
 0x48d   : > { %8260 = vmatpush2.bf16.msra.mxu0 %v21419_v54 }
 0x48e   : > { %8303 = vmatpush2.bf16.msra.mxu1 %v21422_v15  ;;  %8261 = vmatprep.subr.bf16.mxu0 %v21427_v33  ;;  %v7937_v46 = vpop.f32.mrf.mxu0  ;;  %v7980_v54 = vpop.f32.mrf.mxu1 }
 0x48f   : > { %8304 = vmatprep.subr.bf16.mxu1 %v21430_v40 }
 0x490   : > { %v7939_v15 = vpop.f32.mrf.mxu0  ;;  %v7982_v33 = vpop.f32.mrf.mxu1 }
 0x491   : > { %8262 = vmatpush2.bf16.msra.mxu0 %v21425_v39 }
 0x492   : > { %8305 = vmatpush2.bf16.msra.mxu1 %v21428_v12  ;;  %8263 = vmatprep.subr.bf16.mxu0 %v21433_v58 }
 0x493   : > { %8306 = vmatprep.subr.bf16.mxu1 %v21436_v18  ;;  %v7719_v18 = vadd.f32 %v7718_v26, %v7675_v52 }
 0x495   : > { %8264 = vmatpush2.bf16.msra.mxu0 %v21431_v9  ;;  %v7721_v9 = vadd.f32 %v7720_v36, %v7677_v59 }
 0x496   : > { %8307 = vmatpush2.bf16.msra.mxu1 %v21434_v0  ;;  %8265 = vmatprep.subr.bf16.mxu0 %v21439_v61  ;;  %v7762_v0 = vadd.f32 %v7761_v13, %v7719_v18 }
 0x497   : > { %8308 = vmatprep.subr.bf16.mxu1 %v21442_v32 }
 0x499   : > { %8266 = vmatpush2.bf16.msra.mxu0 %v21437_v10  ;;  %v7723_v10 = vadd.f32 %v7722_v27, %v7679_v37 }
 0x49a   : > { %8309 = vmatpush2.bf16.msra.mxu1 %v21440_v11  ;;  %8267 = vmatprep.subr.bf16.mxu0 %v21445_v1  ;;  %v7764_v11 = vadd.f32 %v7763_v7, %v7721_v9  ;;  %v7725_v1 = vadd.f32 %v7724_v21, %v7681_v29 }
 0x49b   : > { %8310 = vmatprep.subr.bf16.mxu1 %v21448_v6  ;;  %v7805_v6 = vadd.f32 %v7804_v60, %v7762_v0 }
 0x49d   : > { %8268 = vmatpush2.bf16.msra.mxu0 %v21443_v55  ;;  %v7766_v55 = vadd.f32 %v7765_v20, %v7723_v10 }
 0x49e   : > { %8311 = vmatpush2.bf16.msra.mxu1 %v21446_v50  ;;  %8269 = vmatprep.subr.bf16.mxu0 %v21451_v51 }
 0x49f   : > { %8312 = vmatprep.subr.bf16.mxu1 %v21454_v38  ;;  %v7807_v38 = vadd.f32 %v7806_v53, %v7764_v11 }
 0x4a1   : > { %8270 = vmatpush2.bf16.msra.mxu0 %v21449_v62  ;;  %v7768_v62 = vadd.f32 %v7767_v31, %v7725_v1 }
 0x4a2   : > { %8313 = vmatpush2.bf16.msra.mxu1 %v21452_v3  ;;  %8271 = vmatprep.subr.bf16.mxu0 %v21457_v48  ;;  %v7848_v3 = vadd.f32 %v7847_v5, %v7805_v6  ;;  %v23628_v6 = vsub.s32 3, %v23249_v19 }
 0x4a3   : > { %8314 = vmatprep.subr.bf16.mxu1 %v21460_v44 }
 0x4a5   : > { %8272 = vmatpush2.bf16.msra.mxu0 %v21455_v45  ;;  %v7809_v45 = vadd.f32 %v7808_v30, %v7766_v55 }
 0x4a6   : > { %8315 = vmatpush2.bf16.msra.mxu1 %v21458_v17  ;;  %8273 = vmatprep.subr.bf16.mxu0 %v21463_v49  ;;  %v7850_v17 = vadd.f32 %v7849_v28, %v7807_v38  ;;  %v7811_v49 = vadd.f32 %v7810_v34, %v7768_v62 }
 0x4a7   : > { %8316 = vmatprep.subr.bf16.mxu1 %v21466_v23  ;;  %v7891_v23 = vadd.f32 %v7890_v14, %v7848_v3  ;;  %v21467_v3 = vld [vmem:[%s23254_s6] sm:$0xf] }
 0x4a8   : > { %v7854_v52 = vadd.f32 %v7853_v22, %v7811_v49 }
 0x4a9   : > { %8274 = vmatpush2.bf16.msra.mxu0 %v21461_v56  ;;  %v7852_v56 = vadd.f32 %v7851_v2, %v7809_v45  ;;  %v7934_v26 = vadd.f32 %v7933_v16, %v7891_v23 }
 0x4aa   : > { %8317 = vmatpush2.bf16.msra.mxu1 %v21464_v57  ;;  %v7897_v29 = vadd.f32 %v7896_v8, %v7854_v52 }
 0x4ab   : > { %v7895_v59 = vadd.f32 %v7894_v4, %v7852_v56  ;;  %v7977_v21 = vadd.f32 %v7976_v43, %v7934_v26 }
 0x4ac   : > { %8276 = vmatmul.mubr.bf16.vlgmr.msra.gmra.mxu0 %v24130_v24  ;;  %v8019_v40 = vpop.f32.mrf.mxu0  ;;  %v7940_v7 = vadd.f32 %v7939_v15, %v7897_v29 }
 0x4ad   : > { %8319 = vmatmul.mubr.bf16.vlgmr.msra.gmra.mxu1 %v24131_v25  ;;  %v8062_v39 = vpop.f32.mrf.mxu1  ;;  %v7893_v25 = vadd.f32 %v7892_v42, %v7850_v17  ;;  %v7938_v13 = vadd.f32 %v7937_v46, %v7895_v59  ;;  %v8020_v53 = vadd.f32 %v8019_v40, %v7977_v21 }
 0x4ae   : > { %v8021_v12 = vpop.f32.mrf.mxu0  ;;  %v7983_v28 = vadd.f32 %v7982_v33, %v7940_v7 }
 0x4af   : > { %v8064_v58 = vpop.f32.mrf.mxu1  ;;  %v7936_v36 = vadd.f32 %v7935_v63, %v7893_v25  ;;  %v7981_v31 = vadd.f32 %v7980_v54, %v7938_v13  ;;  %v8063_v42 = vadd.f32 %v8062_v39, %v8020_v53  ;;  %v23625_v39 = vsub.s32 2, %v23249_v19 }
 0x4b0   : > { %v8023_v61 = vpop.f32.mrf.mxu0 }
 0x4b1   : > { %v8066_v32 = vpop.f32.mrf.mxu1  ;;  %v7979_v60 = vadd.f32 %v7978_v47, %v7936_v36  ;;  %v8024_v2 = vadd.f32 %v8023_v61, %v7981_v31 }
 0x4b2   : > { %v8025_v50 = vpop.f32.mrf.mxu0 }
 0x4b3   : > { %v8068_v51 = vpop.f32.mrf.mxu1  ;;  %v8022_v34 = vadd.f32 %v8021_v12, %v7979_v60  ;;  %v8026_v4 = vadd.f32 %v8025_v50, %v7983_v28  ;;  %v8067_v8 = vadd.f32 %v8066_v32, %v8024_v2 }
 0x4b5   : > { %v8065_v22 = vadd.f32 %v8064_v58, %v8022_v34  ;;  %v8069_v46 = vadd.f32 %v8068_v51, %v8026_v4 }
 0x4ec   : > { %v8105_v48 = vpop.f32.mrf.mxu0 }
 0x4ed   : > { %v8148_v44 = vpop.f32.mrf.mxu1  ;;  %v8106_v16 = vadd.f32 %v8105_v48, %v8063_v42  ;;  %v8342_v48 = vrot.slane %v21467_v3, %v23625_v39 }
 0x4ee   : > { %v8107_v57 = vpop.f32.mrf.mxu0 }
 0x4ef   : > { %v8150_v24 = vpop.f32.mrf.mxu1  ;;  %v8108_v43 = vadd.f32 %v8107_v57, %v8065_v22  ;;  %v8149_v47 = vadd.f32 %v8148_v44, %v8106_v16  ;;  %v21468_v44 = vld [vmem:[%s23262_s17] sm:$0xf] }
 0x4f0   : > { %v8109_v37 = vpop.f32.mrf.mxu0  ;;  %v8372_v45 = vrot.slane %v21468_v44, %v23625_v39  ;;  %v8376_v25 = vrot.slane %v21468_v44, %v23628_v6 }
 0x4f1   : > { %v8152_v27 = vpop.f32.mrf.mxu1  ;;  %v8110_v15 = vadd.f32 %v8109_v37, %v8067_v8  ;;  %v8151_v0 = vadd.f32 %v8150_v24, %v8108_v43  ;;  %v8346_v24 = vrot.slane %v21467_v3, %v23628_v6 }
 0x4f2   : > { %v8111_v20 = vpop.f32.mrf.mxu0 }
 0x4f3   : > { %v8154_v30 = vpop.f32.mrf.mxu1  ;;  %v8112_v54 = vadd.f32 %v8111_v20, %v8069_v46  ;;  %v8153_v10 = vadd.f32 %v8152_v27, %v8110_v15 }
 0x4f5   : > { %v8155_v11 = vadd.f32 %v8154_v30, %v8112_v54 }
 0x52c   : > { %v8191_v5 = vpop.f32.mrf.mxu0 }
 0x52d   : > { %v8234_v14 = vpop.f32.mrf.mxu1  ;;  %v8192_v12 = vadd.f32 %v8191_v5, %v8149_v47 }
 0x52e   : > { %v8193_v63 = vpop.f32.mrf.mxu0 }
 0x52f   : > { %v8236_v18 = vpop.f32.mrf.mxu1  ;;  %v8194_v33 = vadd.f32 %v8193_v63, %v8151_v0  ;;  %v8235_v32 = vadd.f32 %v8234_v14, %v8192_v12 }
 0x530   : > { %v8195_v40 = vpop.f32.mrf.mxu0 }
 0x531   : > { %v8238_v9 = vpop.f32.mrf.mxu1  ;;  %v8196_v1 = vadd.f32 %v8195_v40, %v8153_v10  ;;  %v8237_v51 = vadd.f32 %v8236_v18, %v8194_v33 }
 0x532   : > { %v8197_v58 = vpop.f32.mrf.mxu0 }
 0x533   : > { %v8240_v61 = vpop.f32.mrf.mxu1  ;;  %v8198_v38 = vadd.f32 %v8197_v58, %v8155_v11  ;;  %v8239_v23 = vadd.f32 %v8238_v9, %v8196_v1 }
 0x535   : > { %v8241_v59 = vadd.f32 %v8240_v61, %v8198_v38 }
 0x56c   : > { %v8277_v55 = vpop.f32.mrf.mxu0 }
 0x56d   : > { %v8320_v50 = vpop.f32.mrf.mxu1  ;;  %v8278_v62 = vadd.f32 %v8277_v55, %v8235_v32 }
 0x56e   : > { %v8279_v17 = vpop.f32.mrf.mxu0 }
 0x56f   : > { %v8322_v49 = vpop.f32.mrf.mxu1  ;;  %v8321_v56 = vadd.f32 %v8320_v50, %v8278_v62  ;;  %v8280_v57 = vadd.f32 %v8279_v17, %v8237_v51 }
 0x570   : > { %v8281_v52 = vpop.f32.mrf.mxu0 }
 0x571   : > { %v8324_v26 = vpop.f32.mrf.mxu1  ;;  %v8353_v36 = vmul.f32 %v8342_v48, %v8321_v56  ;;  %v8323_v37 = vadd.f32 %v8322_v49, %v8280_v57  ;;  %v8282_v27 = vadd.f32 %v8281_v52, %v8239_v23 }
 0x572   : > { %v8283_v29 = vpop.f32.mrf.mxu0 }
 0x573   : > { %v8383_v21 = vadd.f32 %v8372_v45, %v8353_v36  ;;  %v8354_v13 = vmul.f32 %v8346_v24, %v8323_v37  ;;  %v8325_v60 = vadd.f32 %v8324_v26, %v8282_v27  ;;  %v8284_v7 = vadd.f32 %v8283_v29, %v8241_v59  ;;  %v8326_v53 = vpop.f32.mrf.mxu1 }
 0x575   : > { %v8391_v20 = vmax.f32 %v8383_v21, 0.0  ;;  %v8384_v30 = vadd.f32 %v8376_v25, %v8354_v13  ;;  %v8357_v31 = vmul.f32 %v8342_v48, %v8325_v60  ;;  %v8327_v34 = vadd.f32 %v8326_v53, %v8284_v7 }
 0x577   : > { %8402 = vst [vmem:[%s23298_s18 + $0x10] sm:$0xff] %v8391_v20  ;;  %v8392_v5 = vmax.f32 %v8384_v30, 0.0  ;;  %v8387_v14 = vadd.f32 %v8372_v45, %v8357_v31  ;;  %v8358_v28 = vmul.f32 %v8346_v24, %v8327_v34 }
 0x579   : > { %8403 = vst [vmem:[%s23298_s18 + $0x18] sm:$0xff] %v8392_v5  ;;  %v8395_v42 = vmax.f32 %v8387_v14, 0.0  ;;  %v8388_v2 = vadd.f32 %v8376_v25, %v8358_v28  ;;  %8411 = sbr.rel (%p18754_p8) target bundleno = 3562 (0xdea), region = 116 }
 0x57b   : > { %8406 = vst [vmem:[%s23298_s18 + $0x30] sm:$0xff] %v8395_v42  ;;  %v8396_v22 = vmax.f32 %v8388_v2, 0.0 }
 0x57d   : > { %8407 = vst [vmem:[%s23298_s18 + $0x38] sm:$0xff] %v8396_v22 }
 0x57e   : > { %v8429_v4 = vld [vmem:[#allocation9] sm:$0x77]  ;;  %v8430_v16 = vld [vmem:[#allocation9 + $0x8] sm:$0x77]  ;;  %v8431_v46 = vld [vmem:[#allocation9 + $0x10] sm:$0x77] }
 0x57f   : > { %v8444_v18 = vcombine.high %v8429_v4, %v8429_v4  ;;  %v8445_v8 = vcombine.high %v8430_v16, %v8430_v16  ;;  %v8446_v47 = vcombine.high %v8431_v46, %v8431_v46  ;;  %v8432_v15 = vld [vmem:[#allocation9 + $0x18] sm:$0x77]  ;;  %v18755_v38 = vld [vmem:[#allocation11] ss:$0 sm:$0xff]  ;;  %vm8764_vm0 = vcmask 23552  }
 0x580   : > { %v8447_v0 = vcombine.high %v8432_v15, %v8432_v15  ;;  %vm8788_vm1 = vcmask 130048   ;;  %vm9096_vm2 = vcmask 1043456   ;;  %vm16875_vm3 = vcmask 523264  }
 0x581   : > { %8482 = vmatprep.subr.mxu0 %v8444_v18  ;;  %8557 = vmatprep.subr.mxu1 %v8445_v8  ;;  %vm17207_vm4 = vcmask 1045504   ;;  %vm17171_vm5 = vcmask 1041408   ;;  %vm17515_vm6 = vcmask 41984  }
 0x582   : > { %8483 = vmatpush1.xpose.msra.mxu0 %v8429_v4  ;;  %8558 = vmatpush1.xpose.msra.mxu1 %v8430_v16  ;;  %v21819_v4 = vmov 0.0  }
 0x583   : > { %8632 = vmatprep.subr.mxu0 %v8446_v47  ;;  %8707 = vmatprep.subr.mxu1 %v8447_v0 }
 0x584   : > { %v23641_v63 = vld [vmem:[#allocation2 + $0x8] sm:$0xff]  ;;  %v23644_v43 = vld [vmem:[#allocation2 + $0x18] sm:$0xff]  ;;  %v23647_v40 = vld [vmem:[#allocation2] sm:$0xff] }
 0x585   : > { %8516 = vmatprep.mubr.f32.mxu0 %v23641_v63  ;;  %8591 = vmatprep.mubr.f32.mxu1 %v23644_v43  ;;  %v23649_v9 = vld [vmem:[#allocation2 + $0x10] sm:$0xff]  ;;  %v23651_v54 = vld [vmem:[#allocation2 + $0x28] sm:$0xff]  ;;  %v23653_v12 = vld [vmem:[#allocation2 + $0x38] sm:$0xff] }
 0x586   : > { %8517 = vmatmul.mubr.f32.vlgmr.msra.gmra.mxu0 %v23647_v40  ;;  %8592 = vmatmul.mubr.f32.vlgmr.msra.gmra.mxu1 %v23649_v9  ;;  %v23659_v10 = vld [vmem:[#allocation2 + $0x20] sm:$0xff]  ;;  %v23661_v33 = vld [vmem:[#allocation2 + $0x30] sm:$0xff]  ;;  %v23663_v58 = vld [vmem:[#allocation2 + $0x48] sm:$0xff] }
 0x587   : > { %8521 = vmatprep.mubr.f32.mxu0 %v23651_v54  ;;  %8596 = vmatprep.mubr.f32.mxu1 %v23653_v12  ;;  %v23665_v61 = vld [vmem:[#allocation2 + $0x58] sm:$0xff]  ;;  %v23671_v11 = vld [vmem:[#allocation2 + $0x40] sm:$0xff]  ;;  %v23673_v32 = vld [vmem:[#allocation2 + $0x50] sm:$0xff] }
 0x588   : > { %8633 = vmatpush1.xpose.msra.mxu0 %v8431_v46  ;;  %8708 = vmatpush1.xpose.msra.mxu1 %v8432_v15  ;;  %v23675_v1 = vld [vmem:[#allocation2 + $0x68] sm:$0xff]  ;;  %v23677_v55 = vld [vmem:[#allocation2 + $0x78] sm:$0xff]  ;;  %v23683_v50 = vld [vmem:[#allocation2 + $0x60] sm:$0xff] }
 0x589   : > { %v23685_v51 = vld [vmem:[#allocation2 + $0x70] sm:$0xff] }
 0x58a   : > { %8522 = vmatmul.mubr.f32.gmra.mxu0 %v23659_v10  ;;  %8597 = vmatmul.mubr.f32.gmra.mxu1 %v23661_v33 }
 0x58b   : > { %8666 = vmatprep.mubr.f32.mxu0 %v23663_v58  ;;  %8741 = vmatprep.mubr.f32.mxu1 %v23665_v61 }
 0x58e   : > { %8667 = vmatmul.mubr.f32.vlgmr.msra.gmra.mxu0 %v23671_v11  ;;  %8742 = vmatmul.mubr.f32.vlgmr.msra.gmra.mxu1 %v23673_v32 }
 0x58f   : > { %8671 = vmatprep.mubr.f32.mxu0 %v23675_v1  ;;  %8746 = vmatprep.mubr.f32.mxu1 %v23677_v55 }
 0x592   : > { %8672 = vmatmul.mubr.f32.gmra.mxu0 %v23683_v50  ;;  %8747 = vmatmul.mubr.f32.gmra.mxu1 %v23685_v51 }
 0x593   : > { %8856 = vmatprep.mubr.f32.mxu0 %v21819_v4  ;;  %8927 = vmatprep.mubr.f32.mxu1 %v21819_v4 }
 0x646   : > { %v8518_v62 = vpop.f32.mrf.mxu0  ;;  %v8593_v3 = vpop.f32.mrf.mxu1 }
 0x647   : > { %v8519_v45 = vadd.f32 %v18755_v38, %v8518_v62 }
 0x648   : > { %v8520_v48 = vpop.f32.mrf.mxu0  ;;  %v8595_v44 = vpop.f32.mrf.mxu1 }
 0x649   : > { %v8594_v57 = vadd.f32 %v8593_v3, %v8519_v45  ;;  %v9458_v48 = vld [vmem:[#allocation12 + $0x5e0] sm:$0xff] }
 0x64a   : > { %v8523_v17 = vpop.f32.mrf.mxu0  ;;  %v8598_v49 = vpop.f32.mrf.mxu1  ;;  %v9318_v45 = vld [vmem:[#allocation12 + $0x180] sm:$0xff] }
 0x64b   : > { %v8524_v24 = vadd.f32 %v18755_v38, %v8523_v17 }
 0x64c   : > { %v8525_v23 = vpop.f32.mrf.mxu0  ;;  %v8600_v56 = vpop.f32.mrf.mxu1 }
 0x64d   : > { %v8599_v37 = vadd.f32 %v8598_v49, %v8524_v24  ;;  %v9322_v49 = vld [vmem:[#allocation12 + $0x1a0] sm:$0xff] }
 0x64e   : > { %v8668_v25 = vpop.f32.mrf.mxu0  ;;  %v8743_v52 = vpop.f32.mrf.mxu1  ;;  %v9450_v23 = vld [vmem:[#allocation12 + $0x5a0] sm:$0xff] }
 0x64f   : > { %v8669_v26 = vadd.f32 %v8668_v25, %v8594_v57  ;;  %v9438_v25 = vld [vmem:[#allocation12 + $0x540] sm:$0xff] }
 0x650   : > { %v8670_v59 = vpop.f32.mrf.mxu0  ;;  %v8745_v36 = vpop.f32.mrf.mxu1 }
 0x651   : > { %v8744_v27 = vadd.f32 %v8743_v52, %v8669_v26  ;;  %v9442_v52 = vld [vmem:[#allocation12 + $0x560] sm:$0xff]  ;;  %v18810_v26 = vcombine.low %v9318_v45, %v9322_v49 }
 0x652   : > { %v8673_v29 = vpop.f32.mrf.mxu0  ;;  %v8748_v21 = vpop.f32.mrf.mxu1 }
 0x653   : > { %v18756_v13 = vmul.f32 -1.442695, %v8744_v27  ;;  %v8674_v60 = vadd.f32 %v8673_v29, %v8599_v37  ;;  %v18931_v37 = vcombine.high %v9438_v25, %v9442_v52  ;;  %v9302_v27 = vld [vmem:[#allocation12 + $0x100] sm:$0xff] }
 0x654   : > { %v8675_v7 = vpop.f32.mrf.mxu0  ;;  %v8750_v53 = vpop.f32.mrf.mxu1  ;;  %v9306_v29 = vld [vmem:[#allocation12 + $0x120] sm:$0xff] }
 0x655   : > { %v8749_v20 = vadd.f32 %v8748_v21, %v8674_v60  ;;  %21473 = vpow2.f32 %v18756_v13  ;;  %v9430_v21 = vld [vmem:[#allocation12 + $0x500] sm:$0xff]  ;;  %v18930_v7 = vcombine.low %v9438_v25, %v9442_v52  ;;  %v18795_v53 = vcombine.high %v9302_v27, %v9306_v29 }
 0x656   : > { %v9434_v13 = vld [vmem:[#allocation12 + $0x520] sm:$0xff] }
 0x657   : > { %v18757_v30 = vmul.f32 -1.442695, %v8749_v20  ;;  %v18923_v20 = vcombine.high %v9430_v21, %v9434_v13 }
 0x659   : > { %21475 = vpow2.f32 %v18757_v30  ;;  %v9294_v30 = vld [vmem:[#allocation12 + $0xc0] sm:$0xff] }
 0x662   : > { %v21474_v31 = vpop.eup %21473 }
 0x663   : > { %v8758_v5 = vadd.f32 1.0, %v21474_v31  ;;  %v9298_v31 = vld [vmem:[#allocation12 + $0xe0] sm:$0xff] }
 0x666   : > { %v21476_v34 = vpop.eup %21475 }
 0x667   : > { %v8759_v14 = vadd.f32 1.0, %v21476_v34  ;;  %v9422_v34 = vld [vmem:[#allocation12 + $0x4c0] sm:$0xff] }
 0x669   : > { %21477 = vrcp.f32 %v8759_v14  ;;  %v18794_v14 = vcombine.low %v9302_v27, %v9306_v29  ;;  %v9502_v27 = vld [vmem:[#allocation12 + $0x740] sm:$0xff] }
 0x66a   : > { %21479 = vrcp.f32 %v8758_v5  ;;  %v9426_v5 = vld [vmem:[#allocation12 + $0x4e0] sm:$0xff] }
 0x66b   : > { %v9506_v29 = vld [vmem:[#allocation12 + $0x760] sm:$0xff] }
 0x676   : > { %v21478_v28 = vpop.eup %21477 }
 0x677   : > { %v8768_v42 = vsel %vm8764_vm0, %v21478_v28, 0.0  ;;  %v21480_v2 = vpop.eup %21479  ;;  %v18922_v28 = vcombine.low %v9430_v21, %v9434_v13 }
 0x678   : > { %8769 = vadd.xlane.f32.xlu0 %v8768_v42  ;;  %v8765_v22 = vsel %vm8764_vm0, %v21480_v2, 0.0  ;;  %v18787_v42 = vcombine.high %v9294_v30, %v9298_v31  ;;  %v18915_v2 = vcombine.high %v9422_v34, %v9426_v5 }
 0x67c   : > { %8766 = vadd.xlane.f32.xlu0 %v8765_v22  ;;  %v9286_v22 = vld [vmem:[#allocation12 + $0x80] sm:$0xff] }
 0x701   : > { %v8770_v16 = vpop.xlane.xlu0 %8769 }
 0x702   : > { %v8781_v18 = vmul.f32 %v8770_v16, %v23651_v54  ;;  %v8783_v8 = vmul.f32 %v8770_v16, %v23653_v12  ;;  %v8780_v46 = vmul.f32 %v8770_v16, %v23659_v10  ;;  %v8782_v47 = vmul.f32 %v8770_v16, %v23661_v33  ;;  %v8771_v54 = vld [vmem:[%s24073_s4] sm:$0x3]  ;;  %v9454_v33 = vld [vmem:[#allocation12 + $0x5c0] sm:$0xff] }
 0x703   : > { %v8785_v12 = vmul.f32 %v8770_v16, %v23675_v1  ;;  %v8787_v10 = vmul.f32 %v8770_v16, %v23677_v55  ;;  %v18947_v56 = vcombine.high %v9454_v33, %v9458_v48 }
 0x704   : > { %8820 = vmatprep.subr.mxu0 %v8781_v18  ;;  %8891 = vmatprep.subr.mxu1 %v8783_v8  ;;  %v9414_v18 = vld [vmem:[#allocation12 + $0x480] sm:$0xff] }
 0x705   : > { %8821 = vmatpush1.msra.mxu0 %v8780_v46  ;;  %8892 = vmatpush1.msra.mxu1 %v8782_v47  ;;  %v8767_v15 = vpop.xlane.xlu0 %8766  ;;  %v9418_v8 = vld [vmem:[#allocation12 + $0x4a0] sm:$0xff]  ;;  %v18786_v46 = vcombine.low %v9294_v30, %v9298_v31  ;;  %v18914_v47 = vcombine.low %v9422_v34, %v9426_v5  ;;  %v18994_v5 = vcombine.low %v9502_v27, %v9506_v29 }
 0x706   : > { %v8773_v0 = vmul.f32 %v8767_v15, %v23641_v63  ;;  %v8775_v38 = vmul.f32 %v8767_v15, %v23644_v43  ;;  %v8772_v62 = vmul.f32 %v8767_v15, %v23647_v40  ;;  %v8774_v3 = vmul.f32 %v8767_v15, %v23649_v9  ;;  %v9326_v63 = vld [vmem:[#allocation12 + $0x1c0] sm:$0xff] }
 0x707   : > { %v8784_v43 = vmul.f32 %v8770_v16, %v23683_v50  ;;  %v8786_v40 = vmul.f32 %v8770_v16, %v23685_v51  ;;  %v9330_v9 = vld [vmem:[#allocation12 + $0x1e0] sm:$0xff]  ;;  %v8777_v44 = vmul.f32 %v8767_v15, %v23663_v58  ;;  %v8779_v1 = vmul.f32 %v8767_v15, %v23665_v61 }
 0x708   : > { %8822 = vmatprep.subr.mxu0 %v8773_v0  ;;  %8893 = vmatprep.subr.mxu1 %v8775_v38  ;;  %v8776_v55 = vmul.f32 %v8767_v15, %v23671_v11  ;;  %v8778_v17 = vmul.f32 %v8767_v15, %v23673_v32  ;;  %v9446_v50 = vld [vmem:[#allocation12 + $0x580] sm:$0xff]  ;;  %v18819_v51 = vcombine.high %v9326_v63, %v9330_v9 }
 0x709   : > { %8823 = vmatpush1.msra.mxu0 %v8772_v62  ;;  %8894 = vmatpush1.msra.mxu1 %v8774_v3  ;;  %v18818_v57 = vcombine.low %v9326_v63, %v9330_v9  ;;  %v18946_v58 = vcombine.low %v9454_v33, %v9458_v48  ;;  %v18811_v61 = vcombine.high %v9318_v45, %v9322_v49  ;;  %v9310_v11 = vld [vmem:[#allocation12 + $0x140] sm:$0xff] }
 0x70a   : > { %18758 = vmatmul.mubr.msk.f32.vlgmr.msra.gmra.mxu0 %vm8788_vm1, %v8771_v54  ;;  %18759 = vmatmul.mubr.msk.f32.vlgmr.msra.gmra.mxu1 %vm8788_vm1, %v8771_v54  ;;  %v18939_v24 = vcombine.high %v9446_v50, %v9450_v23  ;;  %v9314_v32 = vld [vmem:[#allocation12 + $0x160] sm:$0xff]  ;;  %v18938_v59 = vcombine.low %v9446_v50, %v9450_v23  ;;  %v18907_v0 = vcombine.high %v9414_v18, %v9418_v8 }
 0x70b   : > { %8962 = vmatprep.subr.mxu0 %v8785_v12  ;;  %9033 = vmatprep.subr.mxu1 %v8787_v10  ;;  %v18803_v36 = vcombine.high %v9310_v11, %v9314_v32  ;;  %v18802_v60 = vcombine.low %v9310_v11, %v9314_v32  ;;  %v9290_v16 = vld [vmem:[#allocation12 + $0xa0] sm:$0xff]  ;;  %v18906_v10 = vcombine.low %v9414_v18, %v9418_v8 }
 0x70c   : > { %8963 = vmatpush1.msra.mxu0 %v8784_v43  ;;  %9034 = vmatpush1.msra.mxu1 %v8786_v40  ;;  %v18779_v15 = vcombine.high %v9286_v22, %v9290_v16  ;;  %v9278_v38 = vld [vmem:[#allocation12 + $0x40] sm:$0xff]  ;;  %v18778_v12 = vcombine.low %v9286_v22, %v9290_v16 }
 0x70d   : > { %8964 = vmatprep.subr.mxu0 %v8777_v44  ;;  %9035 = vmatprep.subr.mxu1 %v8779_v1  ;;  %v9282_v62 = vld [vmem:[#allocation12 + $0x60] sm:$0xff] }
 0x70e   : > { %8965 = vmatpush1.msra.mxu0 %v8776_v55  ;;  %9036 = vmatpush1.msra.mxu1 %v8778_v17  ;;  %v9406_v3 = vld [vmem:[#allocation12 + $0x440] sm:$0xff]  ;;  %v18771_v63 = vcombine.high %v9278_v38, %v9282_v62  ;;  %v18770_v44 = vcombine.low %v9278_v38, %v9282_v62 }
 0x70f   : > { %8998 = vmatprep.mubr.f32.mxu0 %v21819_v4  ;;  %9069 = vmatprep.mubr.f32.mxu1 %v21819_v4  ;;  %v9270_v40 = vld [vmem:[#allocation12] sm:$0xff] }
 0x710   : > { %18760 = vmatmul.mubr.msk.f32.vlgmr.msra.gmra.mxu0 %vm8788_vm1, %v8771_v54  ;;  %18761 = vmatmul.mubr.msk.f32.vlgmr.msra.gmra.mxu1 %vm8788_vm1, %v8771_v54  ;;  %v9410_v54 = vld [vmem:[#allocation12 + $0x460] sm:$0xff] }
 0x711   : > { %15456 = vmatprep.subr.bf16.mxu0 %v18819_v51  ;;  %15497 = vmatprep.subr.bf16.mxu1 %v18947_v56  ;;  %v18899_v43 = vcombine.high %v9406_v3, %v9410_v54  ;;  %v9274_v9 = vld [vmem:[#allocation12 + $0x20] sm:$0xff]  ;;  %v18898_v1 = vcombine.low %v9406_v3, %v9410_v54 }
 0x712   : > { %15457 = vmatpush1.bf16.msra.mxu0 %v18818_v57  ;;  %15498 = vmatpush1.bf16.msra.mxu1 %v18946_v58  ;;  %v9398_v33 = vld [vmem:[#allocation12 + $0x400] sm:$0xff]  ;;  %v18763_v45 = vcombine.high %v9270_v40, %v9274_v9  ;;  %v18762_v51 = vcombine.low %v9270_v40, %v9274_v9 }
 0x713   : > { %15458 = vmatprep.subr.bf16.mxu0 %v18811_v61  ;;  %15499 = vmatprep.subr.bf16.mxu1 %v18939_v24  ;;  %v9402_v48 = vld [vmem:[#allocation12 + $0x420] sm:$0xff] }
 0x714   : > { %v18891_v55 = vcombine.high %v9398_v33, %v9402_v48  ;;  %v9390_v17 = vld [vmem:[#allocation12 + $0x3c0] sm:$0xff]  ;;  %v18890_v56 = vcombine.low %v9398_v33, %v9402_v48 }
 0x715   : > { %v9394_v49 = vld [vmem:[#allocation12 + $0x3e0] sm:$0xff] }
 0x716   : > { %15459 = vmatpush1.bf16.msra.mxu0 %v18810_v26  ;;  %15500 = vmatpush1.bf16.msra.mxu1 %v18938_v59  ;;  %v9518_v50 = vld [vmem:[#allocation12 + $0x7c0] sm:$0xff]  ;;  %v18883_v57 = vcombine.high %v9390_v17, %v9394_v49  ;;  %v18882_v25 = vcombine.low %v9390_v17, %v9394_v49 }
 0x717   : > { %15460 = vmatprep.subr.bf16.mxu0 %v18803_v36  ;;  %15501 = vmatprep.subr.bf16.mxu1 %v18931_v37  ;;  %v9522_v23 = vld [vmem:[#allocation12 + $0x7e0] sm:$0xff] }
 0x718   : > { %v19011_v58 = vcombine.high %v9518_v50, %v9522_v23  ;;  %v9382_v61 = vld [vmem:[#allocation12 + $0x380] sm:$0xff]  ;;  %v19010_v52 = vcombine.low %v9518_v50, %v9522_v23 }
 0x719   : > { %v9386_v24 = vld [vmem:[#allocation12 + $0x3a0] sm:$0xff] }
 0x71a   : > { %15461 = vmatpush1.bf16.msra.mxu0 %v18802_v60  ;;  %15502 = vmatpush1.bf16.msra.mxu1 %v18930_v7  ;;  %v9510_v11 = vld [vmem:[#allocation12 + $0x780] sm:$0xff]  ;;  %v18875_v26 = vcombine.high %v9382_v61, %v9386_v24  ;;  %v18874_v21 = vcombine.low %v9382_v61, %v9386_v24  ;;  %v18995_v7 = vcombine.high %v9502_v27, %v9506_v29 }
 0x71b   : > { %15462 = vmatprep.subr.bf16.mxu0 %v18795_v53  ;;  %15503 = vmatprep.subr.bf16.mxu1 %v18923_v20  ;;  %v9514_v32 = vld [vmem:[#allocation12 + $0x7a0] sm:$0xff] }
 0x71c   : > { %v19003_v59 = vcombine.high %v9510_v11, %v9514_v32  ;;  %v9374_v36 = vld [vmem:[#allocation12 + $0x340] sm:$0xff]  ;;  %v19002_v13 = vcombine.low %v9510_v11, %v9514_v32 }
 0x71d   : > { %v9378_v37 = vld [vmem:[#allocation12 + $0x360] sm:$0xff] }
 0x71e   : > { %15463 = vmatpush1.bf16.msra.mxu0 %v18794_v14  ;;  %15504 = vmatpush1.bf16.msra.mxu1 %v18922_v28  ;;  %v18867_v60 = vcombine.high %v9374_v36, %v9378_v37  ;;  %v9366_v53 = vld [vmem:[#allocation12 + $0x300] sm:$0xff]  ;;  %v18866_v34 = vcombine.low %v9374_v36, %v9378_v37 }
 0x71f   : > { %15464 = vmatprep.subr.bf16.mxu0 %v18787_v42  ;;  %15505 = vmatprep.subr.bf16.mxu1 %v18915_v2  ;;  %v9370_v20 = vld [vmem:[#allocation12 + $0x320] sm:$0xff] }
 0x720   : > { %v9494_v30 = vld [vmem:[#allocation12 + $0x700] sm:$0xff]  ;;  %v18859_v14 = vcombine.high %v9366_v53, %v9370_v20  ;;  %v18858_v18 = vcombine.low %v9366_v53, %v9370_v20 }
 0x721   : > { %v9498_v31 = vld [vmem:[#allocation12 + $0x720] sm:$0xff] }
 0x722   : > { %15465 = vmatpush1.bf16.msra.mxu0 %v18786_v46  ;;  %15506 = vmatpush1.bf16.msra.mxu1 %v18914_v47  ;;  %v18987_v28 = vcombine.high %v9494_v30, %v9498_v31  ;;  %v9358_v42 = vld [vmem:[#allocation12 + $0x2c0] sm:$0xff]  ;;  %v18986_v8 = vcombine.low %v9494_v30, %v9498_v31 }
 0x723   : > { %15466 = vmatprep.subr.bf16.mxu0 %v18779_v15  ;;  %15507 = vmatprep.subr.bf16.mxu1 %v18907_v0  ;;  %v9362_v2 = vld [vmem:[#allocation12 + $0x2e0] sm:$0xff] }
 0x724   : > { %v9486_v22 = vld [vmem:[#allocation12 + $0x6c0] sm:$0xff]  ;;  %v18851_v46 = vcombine.high %v9358_v42, %v9362_v2  ;;  %v18850_v3 = vcombine.low %v9358_v42, %v9362_v2 }
 0x725   : > { %v9490_v16 = vld [vmem:[#allocation12 + $0x6e0] sm:$0xff] }
 0x726   : > { %15467 = vmatpush1.bf16.msra.mxu0 %v18778_v12  ;;  %15508 = vmatpush1.bf16.msra.mxu1 %v18906_v10  ;;  %v18979_v47 = vcombine.high %v9486_v22, %v9490_v16  ;;  %v9350_v15 = vld [vmem:[#allocation12 + $0x280] sm:$0xff]  ;;  %v18978_v54 = vcombine.low %v9486_v22, %v9490_v16 }
 0x727   : > { %15468 = vmatprep.subr.bf16.mxu0 %v18771_v63  ;;  %15509 = vmatprep.subr.bf16.mxu1 %v18899_v43  ;;  %v9354_v0 = vld [vmem:[#allocation12 + $0x2a0] sm:$0xff] }
 0x728   : > { %v9478_v38 = vld [vmem:[#allocation12 + $0x680] sm:$0xff]  ;;  %v18843_v12 = vcombine.high %v9350_v15, %v9354_v0  ;;  %v18842_v33 = vcombine.low %v9350_v15, %v9354_v0 }
 0x729   : > { %v9482_v62 = vld [vmem:[#allocation12 + $0x6a0] sm:$0xff] }
 0x72a   : > { %15469 = vmatpush1.bf16.msra.mxu0 %v18770_v44  ;;  %15510 = vmatpush1.bf16.msra.mxu1 %v18898_v1  ;;  %v18971_v10 = vcombine.high %v9478_v38, %v9482_v62  ;;  %v9342_v63 = vld [vmem:[#allocation12 + $0x240] sm:$0xff]  ;;  %v18970_v48 = vcombine.low %v9478_v38, %v9482_v62 }
 0x72b   : > { %15470 = vmatprep.subr.bf16.mxu0 %v18763_v45  ;;  %15511 = vmatprep.subr.bf16.mxu1 %v18891_v55  ;;  %v9346_v43 = vld [vmem:[#allocation12 + $0x260] sm:$0xff] }
 0x72c   : > { %v9470_v40 = vld [vmem:[#allocation12 + $0x640] sm:$0xff]  ;;  %v18835_v44 = vcombine.high %v9342_v63, %v9346_v43  ;;  %v18834_v45 = vcombine.low %v9342_v63, %v9346_v43 }
 0x72d   : > { %v9474_v9 = vld [vmem:[#allocation12 + $0x660] sm:$0xff] }
 0x72e   : > { %15471 = vmatpush1.bf16.msra.mxu0 %v18762_v51  ;;  %15512 = vmatpush1.bf16.msra.mxu1 %v18890_v56  ;;  %v18963_v1 = vcombine.high %v9470_v40, %v9474_v9  ;;  %v18962_v55 = vcombine.low %v9470_v40, %v9474_v9  ;;  %v9334_v17 = vld [vmem:[#allocation12 + $0x200] sm:$0xff] }
 0x72f   : > { %15472 = vmatprep.subr.bf16.mxu0 %v18883_v57  ;;  %15513 = vmatprep.subr.bf16.mxu1 %v19011_v58  ;;  %v9338_v49 = vld [vmem:[#allocation12 + $0x220] sm:$0xff] }
 0x730   : > { %v9462_v50 = vld [vmem:[#allocation12 + $0x600] sm:$0xff]  ;;  %v18827_v23 = vcombine.high %v9334_v17, %v9338_v49  ;;  %v18826_v56 = vcombine.low %v9334_v17, %v9338_v49 }
 0x731   : > { %v9466_v51 = vld [vmem:[#allocation12 + $0x620] sm:$0xff] }
 0x732   : > { %15473 = vmatpush2.bf16.msra.mxu0 %v18882_v25  ;;  %15514 = vmatpush2.bf16.msra.mxu1 %v19010_v52  ;;  %v18954_v57 = vcombine.low %v9462_v50, %v9466_v51  ;;  %v18955_v58 = vcombine.high %v9462_v50, %v9466_v51  ;;  %v9582_v61 = vld [vmem:[#allocation12 + $0x9c0] sm:$0xff] }
 0x733   : > { %15474 = vmatprep.subr.bf16.mxu0 %v18875_v26  ;;  %15515 = vmatprep.subr.bf16.mxu1 %v19003_v59  ;;  %v9586_v24 = vld [vmem:[#allocation12 + $0x9e0] sm:$0xff] }
 0x734   : > { %v9710_v11 = vld [vmem:[#allocation12 + $0xdc0] sm:$0xff]  ;;  %v19075_v32 = vcombine.high %v9582_v61, %v9586_v24  ;;  %v19074_v52 = vcombine.low %v9582_v61, %v9586_v24 }
 0x735   : > { %v9714_v25 = vld [vmem:[#allocation12 + $0xde0] sm:$0xff] }
 0x736   : > { %15475 = vmatpush2.bf16.msra.mxu0 %v18874_v21  ;;  %15516 = vmatpush2.bf16.msra.mxu1 %v19002_v13  ;;  %v19202_v26 = vcombine.low %v9710_v11, %v9714_v25  ;;  %v19203_v59 = vcombine.high %v9710_v11, %v9714_v25  ;;  %v9076_v36 = vld [vmem:[#allocation8] sm:$0xff]  ;;  %v9077_v37 = vld [vmem:[#allocation8 + $0x8] sm:$0xff] }
 0x737   : > { %15476 = vmatprep.subr.bf16.mxu0 %v18867_v60  ;;  %15517 = vmatprep.subr.bf16.mxu1 %v18995_v7  ;;  %v9574_v21 = vld [vmem:[#allocation12 + $0x980] sm:$0xff]  ;;  %v9080_v31 = vmax.f32 %v9076_v36, 0.0 }
 0x738   : > { %v9578_v13 = vld [vmem:[#allocation12 + $0x9a0] sm:$0xff] }
 0x739   : > { %v9702_v60 = vld [vmem:[#allocation12 + $0xd80] sm:$0xff]  ;;  %v19067_v42 = vcombine.high %v9574_v21, %v9578_v13  ;;  %v9088_v15 = vcombine.high %v9080_v31, %v9080_v31  ;;  %v19066_v38 = vcombine.low %v9574_v21, %v9578_v13 }
 0x73a   : > { %15477 = vmatpush2.bf16.msra.mxu0 %v18866_v34  ;;  %15518 = vmatpush2.bf16.msra.mxu1 %v18994_v5  ;;  %v9706_v7 = vld [vmem:[#allocation12 + $0xda0] sm:$0xff]  ;;  %v9081_v34 = vmax.f32 %v9077_v37, 0.0 }
 0x73b   : > { %15478 = vmatprep.subr.bf16.mxu0 %v18859_v14  ;;  %15519 = vmatprep.subr.bf16.mxu1 %v18987_v28  ;;  %v19195_v2 = vcombine.high %v9702_v60, %v9706_v7  ;;  %v9566_v22 = vld [vmem:[#allocation12 + $0x940] sm:$0xff]  ;;  %v19194_v62 = vcombine.low %v9702_v60, %v9706_v7 }
 0x73c   : > { %v9570_v16 = vld [vmem:[#allocation12 + $0x960] sm:$0xff]  ;;  %v9089_v0 = vcombine.high %v9081_v34, %v9081_v34 }
 0x73d   : > { %v9562_v43 = vld [vmem:[#allocation12 + $0x920] sm:$0xff]  ;;  %v19058_v17 = vcombine.low %v9566_v22, %v9570_v16 }
 0x73e   : > { %15479 = vmatpush2.bf16.msra.mxu0 %v18858_v18  ;;  %15520 = vmatpush2.bf16.msra.mxu1 %v18986_v8  ;;  %v9694_v18 = vld [vmem:[#allocation12 + $0xd40] sm:$0xff] }
 0x73f   : > { %15480 = vmatprep.subr.bf16.mxu0 %v18851_v46  ;;  %15521 = vmatprep.subr.bf16.mxu1 %v18979_v47  ;;  %v9698_v8 = vld [vmem:[#allocation12 + $0xd60] sm:$0xff] }
 0x740   : > { %v9686_v40 = vld [vmem:[#allocation12 + $0xd00] sm:$0xff]  ;;  %v19186_v49 = vcombine.low %v9694_v18, %v9698_v8 }
 0x741   : > { %v9690_v9 = vld [vmem:[#allocation12 + $0xd20] sm:$0xff] }
 0x742   : > { %15481 = vmatpush2.bf16.msra.mxu0 %v18850_v3  ;;  %15522 = vmatpush2.bf16.msra.mxu1 %v18978_v54  ;;  %v19059_v3 = vcombine.high %v9566_v22, %v9570_v16  ;;  %v19187_v54 = vcombine.high %v9694_v18, %v9698_v8  ;;  %v9550_v51 = vld [vmem:[#allocation12 + $0x8c0] sm:$0xff] }
 0x743   : > { %15482 = vmatprep.subr.bf16.mxu0 %v18843_v12  ;;  %15523 = vmatprep.subr.bf16.mxu1 %v18971_v10  ;;  %v9558_v12 = vld [vmem:[#allocation12 + $0x900] sm:$0xff] }
 0x744   : > { %v19051_v50 = vcombine.high %v9558_v12, %v9562_v43  ;;  %v9682_v61 = vld [vmem:[#allocation12 + $0xce0] sm:$0xff]  ;;  %v19050_v25 = vcombine.low %v9558_v12, %v9562_v43 }
 0x745   : > { %v9542_v36 = vld [vmem:[#allocation12 + $0x880] sm:$0xff] }
 0x746   : > { %15483 = vmatpush2.bf16.msra.mxu0 %v18842_v33  ;;  %15524 = vmatpush2.bf16.msra.mxu1 %v18970_v48  ;;  %v9674_v21 = vld [vmem:[#allocation12 + $0xca0] sm:$0xff] }
 0x747   : > { %15484 = vmatprep.subr.bf16.mxu0 %v18835_v44  ;;  %15525 = vmatprep.subr.bf16.mxu1 %v18963_v1  ;;  %v9097_v44 = vsel %vm9096_vm2, %v9080_v31, 0.0  ;;  %v9104_v1 = vsel %vm9096_vm2, %v9088_v15, 0.0  ;;  %v9538_v22 = vld [vmem:[#allocation12 + $0x860] sm:$0xff] }
 0x748   : > { %v9105_v24 = vrot.slane %v9104_v1, 4  ;;  %v9662_v16 = vld [vmem:[#allocation12 + $0xc40] sm:$0xff] }
 0x749   : > { %v9666_v18 = vld [vmem:[#allocation12 + $0xc60] sm:$0xff] }
 0x74a   : > { %15485 = vmatpush2.bf16.msra.mxu0 %v18834_v45  ;;  %15526 = vmatpush2.bf16.msra.mxu1 %v18962_v55  ;;  %v9111_v45 = vsel %vm9096_vm2, %v9081_v34, 0.0  ;;  %v9118_v55 = vsel %vm9096_vm2, %v9089_v0, 0.0  ;;  %v9106_v13 = vadd.f32 %v9105_v24, %v9104_v1  ;;  %v9526_v12 = vld [vmem:[#allocation12 + $0x800] sm:$0xff] }
 0x74b   : > { %15486 = vmatprep.subr.bf16.mxu0 %v18827_v23  ;;  %15527 = vmatprep.subr.bf16.mxu1 %v18955_v58  ;;  %v19179_v23 = vcombine.high %v9686_v40, %v9690_v9  ;;  %v9678_v58 = vld [vmem:[#allocation12 + $0xcc0] sm:$0xff]  ;;  %v9112_v11 = vrot.slane %v9111_v45, 4 }
 0x74c   : > { %v9107_v8 = vrot.slane %v9106_v13, 2  ;;  %v9654_v43 = vld [vmem:[#allocation12 + $0xc00] sm:$0xff] }
 0x74d   : > { %v9113_v60 = vadd.f32 %v9112_v11, %v9111_v45 }
 0x74e   : > { %15487 = vmatpush2.bf16.msra.mxu0 %v18826_v56  ;;  %15528 = vmatpush2.bf16.msra.mxu1 %v18954_v57  ;;  %v9098_v56 = vrot.slane %v9097_v44, 4  ;;  %v9554_v57 = vld [vmem:[#allocation12 + $0x8e0] sm:$0xff] }
 0x74f   : > { %15538 = vmatprep.subr.bf16.mxu0 %v19075_v32  ;;  %15579 = vmatprep.subr.bf16.mxu1 %v19203_v59  ;;  %v9119_v32 = vrot.slane %v9118_v55, 4  ;;  %v19171_v59 = vcombine.high %v9678_v58, %v9682_v61  ;;  %v9114_v15 = vrot.slane %v9113_v60, 2 }
 0x750   : > { %v9099_v37 = vadd.f32 %v9098_v56, %v9097_v44  ;;  %v9774_v56 = vld [vmem:[#allocation12 + $0xfc0] sm:$0xff] }
 0x751   : > { %v9120_v7 = vadd.f32 %v9119_v32, %v9118_v55  ;;  %v9115_v44 = vadd.f32 %v9114_v15, %v9113_v60  ;;  %v19154_v55 = vcombine.low %v9662_v16, %v9666_v18  ;;  %v21820_v60 = vmov 1983009808  }
 0x753   : > { %v9121_v0 = vrot.slane %v9120_v7, 2 }
 0x755   : > { %v9122_v1 = vadd.f32 %v9121_v0, %v9120_v7  ;;  %v9175_v7 = vunpack.c.l.s4 %v21820_v60  ;;  %v9598_v60 = vld [vmem:[#allocation12 + $0xa40] sm:$0xff] }
 0x757   : > { %v9123_v24 = vrot.slane %v9122_v1, 1 }
 0x7ca   : > { %v8858_v27 = vpop.f32.mrf.mxu0  ;;  %v8929_v29 = vpop.f32.mrf.mxu1 }
 0x7cb   : > { %v23716_v53 = vpack.c.bf16 %v8929_v29, %v8929_v29  ;;  %v23722_v28 = vpack.c.bf16 %v8858_v27, %v8858_v27  ;;  %v9546_v27 = vld [vmem:[#allocation12 + $0x8a0] sm:$0xff] }
 0x7cc   : > { %v8860_v20 = vpop.f32.mrf.mxu0  ;;  %v8931_v30 = vpop.f32.mrf.mxu1  ;;  %v9670_v29 = vld [vmem:[#allocation12 + $0xc80] sm:$0xff]  ;;  %v19035_v31 = vcombine.high %v9542_v36, %v9546_v27 }
 0x7cd   : > { %v23718_v5 = vpack.c.bf16 %v8860_v20, %v8860_v20  ;;  %v23720_v14 = vpack.c.bf16 %v8931_v30, %v8931_v30  ;;  %v19042_v20 = vcombine.low %v9550_v51, %v9554_v57  ;;  %v19170_v30 = vcombine.low %v9678_v58, %v9682_v61 }
 0x7ce   : > { %v19163_v34 = vcombine.high %v9670_v29, %v9674_v21  ;;  %v9116_v61 = vrot.slane %v9115_v44, 1 }
 0x7cf   : > { %15488 = vmatprep.mubr.bf16.mxu0 %v23718_v5  ;;  %15529 = vmatprep.mubr.bf16.mxu1 %v23720_v14 }
 0x7d0   : > { %15489 = vmatmul.mubr.bf16.vlgmr.msra.gmra.mxu0 %v23722_v28  ;;  %15530 = vmatmul.mubr.bf16.vlgmr.msra.gmra.mxu1 %v23716_v53  ;;  %v23728_v46 = vpop.f32.mrf.mxu0  ;;  %v23730_v47 = vpop.f32.mrf.mxu1 }
 0x7d1   : > { %15539 = vmatpush1.bf16.msra.mxu0 %v19074_v52  ;;  %15580 = vmatpush1.bf16.msra.mxu1 %v19202_v26  ;;  %v19178_v52 = vcombine.low %v9686_v40, %v9690_v9  ;;  %v19043_v26 = vcombine.high %v9550_v51, %v9554_v57  ;;  %v9658_v40 = vld [vmem:[#allocation12 + $0xc20] sm:$0xff]  ;;  %v9108_v9 = vadd.f32 %v9107_v8, %v9106_v13 }
 0x7d2   : > { %15540 = vmatprep.subr.bf16.mxu0 %v19067_v42  ;;  %15581 = vmatprep.subr.bf16.mxu1 %v19195_v2  ;;  %v9002_v10 = vpop.f32.mrf.mxu0  ;;  %v9073_v63 = vpop.f32.mrf.mxu1  ;;  %v9534_v42 = vld [vmem:[#allocation12 + $0x840] sm:$0xff]  ;;  %v9100_v2 = vrot.slane %v9099_v37, 2  ;;  %v19146_v32 = vcombine.low %v9654_v43, %v9658_v40  ;;  %v9124_v13 = vadd.f32 %v9123_v24, %v9122_v1 }
 0x7d3   : > { %v23732_v33 = vpack.c.bf16 %v9002_v10, %v9002_v10  ;;  %v23734_v48 = vpack.c.bf16 %v9073_v63, %v9073_v63  ;;  %v9530_v63 = vld [vmem:[#allocation12 + $0x820] sm:$0xff]  ;;  %v19026_v45 = vcombine.low %v9534_v42, %v9538_v22  ;;  %v9109_v58 = vrot.slane %v9108_v9, 1 }
 0x7d4   : > { %v9101_v10 = vadd.f32 %v9100_v2, %v9099_v37  ;;  %v9650_v51 = vld [vmem:[#allocation12 + $0xbe0] sm:$0xff]  ;;  %v19018_v11 = vcombine.low %v9526_v12, %v9530_v63  ;;  %v9157_v0 = vmul.f32 0.25, %v9124_v13 }
 0x7d5   : > { %15541 = vmatpush1.bf16.msra.mxu0 %v19066_v38  ;;  %15582 = vmatpush1.bf16.msra.mxu1 %v19194_v62  ;;  %v19034_v38 = vcombine.low %v9542_v36, %v9546_v27  ;;  %v19162_v62 = vcombine.low %v9670_v29, %v9674_v21  ;;  %v9778_v57 = vld [vmem:[#allocation12 + $0xfe0] sm:$0xff]  ;;  %v9110_v29 = vadd.f32 %v9109_v58, %v9108_v9 }
 0x7d6   : > { %15542 = vmatprep.subr.bf16.mxu0 %v19059_v3  ;;  %15583 = vmatprep.subr.bf16.mxu1 %v19187_v54  ;;  %v19027_v3 = vcombine.high %v9534_v42, %v9538_v22  ;;  %v19155_v54 = vcombine.high %v9662_v16, %v9666_v18  ;;  %v9642_v36 = vld [vmem:[#allocation12 + $0xba0] sm:$0xff]  ;;  %v9117_v21 = vadd.f32 %v9116_v61, %v9115_v44 }
 0x7d7   : > { %15570 = vmatprep.mubr.bf16.mxu0 %v23732_v33  ;;  %15611 = vmatprep.mubr.bf16.mxu1 %v23734_v48  ;;  %v9766_v37 = vld [vmem:[#allocation12 + $0xf80] sm:$0xff]  ;;  %v9155_v8 = vmul.f32 0.25, %v9110_v29 }
 0x7d8   : > { %v9770_v27 = vld [vmem:[#allocation12 + $0xfa0] sm:$0xff]  ;;  %v9156_v15 = vmul.f32 0.25, %v9117_v21 }
 0x7d9   : > { %15543 = vmatpush1.bf16.msra.mxu0 %v19058_v17  ;;  %15584 = vmatpush1.bf16.msra.mxu1 %v19186_v49  ;;  %v19019_v17 = vcombine.high %v9526_v12, %v9530_v63  ;;  %v19147_v49 = vcombine.high %v9654_v43, %v9658_v40  ;;  %v9630_v42 = vld [vmem:[#allocation12 + $0xb40] sm:$0xff] }
 0x7da   : > { %15544 = vmatprep.subr.bf16.mxu0 %v19051_v50  ;;  %15585 = vmatprep.subr.bf16.mxu1 %v19179_v23  ;;  %v9646_v50 = vld [vmem:[#allocation12 + $0xbc0] sm:$0xff]  ;;  %v9102_v23 = vrot.slane %v9101_v10, 1  ;;  %v9173_v44 = vcombine.low %v9156_v15, %v9157_v0 }
 0x7db   : > { %v9634_v22 = vld [vmem:[#allocation12 + $0xb60] sm:$0xff] }
 0x7dc   : > { %v9758_v16 = vld [vmem:[#allocation12 + $0xf40] sm:$0xff] }
 0x7dd   : > { %15545 = vmatpush1.bf16.msra.mxu0 %v19050_v25  ;;  %15586 = vmatpush1.bf16.msra.mxu1 %v19178_v52  ;;  %v19139_v25 = vcombine.high %v9646_v50, %v9650_v51  ;;  %v19267_v52 = vcombine.high %v9774_v56, %v9778_v57  ;;  %v9762_v18 = vld [vmem:[#allocation12 + $0xf60] sm:$0xff] }
 0x7de   : > { %15546 = vmatprep.subr.bf16.mxu0 %v19043_v26  ;;  %15587 = vmatprep.subr.bf16.mxu1 %v19171_v59  ;;  %v9638_v26 = vld [vmem:[#allocation12 + $0xb80] sm:$0xff]  ;;  %v9103_v59 = vadd.f32 %v9102_v23, %v9101_v10  ;;  %v19251_v12 = vcombine.high %v9758_v16, %v9762_v18 }
 0x7df   : > { %v9622_v10 = vld [vmem:[#allocation12 + $0xb00] sm:$0xff] }
 0x7e0   : > { %v9154_v2 = vmul.f32 0.25, %v9103_v59  ;;  %v9626_v63 = vld [vmem:[#allocation12 + $0xb20] sm:$0xff] }
 0x7e1   : > { %15547 = vmatpush1.bf16.msra.mxu0 %v19042_v20  ;;  %15588 = vmatpush1.bf16.msra.mxu1 %v19170_v30  ;;  %v19138_v20 = vcombine.low %v9646_v50, %v9650_v51  ;;  %v19266_v30 = vcombine.low %v9774_v56, %v9778_v57  ;;  %v9750_v43 = vld [vmem:[#allocation12 + $0xf00] sm:$0xff]  ;;  %v19114_v61 = vcombine.low %v9622_v10, %v9626_v63 }
 0x7e2   : > { %15548 = vmatprep.subr.bf16.mxu0 %v19035_v31  ;;  %15589 = vmatprep.subr.bf16.mxu1 %v19163_v34  ;;  %v19131_v31 = vcombine.high %v9638_v26, %v9642_v36  ;;  %v19259_v34 = vcombine.high %v9766_v37, %v9770_v27  ;;  %v9754_v40 = vld [vmem:[#allocation12 + $0xf20] sm:$0xff]  ;;  %v9172_v9 = vcombine.low %v9154_v2, %v9155_v8 }
 0x7e3   : > { %v9614_v50 = vld [vmem:[#allocation12 + $0xac0] sm:$0xff]  ;;  %v19242_v24 = vcombine.low %v9750_v43, %v9754_v40 }
 0x7e4   : > { %v9618_v23 = vld [vmem:[#allocation12 + $0xae0] sm:$0xff] }
 0x7e5   : > { %15549 = vmatpush1.bf16.msra.mxu0 %v19034_v38  ;;  %15590 = vmatpush1.bf16.msra.mxu1 %v19162_v62  ;;  %v9176_v38 = vunpack.c.0.s8 %v9175_v7  ;;  %v19130_v62 = vcombine.low %v9638_v26, %v9642_v36  ;;  %v9742_v51 = vld [vmem:[#allocation12 + $0xec0] sm:$0xff] }
 0x7e6   : > { %15550 = vmatprep.subr.bf16.mxu0 %v19027_v3  ;;  %15591 = vmatprep.subr.bf16.mxu1 %v19155_v54  ;;  %v19258_v3 = vcombine.low %v9766_v37, %v9770_v27  ;;  %v19123_v54 = vcombine.high %v9630_v42, %v9634_v22  ;;  %v9746_v56 = vld [vmem:[#allocation12 + $0xee0] sm:$0xff]  ;;  %v9162_v37 = vld [vmem:[#allocation6] sm:$0xff]  ;;  %v19106_v27 = vcombine.low %v9614_v50, %v9618_v23 }
 0x7e7   : > { %v23743_v1 = vsub.s32 %v9176_v38, %v23249_v19  ;;  %v9734_v26 = vld [vmem:[#allocation12 + $0xe80] sm:$0xff]  ;;  %v19234_v29 = vcombine.low %v9742_v51, %v9746_v56 }
 0x7e8   : > { %v9738_v59 = vld [vmem:[#allocation12 + $0xea0] sm:$0xff] }
 0x7e9   : > { %15551 = vmatpush1.bf16.msra.mxu0 %v19026_v45  ;;  %15592 = vmatpush1.bf16.msra.mxu1 %v19154_v55  ;;  %v19122_v45 = vcombine.low %v9630_v42, %v9634_v22  ;;  %v19250_v55 = vcombine.low %v9758_v16, %v9762_v18  ;;  %v9180_v57 = vrot.slane %v9172_v9, %v23743_v1  ;;  %v9602_v7 = vld [vmem:[#allocation12 + $0xa60] sm:$0xff] }
 0x7ea   : > { %15552 = vmatprep.subr.bf16.mxu0 %v19019_v17  ;;  %15593 = vmatprep.subr.bf16.mxu1 %v19147_v49  ;;  %v19115_v17 = vcombine.high %v9622_v10, %v9626_v63  ;;  %v19243_v49 = vcombine.high %v9750_v43, %v9754_v40  ;;  %v9187_v58 = vrot.slane %v9173_v44, %v23743_v1  ;;  %v9590_v16 = vld [vmem:[#allocation12 + $0xa00] sm:$0xff] }
 0x7eb   : > { %v19227_v13 = vcombine.high %v9734_v26, %v9738_v59  ;;  %v19226_v42 = vcombine.low %v9734_v26, %v9738_v59  ;;  %v19091_v2 = vcombine.high %v9598_v60, %v9602_v7  ;;  %v9594_v18 = vld [vmem:[#allocation12 + $0xa20] sm:$0xff]  ;;  %v19090_v38 = vcombine.low %v9598_v60, %v9602_v7 }
 0x7ec   : > { %v9188_v36 = vcombine.low %v9180_v57, %v9187_v58  ;;  %v9718_v8 = vld [vmem:[#allocation12 + $0xe00] sm:$0xff]  ;;  %v19082_v44 = vcombine.low %v9590_v16, %v9594_v18  ;;  %v23763_v26 = vpack.c.bf16 %v23728_v46, %v23728_v46 }
 0x7ed   : > { %15553 = vmatpush1.bf16.msra.mxu0 %v19018_v11  ;;  %15594 = vmatpush1.bf16.msra.mxu1 %v19146_v32  ;;  %v19107_v11 = vcombine.high %v9614_v50, %v9618_v23  ;;  %v19235_v32 = vcombine.high %v9742_v51, %v9746_v56  ;;  %v9722_v15 = vld [vmem:[#allocation12 + $0xe20] sm:$0xff] }
 0x7ee   : > { %15554 = vmatprep.subr.bf16.mxu0 %v19139_v25  ;;  %15595 = vmatprep.subr.bf16.mxu1 %v19267_v52  ;;  %v9606_v25 = vld [vmem:[#allocation12 + $0xa80] sm:$0xff] }
 0x7ef   : > { %v9610_v52 = vld [vmem:[#allocation12 + $0xaa0] sm:$0xff] }
 0x7f0   : > { %v19099_v21 = vcombine.high %v9606_v25, %v9610_v52  ;;  %v9842_v10 = vld [vmem:[#allocation12 + $0x11e0] sm:$0xff] }
 0x7f1   : > { %15555 = vmatpush2.bf16.msra.mxu0 %v19138_v20  ;;  %15596 = vmatpush2.bf16.msra.mxu1 %v19266_v30  ;;  %v9726_v20 = vld [vmem:[#allocation12 + $0xe40] sm:$0xff] }
 0x7f2   : > { %15556 = vmatprep.subr.bf16.mxu0 %v19131_v31  ;;  %15597 = vmatprep.subr.bf16.mxu1 %v19259_v34  ;;  %v9730_v30 = vld [vmem:[#allocation12 + $0xe60] sm:$0xff]  ;;  %v9208_v31 = vmul.f32 %v9188_v36, %v9162_v37  ;;  %v19098_v34 = vcombine.low %v9606_v25, %v9610_v52 }
 0x7f3   : > { %v19219_v22 = vcombine.high %v9726_v20, %v9730_v30  ;;  %v9966_v63 = vld [vmem:[#allocation12 + $0x15c0] sm:$0xff] }
 0x7f4   : > { %v9212_v0 = vcombine.high %v9208_v31, %v9208_v31  ;;  %v9970_v43 = vld [vmem:[#allocation12 + $0x15e0] sm:$0xff]  ;;  %v23748_v40 = vrot.slane %v9208_v31, %v23743_v1 }
 0x7f5   : > { %15557 = vmatpush2.bf16.msra.mxu0 %v19130_v62  ;;  %15598 = vmatpush2.bf16.msra.mxu1 %v19258_v3  ;;  %v19218_v62 = vcombine.low %v9726_v20, %v9730_v30  ;;  %v19083_v3 = vcombine.high %v9590_v16, %v9594_v18  ;;  %v19459_v50 = vcombine.high %v9966_v63, %v9970_v43  ;;  %v9830_v23 = vld [vmem:[#allocation12 + $0x1180] sm:$0xff] }
 0x7f6   : > { %15558 = vmatprep.subr.bf16.mxu0 %v19123_v54  ;;  %15599 = vmatprep.subr.bf16.mxu1 %v19251_v12  ;;  %v19211_v54 = vcombine.high %v9718_v8, %v9722_v15  ;;  %v9838_v12 = vld [vmem:[#allocation12 + $0x11c0] sm:$0xff]  ;;  %v23751_v9 = vrot.slane %v9212_v0, %v23743_v1  ;;  %v9227_v58 = vcombine.high %v23748_v40, %v23748_v40 }
 0x7f7   : > { %v9834_v51 = vld [vmem:[#allocation12 + $0x11a0] sm:$0xff]  ;;  %v19330_v25 = vcombine.low %v9838_v12, %v9842_v10  ;;  %v19458_v52 = vcombine.low %v9966_v63, %v9970_v43 }
 0x7f8   : > { %v9958_v56 = vld [vmem:[#allocation12 + $0x1580] sm:$0xff]  ;;  %v19323_v59 = vcombine.high %v9830_v23, %v9834_v51  ;;  %v19322_v46 = vcombine.low %v9830_v23, %v9834_v51 }
 0x7f9   : > { %15559 = vmatpush2.bf16.msra.mxu0 %v19122_v45  ;;  %15600 = vmatpush2.bf16.msra.mxu1 %v19250_v55  ;;  %v19210_v45 = vcombine.low %v9718_v8, %v9722_v15  ;;  %v9078_v55 = vld [vmem:[#allocation8 + $0x10] sm:$0xff]  ;;  %v9962_v57 = vld [vmem:[#allocation12 + $0x15a0] sm:$0xff] }
 0x7fa   : > { %15560 = vmatprep.subr.bf16.mxu0 %v19115_v17  ;;  %15601 = vmatprep.subr.bf16.mxu1 %v19243_v49  ;;  %v9079_v17 = vld [vmem:[#allocation8 + $0x18] sm:$0xff]  ;;  %v19331_v49 = vcombine.high %v9838_v12, %v9842_v10  ;;  %v19451_v36 = vcombine.high %v9958_v56, %v9962_v57  ;;  %v9822_v37 = vld [vmem:[#allocation12 + $0x1140] sm:$0xff]  ;;  %v19450_v20 = vcombine.low %v9958_v56, %v9962_v57 }
 0x7fb   : > { %v9810_v12 = vld [vmem:[#allocation12 + $0x10e0] sm:$0xff] }
 0x7fc   : > { %v9934_v10 = vld [vmem:[#allocation12 + $0x14c0] sm:$0xff] }
 0x7fd   : > { %15561 = vmatpush2.bf16.msra.mxu0 %v19114_v61  ;;  %15602 = vmatpush2.bf16.msra.mxu1 %v19242_v24  ;;  %v9228_v61 = vcombine.high %v23751_v9, %v23751_v9  ;;  %v23759_v24 = vpack.c.bf16 %v23730_v47, %v23730_v47  ;;  %v23765_v47 = vpack.c.bf16 %v9227_v58, %v9227_v58  ;;  %v9938_v63 = vld [vmem:[#allocation12 + $0x14e0] sm:$0xff] }
 0x7fe   : > { %15562 = vmatprep.subr.bf16.mxu0 %v19107_v11  ;;  %15603 = vmatprep.subr.bf16.mxu1 %v19235_v32  ;;  %v9082_v11 = vmax.f32 %v9078_v55, 0.0  ;;  %v9083_v32 = vmax.f32 %v9079_v17, 0.0  ;;  %v19427_v23 = vcombine.high %v9934_v10, %v9938_v63  ;;  %v9798_v51 = vld [vmem:[#allocation12 + $0x1080] sm:$0xff] }
 0x7ff   : > { %v9802_v56 = vld [vmem:[#allocation12 + $0x10a0] sm:$0xff] }
 0x800   : > { %v9090_v60 = vcombine.high %v9082_v11, %v9082_v11  ;;  %v9091_v7 = vcombine.high %v9083_v32, %v9083_v32  ;;  %v9125_v16 = vsel %vm9096_vm2, %v9082_v11, 0.0  ;;  %v9139_v8 = vsel %vm9096_vm2, %v9083_v32, 0.0  ;;  %v9926_v57 = vld [vmem:[#allocation12 + $0x1480] sm:$0xff] }
 0x801   : > { %15563 = vmatpush2.bf16.msra.mxu0 %v19106_v27  ;;  %15604 = vmatpush2.bf16.msra.mxu1 %v19234_v29  ;;  %v9826_v27 = vld [vmem:[#allocation12 + $0x1160] sm:$0xff]  ;;  %v9126_v43 = vrot.slane %v9125_v16, 4 }
 0x802   : > { %15564 = vmatprep.subr.bf16.mxu0 %v19099_v21  ;;  %15605 = vmatprep.subr.bf16.mxu1 %v19227_v13  ;;  %v9950_v29 = vld [vmem:[#allocation12 + $0x1540] sm:$0xff]  ;;  %v23767_v13 = vpack.c.bf16 %v9228_v61, %v9228_v61  ;;  %v19315_v30 = vcombine.high %v9822_v37, %v9826_v27  ;;  %v9132_v18 = vsel %vm9096_vm2, %v9090_v60, 0.0  ;;  %v9146_v15 = vsel %vm9096_vm2, %v9091_v7, 0.0 }
 0x803   : > { %v9954_v21 = vld [vmem:[#allocation12 + $0x1560] sm:$0xff]  ;;  %v19314_v0 = vcombine.low %v9822_v37, %v9826_v27  ;;  %v9147_v55 = vrot.slane %v9146_v15, 4  ;;  %v9127_v61 = vadd.f32 %v9126_v43, %v9125_v16 }
 0x804   : > { %v19443_v31 = vcombine.high %v9950_v29, %v9954_v21  ;;  %v9930_v58 = vld [vmem:[#allocation12 + $0x14a0] sm:$0xff] }
 0x805   : > { %15565 = vmatpush2.bf16.msra.mxu0 %v19098_v34  ;;  %15606 = vmatpush2.bf16.msra.mxu1 %v19226_v42  ;;  %v9814_v34 = vld [vmem:[#allocation12 + $0x1100] sm:$0xff]  ;;  %v19419_v37 = vcombine.high %v9926_v57, %v9930_v58  ;;  %v9128_v7 = vrot.slane %v9127_v61, 2 }
 0x806   : > { %15566 = vmatprep.subr.bf16.mxu0 %v19091_v2  ;;  %15607 = vmatprep.subr.bf16.mxu1 %v19219_v22  ;;  %v9818_v42 = vld [vmem:[#allocation12 + $0x1120] sm:$0xff] }
 0x807   : > { %v9942_v2 = vld [vmem:[#allocation12 + $0x1500] sm:$0xff]  ;;  %v19306_v17 = vcombine.low %v9814_v34, %v9818_v42 }
 0x808   : > { %v9946_v22 = vld [vmem:[#allocation12 + $0x1520] sm:$0xff] }
 0x809   : > { %15567 = vmatpush2.bf16.msra.mxu0 %v19090_v38  ;;  %15608 = vmatpush2.bf16.msra.mxu1 %v19218_v62  ;;  %v19442_v38 = vcombine.low %v9950_v29, %v9954_v21  ;;  %v19307_v62 = vcombine.high %v9814_v34, %v9818_v42  ;;  %v9790_v27 = vld [vmem:[#allocation12 + $0x1040] sm:$0xff]  ;;  %v19418_v34 = vcombine.low %v9926_v57, %v9930_v58 }
 0x80a   : > { %15568 = vmatprep.subr.bf16.mxu0 %v19083_v3  ;;  %15609 = vmatprep.subr.bf16.mxu1 %v19211_v54  ;;  %v19435_v3 = vcombine.high %v9942_v2, %v9946_v22  ;;  %v9806_v54 = vld [vmem:[#allocation12 + $0x10c0] sm:$0xff] }
 0x80b   : > { %v9794_v29 = vld [vmem:[#allocation12 + $0x1060] sm:$0xff] }
 0x80c   : > { %v9918_v21 = vld [vmem:[#allocation12 + $0x1440] sm:$0xff]  ;;  %v19283_v42 = vcombine.high %v9790_v27, %v9794_v29 }
 0x80d   : > { %15569 = vmatpush2.bf16.msra.mxu0 %v19082_v44  ;;  %15610 = vmatpush2.bf16.msra.mxu1 %v19210_v45  ;;  %v9133_v44 = vrot.slane %v9132_v18, 4  ;;  %v9140_v45 = vrot.slane %v9139_v8, 4  ;;  %v9922_v60 = vld [vmem:[#allocation12 + $0x1460] sm:$0xff] }
 0x80e   : > { %15620 = vmatprep.subr.bf16.mxu0 %v19331_v49  ;;  %15661 = vmatprep.subr.bf16.mxu1 %v19459_v50  ;;  %v19434_v49 = vcombine.low %v9942_v2, %v9946_v22  ;;  %v19299_v50 = vcombine.high %v9806_v54, %v9810_v12  ;;  %v19411_v2 = vcombine.high %v9918_v21, %v9922_v60  ;;  %v9782_v22 = vld [vmem:[#allocation12 + $0x1000] sm:$0xff] }
 0x80f   : > { %v9134_v11 = vadd.f32 %v9133_v44, %v9132_v18  ;;  %v9141_v32 = vadd.f32 %v9140_v45, %v9139_v8  ;;  %v9786_v16 = vld [vmem:[#allocation12 + $0x1020] sm:$0xff] }
 0x810   : > { %15571 = vmatmul.mubr.bf16.vlgmr.msra.gmra.mxu0 %v23763_v26  ;;  %15612 = vmatmul.mubr.bf16.vlgmr.msra.gmra.mxu1 %v23759_v24  ;;  %v9910_v18 = vld [vmem:[#allocation12 + $0x1400] sm:$0xff] }
 0x811   : > { %15621 = vmatpush1.bf16.msra.mxu0 %v19330_v25  ;;  %15662 = vmatpush1.bf16.msra.mxu1 %v19458_v52  ;;  %v9148_v25 = vadd.f32 %v9147_v55, %v9146_v15  ;;  %v19298_v52 = vcombine.low %v9806_v54, %v9810_v12  ;;  %v9914_v8 = vld [vmem:[#allocation12 + $0x1420] sm:$0xff]  ;;  %v9129_v15 = vadd.f32 %v9128_v7, %v9127_v61 }
 0x812   : > { %15622 = vmatprep.subr.bf16.mxu0 %v19323_v59  ;;  %15663 = vmatprep.subr.bf16.mxu1 %v19451_v36  ;;  %v19426_v59 = vcombine.low %v9934_v10, %v9938_v63  ;;  %v19291_v36 = vcombine.high %v9798_v51, %v9802_v56  ;;  %v19410_v54 = vcombine.low %v9918_v21, %v9922_v60  ;;  %v9902_v63 = vld [vmem:[#allocation12 + $0x13c0] sm:$0xff] }
 0x813   : > { %15652 = vmatprep.mubr.bf16.mxu0 %v23765_v47  ;;  %15693 = vmatprep.mubr.bf16.mxu1 %v23767_v13  ;;  %v19275_v12 = vcombine.high %v9782_v22, %v9786_v16  ;;  %v19403_v10 = vcombine.high %v9910_v18, %v9914_v8  ;;  %v9906_v43 = vld [vmem:[#allocation12 + $0x13e0] sm:$0xff]  ;;  %v9130_v55 = vrot.slane %v9129_v15, 1 }
 0x814   : > { %v10030_v44 = vld [vmem:[#allocation12 + $0x17c0] sm:$0xff] }
 0x815   : > { %15623 = vmatpush1.bf16.msra.mxu0 %v19322_v46  ;;  %15664 = vmatpush1.bf16.msra.mxu1 %v19450_v20  ;;  %v9135_v46 = vrot.slane %v9134_v11, 2  ;;  %v9142_v20 = vrot.slane %v9141_v32, 2  ;;  %v10034_v45 = vld [vmem:[#allocation12 + $0x17e0] sm:$0xff] }
 0x816   : > { %15624 = vmatprep.subr.bf16.mxu0 %v19315_v30  ;;  %15665 = vmatprep.subr.bf16.mxu1 %v19443_v31  ;;  %v9149_v30 = vrot.slane %v9148_v25, 2  ;;  %v19290_v31 = vcombine.low %v9798_v51, %v9802_v56  ;;  %v19402_v51 = vcombine.low %v9910_v18, %v9914_v8  ;;  %v19395_v56 = vcombine.high %v9902_v63, %v9906_v43  ;;  %v9894_v58 = vld [vmem:[#allocation12 + $0x1380] sm:$0xff] }
 0x817   : > { %v19523_v57 = vcombine.high %v10030_v44, %v10034_v45  ;;  %v9898_v61 = vld [vmem:[#allocation12 + $0x13a0] sm:$0xff] }
 0x818   : > { %v9886_v60 = vld [vmem:[#allocation12 + $0x1340] sm:$0xff] }
 0x819   : > { %15625 = vmatpush1.bf16.msra.mxu0 %v19314_v0  ;;  %15666 = vmatpush1.bf16.msra.mxu1 %v19442_v38  ;;  %v9136_v0 = vadd.f32 %v9135_v46, %v9134_v11  ;;  %v9143_v38 = vadd.f32 %v9142_v20, %v9141_v32  ;;  %v10022_v11 = vld [vmem:[#allocation12 + $0x1780] sm:$0xff] }
 0x81a   : > { %15626 = vmatprep.subr.bf16.mxu0 %v19307_v62  ;;  %15667 = vmatprep.subr.bf16.mxu1 %v19435_v3  ;;  %v9150_v62 = vadd.f32 %v9149_v30, %v9148_v25  ;;  %v19282_v3 = vcombine.low %v9790_v27, %v9794_v29  ;;  %v10026_v32 = vld [vmem:[#allocation12 + $0x17a0] sm:$0xff]  ;;  %v9131_v25 = vadd.f32 %v9130_v55, %v9129_v15 }
 0x81b   : > { %v19522_v27 = vcombine.low %v10030_v44, %v10034_v45  ;;  %v19387_v29 = vcombine.high %v9894_v58, %v9898_v61  ;;  %v19515_v21 = vcombine.high %v10022_v11, %v10026_v32  ;;  %v9890_v7 = vld [vmem:[#allocation12 + $0x1360] sm:$0xff] }
 0x81c   : > { %v10014_v46 = vld [vmem:[#allocation12 + $0x1740] sm:$0xff]  ;;  %v9158_v30 = vmul.f32 0.25, %v9131_v25  ;;  %v9163_v25 = vld [vmem:[#allocation6 + $0x8] sm:$0xff] }
 0x81d   : > { %15627 = vmatpush1.bf16.msra.mxu0 %v19306_v17  ;;  %15668 = vmatpush1.bf16.msra.mxu1 %v19434_v49  ;;  %v9137_v17 = vrot.slane %v9136_v0, 1  ;;  %v9144_v49 = vrot.slane %v9143_v38, 1  ;;  %v10018_v20 = vld [vmem:[#allocation12 + $0x1760] sm:$0xff] }
 0x81e   : > { %15628 = vmatprep.subr.bf16.mxu0 %v19299_v50  ;;  %15669 = vmatprep.subr.bf16.mxu1 %v19427_v23  ;;  %v9151_v50 = vrot.slane %v9150_v62, 1  ;;  %v19274_v23 = vcombine.low %v9782_v22, %v9786_v16  ;;  %v19514_v22 = vcombine.low %v10022_v11, %v10026_v32  ;;  %v19379_v16 = vcombine.high %v9886_v60, %v9890_v7  ;;  %v9878_v8 = vld [vmem:[#allocation12 + $0x1300] sm:$0xff] }
 0x81f   : > { %v19507_v18 = vcombine.high %v10014_v46, %v10018_v20  ;;  %v9882_v15 = vld [vmem:[#allocation12 + $0x1320] sm:$0xff] }
 0x820   : > { %v9874_v44 = vld [vmem:[#allocation12 + $0x12e0] sm:$0xff] }
 0x821   : > { %15629 = vmatpush1.bf16.msra.mxu0 %v19298_v52  ;;  %15670 = vmatpush1.bf16.msra.mxu1 %v19426_v59  ;;  %v9138_v52 = vadd.f32 %v9137_v17, %v9136_v0  ;;  %v9145_v59 = vadd.f32 %v9144_v49, %v9143_v38  ;;  %v10006_v0 = vld [vmem:[#allocation12 + $0x1700] sm:$0xff] }
 0x822   : > { %15630 = vmatprep.subr.bf16.mxu0 %v19291_v36  ;;  %15671 = vmatprep.subr.bf16.mxu1 %v19419_v37  ;;  %v9152_v36 = vadd.f32 %v9151_v50, %v9150_v62  ;;  %v19394_v37 = vcombine.low %v9902_v63, %v9906_v43  ;;  %v10010_v38 = vld [vmem:[#allocation12 + $0x1720] sm:$0xff]  ;;  %v19370_v50 = vcombine.low %v9878_v8, %v9882_v15 }
 0x823   : > { %v19499_v63 = vcombine.high %v10006_v0, %v10010_v38  ;;  %v9870_v43 = vld [vmem:[#allocation12 + $0x12c0] sm:$0xff] }
 0x824   : > { %v9998_v45 = vld [vmem:[#allocation12 + $0x16c0] sm:$0xff] }
 0x825   : > { %15631 = vmatpush1.bf16.msra.mxu0 %v19290_v31  ;;  %15672 = vmatpush1.bf16.msra.mxu1 %v19418_v34  ;;  %v9159_v31 = vmul.f32 0.25, %v9138_v52  ;;  %v9160_v34 = vmul.f32 0.25, %v9145_v59  ;;  %v10002_v55 = vld [vmem:[#allocation12 + $0x16e0] sm:$0xff]  ;;  %v19362_v52 = vcombine.low %v9870_v43, %v9874_v44 }
 0x826   : > { %15632 = vmatprep.subr.bf16.mxu0 %v19283_v42  ;;  %15673 = vmatprep.subr.bf16.mxu1 %v19411_v2  ;;  %v9161_v42 = vmul.f32 0.25, %v9152_v36  ;;  %v19386_v2 = vcombine.low %v9894_v58, %v9898_v61  ;;  %v9866_v58 = vld [vmem:[#allocation12 + $0x12a0] sm:$0xff]  ;;  %v19490_v59 = vcombine.low %v9998_v45, %v10002_v55 }
 0x827   : > { %v9189_v62 = vcombine.low %v9158_v30, %v9159_v31  ;;  %v9990_v61 = vld [vmem:[#allocation12 + $0x1680] sm:$0xff] }
 0x828   : > { %v9994_v11 = vld [vmem:[#allocation12 + $0x16a0] sm:$0xff] }
 0x829   : > { %15633 = vmatpush1.bf16.msra.mxu0 %v19282_v3  ;;  %15674 = vmatpush1.bf16.msra.mxu1 %v19410_v54  ;;  %v9190_v3 = vcombine.low %v9160_v34, %v9161_v42  ;;  %v19378_v54 = vcombine.low %v9886_v60, %v9890_v7  ;;  %v9197_v17 = vrot.slane %v9189_v62, %v23743_v1  ;;  %v9986_v60 = vld [vmem:[#allocation12 + $0x1660] sm:$0xff] }
 0x82a   : > { %15634 = vmatprep.subr.bf16.mxu0 %v19275_v12  ;;  %15675 = vmatprep.subr.bf16.mxu1 %v19403_v10  ;;  %v19506_v12 = vcombine.low %v10014_v46, %v10018_v20  ;;  %v19371_v10 = vcombine.high %v9878_v8, %v9882_v15  ;;  %v19482_v20 = vcombine.low %v9990_v61, %v9994_v11  ;;  %v9846_v34 = vld [vmem:[#allocation12 + $0x1200] sm:$0xff] }
 0x82b   : > { %v9204_v49 = vrot.slane %v9190_v3, %v23743_v1  ;;  %v9850_v42 = vld [vmem:[#allocation12 + $0x1220] sm:$0xff] }
 0x82c   : > { %v19339_v15 = vcombine.high %v9846_v34, %v9850_v42  ;;  %v10098_v62 = vld [vmem:[#allocation12 + $0x19e0] sm:$0xff] }
 0x82d   : > { %15635 = vmatpush1.bf16.msra.mxu0 %v19274_v23  ;;  %15676 = vmatpush1.bf16.msra.mxu1 %v19402_v51  ;;  %v19498_v23 = vcombine.low %v10006_v0, %v10010_v38  ;;  %v19363_v51 = vcombine.high %v9870_v43, %v9874_v44  ;;  %v9205_v32 = vcombine.low %v9197_v17, %v9204_v49  ;;  %v10094_v38 = vld [vmem:[#allocation12 + $0x19c0] sm:$0xff] }
 0x82e   : > { %15636 = vmatprep.subr.bf16.mxu0 %v19395_v56  ;;  %15677 = vmatprep.subr.bf16.mxu1 %v19523_v57  ;;  %v19491_v56 = vcombine.high %v9998_v45, %v10002_v55  ;;  %v9862_v57 = vld [vmem:[#allocation12 + $0x1280] sm:$0xff]  ;;  %v19587_v44 = vcombine.high %v10094_v38, %v10098_v62 }
 0x82f   : > { %v19355_v36 = vcombine.high %v9862_v57, %v9866_v58  ;;  %v9209_v7 = vmul.f32 %v9205_v32, %v9163_v25  ;;  %v19354_v46 = vcombine.low %v9862_v57, %v9866_v58  ;;  %v10222_v3 = vld [vmem:[#allocation12 + $0x1dc0] sm:$0xff]  ;;  %v19586_v57 = vcombine.low %v10094_v38, %v10098_v62 }
 0x830   : > { %v10086_v55 = vld [vmem:[#allocation12 + $0x1980] sm:$0xff] }
 0x831   : > { %15637 = vmatpush2.bf16.msra.mxu0 %v19394_v37  ;;  %15678 = vmatpush2.bf16.msra.mxu1 %v19522_v27  ;;  %v19483_v37 = vcombine.high %v9990_v61, %v9994_v11  ;;  %v9854_v27 = vld [vmem:[#allocation12 + $0x1240] sm:$0xff] }
 0x832   : > { %15638 = vmatprep.subr.bf16.mxu0 %v19387_v29  ;;  %15679 = vmatprep.subr.bf16.mxu1 %v19515_v21  ;;  %v9858_v29 = vld [vmem:[#allocation12 + $0x1260] sm:$0xff] }
 0x833   : > { %v9982_v21 = vld [vmem:[#allocation12 + $0x1640] sm:$0xff]  ;;  %v19347_v30 = vcombine.high %v9854_v27, %v9858_v29 }
 0x834   : > { %v19475_v31 = vcombine.high %v9982_v21, %v9986_v60  ;;  %v19474_v8 = vcombine.low %v9982_v21, %v9986_v60  ;;  %v10090_v17 = vld [vmem:[#allocation12 + $0x19a0] sm:$0xff] }
 0x835   : > { %15639 = vmatpush2.bf16.msra.mxu0 %v19386_v2  ;;  %15680 = vmatpush2.bf16.msra.mxu1 %v19514_v22  ;;  %v9974_v2 = vld [vmem:[#allocation12 + $0x1600] sm:$0xff]  ;;  %v19579_v61 = vcombine.high %v10086_v55, %v10090_v17 }
 0x836   : > { %15640 = vmatprep.subr.bf16.mxu0 %v19379_v16  ;;  %15681 = vmatprep.subr.bf16.mxu1 %v19507_v18  ;;  %v9978_v22 = vld [vmem:[#allocation12 + $0x1620] sm:$0xff]  ;;  %v9229_v16 = vcombine.high %v9209_v7, %v9209_v7  ;;  %v19346_v18 = vcombine.low %v9854_v27, %v9858_v29 }
 0x837   : > { %v19467_v0 = vcombine.high %v9974_v2, %v9978_v22  ;;  %v19466_v43 = vcombine.low %v9974_v2, %v9978_v22  ;;  %v10214_v49 = vld [vmem:[#allocation12 + $0x1d80] sm:$0xff] }
 0x838   : > { %v10078_v32 = vld [vmem:[#allocation12 + $0x1940] sm:$0xff] }
 0x839   : > { %15641 = vmatpush2.bf16.msra.mxu0 %v19378_v54  ;;  %15682 = vmatpush2.bf16.msra.mxu1 %v19506_v12  ;;  %v10226_v54 = vld [vmem:[#allocation12 + $0x1de0] sm:$0xff]  ;;  %v23780_v12 = vrot.slane %v9209_v7, %v23743_v1 }
 0x83a   : > { %15642 = vmatprep.subr.bf16.mxu0 %v19371_v10  ;;  %15683 = vmatprep.subr.bf16.mxu1 %v19499_v63  ;;  %v23783_v10 = vrot.slane %v9229_v16, %v23743_v1  ;;  %v19338_v63 = vcombine.low %v9846_v34, %v9850_v42  ;;  %v19715_v45 = vcombine.high %v10222_v3, %v10226_v54  ;;  %v10082_v25 = vld [vmem:[#allocation12 + $0x1960] sm:$0xff] }
 0x83b   : > { %v23791_v1 = vpack.c.bf16 %v23748_v40, %v23748_v40  ;;  %v19714_v58 = vcombine.low %v10222_v3, %v10226_v54  ;;  %v19571_v27 = vcombine.high %v10078_v32, %v10082_v25  ;;  %v10070_v21 = vld [vmem:[#allocation12 + $0x1900] sm:$0xff] }
 0x83c   : > { %v10074_v60 = vld [vmem:[#allocation12 + $0x1920] sm:$0xff] }
 0x83d   : > { %15643 = vmatpush2.bf16.msra.mxu0 %v19370_v50  ;;  %15684 = vmatpush2.bf16.msra.mxu1 %v19498_v23  ;;  %v10218_v50 = vld [vmem:[#allocation12 + $0x1da0] sm:$0xff]  ;;  %v9244_v23 = vcombine.high %v23780_v12, %v23780_v12 }
 0x83e   : > { %15644 = vmatprep.subr.bf16.mxu0 %v19363_v51  ;;  %15685 = vmatprep.subr.bf16.mxu1 %v19491_v56  ;;  %v9245_v51 = vcombine.high %v23783_v10, %v23783_v10  ;;  %v23795_v56 = vpack.c.bf16 %v23751_v9, %v23751_v9  ;;  %v19707_v11 = vcombine.high %v10214_v49, %v10218_v50  ;;  %v10198_v7 = vld [vmem:[#allocation12 + $0x1d00] sm:$0xff] }
 0x83f   : > { %v19578_v9 = vcombine.low %v10086_v55, %v10090_v17  ;;  %v10062_v42 = vld [vmem:[#allocation12 + $0x18c0] sm:$0xff] }
 0x840   : > { %v23799_v40 = vpack.c.bf16 %v9245_v51, %v9245_v51  ;;  %v10066_v2 = vld [vmem:[#allocation12 + $0x18e0] sm:$0xff] }
 0x841   : > { %15645 = vmatpush2.bf16.msra.mxu0 %v19362_v52  ;;  %15686 = vmatpush2.bf16.msra.mxu1 %v19490_v59  ;;  %v10206_v52 = vld [vmem:[#allocation12 + $0x1d40] sm:$0xff] }
 0x842   : > { %15646 = vmatprep.subr.bf16.mxu0 %v19355_v36  ;;  %15687 = vmatprep.subr.bf16.mxu1 %v19483_v37  ;;  %v10210_v59 = vld [vmem:[#allocation12 + $0x1d60] sm:$0xff]  ;;  %v23797_v36 = vpack.c.bf16 %v9244_v23, %v9244_v23  ;;  %v19706_v37 = vcombine.low %v10214_v49, %v10218_v50 }
 0x843   : > { %v19699_v29 = vcombine.high %v10206_v52, %v10210_v59  ;;  %v10190_v22 = vld [vmem:[#allocation12 + $0x1cc0] sm:$0xff] }
 0x844   : > { %v10194_v16 = vld [vmem:[#allocation12 + $0x1ce0] sm:$0xff] }
 0x845   : > { %15647 = vmatpush2.bf16.msra.mxu0 %v19354_v46  ;;  %15688 = vmatpush2.bf16.msra.mxu1 %v19482_v20  ;;  %v10202_v46 = vld [vmem:[#allocation12 + $0x1d20] sm:$0xff]  ;;  %v19570_v20 = vcombine.low %v10078_v32, %v10082_v25 }
 0x846   : > { %15648 = vmatprep.subr.bf16.mxu0 %v19347_v30  ;;  %15689 = vmatprep.subr.bf16.mxu1 %v19475_v31  ;;  %v19698_v30 = vcombine.low %v10206_v52, %v10210_v59  ;;  %v19563_v31 = vcombine.high %v10070_v21, %v10074_v60  ;;  %v19691_v34 = vcombine.high %v10198_v7, %v10202_v46  ;;  %v10054_v38 = vld [vmem:[#allocation12 + $0x1880] sm:$0xff] }
 0x847   : > { %v10058_v62 = vld [vmem:[#allocation12 + $0x18a0] sm:$0xff] }
 0x848   : > { %v10182_v3 = vld [vmem:[#allocation12 + $0x1c80] sm:$0xff]  ;;  %v19546_v23 = vcombine.low %v10054_v38, %v10058_v62 }
 0x849   : > { %15649 = vmatpush2.bf16.msra.mxu0 %v19346_v18  ;;  %15690 = vmatpush2.bf16.msra.mxu1 %v19474_v8  ;;  %v19562_v18 = vcombine.low %v10070_v21, %v10074_v60  ;;  %v19690_v8 = vcombine.low %v10198_v7, %v10202_v46  ;;  %v10186_v54 = vld [vmem:[#allocation12 + $0x1ca0] sm:$0xff] }
 0x84a   : > { %15650 = vmatprep.subr.bf16.mxu0 %v19339_v15  ;;  %15691 = vmatprep.subr.bf16.mxu1 %v19467_v0  ;;  %v19555_v15 = vcombine.high %v10062_v42, %v10066_v2  ;;  %v19683_v0 = vcombine.high %v10190_v22, %v10194_v16  ;;  %v10046_v55 = vld [vmem:[#allocation12 + $0x1840] sm:$0xff]  ;;  %v19674_v51 = vcombine.low %v10182_v3, %v10186_v54 }
 0x84b   : > { %v10050_v17 = vld [vmem:[#allocation12 + $0x1860] sm:$0xff] }
 0x84c   : > { %v10174_v49 = vld [vmem:[#allocation12 + $0x1c40] sm:$0xff]  ;;  %v19538_v52 = vcombine.low %v10046_v55, %v10050_v17 }
 0x84d   : > { %15651 = vmatpush2.bf16.msra.mxu0 %v19338_v63  ;;  %15692 = vmatpush2.bf16.msra.mxu1 %v19466_v43  ;;  %v19554_v63 = vcombine.low %v10062_v42, %v10066_v2  ;;  %v19682_v43 = vcombine.low %v10190_v22, %v10194_v16  ;;  %v10178_v50 = vld [vmem:[#allocation12 + $0x1c60] sm:$0xff] }
 0x84e   : > { %15702 = vmatprep.subr.bf16.mxu0 %v19587_v44  ;;  %15743 = vmatprep.subr.bf16.mxu1 %v19715_v45  ;;  %v19547_v44 = vcombine.high %v10054_v38, %v10058_v62  ;;  %v19675_v45 = vcombine.high %v10182_v3, %v10186_v54  ;;  %v10166_v32 = vld [vmem:[#allocation12 + $0x1c00] sm:$0xff]  ;;  %v19666_v59 = vcombine.low %v10174_v49, %v10178_v50 }
 0x84f   : > { %v10170_v25 = vld [vmem:[#allocation12 + $0x1c20] sm:$0xff] }
 0x850   : > { %15653 = vmatmul.mubr.bf16.vlgmr.msra.gmra.mxu0 %v23791_v1  ;;  %15694 = vmatmul.mubr.bf16.vlgmr.msra.gmra.mxu1 %v23795_v56  ;;  %v10286_v21 = vld [vmem:[#allocation12 + $0x1fc0] sm:$0xff]  ;;  %v19658_v46 = vcombine.low %v10166_v32, %v10170_v25 }
 0x851   : > { %15703 = vmatpush1.bf16.msra.mxu0 %v19586_v57  ;;  %15744 = vmatpush1.bf16.msra.mxu1 %v19714_v58  ;;  %v19539_v57 = vcombine.high %v10046_v55, %v10050_v17  ;;  %v19667_v58 = vcombine.high %v10174_v49, %v10178_v50  ;;  %v10290_v60 = vld [vmem:[#allocation12 + $0x1fe0] sm:$0xff] }
 0x852   : > { %15704 = vmatprep.subr.bf16.mxu0 %v19579_v61  ;;  %15745 = vmatprep.subr.bf16.mxu1 %v19707_v11  ;;  %v10038_v61 = vld [vmem:[#allocation12 + $0x1800] sm:$0xff]  ;;  %v19778_v16 = vcombine.low %v10286_v21, %v10290_v60 }
 0x853   : > { %15734 = vmatprep.mubr.bf16.mxu0 %v23797_v36  ;;  %15775 = vmatprep.mubr.bf16.mxu1 %v23799_v40  ;;  %v10042_v11 = vld [vmem:[#allocation12 + $0x1820] sm:$0xff] }
 0x854   : > { %v19530_v7 = vcombine.low %v10038_v61, %v10042_v11  ;;  %v10278_v42 = vld [vmem:[#allocation12 + $0x1f80] sm:$0xff] }
 0x855   : > { %15705 = vmatpush1.bf16.msra.mxu0 %v19578_v9  ;;  %15746 = vmatpush1.bf16.msra.mxu1 %v19706_v37  ;;  %v19531_v9 = vcombine.high %v10038_v61, %v10042_v11  ;;  %v19659_v37 = vcombine.high %v10166_v32, %v10170_v25  ;;  %v10282_v2 = vld [vmem:[#allocation12 + $0x1fa0] sm:$0xff] }
 0x856   : > { %15706 = vmatprep.subr.bf16.mxu0 %v19571_v27  ;;  %15747 = vmatprep.subr.bf16.mxu1 %v19699_v29  ;;  %v10158_v27 = vld [vmem:[#allocation12 + $0x1bc0] sm:$0xff]  ;;  %v19770_v54 = vcombine.low %v10278_v42, %v10282_v2 }
 0x857   : > { %v10162_v29 = vld [vmem:[#allocation12 + $0x1be0] sm:$0xff] }
 0x858   : > { %v19650_v22 = vcombine.low %v10158_v27, %v10162_v29  ;;  %v10270_v38 = vld [vmem:[#allocation12 + $0x1f40] sm:$0xff] }
 0x859   : > { %15707 = vmatpush1.bf16.msra.mxu0 %v19570_v20  ;;  %15748 = vmatpush1.bf16.msra.mxu1 %v19698_v30  ;;  %v19651_v20 = vcombine.high %v10158_v27, %v10162_v29  ;;  %v19779_v30 = vcombine.high %v10286_v21, %v10290_v60  ;;  %v10274_v62 = vld [vmem:[#allocation12 + $0x1f60] sm:$0xff] }
 0x85a   : > { %15708 = vmatprep.subr.bf16.mxu0 %v19563_v31  ;;  %15749 = vmatprep.subr.bf16.mxu1 %v19691_v34  ;;  %v10150_v31 = vld [vmem:[#allocation12 + $0x1b80] sm:$0xff]  ;;  %v19762_v50 = vcombine.low %v10270_v38, %v10274_v62 }
 0x85b   : > { %v10154_v34 = vld [vmem:[#allocation12 + $0x1ba0] sm:$0xff] }
 0x85c   : > { %v19642_v3 = vcombine.low %v10150_v31, %v10154_v34  ;;  %v10262_v55 = vld [vmem:[#allocation12 + $0x1f00] sm:$0xff] }
 0x85d   : > { %15709 = vmatpush1.bf16.msra.mxu0 %v19562_v18  ;;  %15750 = vmatpush1.bf16.msra.mxu1 %v19690_v8  ;;  %v19643_v18 = vcombine.high %v10150_v31, %v10154_v34  ;;  %v19771_v8 = vcombine.high %v10278_v42, %v10282_v2  ;;  %v10266_v17 = vld [vmem:[#allocation12 + $0x1f20] sm:$0xff] }
 0x85e   : > { %15710 = vmatprep.subr.bf16.mxu0 %v19555_v15  ;;  %15751 = vmatprep.subr.bf16.mxu1 %v19683_v0  ;;  %v10142_v15 = vld [vmem:[#allocation12 + $0x1b40] sm:$0xff]  ;;  %v19754_v25 = vcombine.low %v10262_v55, %v10266_v17 }
 0x85f   : > { %v10146_v0 = vld [vmem:[#allocation12 + $0x1b60] sm:$0xff] }
 0x860   : > { %v19634_v49 = vcombine.low %v10142_v15, %v10146_v0  ;;  %v10254_v61 = vld [vmem:[#allocation12 + $0x1ec0] sm:$0xff] }
 0x861   : > { %15711 = vmatpush1.bf16.msra.mxu0 %v19554_v63  ;;  %15752 = vmatpush1.bf16.msra.mxu1 %v19682_v43  ;;  %v19635_v63 = vcombine.high %v10142_v15, %v10146_v0  ;;  %v19763_v43 = vcombine.high %v10270_v38, %v10274_v62  ;;  %v10258_v11 = vld [vmem:[#allocation12 + $0x1ee0] sm:$0xff] }
 0x862   : > { %15712 = vmatprep.subr.bf16.mxu0 %v19547_v44  ;;  %15753 = vmatprep.subr.bf16.mxu1 %v19675_v45  ;;  %v10134_v44 = vld [vmem:[#allocation12 + $0x1b00] sm:$0xff]  ;;  %v19746_v60 = vcombine.low %v10254_v61, %v10258_v11 }
 0x863   : > { %v10138_v45 = vld [vmem:[#allocation12 + $0x1b20] sm:$0xff] }
 0x864   : > { %v19626_v32 = vcombine.low %v10134_v44, %v10138_v45  ;;  %v10246_v27 = vld [vmem:[#allocation12 + $0x1e80] sm:$0xff] }
 0x865   : > { %15713 = vmatpush1.bf16.msra.mxu0 %v19546_v23  ;;  %15754 = vmatpush1.bf16.msra.mxu1 %v19674_v51  ;;  %v19627_v23 = vcombine.high %v10134_v44, %v10138_v45  ;;  %v19755_v51 = vcombine.high %v10262_v55, %v10266_v17  ;;  %v10250_v29 = vld [vmem:[#allocation12 + $0x1ea0] sm:$0xff]  ;;  %v9455_v44 = vld [vmem:[#allocation12 + $0x5c8] sm:$0xff] }
 0x866   : > { %15714 = vmatprep.subr.bf16.mxu0 %v19539_v57  ;;  %15755 = vmatprep.subr.bf16.mxu1 %v19667_v58  ;;  %v10126_v57 = vld [vmem:[#allocation12 + $0x1ac0] sm:$0xff]  ;;  %v19738_v2 = vcombine.low %v10246_v27, %v10250_v29  ;;  %v9459_v45 = vld [vmem:[#allocation12 + $0x5e8] sm:$0xff] }
 0x867   : > { %v10130_v58 = vld [vmem:[#allocation12 + $0x1ae0] sm:$0xff] }
 0x868   : > { %v19618_v21 = vcombine.low %v10126_v57, %v10130_v58  ;;  %v10238_v31 = vld [vmem:[#allocation12 + $0x1e40] sm:$0xff] }
 0x869   : > { %15715 = vmatpush1.bf16.msra.mxu0 %v19538_v52  ;;  %15756 = vmatpush1.bf16.msra.mxu1 %v19666_v59  ;;  %v19619_v52 = vcombine.high %v10126_v57, %v10130_v58  ;;  %v19747_v59 = vcombine.high %v10254_v61, %v10258_v11  ;;  %v10242_v34 = vld [vmem:[#allocation12 + $0x1e60] sm:$0xff]  ;;  %v23807_v57 = vpack.c.bf16 %v23780_v12, %v23780_v12  ;;  %v9323_v61 = vld [vmem:[#allocation12 + $0x1a8] sm:$0xff] }
 0x86a   : > { %15716 = vmatprep.subr.bf16.mxu0 %v19531_v9  ;;  %15757 = vmatprep.subr.bf16.mxu1 %v19659_v37  ;;  %v10118_v9 = vld [vmem:[#allocation12 + $0x1a80] sm:$0xff]  ;;  %v19730_v62 = vcombine.low %v10238_v31, %v10242_v34  ;;  %v23811_v58 = vpack.c.bf16 %v23783_v10, %v23783_v10  ;;  %v9447_v11 = vld [vmem:[#allocation12 + $0x588] sm:$0xff] }
 0x86b   : > { %v10122_v37 = vld [vmem:[#allocation12 + $0x1aa0] sm:$0xff] }
 0x86c   : > { %v19610_v42 = vcombine.low %v10118_v9, %v10122_v37  ;;  %v10230_v15 = vld [vmem:[#allocation12 + $0x1e00] sm:$0xff] }
 0x86d   : > { %15717 = vmatpush1.bf16.msra.mxu0 %v19530_v7  ;;  %15758 = vmatpush1.bf16.msra.mxu1 %v19658_v46  ;;  %v19611_v7 = vcombine.high %v10118_v9, %v10122_v37  ;;  %v19739_v46 = vcombine.high %v10246_v27, %v10250_v29  ;;  %v10234_v0 = vld [vmem:[#allocation12 + $0x1e20] sm:$0xff]  ;;  %v9311_v27 = vld [vmem:[#allocation12 + $0x148] sm:$0xff] }
 0x86e   : > { %15718 = vmatprep.subr.bf16.mxu0 %v19651_v20  ;;  %15759 = vmatprep.subr.bf16.mxu1 %v19779_v30  ;;  %v10110_v20 = vld [vmem:[#allocation12 + $0x1a40] sm:$0xff]  ;;  %v19722_v17 = vcombine.low %v10230_v15, %v10234_v0  ;;  %v9315_v29 = vld [vmem:[#allocation12 + $0x168] sm:$0xff] }
 0x86f   : > { %v10114_v30 = vld [vmem:[#allocation12 + $0x1a60] sm:$0xff] }
 0x870   : > { %v19602_v38 = vcombine.low %v10110_v20, %v10114_v30 }
 0x871   : > { %15719 = vmatpush2.bf16.msra.mxu0 %v19650_v22  ;;  %15760 = vmatpush2.bf16.msra.mxu1 %v19778_v16  ;;  %v19603_v22 = vcombine.high %v10110_v20, %v10114_v30  ;;  %v19731_v16 = vcombine.high %v10238_v31, %v10242_v34 }
 0x872   : > { %15720 = vmatprep.subr.bf16.mxu0 %v19643_v18  ;;  %15761 = vmatprep.subr.bf16.mxu1 %v19771_v8  ;;  %v10102_v18 = vld [vmem:[#allocation12 + $0x1a00] sm:$0xff] }
 0x873   : > { %v10106_v8 = vld [vmem:[#allocation12 + $0x1a20] sm:$0xff] }
 0x874   : > { %v19594_v55 = vcombine.low %v10102_v18, %v10106_v8 }
 0x875   : > { %15721 = vmatpush2.bf16.msra.mxu0 %v19642_v3  ;;  %15762 = vmatpush2.bf16.msra.mxu1 %v19770_v54  ;;  %v19595_v3 = vcombine.high %v10102_v18, %v10106_v8  ;;  %v19723_v54 = vcombine.high %v10230_v15, %v10234_v0  ;;  %v9303_v18 = vld [vmem:[#allocation12 + $0x108] sm:$0xff] }
 0x876   : > { %15722 = vmatprep.subr.bf16.mxu0 %v19635_v63  ;;  %15763 = vmatprep.subr.bf16.mxu1 %v19763_v43  ;;  %v9327_v63 = vld [vmem:[#allocation12 + $0x1c8] sm:$0xff] }
 0x877   : > { %v9331_v43 = vld [vmem:[#allocation12 + $0x1e8] sm:$0xff] }
 0x878   : > { %v9307_v8 = vld [vmem:[#allocation12 + $0x128] sm:$0xff] }
 0x879   : > { %15723 = vmatpush2.bf16.msra.mxu0 %v19634_v49  ;;  %15764 = vmatpush2.bf16.msra.mxu1 %v19762_v50  ;;  %v18821_v49 = vcombine.high %v9327_v63, %v9331_v43  ;;  %v18949_v50 = vcombine.high %v9455_v44, %v9459_v45 }
 0x87a   : > { %15724 = vmatprep.subr.bf16.mxu0 %v19627_v23  ;;  %15765 = vmatprep.subr.bf16.mxu1 %v19755_v51  ;;  %v10294_v23 = vld [vmem:[#allocation14] sm:$0xff]  ;;  %v9319_v51 = vld [vmem:[#allocation12 + $0x188] sm:$0xff] }
 0x87b   : > { %v10303_v9 = vrot.slane %v10294_v23, %v23272_v35  ;;  %v18813_v37 = vcombine.high %v9319_v51, %v9323_v61  ;;  %v18812_v20 = vcombine.low %v9319_v51, %v9323_v61  ;;  %v18796_v51 = vcombine.low %v9303_v18, %v9307_v8 }
 0x87d   : > { %15725 = vmatpush2.bf16.msra.mxu0 %v19626_v32  ;;  %15766 = vmatpush2.bf16.msra.mxu1 %v19754_v25  ;;  %v9451_v32 = vld [vmem:[#allocation12 + $0x5a8] sm:$0xff]  ;;  %v18820_v25 = vcombine.low %v9327_v63, %v9331_v43 }
 0x87e   : > { %15726 = vmatprep.subr.bf16.mxu0 %v19619_v52  ;;  %15767 = vmatprep.subr.bf16.mxu1 %v19747_v59  ;;  %v10299_v52 = vrot.slane %v10294_v23, %v23268_v41  ;;  %v18948_v59 = vcombine.low %v9455_v44, %v9459_v45  ;;  %v18941_v12 = vcombine.high %v9447_v11, %v9451_v32  ;;  %v9427_v23 = vld [vmem:[#allocation12 + $0x4e8] sm:$0xff] }
 0x87f   : > { %v18940_v34 = vcombine.low %v9447_v11, %v9451_v32  ;;  %v18797_v45 = vcombine.high %v9303_v18, %v9307_v8 }
 0x881   : > { %15727 = vmatpush2.bf16.msra.mxu0 %v19618_v21  ;;  %15768 = vmatpush2.bf16.msra.mxu1 %v19746_v60  ;;  %v9439_v60 = vld [vmem:[#allocation12 + $0x548] sm:$0xff] }
 0x882   : > { %15728 = vmatprep.subr.bf16.mxu0 %v19611_v7  ;;  %15769 = vmatprep.subr.bf16.mxu1 %v19739_v46  ;;  %v9443_v7 = vld [vmem:[#allocation12 + $0x568] sm:$0xff] }
 0x883   : > { %v18932_v44 = vcombine.low %v9439_v60, %v9443_v7 }
 0x885   : > { %15729 = vmatpush2.bf16.msra.mxu0 %v19610_v42  ;;  %15770 = vmatpush2.bf16.msra.mxu1 %v19738_v2  ;;  %v18805_v42 = vcombine.high %v9311_v27, %v9315_v29 }
 0x886   : > { %15730 = vmatprep.subr.bf16.mxu0 %v19603_v22  ;;  %15771 = vmatprep.subr.bf16.mxu1 %v19731_v16  ;;  %v18933_v16 = vcombine.high %v9439_v60, %v9443_v7  ;;  %v9407_v60 = vld [vmem:[#allocation12 + $0x448] sm:$0xff] }
 0x887   : > { %v9411_v7 = vld [vmem:[#allocation12 + $0x468] sm:$0xff] }
 0x888   : > { %v18900_v8 = vcombine.low %v9407_v60, %v9411_v7 }
 0x889   : > { %15731 = vmatpush2.bf16.msra.mxu0 %v19602_v38  ;;  %15772 = vmatpush2.bf16.msra.mxu1 %v19730_v62  ;;  %v9431_v38 = vld [vmem:[#allocation12 + $0x508] sm:$0xff] }
 0x88a   : > { %15732 = vmatprep.subr.bf16.mxu0 %v19595_v3  ;;  %15773 = vmatprep.subr.bf16.mxu1 %v19723_v54  ;;  %v9435_v62 = vld [vmem:[#allocation12 + $0x528] sm:$0xff]  ;;  %v18804_v54 = vcombine.low %v9311_v27, %v9315_v29 }
 0x88b   : > { %v18924_v61 = vcombine.low %v9431_v38, %v9435_v62 }
 0x88d   : > { %15733 = vmatpush2.bf16.msra.mxu0 %v19594_v55  ;;  %15774 = vmatpush2.bf16.msra.mxu1 %v19722_v17  ;;  %v18925_v55 = vcombine.high %v9431_v38, %v9435_v62  ;;  %v9295_v17 = vld [vmem:[#allocation12 + $0xc8] sm:$0xff] }
 0x88e   : > { %15784 = vmatprep.subr.bf16.mxu0 %v18821_v49  ;;  %15825 = vmatprep.subr.bf16.mxu1 %v18949_v50  ;;  %v9299_v49 = vld [vmem:[#allocation12 + $0xe8] sm:$0xff] }
 0x88f   : > { %v9423_v50 = vld [vmem:[#allocation12 + $0x4c8] sm:$0xff]  ;;  %v18789_v11 = vcombine.high %v9295_v17, %v9299_v49 }
 0x890   : > { %15735 = vmatmul.mubr.bf16.vlgmr.msra.gmra.mxu0 %v23807_v57  ;;  %15776 = vmatmul.mubr.bf16.vlgmr.msra.gmra.mxu1 %v23811_v58  ;;  %v15490_v10 = vpop.f32.mrf.mxu0  ;;  %v15531_v21 = vpop.f32.mrf.mxu1  ;;  %v18917_v32 = vcombine.high %v9423_v50, %v9427_v23  ;;  %v9391_v38 = vld [vmem:[#allocation12 + $0x3c8] sm:$0xff] }
 0x891   : > { %v15491_v46 = vadd.f32 %v15490_v10, %v10299_v52  ;;  %15785 = vmatpush1.bf16.msra.mxu0 %v18820_v25  ;;  %15816 = vmatprep.mubr.bf16.mxu0 %v23718_v5  ;;  %v9287_v25 = vld [vmem:[#allocation12 + $0x88] sm:$0xff] }
 0x892   : > { %15826 = vmatpush1.bf16.msra.mxu1 %v18948_v59  ;;  %15857 = vmatprep.mubr.bf16.mxu1 %v23720_v14  ;;  %v15492_v30 = vpop.f32.mrf.mxu0  ;;  %v15533_v31 = vpop.f32.mrf.mxu1  ;;  %v9291_v52 = vld [vmem:[#allocation12 + $0xa8] sm:$0xff] }
 0x893   : > { %v23819_v2 = vadd.f32 %v15531_v21, %v15491_v46  ;;  %v15493_v22 = vadd.f32 %v15492_v30, %v10303_v9  ;;  %15786 = vmatprep.subr.bf16.mxu0 %v18813_v37  ;;  %15827 = vmatprep.subr.bf16.mxu1 %v18941_v12  ;;  %v9415_v59 = vld [vmem:[#allocation12 + $0x488] sm:$0xff]  ;;  %v18788_v37 = vcombine.low %v9295_v17, %v9299_v49 }
 0x894   : > { %v15494_v15 = vpop.f32.mrf.mxu0  ;;  %v15535_v0 = vpop.f32.mrf.mxu1  ;;  %v9419_v9 = vld [vmem:[#allocation12 + $0x4a8] sm:$0xff]  ;;  %v18916_v12 = vcombine.low %v9423_v50, %v9427_v23  ;;  %v18781_v27 = vcombine.high %v9287_v25, %v9291_v52  ;;  %v18780_v46 = vcombine.low %v9287_v25, %v9291_v52 }
 0x895   : > { %v23821_v3 = vadd.f32 %v15533_v31, %v15493_v22  ;;  %15787 = vmatpush1.bf16.msra.mxu0 %v18812_v20  ;;  %v18909_v29 = vcombine.high %v9415_v59, %v9419_v9  ;;  %v9279_v10 = vld [vmem:[#allocation12 + $0x48] sm:$0xff]  ;;  %v18908_v20 = vcombine.low %v9415_v59, %v9419_v9  ;;  %v18901_v31 = vcombine.high %v9407_v60, %v9411_v7 }
 0x896   : > { %15828 = vmatpush1.bf16.msra.mxu1 %v18940_v34  ;;  %v15495_v63 = vpop.f32.mrf.mxu0  ;;  %v15536_v43 = vpop.f32.mrf.mxu1  ;;  %15788 = vmatprep.subr.bf16.mxu0 %v18805_v42  ;;  %v9283_v21 = vld [vmem:[#allocation12 + $0x68] sm:$0xff] }
 0x897   : > { %15829 = vmatprep.subr.bf16.mxu1 %v18933_v16  ;;  %v18773_v30 = vcombine.high %v9279_v10, %v9283_v21  ;;  %v9271_v34 = vld [vmem:[#allocation12 + $0x8] sm:$0xff]  ;;  %v18772_v18 = vcombine.low %v9279_v10, %v9283_v21 }
 0x898   : > { %v9275_v42 = vld [vmem:[#allocation12 + $0x28] sm:$0xff] }
 0x899   : > { %15789 = vmatpush1.bf16.msra.mxu0 %v18804_v54  ;;  %v9399_v22 = vld [vmem:[#allocation12 + $0x408] sm:$0xff]  ;;  %v18765_v15 = vcombine.high %v9271_v34, %v9275_v42  ;;  %v18764_v43 = vcombine.low %v9271_v34, %v9275_v42 }
 0x89a   : > { %15830 = vmatpush1.bf16.msra.mxu1 %v18932_v44  ;;  %15790 = vmatprep.subr.bf16.mxu0 %v18797_v45  ;;  %v9403_v16 = vld [vmem:[#allocation12 + $0x428] sm:$0xff] }
 0x89b   : > { %15831 = vmatprep.subr.bf16.mxu1 %v18925_v55  ;;  %v18893_v0 = vcombine.high %v9399_v22, %v9403_v16  ;;  %v9395_v62 = vld [vmem:[#allocation12 + $0x3e8] sm:$0xff]  ;;  %v18892_v44 = vcombine.low %v9399_v22, %v9403_v16 }
 0x89c   : > { %v9519_v54 = vld [vmem:[#allocation12 + $0x7c8] sm:$0xff]  ;;  %v18885_v45 = vcombine.high %v9391_v38, %v9395_v62 }
 0x89d   : > { %15791 = vmatpush1.bf16.msra.mxu0 %v18796_v51  ;;  %v9523_v63 = vld [vmem:[#allocation12 + $0x7e8] sm:$0xff]  ;;  %v18884_v51 = vcombine.low %v9391_v38, %v9395_v62 }
 0x89e   : > { %15832 = vmatpush1.bf16.msra.mxu1 %v18924_v61  ;;  %15792 = vmatprep.subr.bf16.mxu0 %v18789_v11  ;;  %v19013_v55 = vcombine.high %v9519_v54, %v9523_v63  ;;  %v9383_v17 = vld [vmem:[#allocation12 + $0x388] sm:$0xff]  ;;  %v19012_v61 = vcombine.low %v9519_v54, %v9523_v63 }
 0x89f   : > { %15833 = vmatprep.subr.bf16.mxu1 %v18917_v32  ;;  %v9387_v49 = vld [vmem:[#allocation12 + $0x3a8] sm:$0xff] }
 0x8a0   : > { %v9511_v50 = vld [vmem:[#allocation12 + $0x788] sm:$0xff]  ;;  %v18877_v11 = vcombine.high %v9383_v17, %v9387_v49 }
 0x8a1   : > { %15793 = vmatpush1.bf16.msra.mxu0 %v18788_v37  ;;  %v9515_v23 = vld [vmem:[#allocation12 + $0x7a8] sm:$0xff]  ;;  %v18876_v37 = vcombine.low %v9383_v17, %v9387_v49 }
 0x8a2   : > { %15834 = vmatpush1.bf16.msra.mxu1 %v18916_v12  ;;  %15794 = vmatprep.subr.bf16.mxu0 %v18781_v27  ;;  %v19005_v32 = vcombine.high %v9511_v50, %v9515_v23  ;;  %v9375_v25 = vld [vmem:[#allocation12 + $0x348] sm:$0xff]  ;;  %v19004_v12 = vcombine.low %v9511_v50, %v9515_v23 }
 0x8a3   : > { %15835 = vmatprep.subr.bf16.mxu1 %v18909_v29  ;;  %v9379_v52 = vld [vmem:[#allocation12 + $0x368] sm:$0xff] }
 0x8a4   : > { %v9503_v59 = vld [vmem:[#allocation12 + $0x748] sm:$0xff]  ;;  %v18869_v27 = vcombine.high %v9375_v25, %v9379_v52 }
 0x8a5   : > { %15795 = vmatpush1.bf16.msra.mxu0 %v18780_v46  ;;  %v9507_v9 = vld [vmem:[#allocation12 + $0x768] sm:$0xff]  ;;  %v18868_v46 = vcombine.low %v9375_v25, %v9379_v52 }
 0x8a6   : > { %15836 = vmatpush1.bf16.msra.mxu1 %v18908_v20  ;;  %15796 = vmatprep.subr.bf16.mxu0 %v18773_v30  ;;  %v18997_v29 = vcombine.high %v9503_v59, %v9507_v9  ;;  %v9367_v10 = vld [vmem:[#allocation12 + $0x308] sm:$0xff]  ;;  %v18996_v20 = vcombine.low %v9503_v59, %v9507_v9 }
 0x8a7   : > { %15837 = vmatprep.subr.bf16.mxu1 %v18901_v31  ;;  %v9371_v21 = vld [vmem:[#allocation12 + $0x328] sm:$0xff] }
 0x8a8   : > { %v9495_v60 = vld [vmem:[#allocation12 + $0x708] sm:$0xff]  ;;  %v18861_v30 = vcombine.high %v9367_v10, %v9371_v21 }
 0x8a9   : > { %15797 = vmatpush1.bf16.msra.mxu0 %v18772_v18  ;;  %v9499_v7 = vld [vmem:[#allocation12 + $0x728] sm:$0xff]  ;;  %v18860_v18 = vcombine.low %v9367_v10, %v9371_v21 }
 0x8aa   : > { %15838 = vmatpush1.bf16.msra.mxu1 %v18900_v8  ;;  %15798 = vmatprep.subr.bf16.mxu0 %v18765_v15  ;;  %v18989_v31 = vcombine.high %v9495_v60, %v9499_v7  ;;  %v9359_v34 = vld [vmem:[#allocation12 + $0x2c8] sm:$0xff]  ;;  %v18988_v8 = vcombine.low %v9495_v60, %v9499_v7 }
 0x8ab   : > { %15839 = vmatprep.subr.bf16.mxu1 %v18893_v0  ;;  %v9363_v42 = vld [vmem:[#allocation12 + $0x2e8] sm:$0xff] }
 0x8ac   : > { %v9487_v22 = vld [vmem:[#allocation12 + $0x6c8] sm:$0xff]  ;;  %v18853_v15 = vcombine.high %v9359_v34, %v9363_v42 }
 0x8ad   : > { %15799 = vmatpush1.bf16.msra.mxu0 %v18764_v43  ;;  %v9491_v16 = vld [vmem:[#allocation12 + $0x6e8] sm:$0xff]  ;;  %v18852_v43 = vcombine.low %v9359_v34, %v9363_v42 }
 0x8ae   : > { %15840 = vmatpush1.bf16.msra.mxu1 %v18892_v44  ;;  %15800 = vmatprep.subr.bf16.mxu0 %v18885_v45  ;;  %v18981_v0 = vcombine.high %v9487_v22, %v9491_v16  ;;  %v9351_v38 = vld [vmem:[#allocation12 + $0x288] sm:$0xff]  ;;  %v18980_v44 = vcombine.low %v9487_v22, %v9491_v16 }
 0x8af   : > { %15841 = vmatprep.subr.bf16.mxu1 %v19013_v55  ;;  %v9355_v62 = vld [vmem:[#allocation12 + $0x2a8] sm:$0xff] }
 0x8b0   : > { %v9479_v54 = vld [vmem:[#allocation12 + $0x688] sm:$0xff]  ;;  %v18845_v45 = vcombine.high %v9351_v38, %v9355_v62 }
 0x8b1   : > { %15801 = vmatpush2.bf16.msra.mxu0 %v18884_v51  ;;  %v9483_v63 = vld [vmem:[#allocation12 + $0x6a8] sm:$0xff]  ;;  %v18844_v51 = vcombine.low %v9351_v38, %v9355_v62 }
 0x8b2   : > { %15842 = vmatpush2.bf16.msra.mxu1 %v19012_v61  ;;  %15802 = vmatprep.subr.bf16.mxu0 %v18877_v11  ;;  %v18973_v55 = vcombine.high %v9479_v54, %v9483_v63  ;;  %v9343_v17 = vld [vmem:[#allocation12 + $0x248] sm:$0xff]  ;;  %v18972_v61 = vcombine.low %v9479_v54, %v9483_v63 }
 0x8b3   : > { %15843 = vmatprep.subr.bf16.mxu1 %v19005_v32  ;;  %v9347_v49 = vld [vmem:[#allocation12 + $0x268] sm:$0xff] }
 0x8b4   : > { %v9471_v50 = vld [vmem:[#allocation12 + $0x648] sm:$0xff]  ;;  %v18837_v11 = vcombine.high %v9343_v17, %v9347_v49 }
 0x8b5   : > { %15803 = vmatpush2.bf16.msra.mxu0 %v18876_v37  ;;  %v9475_v23 = vld [vmem:[#allocation12 + $0x668] sm:$0xff]  ;;  %v18836_v37 = vcombine.low %v9343_v17, %v9347_v49 }
 0x8b6   : > { %15844 = vmatpush2.bf16.msra.mxu1 %v19004_v12  ;;  %15804 = vmatprep.subr.bf16.mxu0 %v18869_v27  ;;  %v18965_v32 = vcombine.high %v9471_v50, %v9475_v23  ;;  %v9335_v25 = vld [vmem:[#allocation12 + $0x208] sm:$0xff]  ;;  %v18964_v12 = vcombine.low %v9471_v50, %v9475_v23 }
 0x8b7   : > { %15845 = vmatprep.subr.bf16.mxu1 %v18997_v29  ;;  %v9339_v52 = vld [vmem:[#allocation12 + $0x228] sm:$0xff] }
 0x8b8   : > { %v9463_v59 = vld [vmem:[#allocation12 + $0x608] sm:$0xff]  ;;  %v18829_v27 = vcombine.high %v9335_v25, %v9339_v52 }
 0x8b9   : > { %15805 = vmatpush2.bf16.msra.mxu0 %v18868_v46  ;;  %v9467_v9 = vld [vmem:[#allocation12 + $0x628] sm:$0xff]  ;;  %v18828_v46 = vcombine.low %v9335_v25, %v9339_v52 }
 0x8ba   : > { %15846 = vmatpush2.bf16.msra.mxu1 %v18996_v20  ;;  %15806 = vmatprep.subr.bf16.mxu0 %v18861_v30  ;;  %v18957_v29 = vcombine.high %v9463_v59, %v9467_v9  ;;  %v9583_v10 = vld [vmem:[#allocation12 + $0x9c8] sm:$0xff]  ;;  %v18956_v20 = vcombine.low %v9463_v59, %v9467_v9 }
 0x8bb   : > { %15847 = vmatprep.subr.bf16.mxu1 %v18989_v31  ;;  %v9587_v21 = vld [vmem:[#allocation12 + $0x9e8] sm:$0xff] }
 0x8bc   : > { %v9711_v60 = vld [vmem:[#allocation12 + $0xdc8] sm:$0xff]  ;;  %v19077_v30 = vcombine.high %v9583_v10, %v9587_v21  ;;  %v19076_v22 = vcombine.low %v9583_v10, %v9587_v21 }
 0x8bd   : > { %15807 = vmatpush2.bf16.msra.mxu0 %v18860_v18  ;;  %v9715_v7 = vld [vmem:[#allocation12 + $0xde8] sm:$0xff] }
 0x8be   : > { %15848 = vmatpush2.bf16.msra.mxu1 %v18988_v8  ;;  %15808 = vmatprep.subr.bf16.mxu0 %v18853_v15  ;;  %v19205_v31 = vcombine.high %v9711_v60, %v9715_v7  ;;  %v9575_v34 = vld [vmem:[#allocation12 + $0x988] sm:$0xff]  ;;  %v19204_v8 = vcombine.low %v9711_v60, %v9715_v7 }
 0x8bf   : > { %15849 = vmatprep.subr.bf16.mxu1 %v18981_v0  ;;  %v9579_v42 = vld [vmem:[#allocation12 + $0x9a8] sm:$0xff] }
 0x8c0   : > { %v9703_v16 = vld [vmem:[#allocation12 + $0xd88] sm:$0xff]  ;;  %v19069_v15 = vcombine.high %v9575_v34, %v9579_v42 }
 0x8c1   : > { %15809 = vmatpush2.bf16.msra.mxu0 %v18852_v43  ;;  %v9707_v18 = vld [vmem:[#allocation12 + $0xda8] sm:$0xff] }
 0x8c2   : > { %15850 = vmatpush2.bf16.msra.mxu1 %v18980_v44  ;;  %15810 = vmatprep.subr.bf16.mxu0 %v18845_v45  ;;  %v9567_v0 = vld [vmem:[#allocation12 + $0x948] sm:$0xff]  ;;  %v19197_v63 = vcombine.high %v9703_v16, %v9707_v18  ;;  %v19196_v50 = vcombine.low %v9703_v16, %v9707_v18 }
 0x8c3   : > { %15851 = vmatprep.subr.bf16.mxu1 %v18973_v55  ;;  %v9571_v38 = vld [vmem:[#allocation12 + $0x968] sm:$0xff]  ;;  %v19068_v55 = vcombine.low %v9575_v34, %v9579_v42 }
 0x8c4   : > { %v9695_v43 = vld [vmem:[#allocation12 + $0xd48] sm:$0xff]  ;;  %v19061_v23 = vcombine.high %v9567_v0, %v9571_v38 }
 0x8c5   : > { %15811 = vmatpush2.bf16.msra.mxu0 %v18844_v51  ;;  %v9699_v44 = vld [vmem:[#allocation12 + $0xd68] sm:$0xff] }
 0x8c6   : > { %15852 = vmatpush2.bf16.msra.mxu1 %v18972_v61  ;;  %15812 = vmatprep.subr.bf16.mxu0 %v18837_v11  ;;  %v19189_v11 = vcombine.high %v9695_v43, %v9699_v44  ;;  %v9687_v59 = vld [vmem:[#allocation12 + $0xd08] sm:$0xff]  ;;  %v19188_v10 = vcombine.low %v9695_v43, %v9699_v44 }
 0x8c7   : > { %15853 = vmatprep.subr.bf16.mxu1 %v18965_v32  ;;  %v9563_v32 = vld [vmem:[#allocation12 + $0x928] sm:$0xff] }
 0x8c8   : > { %v9691_v9 = vld [vmem:[#allocation12 + $0xd28] sm:$0xff] }
 0x8c9   : > { %15813 = vmatpush2.bf16.msra.mxu0 %v18836_v37  ;;  %v9551_v60 = vld [vmem:[#allocation12 + $0x8c8] sm:$0xff] }
 0x8ca   : > { %15854 = vmatpush2.bf16.msra.mxu1 %v18964_v12  ;;  %15814 = vmatprep.subr.bf16.mxu0 %v18829_v27  ;;  %v19060_v12 = vcombine.low %v9567_v0, %v9571_v38  ;;  %v9555_v7 = vld [vmem:[#allocation12 + $0x8e8] sm:$0xff] }
 0x8cb   : > { %15855 = vmatprep.subr.bf16.mxu1 %v18957_v29  ;;  %v19045_v34 = vcombine.high %v9551_v60, %v9555_v7  ;;  %v9547_v16 = vld [vmem:[#allocation12 + $0x8a8] sm:$0xff] }
 0x8cc   : > { %v9671_v18 = vld [vmem:[#allocation12 + $0xc88] sm:$0xff] }
 0x8cd   : > { %15815 = vmatpush2.bf16.msra.mxu0 %v18828_v46  ;;  %v9679_v46 = vld [vmem:[#allocation12 + $0xcc8] sm:$0xff] }
 0x8ce   : > { %15856 = vmatpush2.bf16.msra.mxu1 %v18956_v20  ;;  %15866 = vmatprep.subr.bf16.mxu0 %v19077_v30  ;;  %v9683_v20 = vld [vmem:[#allocation12 + $0xce8] sm:$0xff] }
 0x8cf   : > { %15907 = vmatprep.subr.bf16.mxu1 %v19205_v31  ;;  %v19180_v31 = vcombine.low %v9687_v59, %v9691_v9  ;;  %v19173_v42 = vcombine.high %v9679_v46, %v9683_v20  ;;  %v19172_v0 = vcombine.low %v9679_v46, %v9683_v20  ;;  %v9663_v43 = vld [vmem:[#allocation12 + $0xc48] sm:$0xff] }
 0x8d0   : > { %v15572_v62 = vpop.f32.mrf.mxu0  ;;  %v15613_v54 = vpop.f32.mrf.mxu1  ;;  %15817 = vmatmul.mubr.bf16.vlgmr.msra.gmra.mxu0 %v23722_v28  ;;  %v9667_v44 = vld [vmem:[#allocation12 + $0xc68] sm:$0xff] }
 0x8d1   : > { %v15573_v45 = vadd.f32 %v15572_v62, %v23819_v2  ;;  %15858 = vmatmul.mubr.bf16.vlgmr.msra.gmra.mxu1 %v23716_v53  ;;  %15867 = vmatpush1.bf16.msra.mxu0 %v19076_v22  ;;  %v9559_v2 = vld [vmem:[#allocation12 + $0x908] sm:$0xff] }
 0x8d2   : > { %15898 = vmatprep.mubr.bf16.mxu0 %v23732_v33  ;;  %15908 = vmatpush1.bf16.msra.mxu1 %v19204_v8  ;;  %v15574_v17 = vpop.f32.mrf.mxu0  ;;  %v15615_v49 = vpop.f32.mrf.mxu1  ;;  %v19053_v21 = vcombine.high %v9559_v2, %v9563_v32  ;;  %v19052_v30 = vcombine.low %v9559_v2, %v9563_v32  ;;  %v9543_v22 = vld [vmem:[#allocation12 + $0x888] sm:$0xff]  ;;  %v19156_v32 = vcombine.low %v9663_v43, %v9667_v44 }
 0x8d3   : > { %v23827_v51 = vadd.f32 %v15613_v54, %v15573_v45  ;;  %15939 = vmatprep.mubr.bf16.mxu1 %v23734_v48  ;;  %v15575_v61 = vadd.f32 %v15574_v17, %v23821_v3  ;;  %15868 = vmatprep.subr.bf16.mxu0 %v19069_v15  ;;  %v19181_v3 = vcombine.high %v9687_v59, %v9691_v9  ;;  %v9675_v8 = vld [vmem:[#allocation12 + $0xca8] sm:$0xff] }
 0x8d4   : > { %v15576_v25 = vpop.f32.mrf.mxu0  ;;  %v15617_v52 = vpop.f32.mrf.mxu1  ;;  %15909 = vmatprep.subr.bf16.mxu1 %v19197_v63  ;;  %v19044_v15 = vcombine.low %v9551_v60, %v9555_v7  ;;  %v19037_v38 = vcombine.high %v9543_v22, %v9547_v16  ;;  %v19165_v62 = vcombine.high %v9671_v18, %v9675_v8  ;;  %v9535_v54 = vld [vmem:[#allocation12 + $0x848] sm:$0xff]  ;;  %v19036_v45 = vcombine.low %v9543_v22, %v9547_v16 }
 0x8d5   : > { %v23831_v37 = vadd.f32 %v15615_v49, %v15575_v61  ;;  %15869 = vmatpush1.bf16.msra.mxu0 %v19068_v55  ;;  %v9539_v63 = vld [vmem:[#allocation12 + $0x868] sm:$0xff]  ;;  %v19164_v55 = vcombine.low %v9671_v18, %v9675_v8  ;;  %v19157_v49 = vcombine.high %v9663_v43, %v9667_v44 }
 0x8d6   : > { %15910 = vmatpush1.bf16.msra.mxu1 %v19196_v50  ;;  %v15577_v27 = vpop.f32.mrf.mxu0  ;;  %v15618_v29 = vpop.f32.mrf.mxu1  ;;  %15870 = vmatprep.subr.bf16.mxu0 %v19061_v23  ;;  %v19029_v17 = vcombine.high %v9535_v54, %v9539_v63  ;;  %v9527_v50 = vld [vmem:[#allocation12 + $0x808] sm:$0xff]  ;;  %v19028_v2 = vcombine.low %v9535_v54, %v9539_v63 }
 0x8d7   : > { %15911 = vmatprep.subr.bf16.mxu1 %v19189_v11  ;;  %v9531_v23 = vld [vmem:[#allocation12 + $0x828] sm:$0xff] }
 0x8d8   : > { %v9655_v61 = vld [vmem:[#allocation12 + $0xc08] sm:$0xff]  ;;  %v19021_v25 = vcombine.high %v9527_v50, %v9531_v23  ;;  %v19020_v29 = vcombine.low %v9527_v50, %v9531_v23 }
 0x8d9   : > { %15871 = vmatpush1.bf16.msra.mxu0 %v19060_v12  ;;  %v9659_v11 = vld [vmem:[#allocation12 + $0xc28] sm:$0xff] }
 0x8da   : > { %15912 = vmatpush1.bf16.msra.mxu1 %v19188_v10  ;;  %15872 = vmatprep.subr.bf16.mxu0 %v19053_v21  ;;  %v19149_v52 = vcombine.high %v9655_v61, %v9659_v11  ;;  %v9647_v59 = vld [vmem:[#allocation12 + $0xbc8] sm:$0xff]  ;;  %v19148_v10 = vcombine.low %v9655_v61, %v9659_v11 }
 0x8db   : > { %15913 = vmatprep.subr.bf16.mxu1 %v19181_v3  ;;  %v9651_v9 = vld [vmem:[#allocation12 + $0xbe8] sm:$0xff] }
 0x8dc   : > { %v9775_v12 = vld [vmem:[#allocation12 + $0xfc8] sm:$0xff]  ;;  %v19141_v21 = vcombine.high %v9647_v59, %v9651_v9 }
 0x8dd   : > { %15873 = vmatpush1.bf16.msra.mxu0 %v19052_v30  ;;  %v9779_v27 = vld [vmem:[#allocation12 + $0xfe8] sm:$0xff]  ;;  %v19140_v30 = vcombine.low %v9647_v59, %v9651_v9 }
 0x8de   : > { %15914 = vmatpush1.bf16.msra.mxu1 %v19180_v31  ;;  %15874 = vmatprep.subr.bf16.mxu0 %v19045_v34  ;;  %v19269_v3 = vcombine.high %v9775_v12, %v9779_v27  ;;  %v9639_v60 = vld [vmem:[#allocation12 + $0xb88] sm:$0xff]  ;;  %v19268_v31 = vcombine.low %v9775_v12, %v9779_v27 }
 0x8df   : > { %15915 = vmatprep.subr.bf16.mxu1 %v19173_v42  ;;  %v9643_v7 = vld [vmem:[#allocation12 + $0xba8] sm:$0xff] }
 0x8e0   : > { %v9767_v46 = vld [vmem:[#allocation12 + $0xf88] sm:$0xff]  ;;  %v19133_v34 = vcombine.high %v9639_v60, %v9643_v7 }
 0x8e1   : > { %15875 = vmatpush1.bf16.msra.mxu0 %v19044_v15  ;;  %v9771_v20 = vld [vmem:[#allocation12 + $0xfa8] sm:$0xff]  ;;  %v19132_v15 = vcombine.low %v9639_v60, %v9643_v7 }
 0x8e2   : > { %15916 = vmatpush1.bf16.msra.mxu1 %v19172_v0  ;;  %15876 = vmatprep.subr.bf16.mxu0 %v19037_v38  ;;  %v19261_v42 = vcombine.high %v9767_v46, %v9771_v20  ;;  %v9631_v22 = vld [vmem:[#allocation12 + $0xb48] sm:$0xff]  ;;  %v19260_v0 = vcombine.low %v9767_v46, %v9771_v20 }
 0x8e3   : > { %15917 = vmatprep.subr.bf16.mxu1 %v19165_v62  ;;  %v9635_v16 = vld [vmem:[#allocation12 + $0xb68] sm:$0xff] }
 0x8e4   : > { %v9759_v18 = vld [vmem:[#allocation12 + $0xf48] sm:$0xff]  ;;  %v19125_v38 = vcombine.high %v9631_v22, %v9635_v16 }
 0x8e5   : > { %15877 = vmatpush1.bf16.msra.mxu0 %v19036_v45  ;;  %v9763_v8 = vld [vmem:[#allocation12 + $0xf68] sm:$0xff]  ;;  %v19124_v45 = vcombine.low %v9631_v22, %v9635_v16 }
 0x8e6   : > { %15918 = vmatpush1.bf16.msra.mxu1 %v19164_v55  ;;  %15878 = vmatprep.subr.bf16.mxu0 %v19029_v17  ;;  %v19253_v62 = vcombine.high %v9759_v18, %v9763_v8  ;;  %v9623_v54 = vld [vmem:[#allocation12 + $0xb08] sm:$0xff]  ;;  %v19252_v55 = vcombine.low %v9759_v18, %v9763_v8 }
 0x8e7   : > { %15919 = vmatprep.subr.bf16.mxu1 %v19157_v49  ;;  %v9627_v63 = vld [vmem:[#allocation12 + $0xb28] sm:$0xff] }
 0x8e8   : > { %v9751_v43 = vld [vmem:[#allocation12 + $0xf08] sm:$0xff]  ;;  %v19117_v17 = vcombine.high %v9623_v54, %v9627_v63 }
 0x8e9   : > { %15879 = vmatpush1.bf16.msra.mxu0 %v19028_v2  ;;  %v9755_v44 = vld [vmem:[#allocation12 + $0xf28] sm:$0xff]  ;;  %v19116_v2 = vcombine.low %v9623_v54, %v9627_v63 }
 0x8ea   : > { %15920 = vmatpush1.bf16.msra.mxu1 %v19156_v32  ;;  %15880 = vmatprep.subr.bf16.mxu0 %v19021_v25  ;;  %v19245_v49 = vcombine.high %v9751_v43, %v9755_v44  ;;  %v9615_v50 = vld [vmem:[#allocation12 + $0xac8] sm:$0xff]  ;;  %v19244_v32 = vcombine.low %v9751_v43, %v9755_v44 }
 0x8eb   : > { %15921 = vmatprep.subr.bf16.mxu1 %v19149_v52  ;;  %v9619_v23 = vld [vmem:[#allocation12 + $0xae8] sm:$0xff] }
 0x8ec   : > { %v9743_v61 = vld [vmem:[#allocation12 + $0xec8] sm:$0xff]  ;;  %v19109_v25 = vcombine.high %v9615_v50, %v9619_v23 }
 0x8ed   : > { %15881 = vmatpush1.bf16.msra.mxu0 %v19020_v29  ;;  %v9747_v11 = vld [vmem:[#allocation12 + $0xee8] sm:$0xff]  ;;  %v19108_v29 = vcombine.low %v9615_v50, %v9619_v23 }
 0x8ee   : > { %15922 = vmatpush1.bf16.msra.mxu1 %v19148_v10  ;;  %15882 = vmatprep.subr.bf16.mxu0 %v19141_v21  ;;  %v19237_v52 = vcombine.high %v9743_v61, %v9747_v11  ;;  %v9607_v59 = vld [vmem:[#allocation12 + $0xa88] sm:$0xff]  ;;  %v19236_v10 = vcombine.low %v9743_v61, %v9747_v11 }
 0x8ef   : > { %15923 = vmatprep.subr.bf16.mxu1 %v19269_v3  ;;  %v9611_v9 = vld [vmem:[#allocation12 + $0xaa8] sm:$0xff] }
 0x8f0   : > { %v9735_v12 = vld [vmem:[#allocation12 + $0xe88] sm:$0xff]  ;;  %v19101_v21 = vcombine.high %v9607_v59, %v9611_v9 }
 0x8f1   : > { %15883 = vmatpush2.bf16.msra.mxu0 %v19140_v30  ;;  %v9739_v27 = vld [vmem:[#allocation12 + $0xea8] sm:$0xff]  ;;  %v19100_v30 = vcombine.low %v9607_v59, %v9611_v9 }
 0x8f2   : > { %15924 = vmatpush2.bf16.msra.mxu1 %v19268_v31  ;;  %15884 = vmatprep.subr.bf16.mxu0 %v19133_v34  ;;  %v19229_v3 = vcombine.high %v9735_v12, %v9739_v27  ;;  %v9599_v60 = vld [vmem:[#allocation12 + $0xa48] sm:$0xff]  ;;  %v19228_v31 = vcombine.low %v9735_v12, %v9739_v27 }
 0x8f3   : > { %15925 = vmatprep.subr.bf16.mxu1 %v19261_v42  ;;  %v9603_v7 = vld [vmem:[#allocation12 + $0xa68] sm:$0xff] }
 0x8f4   : > { %v9727_v46 = vld [vmem:[#allocation12 + $0xe48] sm:$0xff]  ;;  %v19093_v34 = vcombine.high %v9599_v60, %v9603_v7 }
 0x8f5   : > { %15885 = vmatpush2.bf16.msra.mxu0 %v19132_v15  ;;  %v9731_v20 = vld [vmem:[#allocation12 + $0xe68] sm:$0xff]  ;;  %v19092_v15 = vcombine.low %v9599_v60, %v9603_v7 }
 0x8f6   : > { %15926 = vmatpush2.bf16.msra.mxu1 %v19260_v0  ;;  %15886 = vmatprep.subr.bf16.mxu0 %v19125_v38  ;;  %v19221_v42 = vcombine.high %v9727_v46, %v9731_v20  ;;  %v9591_v22 = vld [vmem:[#allocation12 + $0xa08] sm:$0xff]  ;;  %v19220_v0 = vcombine.low %v9727_v46, %v9731_v20 }
 0x8f7   : > { %15927 = vmatprep.subr.bf16.mxu1 %v19253_v62  ;;  %v9595_v16 = vld [vmem:[#allocation12 + $0xa28] sm:$0xff] }
 0x8f8   : > { %v9719_v18 = vld [vmem:[#allocation12 + $0xe08] sm:$0xff]  ;;  %v19085_v38 = vcombine.high %v9591_v22, %v9595_v16 }
 0x8f9   : > { %15887 = vmatpush2.bf16.msra.mxu0 %v19124_v45  ;;  %v9723_v8 = vld [vmem:[#allocation12 + $0xe28] sm:$0xff]  ;;  %v19084_v45 = vcombine.low %v9591_v22, %v9595_v16 }
 0x8fa   : > { %15928 = vmatpush2.bf16.msra.mxu1 %v19252_v55  ;;  %15888 = vmatprep.subr.bf16.mxu0 %v19117_v17  ;;  %v19213_v62 = vcombine.high %v9719_v18, %v9723_v8  ;;  %v9839_v54 = vld [vmem:[#allocation12 + $0x11c8] sm:$0xff]  ;;  %v19212_v55 = vcombine.low %v9719_v18, %v9723_v8 }
 0x8fb   : > { %15929 = vmatprep.subr.bf16.mxu1 %v19245_v49  ;;  %v9843_v63 = vld [vmem:[#allocation12 + $0x11e8] sm:$0xff] }
 0x8fc   : > { %v9967_v43 = vld [vmem:[#allocation12 + $0x15c8] sm:$0xff]  ;;  %v19333_v17 = vcombine.high %v9839_v54, %v9843_v63 }
 0x8fd   : > { %15889 = vmatpush2.bf16.msra.mxu0 %v19116_v2  ;;  %v9971_v44 = vld [vmem:[#allocation12 + $0x15e8] sm:$0xff]  ;;  %v19332_v2 = vcombine.low %v9839_v54, %v9843_v63 }
 0x8fe   : > { %15930 = vmatpush2.bf16.msra.mxu1 %v19244_v32  ;;  %15890 = vmatprep.subr.bf16.mxu0 %v19109_v25  ;;  %v19461_v49 = vcombine.high %v9967_v43, %v9971_v44  ;;  %v9831_v50 = vld [vmem:[#allocation12 + $0x1188] sm:$0xff]  ;;  %v19460_v32 = vcombine.low %v9967_v43, %v9971_v44 }
 0x8ff   : > { %15931 = vmatprep.subr.bf16.mxu1 %v19237_v52  ;;  %v9835_v23 = vld [vmem:[#allocation12 + $0x11a8] sm:$0xff] }
 0x900   : > { %v9959_v61 = vld [vmem:[#allocation12 + $0x1588] sm:$0xff]  ;;  %v19325_v25 = vcombine.high %v9831_v50, %v9835_v23 }
 0x901   : > { %15891 = vmatpush2.bf16.msra.mxu0 %v19108_v29  ;;  %v9963_v11 = vld [vmem:[#allocation12 + $0x15a8] sm:$0xff] }
 0x902   : > { %15932 = vmatpush2.bf16.msra.mxu1 %v19236_v10  ;;  %15892 = vmatprep.subr.bf16.mxu0 %v19101_v21  ;;  %v19453_v52 = vcombine.high %v9959_v61, %v9963_v11  ;;  %v9823_v59 = vld [vmem:[#allocation12 + $0x1148] sm:$0xff]  ;;  %v19452_v46 = vcombine.low %v9959_v61, %v9963_v11 }
 0x903   : > { %15933 = vmatprep.subr.bf16.mxu1 %v19229_v3  ;;  %v9827_v9 = vld [vmem:[#allocation12 + $0x1168] sm:$0xff]  ;;  %v19324_v3 = vcombine.low %v9831_v50, %v9835_v23 }
 0x904   : > { %v9951_v29 = vld [vmem:[#allocation12 + $0x1548] sm:$0xff]  ;;  %v19317_v20 = vcombine.high %v9823_v59, %v9827_v9 }
 0x905   : > { %15893 = vmatpush2.bf16.msra.mxu0 %v19100_v30  ;;  %v9955_v10 = vld [vmem:[#allocation12 + $0x1568] sm:$0xff] }
 0x906   : > { %15934 = vmatpush2.bf16.msra.mxu1 %v19228_v31  ;;  %15894 = vmatprep.subr.bf16.mxu0 %v19093_v34  ;;  %v19445_v34 = vcombine.high %v9951_v29, %v9955_v10  ;;  %v9819_v22 = vld [vmem:[#allocation12 + $0x1128] sm:$0xff] }
 0x907   : > { %15935 = vmatprep.subr.bf16.mxu1 %v19221_v42  ;;  %v9815_v42 = vld [vmem:[#allocation12 + $0x1108] sm:$0xff] }
 0x908   : > { %v9943_v18 = vld [vmem:[#allocation12 + $0x1508] sm:$0xff]  ;;  %v19309_v54 = vcombine.high %v9815_v42, %v9819_v22 }
 0x909   : > { %15895 = vmatpush2.bf16.msra.mxu0 %v19092_v15  ;;  %v9947_v8 = vld [vmem:[#allocation12 + $0x1528] sm:$0xff] }
 0x90a   : > { %15936 = vmatpush2.bf16.msra.mxu1 %v19220_v0  ;;  %15896 = vmatprep.subr.bf16.mxu0 %v19085_v38  ;;  %v19316_v0 = vcombine.low %v9823_v59, %v9827_v9  ;;  %v19437_v63 = vcombine.high %v9943_v18, %v9947_v8  ;;  %v9807_v43 = vld [vmem:[#allocation12 + $0x10c8] sm:$0xff] }
 0x90b   : > { %15937 = vmatprep.subr.bf16.mxu1 %v19213_v62  ;;  %v19444_v62 = vcombine.low %v9951_v29, %v9955_v10  ;;  %v9811_v44 = vld [vmem:[#allocation12 + $0x10e8] sm:$0xff] }
 0x90c   : > { %v19301_v50 = vcombine.high %v9807_v43, %v9811_v44  ;;  %v9799_v61 = vld [vmem:[#allocation12 + $0x1088] sm:$0xff] }
 0x90d   : > { %15897 = vmatpush2.bf16.msra.mxu0 %v19084_v45  ;;  %v9935_v45 = vld [vmem:[#allocation12 + $0x14c8] sm:$0xff] }
 0x90e   : > { %15938 = vmatpush2.bf16.msra.mxu1 %v19212_v55  ;;  %15948 = vmatprep.subr.bf16.mxu0 %v19333_v17  ;;  %v9939_v55 = vld [vmem:[#allocation12 + $0x14e8] sm:$0xff]  ;;  %v19308_v17 = vcombine.low %v9815_v42, %v9819_v22 }
 0x90f   : > { %15989 = vmatprep.subr.bf16.mxu1 %v19461_v49  ;;  %v19436_v49 = vcombine.low %v9943_v18, %v9947_v8  ;;  %v19429_v23 = vcombine.high %v9935_v45, %v9939_v55  ;;  %v9803_v11 = vld [vmem:[#allocation12 + $0x10a8] sm:$0xff] }
 0x910   : > { %v15654_v12 = vpop.f32.mrf.mxu0  ;;  %15899 = vmatmul.mubr.bf16.vlgmr.msra.gmra.mxu0 %v23763_v26  ;;  %v15695_v27 = vpop.f32.mrf.mxu1  ;;  %v19293_v59 = vcombine.high %v9799_v61, %v9803_v11  ;;  %v9919_v29 = vld [vmem:[#allocation12 + $0x1448] sm:$0xff] }
 0x911   : > { %v15655_v21 = vadd.f32 %v15654_v12, %v23827_v51  ;;  %15940 = vmatmul.mubr.bf16.vlgmr.msra.gmra.mxu1 %v23759_v24  ;;  %15949 = vmatpush1.bf16.msra.mxu0 %v19332_v2  ;;  %v9927_v2 = vld [vmem:[#allocation12 + $0x1488] sm:$0xff] }
 0x912   : > { %15990 = vmatpush1.bf16.msra.mxu1 %v19460_v32  ;;  %v15656_v60 = vpop.f32.mrf.mxu0  ;;  %v15697_v7 = vpop.f32.mrf.mxu1  ;;  %15950 = vmatprep.subr.bf16.mxu0 %v19325_v25  ;;  %v9931_v32 = vld [vmem:[#allocation12 + $0x14a8] sm:$0xff]  ;;  %v19300_v25 = vcombine.low %v9807_v43, %v9811_v44 }
 0x913   : > { %v15657_v30 = vadd.f32 %v15656_v60, %v23831_v37  ;;  %v23837_v31 = vadd.f32 %v15695_v27, %v15655_v21  ;;  %15991 = vmatprep.subr.bf16.mxu1 %v19453_v52  ;;  %15980 = vmatprep.mubr.bf16.mxu0 %v23765_v47  ;;  %v19428_v52 = vcombine.low %v9935_v45, %v9939_v55  ;;  %v9791_v12 = vld [vmem:[#allocation12 + $0x1048] sm:$0xff] }
 0x914   : > { %v15658_v51 = vpop.f32.mrf.mxu0  ;;  %v15699_v16 = vpop.f32.mrf.mxu1  ;;  %16021 = vmatprep.mubr.bf16.mxu1 %v23767_v13  ;;  %v19421_v9 = vcombine.high %v9927_v2, %v9931_v32  ;;  %v9795_v27 = vld [vmem:[#allocation12 + $0x1068] sm:$0xff]  ;;  %v19292_v21 = vcombine.low %v9799_v61, %v9803_v11 }
 0x915   : > { %v23841_v15 = vadd.f32 %v15697_v7, %v15657_v30  ;;  %15951 = vmatpush1.bf16.msra.mxu0 %v19324_v3  ;;  %v9923_v10 = vld [vmem:[#allocation12 + $0x1468] sm:$0xff]  ;;  %v19420_v3 = vcombine.low %v9927_v2, %v9931_v32  ;;  %v19285_v60 = vcombine.high %v9791_v12, %v9795_v27  ;;  %v19284_v42 = vcombine.low %v9791_v12, %v9795_v27 }
 0x916   : > { %15992 = vmatpush1.bf16.msra.mxu1 %v19452_v46  ;;  %v15659_v37 = vpop.f32.mrf.mxu0  ;;  %v15700_v38 = vpop.f32.mrf.mxu1  ;;  %15952 = vmatprep.subr.bf16.mxu0 %v19317_v20  ;;  %v19413_v7 = vcombine.high %v9919_v29, %v9923_v10  ;;  %v9783_v46 = vld [vmem:[#allocation12 + $0x1008] sm:$0xff]  ;;  %v19412_v22 = vcombine.low %v9919_v29, %v9923_v10 }
 0x917   : > { %15993 = vmatprep.subr.bf16.mxu1 %v19445_v34  ;;  %v9787_v20 = vld [vmem:[#allocation12 + $0x1028] sm:$0xff] }
 0x918   : > { %v9911_v30 = vld [vmem:[#allocation12 + $0x1408] sm:$0xff]  ;;  %v19277_v51 = vcombine.high %v9783_v46, %v9787_v20  ;;  %v19276_v38 = vcombine.low %v9783_v46, %v9787_v20 }
 0x919   : > { %15953 = vmatpush1.bf16.msra.mxu0 %v19316_v0  ;;  %v9915_v34 = vld [vmem:[#allocation12 + $0x1428] sm:$0xff] }
 0x91a   : > { %15994 = vmatpush1.bf16.msra.mxu1 %v19444_v62  ;;  %15954 = vmatprep.subr.bf16.mxu0 %v19309_v54  ;;  %v19405_v16 = vcombine.high %v9911_v30, %v9915_v34  ;;  %v9903_v18 = vld [vmem:[#allocation12 + $0x13c8] sm:$0xff]  ;;  %v19404_v62 = vcombine.low %v9911_v30, %v9915_v34 }
 0x91b   : > { %15995 = vmatprep.subr.bf16.mxu1 %v19437_v63  ;;  %v9907_v8 = vld [vmem:[#allocation12 + $0x13e8] sm:$0xff] }
 0x91c   : > { %v10031_v0 = vld [vmem:[#allocation12 + $0x17c8] sm:$0xff]  ;;  %v19397_v54 = vcombine.high %v9903_v18, %v9907_v8 }
 0x91d   : > { %15955 = vmatpush1.bf16.msra.mxu0 %v19308_v17  ;;  %v10035_v37 = vld [vmem:[#allocation12 + $0x17e8] sm:$0xff]  ;;  %v19396_v17 = vcombine.low %v9903_v18, %v9907_v8 }
 0x91e   : > { %15996 = vmatpush1.bf16.msra.mxu1 %v19436_v49  ;;  %15956 = vmatprep.subr.bf16.mxu0 %v19301_v50  ;;  %v19525_v63 = vcombine.high %v10031_v0, %v10035_v37  ;;  %v9895_v43 = vld [vmem:[#allocation12 + $0x1388] sm:$0xff]  ;;  %v19524_v49 = vcombine.low %v10031_v0, %v10035_v37 }
 0x91f   : > { %15997 = vmatprep.subr.bf16.mxu1 %v19429_v23  ;;  %v9899_v44 = vld [vmem:[#allocation12 + $0x13a8] sm:$0xff] }
 0x920   : > { %v10023_v45 = vld [vmem:[#allocation12 + $0x1788] sm:$0xff]  ;;  %v19389_v50 = vcombine.high %v9895_v43, %v9899_v44 }
 0x921   : > { %15957 = vmatpush1.bf16.msra.mxu0 %v19300_v25  ;;  %v10027_v55 = vld [vmem:[#allocation12 + $0x17a8] sm:$0xff]  ;;  %v19388_v25 = vcombine.low %v9895_v43, %v9899_v44 }
 0x922   : > { %15998 = vmatpush1.bf16.msra.mxu1 %v19428_v52  ;;  %15958 = vmatprep.subr.bf16.mxu0 %v19293_v59  ;;  %v19517_v23 = vcombine.high %v10023_v45, %v10027_v55  ;;  %v9887_v61 = vld [vmem:[#allocation12 + $0x1348] sm:$0xff]  ;;  %v19516_v52 = vcombine.low %v10023_v45, %v10027_v55 }
 0x923   : > { %15999 = vmatprep.subr.bf16.mxu1 %v19421_v9  ;;  %v9891_v11 = vld [vmem:[#allocation12 + $0x1368] sm:$0xff] }
 0x924   : > { %v10015_v2 = vld [vmem:[#allocation12 + $0x1748] sm:$0xff]  ;;  %v19381_v59 = vcombine.high %v9887_v61, %v9891_v11 }
 0x925   : > { %15959 = vmatpush1.bf16.msra.mxu0 %v19292_v21  ;;  %v10019_v32 = vld [vmem:[#allocation12 + $0x1768] sm:$0xff]  ;;  %v19380_v21 = vcombine.low %v9887_v61, %v9891_v11 }
 0x926   : > { %16000 = vmatpush1.bf16.msra.mxu1 %v19420_v3  ;;  %15960 = vmatprep.subr.bf16.mxu0 %v19285_v60  ;;  %v19509_v9 = vcombine.high %v10015_v2, %v10019_v32  ;;  %v9879_v12 = vld [vmem:[#allocation12 + $0x1308] sm:$0xff]  ;;  %v19508_v3 = vcombine.low %v10015_v2, %v10019_v32 }
 0x927   : > { %16001 = vmatprep.subr.bf16.mxu1 %v19413_v7  ;;  %v9883_v27 = vld [vmem:[#allocation12 + $0x1328] sm:$0xff] }
 0x928   : > { %v10007_v29 = vld [vmem:[#allocation12 + $0x1708] sm:$0xff]  ;;  %v19373_v60 = vcombine.high %v9879_v12, %v9883_v27 }
 0x929   : > { %15961 = vmatpush1.bf16.msra.mxu0 %v19284_v42  ;;  %v10011_v10 = vld [vmem:[#allocation12 + $0x1728] sm:$0xff]  ;;  %v19372_v42 = vcombine.low %v9879_v12, %v9883_v27 }
 0x92a   : > { %16002 = vmatpush1.bf16.msra.mxu1 %v19412_v22  ;;  %15962 = vmatprep.subr.bf16.mxu0 %v19277_v51  ;;  %v19501_v7 = vcombine.high %v10007_v29, %v10011_v10  ;;  %v9871_v46 = vld [vmem:[#allocation12 + $0x12c8] sm:$0xff]  ;;  %v19500_v22 = vcombine.low %v10007_v29, %v10011_v10 }
 0x92b   : > { %16003 = vmatprep.subr.bf16.mxu1 %v19405_v16  ;;  %v9875_v20 = vld [vmem:[#allocation12 + $0x12e8] sm:$0xff] }
 0x92c   : > { %v9999_v30 = vld [vmem:[#allocation12 + $0x16c8] sm:$0xff]  ;;  %v19365_v51 = vcombine.high %v9871_v46, %v9875_v20 }
 0x92d   : > { %15963 = vmatpush1.bf16.msra.mxu0 %v19276_v38  ;;  %v10003_v34 = vld [vmem:[#allocation12 + $0x16e8] sm:$0xff]  ;;  %v19364_v38 = vcombine.low %v9871_v46, %v9875_v20 }
 0x92e   : > { %16004 = vmatpush1.bf16.msra.mxu1 %v19404_v62  ;;  %15964 = vmatprep.subr.bf16.mxu0 %v19397_v54  ;;  %v19493_v16 = vcombine.high %v9999_v30, %v10003_v34  ;;  %v9863_v18 = vld [vmem:[#allocation12 + $0x1288] sm:$0xff]  ;;  %v19492_v62 = vcombine.low %v9999_v30, %v10003_v34 }
 0x92f   : > { %16005 = vmatprep.subr.bf16.mxu1 %v19525_v63  ;;  %v9867_v8 = vld [vmem:[#allocation12 + $0x12a8] sm:$0xff] }
 0x930   : > { %v9991_v0 = vld [vmem:[#allocation12 + $0x1688] sm:$0xff]  ;;  %v19357_v54 = vcombine.high %v9863_v18, %v9867_v8 }
 0x931   : > { %15965 = vmatpush2.bf16.msra.mxu0 %v19396_v17  ;;  %v9995_v37 = vld [vmem:[#allocation12 + $0x16a8] sm:$0xff]  ;;  %v19356_v17 = vcombine.low %v9863_v18, %v9867_v8 }
 0x932   : > { %16006 = vmatpush2.bf16.msra.mxu1 %v19524_v49  ;;  %15966 = vmatprep.subr.bf16.mxu0 %v19389_v50  ;;  %v19485_v63 = vcombine.high %v9991_v0, %v9995_v37  ;;  %v9855_v43 = vld [vmem:[#allocation12 + $0x1248] sm:$0xff]  ;;  %v19484_v49 = vcombine.low %v9991_v0, %v9995_v37 }
 0x933   : > { %16007 = vmatprep.subr.bf16.mxu1 %v19517_v23  ;;  %v9859_v44 = vld [vmem:[#allocation12 + $0x1268] sm:$0xff] }
 0x934   : > { %v9983_v45 = vld [vmem:[#allocation12 + $0x1648] sm:$0xff]  ;;  %v19349_v50 = vcombine.high %v9855_v43, %v9859_v44 }
 0x935   : > { %15967 = vmatpush2.bf16.msra.mxu0 %v19388_v25  ;;  %v9987_v55 = vld [vmem:[#allocation12 + $0x1668] sm:$0xff]  ;;  %v19348_v25 = vcombine.low %v9855_v43, %v9859_v44 }
 0x936   : > { %16008 = vmatpush2.bf16.msra.mxu1 %v19516_v52  ;;  %15968 = vmatprep.subr.bf16.mxu0 %v19381_v59  ;;  %v19477_v23 = vcombine.high %v9983_v45, %v9987_v55  ;;  %v9847_v61 = vld [vmem:[#allocation12 + $0x1208] sm:$0xff]  ;;  %v19476_v52 = vcombine.low %v9983_v45, %v9987_v55 }
 0x937   : > { %16009 = vmatprep.subr.bf16.mxu1 %v19509_v9  ;;  %v9851_v11 = vld [vmem:[#allocation12 + $0x1228] sm:$0xff] }
 0x938   : > { %v9975_v2 = vld [vmem:[#allocation12 + $0x1608] sm:$0xff]  ;;  %v19341_v59 = vcombine.high %v9847_v61, %v9851_v11 }
 0x939   : > { %15969 = vmatpush2.bf16.msra.mxu0 %v19380_v21  ;;  %v9979_v32 = vld [vmem:[#allocation12 + $0x1628] sm:$0xff]  ;;  %v19340_v21 = vcombine.low %v9847_v61, %v9851_v11 }
 0x93a   : > { %16010 = vmatpush2.bf16.msra.mxu1 %v19508_v3  ;;  %15970 = vmatprep.subr.bf16.mxu0 %v19373_v60  ;;  %v19469_v9 = vcombine.high %v9975_v2, %v9979_v32  ;;  %v10095_v12 = vld [vmem:[#allocation12 + $0x19c8] sm:$0xff]  ;;  %v19468_v3 = vcombine.low %v9975_v2, %v9979_v32 }
 0x93b   : > { %16011 = vmatprep.subr.bf16.mxu1 %v19501_v7  ;;  %v10099_v27 = vld [vmem:[#allocation12 + $0x19e8] sm:$0xff] }
 0x93c   : > { %v10223_v29 = vld [vmem:[#allocation12 + $0x1dc8] sm:$0xff]  ;;  %v19589_v60 = vcombine.high %v10095_v12, %v10099_v27 }
 0x93d   : > { %15971 = vmatpush2.bf16.msra.mxu0 %v19372_v42  ;;  %v10227_v10 = vld [vmem:[#allocation12 + $0x1de8] sm:$0xff]  ;;  %v19588_v42 = vcombine.low %v10095_v12, %v10099_v27 }
 0x93e   : > { %16012 = vmatpush2.bf16.msra.mxu1 %v19500_v22  ;;  %15972 = vmatprep.subr.bf16.mxu0 %v19365_v51  ;;  %v19717_v7 = vcombine.high %v10223_v29, %v10227_v10  ;;  %v10087_v46 = vld [vmem:[#allocation12 + $0x1988] sm:$0xff]  ;;  %v19716_v22 = vcombine.low %v10223_v29, %v10227_v10 }
 0x93f   : > { %16013 = vmatprep.subr.bf16.mxu1 %v19493_v16  ;;  %v10091_v20 = vld [vmem:[#allocation12 + $0x19a8] sm:$0xff] }
 0x940   : > { %v10215_v30 = vld [vmem:[#allocation12 + $0x1d88] sm:$0xff]  ;;  %v19581_v51 = vcombine.high %v10087_v46, %v10091_v20 }
 0x941   : > { %15973 = vmatpush2.bf16.msra.mxu0 %v19364_v38  ;;  %v10219_v34 = vld [vmem:[#allocation12 + $0x1da8] sm:$0xff] }
 0x942   : > { %16014 = vmatpush2.bf16.msra.mxu1 %v19492_v62  ;;  %15974 = vmatprep.subr.bf16.mxu0 %v19357_v54  ;;  %v19709_v16 = vcombine.high %v10215_v30, %v10219_v34  ;;  %v10079_v18 = vld [vmem:[#allocation12 + $0x1948] sm:$0xff]  ;;  %v19708_v45 = vcombine.low %v10215_v30, %v10219_v34 }
 0x943   : > { %16015 = vmatprep.subr.bf16.mxu1 %v19485_v63  ;;  %v10083_v8 = vld [vmem:[#allocation12 + $0x1968] sm:$0xff]  ;;  %v19580_v63 = vcombine.low %v10087_v46, %v10091_v20 }
 0x944   : > { %v10207_v38 = vld [vmem:[#allocation12 + $0x1d48] sm:$0xff]  ;;  %v19573_v55 = vcombine.high %v10079_v18, %v10083_v8 }
 0x945   : > { %15975 = vmatpush2.bf16.msra.mxu0 %v19356_v17  ;;  %v10211_v62 = vld [vmem:[#allocation12 + $0x1d68] sm:$0xff] }
 0x946   : > { %16016 = vmatpush2.bf16.msra.mxu1 %v19484_v49  ;;  %15976 = vmatprep.subr.bf16.mxu0 %v19349_v50  ;;  %v19701_v50 = vcombine.high %v10207_v38, %v10211_v62  ;;  %v10075_v61 = vld [vmem:[#allocation12 + $0x1928] sm:$0xff] }
 0x947   : > { %16017 = vmatprep.subr.bf16.mxu1 %v19477_v23  ;;  %v10071_v23 = vld [vmem:[#allocation12 + $0x1908] sm:$0xff] }
 0x948   : > { %v10199_v2 = vld [vmem:[#allocation12 + $0x1d08] sm:$0xff]  ;;  %v19565_v12 = vcombine.high %v10071_v23, %v10075_v61 }
 0x949   : > { %15977 = vmatpush2.bf16.msra.mxu0 %v19348_v25  ;;  %v10203_v32 = vld [vmem:[#allocation12 + $0x1d28] sm:$0xff] }
 0x94a   : > { %16018 = vmatpush2.bf16.msra.mxu1 %v19476_v52  ;;  %15978 = vmatprep.subr.bf16.mxu0 %v19341_v59  ;;  %v19572_v52 = vcombine.low %v10079_v18, %v10083_v8  ;;  %v19693_v27 = vcombine.high %v10199_v2, %v10203_v32  ;;  %v10063_v29 = vld [vmem:[#allocation12 + $0x18c8] sm:$0xff] }
 0x94b   : > { %16019 = vmatprep.subr.bf16.mxu1 %v19469_v9  ;;  %v19700_v9 = vcombine.low %v10207_v38, %v10211_v62  ;;  %v10067_v10 = vld [vmem:[#allocation12 + $0x18e8] sm:$0xff] }
 0x94c   : > { %v19557_v46 = vcombine.high %v10063_v29, %v10067_v10  ;;  %v10055_v30 = vld [vmem:[#allocation12 + $0x1888] sm:$0xff] }
 0x94d   : > { %15979 = vmatpush2.bf16.msra.mxu0 %v19340_v21  ;;  %v10191_v21 = vld [vmem:[#allocation12 + $0x1cc8] sm:$0xff] }
 0x94e   : > { %16020 = vmatpush2.bf16.msra.mxu1 %v19468_v3  ;;  %16030 = vmatprep.subr.bf16.mxu0 %v19589_v60  ;;  %v10195_v3 = vld [vmem:[#allocation12 + $0x1ce8] sm:$0xff]  ;;  %v19564_v60 = vcombine.low %v10071_v23, %v10075_v61 }
 0x94f   : > { %16071 = vmatprep.subr.bf16.mxu1 %v19717_v7  ;;  %v19692_v7 = vcombine.low %v10199_v2, %v10203_v32  ;;  %v19685_v20 = vcombine.high %v10191_v21, %v10195_v3  ;;  %v10059_v34 = vld [vmem:[#allocation12 + $0x18a8] sm:$0xff] }
 0x950   : > { %v15736_v0 = vpop.f32.mrf.mxu0  ;;  %15981 = vmatmul.mubr.bf16.vlgmr.msra.gmra.mxu0 %v23791_v1  ;;  %v15777_v37 = vpop.f32.mrf.mxu1  ;;  %v19549_v18 = vcombine.high %v10055_v30, %v10059_v34  ;;  %v10175_v38 = vld [vmem:[#allocation12 + $0x1c48] sm:$0xff] }
 0x951   : > { %v15737_v54 = vadd.f32 %v15736_v0, %v23837_v31  ;;  %16022 = vmatmul.mubr.bf16.vlgmr.msra.gmra.mxu1 %v23795_v56  ;;  %16031 = vmatpush1.bf16.msra.mxu0 %v19588_v42  ;;  %v10183_v42 = vld [vmem:[#allocation12 + $0x1c88] sm:$0xff] }
 0x952   : > { %16072 = vmatpush1.bf16.msra.mxu1 %v19716_v22  ;;  %v15738_v43 = vpop.f32.mrf.mxu0  ;;  %v15779_v44 = vpop.f32.mrf.mxu1  ;;  %16032 = vmatprep.subr.bf16.mxu0 %v19581_v51  ;;  %v10187_v22 = vld [vmem:[#allocation12 + $0x1ca8] sm:$0xff]  ;;  %v19556_v51 = vcombine.low %v10063_v29, %v10067_v10 }
 0x953   : > { %v15739_v17 = vadd.f32 %v15738_v43, %v23841_v15  ;;  %v23847_v49 = vadd.f32 %v15777_v37, %v15737_v54  ;;  %16073 = vmatprep.subr.bf16.mxu1 %v19709_v16  ;;  %16062 = vmatprep.mubr.bf16.mxu0 %v23797_v36  ;;  %v19684_v16 = vcombine.low %v10191_v21, %v10195_v3  ;;  %v10047_v0 = vld [vmem:[#allocation12 + $0x1848] sm:$0xff] }
 0x954   : > { %v15740_v31 = vpop.f32.mrf.mxu0  ;;  %v15781_v11 = vpop.f32.mrf.mxu1  ;;  %16103 = vmatprep.mubr.bf16.mxu1 %v23799_v40  ;;  %v19677_v8 = vcombine.high %v10183_v42, %v10187_v22  ;;  %v10051_v37 = vld [vmem:[#allocation12 + $0x1868] sm:$0xff]  ;;  %v19548_v54 = vcombine.low %v10055_v30, %v10059_v34 }
 0x955   : > { %v23851_v25 = vadd.f32 %v15779_v44, %v15739_v17  ;;  %16033 = vmatpush1.bf16.msra.mxu0 %v19580_v63  ;;  %v10179_v62 = vld [vmem:[#allocation12 + $0x1c68] sm:$0xff]  ;;  %v19676_v63 = vcombine.low %v10183_v42, %v10187_v22  ;;  %v19541_v43 = vcombine.high %v10047_v0, %v10051_v37  ;;  %v19540_v23 = vcombine.low %v10047_v0, %v10051_v37 }
 0x956   : > { %16074 = vmatpush1.bf16.msra.mxu1 %v19708_v45  ;;  %v15741_v15 = vpop.f32.mrf.mxu0  ;;  %v15782_v59 = vpop.f32.mrf.mxu1  ;;  %16034 = vmatprep.subr.bf16.mxu0 %v19573_v55  ;;  %v19669_v44 = vcombine.high %v10175_v38, %v10179_v62  ;;  %v10039_v45 = vld [vmem:[#allocation12 + $0x1808] sm:$0xff]  ;;  %v19668_v61 = vcombine.low %v10175_v38, %v10179_v62 }
 0x957   : > { %16075 = vmatprep.subr.bf16.mxu1 %v19701_v50  ;;  %v10043_v55 = vld [vmem:[#allocation12 + $0x1828] sm:$0xff] }
 0x958   : > { %v10167_v17 = vld [vmem:[#allocation12 + $0x1c08] sm:$0xff]  ;;  %v19533_v31 = vcombine.high %v10039_v45, %v10043_v55  ;;  %v19532_v59 = vcombine.low %v10039_v45, %v10043_v55 }
 0x959   : > { %16035 = vmatpush1.bf16.msra.mxu0 %v19572_v52  ;;  %v10171_v50 = vld [vmem:[#allocation12 + $0x1c28] sm:$0xff] }
 0x95a   : > { %16076 = vmatpush1.bf16.msra.mxu1 %v19700_v9  ;;  %16036 = vmatprep.subr.bf16.mxu0 %v19565_v12  ;;  %v19661_v11 = vcombine.high %v10167_v17, %v10171_v50  ;;  %v10159_v2 = vld [vmem:[#allocation12 + $0x1bc8] sm:$0xff]  ;;  %v19660_v9 = vcombine.low %v10167_v17, %v10171_v50 }
 0x95b   : > { %16077 = vmatprep.subr.bf16.mxu1 %v19693_v27  ;;  %v10163_v32 = vld [vmem:[#allocation12 + $0x1be8] sm:$0xff] }
 0x95c   : > { %v10287_v52 = vld [vmem:[#allocation12 + $0x1fc8] sm:$0xff]  ;;  %v19653_v12 = vcombine.high %v10159_v2, %v10163_v32 }
 0x95d   : > { %16037 = vmatpush1.bf16.msra.mxu0 %v19564_v60  ;;  %v10291_v15 = vld [vmem:[#allocation12 + $0x1fe8] sm:$0xff]  ;;  %v19652_v60 = vcombine.low %v10159_v2, %v10163_v32 }
 0x95e   : > { %16078 = vmatpush1.bf16.msra.mxu1 %v19692_v7  ;;  %16038 = vmatprep.subr.bf16.mxu0 %v19557_v46  ;;  %v19781_v27 = vcombine.high %v10287_v52, %v10291_v15  ;;  %v10151_v29 = vld [vmem:[#allocation12 + $0x1b88] sm:$0xff]  ;;  %v19780_v7 = vcombine.low %v10287_v52, %v10291_v15 }
 0x95f   : > { %16079 = vmatprep.subr.bf16.mxu1 %v19685_v20  ;;  %v10155_v10 = vld [vmem:[#allocation12 + $0x1ba8] sm:$0xff] }
 0x960   : > { %v10279_v21 = vld [vmem:[#allocation12 + $0x1f88] sm:$0xff]  ;;  %v19645_v46 = vcombine.high %v10151_v29, %v10155_v10 }
 0x961   : > { %16039 = vmatpush1.bf16.msra.mxu0 %v19556_v51  ;;  %v10283_v3 = vld [vmem:[#allocation12 + $0x1fa8] sm:$0xff]  ;;  %v19644_v51 = vcombine.low %v10151_v29, %v10155_v10 }
 0x962   : > { %16080 = vmatpush1.bf16.msra.mxu1 %v19684_v16  ;;  %16040 = vmatprep.subr.bf16.mxu0 %v19549_v18  ;;  %v19773_v20 = vcombine.high %v10279_v21, %v10283_v3  ;;  %v10143_v30 = vld [vmem:[#allocation12 + $0x1b48] sm:$0xff]  ;;  %v19772_v16 = vcombine.low %v10279_v21, %v10283_v3 }
 0x963   : > { %16081 = vmatprep.subr.bf16.mxu1 %v19677_v8  ;;  %v10147_v34 = vld [vmem:[#allocation12 + $0x1b68] sm:$0xff] }
 0x964   : > { %v10271_v42 = vld [vmem:[#allocation12 + $0x1f48] sm:$0xff]  ;;  %v19637_v18 = vcombine.high %v10143_v30, %v10147_v34 }
 0x965   : > { %16041 = vmatpush1.bf16.msra.mxu0 %v19548_v54  ;;  %v10275_v22 = vld [vmem:[#allocation12 + $0x1f68] sm:$0xff]  ;;  %v19636_v54 = vcombine.low %v10143_v30, %v10147_v34 }
 0x966   : > { %16082 = vmatpush1.bf16.msra.mxu1 %v19676_v63  ;;  %16042 = vmatprep.subr.bf16.mxu0 %v19541_v43  ;;  %v19765_v8 = vcombine.high %v10271_v42, %v10275_v22  ;;  %v10135_v0 = vld [vmem:[#allocation12 + $0x1b08] sm:$0xff]  ;;  %v19764_v63 = vcombine.low %v10271_v42, %v10275_v22 }
 0x967   : > { %16083 = vmatprep.subr.bf16.mxu1 %v19669_v44  ;;  %v10139_v37 = vld [vmem:[#allocation12 + $0x1b28] sm:$0xff] }
 0x968   : > { %v10263_v38 = vld [vmem:[#allocation12 + $0x1f08] sm:$0xff]  ;;  %v19629_v43 = vcombine.high %v10135_v0, %v10139_v37 }
 0x969   : > { %16043 = vmatpush1.bf16.msra.mxu0 %v19540_v23  ;;  %v10267_v62 = vld [vmem:[#allocation12 + $0x1f28] sm:$0xff]  ;;  %v19628_v23 = vcombine.low %v10135_v0, %v10139_v37  ;;  %v9328_v0 = vld [vmem:[#allocation12 + $0x1d0] sm:$0xff] }
 0x96a   : > { %16084 = vmatpush1.bf16.msra.mxu1 %v19668_v61  ;;  %16044 = vmatprep.subr.bf16.mxu0 %v19533_v31  ;;  %v19757_v44 = vcombine.high %v10263_v38, %v10267_v62  ;;  %v10127_v45 = vld [vmem:[#allocation12 + $0x1ac8] sm:$0xff]  ;;  %v19756_v61 = vcombine.low %v10263_v38, %v10267_v62  ;;  %v9332_v37 = vld [vmem:[#allocation12 + $0x1f0] sm:$0xff] }
 0x96b   : > { %16085 = vmatprep.subr.bf16.mxu1 %v19661_v11  ;;  %v10131_v55 = vld [vmem:[#allocation12 + $0x1ae8] sm:$0xff]  ;;  %v9456_v38 = vld [vmem:[#allocation12 + $0x5d0] sm:$0xff] }
 0x96c   : > { %v10255_v17 = vld [vmem:[#allocation12 + $0x1ec8] sm:$0xff]  ;;  %v19621_v31 = vcombine.high %v10127_v45, %v10131_v55  ;;  %v9460_v62 = vld [vmem:[#allocation12 + $0x5f0] sm:$0xff] }
 0x96d   : > { %16045 = vmatpush1.bf16.msra.mxu0 %v19532_v59  ;;  %v10259_v50 = vld [vmem:[#allocation12 + $0x1ee8] sm:$0xff]  ;;  %v19620_v59 = vcombine.low %v10127_v45, %v10131_v55  ;;  %v9320_v45 = vld [vmem:[#allocation12 + $0x190] sm:$0xff] }
 0x96e   : > { %16086 = vmatpush1.bf16.msra.mxu1 %v19660_v9  ;;  %16046 = vmatprep.subr.bf16.mxu0 %v19653_v12  ;;  %v19749_v11 = vcombine.high %v10255_v17, %v10259_v50  ;;  %v10119_v2 = vld [vmem:[#allocation12 + $0x1a88] sm:$0xff]  ;;  %v19748_v9 = vcombine.low %v10255_v17, %v10259_v50  ;;  %v9324_v55 = vld [vmem:[#allocation12 + $0x1b0] sm:$0xff]  ;;  %v21485_v17 = vld [vmem:[#allocation14] sm:$0xff] }
 0x96f   : > { %16087 = vmatprep.subr.bf16.mxu1 %v19781_v27  ;;  %v10123_v32 = vld [vmem:[#allocation12 + $0x1aa8] sm:$0xff]  ;;  %v10307_v50 = vrot.slane %v21485_v17, %v23625_v39 }
 0x970   : > { %v10247_v52 = vld [vmem:[#allocation12 + $0x1e88] sm:$0xff]  ;;  %v19613_v12 = vcombine.high %v10119_v2, %v10123_v32 }
 0x971   : > { %16047 = vmatpush2.bf16.msra.mxu0 %v19652_v60  ;;  %v10251_v15 = vld [vmem:[#allocation12 + $0x1ea8] sm:$0xff]  ;;  %v19612_v60 = vcombine.low %v10119_v2, %v10123_v32  ;;  %v10311_v2 = vrot.slane %v21485_v17, %v23628_v6  ;;  %v18815_v32 = vcombine.high %v9320_v45, %v9324_v55  ;;  %v9428_v17 = vld [vmem:[#allocation12 + $0x4f0] sm:$0xff] }
 0x972   : > { %16088 = vmatpush2.bf16.msra.mxu1 %v19780_v7  ;;  %16048 = vmatprep.subr.bf16.mxu0 %v19645_v46  ;;  %v19741_v27 = vcombine.high %v10247_v52, %v10251_v15  ;;  %v10111_v29 = vld [vmem:[#allocation12 + $0x1a48] sm:$0xff]  ;;  %v19740_v7 = vcombine.low %v10247_v52, %v10251_v15  ;;  %v9312_v52 = vld [vmem:[#allocation12 + $0x150] sm:$0xff] }
 0x973   : > { %16089 = vmatprep.subr.bf16.mxu1 %v19773_v20  ;;  %v10115_v10 = vld [vmem:[#allocation12 + $0x1a68] sm:$0xff]  ;;  %v9316_v15 = vld [vmem:[#allocation12 + $0x170] sm:$0xff] }
 0x974   : > { %v10239_v21 = vld [vmem:[#allocation12 + $0x1e48] sm:$0xff]  ;;  %v19605_v46 = vcombine.high %v10111_v29, %v10115_v10 }
 0x975   : > { %16049 = vmatpush2.bf16.msra.mxu0 %v19644_v51  ;;  %v10243_v3 = vld [vmem:[#allocation12 + $0x1e68] sm:$0xff]  ;;  %v19604_v51 = vcombine.low %v10111_v29, %v10115_v10 }
 0x976   : > { %16090 = vmatpush2.bf16.msra.mxu1 %v19772_v16  ;;  %16050 = vmatprep.subr.bf16.mxu0 %v19637_v18  ;;  %v19733_v20 = vcombine.high %v10239_v21, %v10243_v3  ;;  %v10103_v30 = vld [vmem:[#allocation12 + $0x1a08] sm:$0xff]  ;;  %v19732_v16 = vcombine.low %v10239_v21, %v10243_v3  ;;  %v18814_v21 = vcombine.low %v9320_v45, %v9324_v55  ;;  %v9300_v45 = vld [vmem:[#allocation12 + $0xf0] sm:$0xff] }
 0x977   : > { %16091 = vmatprep.subr.bf16.mxu1 %v19765_v8  ;;  %v10107_v34 = vld [vmem:[#allocation12 + $0x1a28] sm:$0xff]  ;;  %v9424_v55 = vld [vmem:[#allocation12 + $0x4d0] sm:$0xff] }
 0x978   : > { %v10231_v42 = vld [vmem:[#allocation12 + $0x1e08] sm:$0xff]  ;;  %v19597_v18 = vcombine.high %v10103_v30, %v10107_v34 }
 0x979   : > { %16051 = vmatpush2.bf16.msra.mxu0 %v19636_v54  ;;  %v10235_v22 = vld [vmem:[#allocation12 + $0x1e28] sm:$0xff]  ;;  %v19596_v54 = vcombine.low %v10103_v30, %v10107_v34 }
 0x97a   : > { %16092 = vmatpush2.bf16.msra.mxu1 %v19764_v63  ;;  %16052 = vmatprep.subr.bf16.mxu0 %v19629_v43  ;;  %v19725_v8 = vcombine.high %v10231_v42, %v10235_v22  ;;  %v19724_v63 = vcombine.low %v10231_v42, %v10235_v22  ;;  %v18823_v43 = vcombine.high %v9328_v0, %v9332_v37  ;;  %v9304_v42 = vld [vmem:[#allocation12 + $0x110] sm:$0xff] }
 0x97b   : > { %16093 = vmatprep.subr.bf16.mxu1 %v19757_v44  ;;  %v18951_v44 = vcombine.high %v9456_v38, %v9460_v62  ;;  %v9308_v22 = vld [vmem:[#allocation12 + $0x130] sm:$0xff] }
 0x97d   : > { %16053 = vmatpush2.bf16.msra.mxu0 %v19628_v23  ;;  %v18822_v23 = vcombine.low %v9328_v0, %v9332_v37  ;;  %v18806_v37 = vcombine.low %v9312_v52, %v9316_v15 }
 0x97e   : > { %16094 = vmatpush2.bf16.msra.mxu1 %v19756_v61  ;;  %16054 = vmatprep.subr.bf16.mxu0 %v19621_v31  ;;  %v9448_v61 = vld [vmem:[#allocation12 + $0x590] sm:$0xff] }
 0x97f   : > { %16095 = vmatprep.subr.bf16.mxu1 %v19749_v11  ;;  %v9452_v31 = vld [vmem:[#allocation12 + $0x5b0] sm:$0xff]  ;;  %v18950_v11 = vcombine.low %v9456_v38, %v9460_v62 }
 0x981   : > { %16055 = vmatpush2.bf16.msra.mxu0 %v19620_v59 }
 0x982   : > { %16096 = vmatpush2.bf16.msra.mxu1 %v19748_v9  ;;  %16056 = vmatprep.subr.bf16.mxu0 %v19613_v12  ;;  %v18943_v9 = vcombine.high %v9448_v61, %v9452_v31  ;;  %v9440_v12 = vld [vmem:[#allocation12 + $0x550] sm:$0xff] }
 0x983   : > { %16097 = vmatprep.subr.bf16.mxu1 %v19741_v27  ;;  %v9444_v27 = vld [vmem:[#allocation12 + $0x570] sm:$0xff] }
 0x984   : > { %v18935_v34 = vcombine.high %v9440_v12, %v9444_v27  ;;  %v18934_v62 = vcombine.low %v9440_v12, %v9444_v27  ;;  %v9280_v27 = vld [vmem:[#allocation12 + $0x50] sm:$0xff] }
 0x985   : > { %16057 = vmatpush2.bf16.msra.mxu0 %v19612_v60  ;;  %v18942_v60 = vcombine.low %v9448_v61, %v9452_v31  ;;  %v18919_v31 = vcombine.high %v9424_v55, %v9428_v17 }
 0x986   : > { %16098 = vmatpush2.bf16.msra.mxu1 %v19740_v7  ;;  %16058 = vmatprep.subr.bf16.mxu0 %v19605_v46  ;;  %v18807_v7 = vcombine.high %v9312_v52, %v9316_v15  ;;  %v9420_v52 = vld [vmem:[#allocation12 + $0x4b0] sm:$0xff] }
 0x987   : > { %16099 = vmatprep.subr.bf16.mxu1 %v19733_v20 }
 0x989   : > { %16059 = vmatpush2.bf16.msra.mxu0 %v19604_v51 }
 0x98a   : > { %16100 = vmatpush2.bf16.msra.mxu1 %v19732_v16  ;;  %16060 = vmatprep.subr.bf16.mxu0 %v19597_v18  ;;  %v9432_v16 = vld [vmem:[#allocation12 + $0x510] sm:$0xff] }
 0x98b   : > { %16101 = vmatprep.subr.bf16.mxu1 %v19725_v8  ;;  %v9436_v18 = vld [vmem:[#allocation12 + $0x530] sm:$0xff] }
 0x98d   : > { %16061 = vmatpush2.bf16.msra.mxu0 %v19596_v54  ;;  %v18799_v54 = vcombine.high %v9304_v42, %v9308_v22 }
 0x98e   : > { %16102 = vmatpush2.bf16.msra.mxu1 %v19724_v63  ;;  %16112 = vmatprep.subr.bf16.mxu0 %v18823_v43  ;;  %v18927_v43 = vcombine.high %v9432_v16, %v9436_v18 }
 0x98f   : > { %16153 = vmatprep.subr.bf16.mxu1 %v18951_v44  ;;  %v9296_v44 = vld [vmem:[#allocation12 + $0xd0] sm:$0xff] }
 0x990   : > { %v15818_v59 = vpop.f32.mrf.mxu0  ;;  %16063 = vmatmul.mubr.bf16.vlgmr.msra.gmra.mxu0 %v23807_v57  ;;  %v18791_v61 = vcombine.high %v9296_v44, %v9300_v45  ;;  %v18790_v15 = vcombine.low %v9296_v44, %v9300_v45 }
 0x991   : > { %v15819_v29 = vadd.f32 %v15818_v59, %v10307_v50  ;;  %v15859_v10 = vpop.f32.mrf.mxu1  ;;  %16104 = vmatmul.mubr.bf16.vlgmr.msra.gmra.mxu1 %v23811_v58  ;;  %16113 = vmatpush1.bf16.msra.mxu0 %v18822_v23  ;;  %v18798_v50 = vcombine.low %v9304_v42, %v9308_v22  ;;  %v18926_v23 = vcombine.low %v9432_v16, %v9436_v18  ;;  %v9400_v42 = vld [vmem:[#allocation12 + $0x410] sm:$0xff] }
 0x992   : > { %16144 = vmatprep.mubr.bf16.mxu0 %v23718_v5  ;;  %16154 = vmatpush1.bf16.msra.mxu1 %v18950_v11  ;;  %v15820_v3 = vpop.f32.mrf.mxu0  ;;  %v9288_v11 = vld [vmem:[#allocation12 + $0x90] sm:$0xff]  ;;  %v18918_v59 = vcombine.low %v9424_v55, %v9428_v17 }
 0x993   : > { %v23858_v46 = vadd.f32 %v15859_v10, %v15819_v29  ;;  %16185 = vmatprep.mubr.bf16.mxu1 %v23720_v14  ;;  %v15821_v20 = vadd.f32 %v15820_v3, %v10311_v2  ;;  %v15861_v30 = vpop.f32.mrf.mxu1  ;;  %16114 = vmatprep.subr.bf16.mxu0 %v18815_v32  ;;  %v9292_v2 = vld [vmem:[#allocation12 + $0xb0] sm:$0xff] }
 0x994   : > { %v15822_v51 = vpop.f32.mrf.mxu0  ;;  %16155 = vmatprep.subr.bf16.mxu1 %v18943_v9  ;;  %v9416_v32 = vld [vmem:[#allocation12 + $0x490] sm:$0xff]  ;;  %v18783_v9 = vcombine.high %v9288_v11, %v9292_v2  ;;  %v18782_v3 = vcombine.low %v9288_v11, %v9292_v2 }
 0x995   : > { %v23861_v8 = vadd.f32 %v15861_v30, %v15821_v20  ;;  %v15863_v0 = vpop.f32.mrf.mxu1  ;;  %16115 = vmatpush1.bf16.msra.mxu0 %v18814_v21  ;;  %v18911_v12 = vcombine.high %v9416_v32, %v9420_v52  ;;  %v9284_v29 = vld [vmem:[#allocation12 + $0x70] sm:$0xff] }
 0x996   : > { %16156 = vmatpush1.bf16.msra.mxu1 %v18942_v60  ;;  %v15823_v38 = vpop.f32.mrf.mxu0  ;;  %16116 = vmatprep.subr.bf16.mxu0 %v18807_v7  ;;  %v9408_v10 = vld [vmem:[#allocation12 + $0x450] sm:$0xff]  ;;  %v18910_v60 = vcombine.low %v9416_v32, %v9420_v52  ;;  %v18775_v7 = vcombine.high %v9280_v27, %v9284_v29  ;;  %v18774_v51 = vcombine.low %v9280_v27, %v9284_v29 }
 0x997   : > { %v15864_v63 = vpop.f32.mrf.mxu1  ;;  %16157 = vmatprep.subr.bf16.mxu1 %v18935_v34  ;;  %v9412_v21 = vld [vmem:[#allocation12 + $0x470] sm:$0xff] }
 0x998   : > { %v18903_v20 = vcombine.high %v9408_v10, %v9412_v21  ;;  %v9272_v30 = vld [vmem:[#allocation12 + $0x10] sm:$0xff]  ;;  %v18902_v16 = vcombine.low %v9408_v10, %v9412_v21 }
 0x999   : > { %16117 = vmatpush1.bf16.msra.mxu0 %v18806_v37  ;;  %v9276_v34 = vld [vmem:[#allocation12 + $0x30] sm:$0xff] }
 0x99a   : > { %16158 = vmatpush1.bf16.msra.mxu1 %v18934_v62  ;;  %16118 = vmatprep.subr.bf16.mxu0 %v18799_v54  ;;  %v9404_v22 = vld [vmem:[#allocation12 + $0x430] sm:$0xff]  ;;  %v18767_v18 = vcombine.high %v9272_v30, %v9276_v34  ;;  %v18766_v63 = vcombine.low %v9272_v30, %v9276_v34 }
 0x99b   : > { %16159 = vmatprep.subr.bf16.mxu1 %v18927_v43  ;;  %v18895_v0 = vcombine.high %v9400_v42, %v9404_v22  ;;  %v9392_v37 = vld [vmem:[#allocation12 + $0x3d0] sm:$0xff]  ;;  %v18894_v43 = vcombine.low %v9400_v42, %v9404_v22 }
 0x99c   : > { %v9396_v38 = vld [vmem:[#allocation12 + $0x3f0] sm:$0xff] }
 0x99d   : > { %16119 = vmatpush1.bf16.msra.mxu0 %v18798_v50  ;;  %v9520_v62 = vld [vmem:[#allocation12 + $0x7d0] sm:$0xff]  ;;  %v18887_v44 = vcombine.high %v9392_v37, %v9396_v38 }
 0x99e   : > { %16160 = vmatpush1.bf16.msra.mxu1 %v18926_v23  ;;  %16120 = vmatprep.subr.bf16.mxu0 %v18791_v61  ;;  %v9524_v54 = vld [vmem:[#allocation12 + $0x7f0] sm:$0xff]  ;;  %v18886_v61 = vcombine.low %v9392_v37, %v9396_v38 }
 0x99f   : > { %16161 = vmatprep.subr.bf16.mxu1 %v18919_v31  ;;  %v19015_v45 = vcombine.high %v9520_v62, %v9524_v54  ;;  %v9384_v55 = vld [vmem:[#allocation12 + $0x390] sm:$0xff]  ;;  %v19014_v31 = vcombine.low %v9520_v62, %v9524_v54 }
 0x9a0   : > { %v9388_v17 = vld [vmem:[#allocation12 + $0x3b0] sm:$0xff] }
 0x9a1   : > { %16121 = vmatpush1.bf16.msra.mxu0 %v18790_v15  ;;  %v9512_v50 = vld [vmem:[#allocation12 + $0x790] sm:$0xff]  ;;  %v18879_v11 = vcombine.high %v9384_v55, %v9388_v17 }
 0x9a2   : > { %16162 = vmatpush1.bf16.msra.mxu1 %v18918_v59  ;;  %16122 = vmatprep.subr.bf16.mxu0 %v18783_v9  ;;  %v9516_v23 = vld [vmem:[#allocation12 + $0x7b0] sm:$0xff]  ;;  %v18878_v9 = vcombine.low %v9384_v55, %v9388_v17 }
 0x9a3   : > { %16163 = vmatprep.subr.bf16.mxu1 %v18911_v12  ;;  %v19007_v2 = vcombine.high %v9512_v50, %v9516_v23  ;;  %v9376_v32 = vld [vmem:[#allocation12 + $0x350] sm:$0xff]  ;;  %v19006_v12 = vcombine.low %v9512_v50, %v9516_v23 }
 0x9a4   : > { %v9380_v52 = vld [vmem:[#allocation12 + $0x370] sm:$0xff] }
 0x9a5   : > { %16123 = vmatpush1.bf16.msra.mxu0 %v18782_v3  ;;  %v9504_v15 = vld [vmem:[#allocation12 + $0x750] sm:$0xff]  ;;  %v18871_v27 = vcombine.high %v9376_v32, %v9380_v52 }
 0x9a6   : > { %16164 = vmatpush1.bf16.msra.mxu1 %v18910_v60  ;;  %16124 = vmatprep.subr.bf16.mxu0 %v18775_v7  ;;  %v9508_v59 = vld [vmem:[#allocation12 + $0x770] sm:$0xff]  ;;  %v18870_v7 = vcombine.low %v9376_v32, %v9380_v52 }
 0x9a7   : > { %16165 = vmatprep.subr.bf16.mxu1 %v18903_v20  ;;  %v18999_v29 = vcombine.high %v9504_v15, %v9508_v59  ;;  %v9368_v10 = vld [vmem:[#allocation12 + $0x310] sm:$0xff]  ;;  %v18998_v20 = vcombine.low %v9504_v15, %v9508_v59 }
 0x9a8   : > { %v9372_v21 = vld [vmem:[#allocation12 + $0x330] sm:$0xff] }
 0x9a9   : > { %16125 = vmatpush1.bf16.msra.mxu0 %v18774_v51  ;;  %v9496_v3 = vld [vmem:[#allocation12 + $0x710] sm:$0xff]  ;;  %v18863_v30 = vcombine.high %v9368_v10, %v9372_v21 }
 0x9aa   : > { %16166 = vmatpush1.bf16.msra.mxu1 %v18902_v16  ;;  %16126 = vmatprep.subr.bf16.mxu0 %v18767_v18  ;;  %v9500_v60 = vld [vmem:[#allocation12 + $0x730] sm:$0xff]  ;;  %v18862_v18 = vcombine.low %v9368_v10, %v9372_v21 }
 0x9ab   : > { %16167 = vmatprep.subr.bf16.mxu1 %v18895_v0  ;;  %v18991_v34 = vcombine.high %v9496_v3, %v9500_v60  ;;  %v9360_v42 = vld [vmem:[#allocation12 + $0x2d0] sm:$0xff]  ;;  %v18990_v0 = vcombine.low %v9496_v3, %v9500_v60 }
 0x9ac   : > { %v9364_v22 = vld [vmem:[#allocation12 + $0x2f0] sm:$0xff] }
 0x9ad   : > { %16127 = vmatpush1.bf16.msra.mxu0 %v18766_v63  ;;  %v9488_v51 = vld [vmem:[#allocation12 + $0x6d0] sm:$0xff]  ;;  %v18855_v37 = vcombine.high %v9360_v42, %v9364_v22 }
 0x9ae   : > { %16168 = vmatpush1.bf16.msra.mxu1 %v18894_v43  ;;  %16128 = vmatprep.subr.bf16.mxu0 %v18887_v44  ;;  %v9492_v16 = vld [vmem:[#allocation12 + $0x6f0] sm:$0xff]  ;;  %v18854_v44 = vcombine.low %v9360_v42, %v9364_v22 }
 0x9af   : > { %16169 = vmatprep.subr.bf16.mxu1 %v19015_v45  ;;  %v18983_v38 = vcombine.high %v9488_v51, %v9492_v16  ;;  %v9352_v62 = vld [vmem:[#allocation12 + $0x290] sm:$0xff]  ;;  %v18982_v45 = vcombine.low %v9488_v51, %v9492_v16 }
 0x9b0   : > { %v9356_v54 = vld [vmem:[#allocation12 + $0x2b0] sm:$0xff] }
 0x9b1   : > { %16129 = vmatpush2.bf16.msra.mxu0 %v18886_v61  ;;  %v9480_v63 = vld [vmem:[#allocation12 + $0x690] sm:$0xff]  ;;  %v18847_v55 = vcombine.high %v9352_v62, %v9356_v54 }
 0x9b2   : > { %16170 = vmatpush2.bf16.msra.mxu1 %v19014_v31  ;;  %16130 = vmatprep.subr.bf16.mxu0 %v18879_v11  ;;  %v9484_v43 = vld [vmem:[#allocation12 + $0x6b0] sm:$0xff]  ;;  %v18846_v11 = vcombine.low %v9352_v62, %v9356_v54 }
 0x9b3   : > { %16171 = vmatprep.subr.bf16.mxu1 %v19007_v2  ;;  %v18975_v17 = vcombine.high %v9480_v63, %v9484_v43  ;;  %v9344_v50 = vld [vmem:[#allocation12 + $0x250] sm:$0xff]  ;;  %v18974_v2 = vcombine.low %v9480_v63, %v9484_v43 }
 0x9b4   : > { %v9348_v23 = vld [vmem:[#allocation12 + $0x270] sm:$0xff] }
 0x9b5   : > { %16131 = vmatpush2.bf16.msra.mxu0 %v18878_v9  ;;  %v9472_v61 = vld [vmem:[#allocation12 + $0x650] sm:$0xff]  ;;  %v18839_v32 = vcombine.high %v9344_v50, %v9348_v23 }
 0x9b6   : > { %16172 = vmatpush2.bf16.msra.mxu1 %v19006_v12  ;;  %16132 = vmatprep.subr.bf16.mxu0 %v18871_v27  ;;  %v9476_v31 = vld [vmem:[#allocation12 + $0x670] sm:$0xff]  ;;  %v18838_v27 = vcombine.low %v9344_v50, %v9348_v23 }
 0x9b7   : > { %16173 = vmatprep.subr.bf16.mxu1 %v18999_v29  ;;  %v18967_v52 = vcombine.high %v9472_v61, %v9476_v31  ;;  %v9336_v15 = vld [vmem:[#allocation12 + $0x210] sm:$0xff]  ;;  %v18966_v29 = vcombine.low %v9472_v61, %v9476_v31 }
 0x9b8   : > { %v9340_v59 = vld [vmem:[#allocation12 + $0x230] sm:$0xff] }
 0x9b9   : > { %16133 = vmatpush2.bf16.msra.mxu0 %v18870_v7  ;;  %v9464_v9 = vld [vmem:[#allocation12 + $0x610] sm:$0xff]  ;;  %v18831_v10 = vcombine.high %v9336_v15, %v9340_v59 }
 0x9ba   : > { %16174 = vmatpush2.bf16.msra.mxu1 %v18998_v20  ;;  %16134 = vmatprep.subr.bf16.mxu0 %v18863_v30  ;;  %v9468_v12 = vld [vmem:[#allocation12 + $0x630] sm:$0xff]  ;;  %v18830_v30 = vcombine.low %v9336_v15, %v9340_v59 }
 0x9bb   : > { %16175 = vmatprep.subr.bf16.mxu1 %v18991_v34  ;;  %v18959_v21 = vcombine.high %v9464_v9, %v9468_v12  ;;  %v9584_v3 = vld [vmem:[#allocation12 + $0x9d0] sm:$0xff]  ;;  %v18958_v34 = vcombine.low %v9464_v9, %v9468_v12 }
 0x9bc   : > { %v9588_v60 = vld [vmem:[#allocation12 + $0x9f0] sm:$0xff] }
 0x9bd   : > { %16135 = vmatpush2.bf16.msra.mxu0 %v18862_v18  ;;  %v9712_v7 = vld [vmem:[#allocation12 + $0xdd0] sm:$0xff]  ;;  %v19079_v42 = vcombine.high %v9584_v3, %v9588_v60  ;;  %v19078_v18 = vcombine.low %v9584_v3, %v9588_v60 }
 0x9be   : > { %16176 = vmatpush2.bf16.msra.mxu1 %v18990_v0  ;;  %16136 = vmatprep.subr.bf16.mxu0 %v18855_v37  ;;  %v9716_v20 = vld [vmem:[#allocation12 + $0xdf0] sm:$0xff] }
 0x9bf   : > { %16177 = vmatprep.subr.bf16.mxu1 %v18983_v38  ;;  %v19207_v22 = vcombine.high %v9712_v7, %v9716_v20  ;;  %v9576_v51 = vld [vmem:[#allocation12 + $0x990] sm:$0xff]  ;;  %v19206_v38 = vcombine.low %v9712_v7, %v9716_v20 }
 0x9c0   : > { %v9580_v16 = vld [vmem:[#allocation12 + $0x9b0] sm:$0xff] }
 0x9c1   : > { %16137 = vmatpush2.bf16.msra.mxu0 %v18854_v44  ;;  %v9704_v0 = vld [vmem:[#allocation12 + $0xd90] sm:$0xff]  ;;  %v19071_v62 = vcombine.high %v9576_v51, %v9580_v16  ;;  %v19070_v23 = vcombine.low %v9576_v51, %v9580_v16 }
 0x9c2   : > { %16178 = vmatpush2.bf16.msra.mxu1 %v18982_v45  ;;  %16138 = vmatprep.subr.bf16.mxu0 %v18847_v55  ;;  %v9708_v37 = vld [vmem:[#allocation12 + $0xdb0] sm:$0xff] }
 0x9c3   : > { %16179 = vmatprep.subr.bf16.mxu1 %v18975_v17  ;;  %v9568_v54 = vld [vmem:[#allocation12 + $0x950] sm:$0xff]  ;;  %v19199_v44 = vcombine.high %v9704_v0, %v9708_v37  ;;  %v19198_v31 = vcombine.low %v9704_v0, %v9708_v37 }
 0x9c4   : > { %v9572_v63 = vld [vmem:[#allocation12 + $0x970] sm:$0xff] }
 0x9c5   : > { %16139 = vmatpush2.bf16.msra.mxu0 %v18846_v11  ;;  %v9696_v45 = vld [vmem:[#allocation12 + $0xd50] sm:$0xff]  ;;  %v19063_v11 = vcombine.high %v9568_v54, %v9572_v63 }
 0x9c6   : > { %16180 = vmatpush2.bf16.msra.mxu1 %v18974_v2  ;;  %16140 = vmatprep.subr.bf16.mxu0 %v18839_v32  ;;  %v9700_v55 = vld [vmem:[#allocation12 + $0xd70] sm:$0xff] }
 0x9c7   : > { %16181 = vmatprep.subr.bf16.mxu1 %v18967_v52  ;;  %v9560_v15 = vld [vmem:[#allocation12 + $0x910] sm:$0xff]  ;;  %v19190_v60 = vcombine.low %v9696_v45, %v9700_v55 }
 0x9c8   : > { %v9564_v59 = vld [vmem:[#allocation12 + $0x930] sm:$0xff] }
 0x9c9   : > { %16141 = vmatpush2.bf16.msra.mxu0 %v18838_v27  ;;  %v9688_v12 = vld [vmem:[#allocation12 + $0xd10] sm:$0xff]  ;;  %v19055_v7 = vcombine.high %v9560_v15, %v9564_v59  ;;  %v19054_v51 = vcombine.low %v9560_v15, %v9564_v59 }
 0x9ca   : > { %16182 = vmatpush2.bf16.msra.mxu1 %v18966_v29  ;;  %16142 = vmatprep.subr.bf16.mxu0 %v18831_v10  ;;  %v9692_v27 = vld [vmem:[#allocation12 + $0xd30] sm:$0xff] }
 0x9cb   : > { %16183 = vmatprep.subr.bf16.mxu1 %v18959_v21  ;;  %v19062_v21 = vcombine.low %v9568_v54, %v9572_v63  ;;  %v19183_v20 = vcombine.high %v9688_v12, %v9692_v27  ;;  %v19182_v16 = vcombine.low %v9688_v12, %v9692_v27  ;;  %v9544_v37 = vld [vmem:[#allocation12 + $0x890] sm:$0xff] }
 0x9cc   : > { %v9676_v54 = vld [vmem:[#allocation12 + $0xcb0] sm:$0xff] }
 0x9cd   : > { %16143 = vmatpush2.bf16.msra.mxu0 %v18830_v30  ;;  %v9552_v30 = vld [vmem:[#allocation12 + $0x8d0] sm:$0xff] }
 0x9ce   : > { %16184 = vmatpush2.bf16.msra.mxu1 %v18958_v34  ;;  %16194 = vmatprep.subr.bf16.mxu0 %v19079_v42  ;;  %v9556_v34 = vld [vmem:[#allocation12 + $0x8f0] sm:$0xff] }
 0x9cf   : > { %16235 = vmatprep.subr.bf16.mxu1 %v19207_v22  ;;  %v9680_v42 = vld [vmem:[#allocation12 + $0xcd0] sm:$0xff]  ;;  %v19046_v63 = vcombine.low %v9552_v30, %v9556_v34 }
 0x9d0   : > { %v15900_v43 = vpop.f32.mrf.mxu0  ;;  %16145 = vmatmul.mubr.bf16.vlgmr.msra.gmra.mxu0 %v23722_v28  ;;  %v9684_v22 = vld [vmem:[#allocation12 + $0xcf0] sm:$0xff] }
 0x9d1   : > { %v15901_v17 = vadd.f32 %v15900_v43, %v23858_v46  ;;  %v15941_v50 = vpop.f32.mrf.mxu1  ;;  %16186 = vmatmul.mubr.bf16.vlgmr.msra.gmra.mxu1 %v23716_v53  ;;  %16195 = vmatpush1.bf16.msra.mxu0 %v19078_v18  ;;  %v19191_v46 = vcombine.high %v9696_v45, %v9700_v55  ;;  %v19047_v18 = vcombine.high %v9552_v30, %v9556_v34  ;;  %v9536_v55 = vld [vmem:[#allocation12 + $0x850] sm:$0xff] }
 0x9d2   : > { %16226 = vmatprep.mubr.bf16.mxu0 %v23732_v33  ;;  %16236 = vmatpush1.bf16.msra.mxu1 %v19206_v38  ;;  %v15902_v61 = vpop.f32.mrf.mxu0  ;;  %v19175_v0 = vcombine.high %v9680_v42, %v9684_v22  ;;  %v9548_v38 = vld [vmem:[#allocation12 + $0x8b0] sm:$0xff]  ;;  %v19174_v43 = vcombine.low %v9680_v42, %v9684_v22 }
 0x9d3   : > { %v23867_v2 = vadd.f32 %v15941_v50, %v15901_v17  ;;  %16267 = vmatprep.mubr.bf16.mxu1 %v23734_v48  ;;  %v15903_v32 = vadd.f32 %v15902_v61, %v23861_v8  ;;  %v15943_v52 = vpop.f32.mrf.mxu1  ;;  %16196 = vmatprep.subr.bf16.mxu0 %v19071_v62  ;;  %v9672_v62 = vld [vmem:[#allocation12 + $0xc90] sm:$0xff]  ;;  %v19038_v61 = vcombine.low %v9544_v37, %v9548_v38 }
 0x9d4   : > { %v15904_v9 = vpop.f32.mrf.mxu0  ;;  %16237 = vmatprep.subr.bf16.mxu1 %v19199_v44  ;;  %v19039_v44 = vcombine.high %v9544_v37, %v9548_v38  ;;  %v19167_v45 = vcombine.high %v9672_v62, %v9676_v54  ;;  %v9540_v17 = vld [vmem:[#allocation12 + $0x870] sm:$0xff] }
 0x9d5   : > { %v23871_v29 = vadd.f32 %v15943_v52, %v15903_v32  ;;  %v15945_v10 = vpop.f32.mrf.mxu1  ;;  %16197 = vmatpush1.bf16.msra.mxu0 %v19070_v23  ;;  %v9664_v50 = vld [vmem:[#allocation12 + $0xc50] sm:$0xff]  ;;  %v19030_v9 = vcombine.low %v9536_v55, %v9540_v17 }
 0x9d6   : > { %16238 = vmatpush1.bf16.msra.mxu1 %v19198_v31  ;;  %v15905_v3 = vpop.f32.mrf.mxu0  ;;  %16198 = vmatprep.subr.bf16.mxu0 %v19063_v11  ;;  %v9668_v23 = vld [vmem:[#allocation12 + $0xc70] sm:$0xff]  ;;  %v19166_v31 = vcombine.low %v9672_v62, %v9676_v54  ;;  %v19031_v11 = vcombine.high %v9536_v55, %v9540_v17 }
 0x9d7   : > { %v15946_v8 = vpop.f32.mrf.mxu1  ;;  %16239 = vmatprep.subr.bf16.mxu1 %v19191_v46  ;;  %v19159_v32 = vcombine.high %v9664_v50, %v9668_v23  ;;  %v9528_v52 = vld [vmem:[#allocation12 + $0x810] sm:$0xff]  ;;  %v19158_v12 = vcombine.low %v9664_v50, %v9668_v23 }
 0x9d8   : > { %v9532_v46 = vld [vmem:[#allocation12 + $0x830] sm:$0xff] }
 0x9d9   : > { %16199 = vmatpush1.bf16.msra.mxu0 %v19062_v21  ;;  %v9656_v15 = vld [vmem:[#allocation12 + $0xc10] sm:$0xff]  ;;  %v19023_v27 = vcombine.high %v9528_v52, %v9532_v46  ;;  %v19022_v8 = vcombine.low %v9528_v52, %v9532_v46 }
 0x9da   : > { %16240 = vmatpush1.bf16.msra.mxu1 %v19190_v60  ;;  %16200 = vmatprep.subr.bf16.mxu0 %v19055_v7  ;;  %v9660_v59 = vld [vmem:[#allocation12 + $0xc30] sm:$0xff] }
 0x9db   : > { %16241 = vmatprep.subr.bf16.mxu1 %v19183_v20  ;;  %v19151_v10 = vcombine.high %v9656_v15, %v9660_v59  ;;  %v9648_v21 = vld [vmem:[#allocation12 + $0xbd0] sm:$0xff]  ;;  %v19150_v20 = vcombine.low %v9656_v15, %v9660_v59 }
 0x9dc   : > { %v9652_v3 = vld [vmem:[#allocation12 + $0xbf0] sm:$0xff] }
 0x9dd   : > { %16201 = vmatpush1.bf16.msra.mxu0 %v19054_v51  ;;  %v9776_v60 = vld [vmem:[#allocation12 + $0xfd0] sm:$0xff]  ;;  %v19143_v30 = vcombine.high %v9648_v21, %v9652_v3 }
 0x9de   : > { %16242 = vmatpush1.bf16.msra.mxu1 %v19182_v16  ;;  %16202 = vmatprep.subr.bf16.mxu0 %v19047_v18  ;;  %v9780_v7 = vld [vmem:[#allocation12 + $0xff0] sm:$0xff]  ;;  %v19142_v18 = vcombine.low %v9648_v21, %v9652_v3 }
 0x9df   : > { %16243 = vmatprep.subr.bf16.mxu1 %v19175_v0  ;;  %v19271_v34 = vcombine.high %v9776_v60, %v9780_v7  ;;  %v9640_v42 = vld [vmem:[#allocation12 + $0xb90] sm:$0xff]  ;;  %v19270_v0 = vcombine.low %v9776_v60, %v9780_v7 }
 0x9e0   : > { %v9644_v22 = vld [vmem:[#allocation12 + $0xbb0] sm:$0xff] }
 0x9e1   : > { %16203 = vmatpush1.bf16.msra.mxu0 %v19046_v63  ;;  %v9768_v51 = vld [vmem:[#allocation12 + $0xf90] sm:$0xff]  ;;  %v19135_v37 = vcombine.high %v9640_v42, %v9644_v22 }
 0x9e2   : > { %16244 = vmatpush1.bf16.msra.mxu1 %v19174_v43  ;;  %16204 = vmatprep.subr.bf16.mxu0 %v19039_v44  ;;  %v9772_v16 = vld [vmem:[#allocation12 + $0xfb0] sm:$0xff]  ;;  %v19134_v44 = vcombine.low %v9640_v42, %v9644_v22 }
 0x9e3   : > { %16245 = vmatprep.subr.bf16.mxu1 %v19167_v45  ;;  %v19263_v38 = vcombine.high %v9768_v51, %v9772_v16  ;;  %v9632_v62 = vld [vmem:[#allocation12 + $0xb50] sm:$0xff]  ;;  %v19262_v45 = vcombine.low %v9768_v51, %v9772_v16 }
 0x9e4   : > { %v9636_v54 = vld [vmem:[#allocation12 + $0xb70] sm:$0xff] }
 0x9e5   : > { %16205 = vmatpush1.bf16.msra.mxu0 %v19038_v61  ;;  %v9760_v63 = vld [vmem:[#allocation12 + $0xf50] sm:$0xff]  ;;  %v19127_v55 = vcombine.high %v9632_v62, %v9636_v54 }
 0x9e6   : > { %16246 = vmatpush1.bf16.msra.mxu1 %v19166_v31  ;;  %16206 = vmatprep.subr.bf16.mxu0 %v19031_v11  ;;  %v9764_v43 = vld [vmem:[#allocation12 + $0xf70] sm:$0xff]  ;;  %v19126_v11 = vcombine.low %v9632_v62, %v9636_v54 }
 0x9e7   : > { %16247 = vmatprep.subr.bf16.mxu1 %v19159_v32  ;;  %v19255_v17 = vcombine.high %v9760_v63, %v9764_v43  ;;  %v9624_v50 = vld [vmem:[#allocation12 + $0xb10] sm:$0xff]  ;;  %v19254_v32 = vcombine.low %v9760_v63, %v9764_v43 }
 0x9e8   : > { %v9628_v23 = vld [vmem:[#allocation12 + $0xb30] sm:$0xff] }
 0x9e9   : > { %16207 = vmatpush1.bf16.msra.mxu0 %v19030_v9  ;;  %v9752_v61 = vld [vmem:[#allocation12 + $0xf10] sm:$0xff]  ;;  %v19119_v52 = vcombine.high %v9624_v50, %v9628_v23 }
 0x9ea   : > { %16248 = vmatpush1.bf16.msra.mxu1 %v19158_v12  ;;  %16208 = vmatprep.subr.bf16.mxu0 %v19023_v27  ;;  %v9756_v31 = vld [vmem:[#allocation12 + $0xf30] sm:$0xff]  ;;  %v19118_v27 = vcombine.low %v9624_v50, %v9628_v23 }
 0x9eb   : > { %16249 = vmatprep.subr.bf16.mxu1 %v19151_v10  ;;  %v19247_v46 = vcombine.high %v9752_v61, %v9756_v31  ;;  %v9616_v15 = vld [vmem:[#allocation12 + $0xad0] sm:$0xff]  ;;  %v19246_v10 = vcombine.low %v9752_v61, %v9756_v31 }
 0x9ec   : > { %v9620_v59 = vld [vmem:[#allocation12 + $0xaf0] sm:$0xff] }
 0x9ed   : > { %16209 = vmatpush1.bf16.msra.mxu0 %v19022_v8  ;;  %v9744_v9 = vld [vmem:[#allocation12 + $0xed0] sm:$0xff]  ;;  %v19111_v21 = vcombine.high %v9616_v15, %v9620_v59 }
 0x9ee   : > { %16250 = vmatpush1.bf16.msra.mxu1 %v19150_v20  ;;  %16210 = vmatprep.subr.bf16.mxu0 %v19143_v30  ;;  %v9748_v12 = vld [vmem:[#allocation12 + $0xef0] sm:$0xff]  ;;  %v19110_v30 = vcombine.low %v9616_v15, %v9620_v59 }
 0x9ef   : > { %16251 = vmatprep.subr.bf16.mxu1 %v19271_v34  ;;  %v19239_v3 = vcombine.high %v9744_v9, %v9748_v12  ;;  %v9608_v60 = vld [vmem:[#allocation12 + $0xa90] sm:$0xff]  ;;  %v19238_v34 = vcombine.low %v9744_v9, %v9748_v12 }
 0x9f0   : > { %v9612_v7 = vld [vmem:[#allocation12 + $0xab0] sm:$0xff] }
 0x9f1   : > { %16211 = vmatpush2.bf16.msra.mxu0 %v19142_v18  ;;  %v9736_v8 = vld [vmem:[#allocation12 + $0xe90] sm:$0xff]  ;;  %v19103_v42 = vcombine.high %v9608_v60, %v9612_v7 }
 0x9f2   : > { %16252 = vmatpush2.bf16.msra.mxu1 %v19270_v0  ;;  %16212 = vmatprep.subr.bf16.mxu0 %v19135_v37  ;;  %v9740_v20 = vld [vmem:[#allocation12 + $0xeb0] sm:$0xff]  ;;  %v19102_v37 = vcombine.low %v9608_v60, %v9612_v7 }
 0x9f3   : > { %16253 = vmatprep.subr.bf16.mxu1 %v19263_v38  ;;  %v19231_v22 = vcombine.high %v9736_v8, %v9740_v20  ;;  %v9600_v51 = vld [vmem:[#allocation12 + $0xa50] sm:$0xff]  ;;  %v19230_v38 = vcombine.low %v9736_v8, %v9740_v20 }
 0x9f4   : > { %v9604_v16 = vld [vmem:[#allocation12 + $0xa70] sm:$0xff] }
 0x9f5   : > { %16213 = vmatpush2.bf16.msra.mxu0 %v19134_v44  ;;  %v9728_v18 = vld [vmem:[#allocation12 + $0xe50] sm:$0xff]  ;;  %v19095_v62 = vcombine.high %v9600_v51, %v9604_v16 }
 0x9f6   : > { %16254 = vmatpush2.bf16.msra.mxu1 %v19262_v45  ;;  %16214 = vmatprep.subr.bf16.mxu0 %v19127_v55  ;;  %v9732_v0 = vld [vmem:[#allocation12 + $0xe70] sm:$0xff]  ;;  %v19094_v55 = vcombine.low %v9600_v51, %v9604_v16 }
 0x9f7   : > { %16255 = vmatprep.subr.bf16.mxu1 %v19255_v17  ;;  %v19223_v54 = vcombine.high %v9728_v18, %v9732_v0  ;;  %v9592_v63 = vld [vmem:[#allocation12 + $0xa10] sm:$0xff]  ;;  %v19222_v17 = vcombine.low %v9728_v18, %v9732_v0 }
 0x9f8   : > { %v9596_v43 = vld [vmem:[#allocation12 + $0xa30] sm:$0xff] }
 0x9f9   : > { %16215 = vmatpush2.bf16.msra.mxu0 %v19126_v11  ;;  %v9720_v44 = vld [vmem:[#allocation12 + $0xe10] sm:$0xff]  ;;  %v19087_v50 = vcombine.high %v9592_v63, %v9596_v43 }
 0x9fa   : > { %16256 = vmatpush2.bf16.msra.mxu1 %v19254_v32  ;;  %16216 = vmatprep.subr.bf16.mxu0 %v19119_v52  ;;  %v9724_v45 = vld [vmem:[#allocation12 + $0xe30] sm:$0xff]  ;;  %v19086_v52 = vcombine.low %v9592_v63, %v9596_v43 }
 0x9fb   : > { %16257 = vmatprep.subr.bf16.mxu1 %v19247_v46  ;;  %v19215_v23 = vcombine.high %v9720_v44, %v9724_v45  ;;  %v9840_v61 = vld [vmem:[#allocation12 + $0x11d0] sm:$0xff]  ;;  %v19214_v46 = vcombine.low %v9720_v44, %v9724_v45 }
 0x9fc   : > { %v9844_v31 = vld [vmem:[#allocation12 + $0x11f0] sm:$0xff] }
 0x9fd   : > { %16217 = vmatpush2.bf16.msra.mxu0 %v19118_v27  ;;  %v9968_v11 = vld [vmem:[#allocation12 + $0x15d0] sm:$0xff]  ;;  %v19335_v15 = vcombine.high %v9840_v61, %v9844_v31 }
 0x9fe   : > { %16258 = vmatpush2.bf16.msra.mxu1 %v19246_v10  ;;  %16218 = vmatprep.subr.bf16.mxu0 %v19111_v21  ;;  %v9972_v32 = vld [vmem:[#allocation12 + $0x15f0] sm:$0xff]  ;;  %v19334_v21 = vcombine.low %v9840_v61, %v9844_v31 }
 0x9ff   : > { %16259 = vmatprep.subr.bf16.mxu1 %v19239_v3  ;;  %v19463_v59 = vcombine.high %v9968_v11, %v9972_v32  ;;  %v9832_v9 = vld [vmem:[#allocation12 + $0x1190] sm:$0xff]  ;;  %v19462_v3 = vcombine.low %v9968_v11, %v9972_v32 }
 0xa00   : > { %v9836_v12 = vld [vmem:[#allocation12 + $0x11b0] sm:$0xff] }
 0xa01   : > { %16219 = vmatpush2.bf16.msra.mxu0 %v19110_v30  ;;  %v9960_v27 = vld [vmem:[#allocation12 + $0x1590] sm:$0xff]  ;;  %v19327_v60 = vcombine.high %v9832_v9, %v9836_v12  ;;  %v19326_v16 = vcombine.low %v9832_v9, %v9836_v12 }
 0xa02   : > { %16260 = vmatpush2.bf16.msra.mxu1 %v19238_v34  ;;  %16220 = vmatprep.subr.bf16.mxu0 %v19103_v42  ;;  %v9964_v10 = vld [vmem:[#allocation12 + $0x15b0] sm:$0xff] }
 0xa03   : > { %16261 = vmatprep.subr.bf16.mxu1 %v19231_v22  ;;  %v19455_v7 = vcombine.high %v9960_v27, %v9964_v10  ;;  %v9824_v8 = vld [vmem:[#allocation12 + $0x1150] sm:$0xff]  ;;  %v19454_v0 = vcombine.low %v9960_v27, %v9964_v10 }
 0xa04   : > { %v9828_v20 = vld [vmem:[#allocation12 + $0x1170] sm:$0xff] }
 0xa05   : > { %16221 = vmatpush2.bf16.msra.mxu0 %v19102_v37  ;;  %v9952_v34 = vld [vmem:[#allocation12 + $0x1550] sm:$0xff]  ;;  %v19319_v37 = vcombine.high %v9824_v8, %v9828_v20 }
 0xa06   : > { %16262 = vmatpush2.bf16.msra.mxu1 %v19230_v38  ;;  %16222 = vmatprep.subr.bf16.mxu0 %v19095_v62  ;;  %v9956_v42 = vld [vmem:[#allocation12 + $0x1570] sm:$0xff] }
 0xa07   : > { %16263 = vmatprep.subr.bf16.mxu1 %v19223_v54  ;;  %v19447_v63 = vcombine.high %v9952_v34, %v9956_v42  ;;  %v9816_v43 = vld [vmem:[#allocation12 + $0x1110] sm:$0xff]  ;;  %v19446_v61 = vcombine.low %v9952_v34, %v9956_v42 }
 0xa08   : > { %v9820_v44 = vld [vmem:[#allocation12 + $0x1130] sm:$0xff] }
 0xa09   : > { %16223 = vmatpush2.bf16.msra.mxu0 %v19094_v55  ;;  %v9944_v45 = vld [vmem:[#allocation12 + $0x1510] sm:$0xff]  ;;  %v19311_v31 = vcombine.high %v9816_v43, %v9820_v44  ;;  %v19310_v9 = vcombine.low %v9816_v43, %v9820_v44 }
 0xa0a   : > { %16264 = vmatpush2.bf16.msra.mxu1 %v19222_v17  ;;  %16224 = vmatprep.subr.bf16.mxu0 %v19087_v50  ;;  %v9948_v55 = vld [vmem:[#allocation12 + $0x1530] sm:$0xff] }
 0xa0b   : > { %16265 = vmatprep.subr.bf16.mxu1 %v19215_v23  ;;  %v19318_v23 = vcombine.low %v9824_v8, %v9828_v20  ;;  %v19439_v32 = vcombine.high %v9944_v45, %v9948_v55  ;;  %v19438_v12 = vcombine.low %v9944_v45, %v9948_v55  ;;  %v9792_v42 = vld [vmem:[#allocation12 + $0x1050] sm:$0xff] }
 0xa0c   : > { %v9912_v43 = vld [vmem:[#allocation12 + $0x1410] sm:$0xff] }
 0xa0d   : > { %16225 = vmatpush2.bf16.msra.mxu0 %v19086_v52  ;;  %v9808_v52 = vld [vmem:[#allocation12 + $0x10d0] sm:$0xff] }
 0xa0e   : > { %16266 = vmatpush2.bf16.msra.mxu1 %v19214_v46  ;;  %16276 = vmatprep.subr.bf16.mxu0 %v19335_v15  ;;  %v9812_v46 = vld [vmem:[#allocation12 + $0x10f0] sm:$0xff] }
 0xa0f   : > { %16317 = vmatprep.subr.bf16.mxu1 %v19463_v59  ;;  %v9936_v15 = vld [vmem:[#allocation12 + $0x14d0] sm:$0xff]  ;;  %v19303_v27 = vcombine.high %v9808_v52, %v9812_v46  ;;  %v19302_v8 = vcombine.low %v9808_v52, %v9812_v46 }
 0xa10   : > { %v15982_v30 = vpop.f32.mrf.mxu0  ;;  %16227 = vmatmul.mubr.bf16.vlgmr.msra.gmra.mxu0 %v23763_v26  ;;  %v9940_v59 = vld [vmem:[#allocation12 + $0x14f0] sm:$0xff] }
 0xa11   : > { %v15983_v22 = vadd.f32 %v15982_v30, %v23867_v2  ;;  %16268 = vmatmul.mubr.bf16.vlgmr.msra.gmra.mxu1 %v23759_v24  ;;  %16277 = vmatpush1.bf16.msra.mxu0 %v19334_v21  ;;  %v16023_v51 = vpop.f32.mrf.mxu1  ;;  %v19431_v10 = vcombine.high %v9936_v15, %v9940_v59  ;;  %v9800_v21 = vld [vmem:[#allocation12 + $0x1090] sm:$0xff]  ;;  %v19430_v20 = vcombine.low %v9936_v15, %v9940_v59 }
 0xa12   : > { %16318 = vmatpush1.bf16.msra.mxu1 %v19462_v3  ;;  %v15984_v18 = vpop.f32.mrf.mxu0  ;;  %16278 = vmatprep.subr.bf16.mxu0 %v19327_v60  ;;  %v9804_v3 = vld [vmem:[#allocation12 + $0x10b0] sm:$0xff] }
 0xa13   : > { %v15985_v38 = vadd.f32 %v15984_v18, %v23871_v29  ;;  %v23877_v62 = vadd.f32 %v16023_v51, %v15983_v22  ;;  %v16025_v54 = vpop.f32.mrf.mxu1  ;;  %16319 = vmatprep.subr.bf16.mxu1 %v19455_v7  ;;  %16308 = vmatprep.mubr.bf16.mxu0 %v23765_v47  ;;  %v9928_v60 = vld [vmem:[#allocation12 + $0x1490] sm:$0xff]  ;;  %v19295_v30 = vcombine.high %v9800_v21, %v9804_v3 }
 0xa14   : > { %v15986_v2 = vpop.f32.mrf.mxu0  ;;  %16349 = vmatprep.mubr.bf16.mxu1 %v23767_v13  ;;  %v9932_v7 = vld [vmem:[#allocation12 + $0x14b0] sm:$0xff]  ;;  %v19294_v18 = vcombine.low %v9800_v21, %v9804_v3 }
 0xa15   : > { %v23881_v17 = vadd.f32 %v16025_v54, %v15985_v38  ;;  %16279 = vmatpush1.bf16.msra.mxu0 %v19326_v16  ;;  %v16027_v50 = vpop.f32.mrf.mxu1  ;;  %v19423_v34 = vcombine.high %v9928_v60, %v9932_v7  ;;  %v9796_v22 = vld [vmem:[#allocation12 + $0x1070] sm:$0xff] }
 0xa16   : > { %16320 = vmatpush1.bf16.msra.mxu1 %v19454_v0  ;;  %v15987_v29 = vpop.f32.mrf.mxu0  ;;  %16280 = vmatprep.subr.bf16.mxu0 %v19319_v37  ;;  %v9920_v51 = vld [vmem:[#allocation12 + $0x1450] sm:$0xff]  ;;  %v19422_v0 = vcombine.low %v9928_v60, %v9932_v7  ;;  %v19287_v37 = vcombine.high %v9792_v42, %v9796_v22  ;;  %v19286_v2 = vcombine.low %v9792_v42, %v9796_v22 }
 0xa17   : > { %v16028_v11 = vpop.f32.mrf.mxu1  ;;  %16321 = vmatprep.subr.bf16.mxu1 %v19447_v63  ;;  %v9924_v16 = vld [vmem:[#allocation12 + $0x1470] sm:$0xff] }
 0xa18   : > { %v19415_v38 = vcombine.high %v9920_v51, %v9924_v16  ;;  %v9784_v54 = vld [vmem:[#allocation12 + $0x1010] sm:$0xff]  ;;  %v19414_v45 = vcombine.low %v9920_v51, %v9924_v16 }
 0xa19   : > { %16281 = vmatpush1.bf16.msra.mxu0 %v19318_v23  ;;  %v9788_v63 = vld [vmem:[#allocation12 + $0x1030] sm:$0xff] }
 0xa1a   : > { %16322 = vmatpush1.bf16.msra.mxu1 %v19446_v61  ;;  %16282 = vmatprep.subr.bf16.mxu0 %v19311_v31  ;;  %v9916_v44 = vld [vmem:[#allocation12 + $0x1430] sm:$0xff]  ;;  %v19279_v55 = vcombine.high %v9784_v54, %v9788_v63  ;;  %v19278_v11 = vcombine.low %v9784_v54, %v9788_v63 }
 0xa1b   : > { %16323 = vmatprep.subr.bf16.mxu1 %v19439_v32  ;;  %v19407_v50 = vcombine.high %v9912_v43, %v9916_v44  ;;  %v9904_v23 = vld [vmem:[#allocation12 + $0x13d0] sm:$0xff]  ;;  %v19406_v32 = vcombine.low %v9912_v43, %v9916_v44 }
 0xa1c   : > { %v9908_v29 = vld [vmem:[#allocation12 + $0x13f0] sm:$0xff] }
 0xa1d   : > { %16283 = vmatpush1.bf16.msra.mxu0 %v19310_v9  ;;  %v10032_v61 = vld [vmem:[#allocation12 + $0x17d0] sm:$0xff]  ;;  %v19399_v52 = vcombine.high %v9904_v23, %v9908_v29 }
 0xa1e   : > { %16324 = vmatpush1.bf16.msra.mxu1 %v19438_v12  ;;  %16284 = vmatprep.subr.bf16.mxu0 %v19303_v27  ;;  %v10036_v31 = vld [vmem:[#allocation12 + $0x17f0] sm:$0xff]  ;;  %v19398_v27 = vcombine.low %v9904_v23, %v9908_v29 }
 0xa1f   : > { %16325 = vmatprep.subr.bf16.mxu1 %v19431_v10  ;;  %v19527_v46 = vcombine.high %v10032_v61, %v10036_v31  ;;  %v9896_v15 = vld [vmem:[#allocation12 + $0x1390] sm:$0xff]  ;;  %v19526_v10 = vcombine.low %v10032_v61, %v10036_v31 }
 0xa20   : > { %v9900_v59 = vld [vmem:[#allocation12 + $0x13b0] sm:$0xff] }
 0xa21   : > { %16285 = vmatpush1.bf16.msra.mxu0 %v19302_v8  ;;  %v10024_v9 = vld [vmem:[#allocation12 + $0x1790] sm:$0xff]  ;;  %v19391_v21 = vcombine.high %v9896_v15, %v9900_v59 }
 0xa22   : > { %16326 = vmatpush1.bf16.msra.mxu1 %v19430_v20  ;;  %16286 = vmatprep.subr.bf16.mxu0 %v19295_v30  ;;  %v10028_v12 = vld [vmem:[#allocation12 + $0x17b0] sm:$0xff]  ;;  %v19390_v30 = vcombine.low %v9896_v15, %v9900_v59 }
 0xa23   : > { %16327 = vmatprep.subr.bf16.mxu1 %v19423_v34  ;;  %v19519_v3 = vcombine.high %v10024_v9, %v10028_v12  ;;  %v9888_v60 = vld [vmem:[#allocation12 + $0x1350] sm:$0xff]  ;;  %v19518_v34 = vcombine.low %v10024_v9, %v10028_v12 }
 0xa24   : > { %v9892_v7 = vld [vmem:[#allocation12 + $0x1370] sm:$0xff] }
 0xa25   : > { %16287 = vmatpush1.bf16.msra.mxu0 %v19294_v18  ;;  %v10016_v8 = vld [vmem:[#allocation12 + $0x1750] sm:$0xff]  ;;  %v19383_v42 = vcombine.high %v9888_v60, %v9892_v7 }
 0xa26   : > { %16328 = vmatpush1.bf16.msra.mxu1 %v19422_v0  ;;  %16288 = vmatprep.subr.bf16.mxu0 %v19287_v37  ;;  %v10020_v20 = vld [vmem:[#allocation12 + $0x1770] sm:$0xff]  ;;  %v19382_v37 = vcombine.low %v9888_v60, %v9892_v7 }
 0xa27   : > { %16329 = vmatprep.subr.bf16.mxu1 %v19415_v38  ;;  %v19511_v22 = vcombine.high %v10016_v8, %v10020_v20  ;;  %v9880_v51 = vld [vmem:[#allocation12 + $0x1310] sm:$0xff]  ;;  %v19510_v38 = vcombine.low %v10016_v8, %v10020_v20 }
 0xa28   : > { %v9884_v16 = vld [vmem:[#allocation12 + $0x1330] sm:$0xff] }
 0xa29   : > { %16289 = vmatpush1.bf16.msra.mxu0 %v19286_v2  ;;  %v10008_v18 = vld [vmem:[#allocation12 + $0x1710] sm:$0xff]  ;;  %v19375_v54 = vcombine.high %v9880_v51, %v9884_v16 }
 0xa2a   : > { %16330 = vmatpush1.bf16.msra.mxu1 %v19414_v45  ;;  %16290 = vmatprep.subr.bf16.mxu0 %v19279_v55  ;;  %v10012_v0 = vld [vmem:[#allocation12 + $0x1730] sm:$0xff]  ;;  %v19374_v55 = vcombine.low %v9880_v51, %v9884_v16 }
 0xa2b   : > { %16331 = vmatprep.subr.bf16.mxu1 %v19407_v50  ;;  %v19503_v63 = vcombine.high %v10008_v18, %v10012_v0  ;;  %v9872_v43 = vld [vmem:[#allocation12 + $0x12d0] sm:$0xff]  ;;  %v19502_v50 = vcombine.low %v10008_v18, %v10012_v0 }
 0xa2c   : > { %v9876_v44 = vld [vmem:[#allocation12 + $0x12f0] sm:$0xff] }
 0xa2d   : > { %16291 = vmatpush1.bf16.msra.mxu0 %v19278_v11  ;;  %v10000_v2 = vld [vmem:[#allocation12 + $0x16d0] sm:$0xff]  ;;  %v19367_v23 = vcombine.high %v9872_v43, %v9876_v44 }
 0xa2e   : > { %16332 = vmatpush1.bf16.msra.mxu1 %v19406_v32  ;;  %16292 = vmatprep.subr.bf16.mxu0 %v19399_v52  ;;  %v10004_v45 = vld [vmem:[#allocation12 + $0x16f0] sm:$0xff]  ;;  %v19366_v52 = vcombine.low %v9872_v43, %v9876_v44 }
 0xa2f   : > { %16333 = vmatprep.subr.bf16.mxu1 %v19527_v46  ;;  %v19495_v29 = vcombine.high %v10000_v2, %v10004_v45  ;;  %v9864_v61 = vld [vmem:[#allocation12 + $0x1290] sm:$0xff]  ;;  %v19494_v46 = vcombine.low %v10000_v2, %v10004_v45 }
 0xa30   : > { %v9868_v31 = vld [vmem:[#allocation12 + $0x12b0] sm:$0xff] }
 0xa31   : > { %16293 = vmatpush2.bf16.msra.mxu0 %v19398_v27  ;;  %v9992_v11 = vld [vmem:[#allocation12 + $0x1690] sm:$0xff]  ;;  %v19359_v15 = vcombine.high %v9864_v61, %v9868_v31 }
 0xa32   : > { %16334 = vmatpush2.bf16.msra.mxu1 %v19526_v10  ;;  %16294 = vmatprep.subr.bf16.mxu0 %v19391_v21  ;;  %v9996_v32 = vld [vmem:[#allocation12 + $0x16b0] sm:$0xff]  ;;  %v19358_v21 = vcombine.low %v9864_v61, %v9868_v31 }
 0xa33   : > { %16335 = vmatprep.subr.bf16.mxu1 %v19519_v3  ;;  %v19487_v59 = vcombine.high %v9992_v11, %v9996_v32  ;;  %v9856_v9 = vld [vmem:[#allocation12 + $0x1250] sm:$0xff]  ;;  %v19486_v3 = vcombine.low %v9992_v11, %v9996_v32 }
 0xa34   : > { %v9860_v12 = vld [vmem:[#allocation12 + $0x1270] sm:$0xff] }
 0xa35   : > { %16295 = vmatpush2.bf16.msra.mxu0 %v19390_v30  ;;  %v9984_v27 = vld [vmem:[#allocation12 + $0x1650] sm:$0xff]  ;;  %v19351_v60 = vcombine.high %v9856_v9, %v9860_v12 }
 0xa36   : > { %16336 = vmatpush2.bf16.msra.mxu1 %v19518_v34  ;;  %16296 = vmatprep.subr.bf16.mxu0 %v19383_v42  ;;  %v9988_v10 = vld [vmem:[#allocation12 + $0x1670] sm:$0xff]  ;;  %v19350_v42 = vcombine.low %v9856_v9, %v9860_v12 }
 0xa37   : > { %16337 = vmatprep.subr.bf16.mxu1 %v19511_v22  ;;  %v19479_v7 = vcombine.high %v9984_v27, %v9988_v10  ;;  %v9848_v8 = vld [vmem:[#allocation12 + $0x1210] sm:$0xff]  ;;  %v19478_v22 = vcombine.low %v9984_v27, %v9988_v10 }
 0xa38   : > { %v9852_v20 = vld [vmem:[#allocation12 + $0x1230] sm:$0xff] }
 0xa39   : > { %16297 = vmatpush2.bf16.msra.mxu0 %v19382_v37  ;;  %v9976_v30 = vld [vmem:[#allocation12 + $0x1610] sm:$0xff]  ;;  %v19343_v51 = vcombine.high %v9848_v8, %v9852_v20 }
 0xa3a   : > { %16338 = vmatpush2.bf16.msra.mxu1 %v19510_v38  ;;  %16298 = vmatprep.subr.bf16.mxu0 %v19375_v54  ;;  %v9980_v34 = vld [vmem:[#allocation12 + $0x1630] sm:$0xff]  ;;  %v19342_v54 = vcombine.low %v9848_v8, %v9852_v20 }
 0xa3b   : > { %16339 = vmatprep.subr.bf16.mxu1 %v19503_v63  ;;  %v19471_v16 = vcombine.high %v9976_v30, %v9980_v34  ;;  %v10096_v18 = vld [vmem:[#allocation12 + $0x19d0] sm:$0xff]  ;;  %v19470_v63 = vcombine.low %v9976_v30, %v9980_v34 }
 0xa3c   : > { %v10100_v0 = vld [vmem:[#allocation12 + $0x19f0] sm:$0xff] }
 0xa3d   : > { %16299 = vmatpush2.bf16.msra.mxu0 %v19374_v55  ;;  %v10224_v37 = vld [vmem:[#allocation12 + $0x1dd0] sm:$0xff]  ;;  %v19591_v43 = vcombine.high %v10096_v18, %v10100_v0 }
 0xa3e   : > { %16340 = vmatpush2.bf16.msra.mxu1 %v19502_v50  ;;  %16300 = vmatprep.subr.bf16.mxu0 %v19367_v23  ;;  %v10228_v38 = vld [vmem:[#allocation12 + $0x1df0] sm:$0xff]  ;;  %v19590_v23 = vcombine.low %v10096_v18, %v10100_v0 }
 0xa3f   : > { %16341 = vmatprep.subr.bf16.mxu1 %v19495_v29  ;;  %v19719_v44 = vcombine.high %v10224_v37, %v10228_v38  ;;  %v10088_v2 = vld [vmem:[#allocation12 + $0x1990] sm:$0xff]  ;;  %v19718_v29 = vcombine.low %v10224_v37, %v10228_v38 }
 0xa40   : > { %v10092_v45 = vld [vmem:[#allocation12 + $0x19b0] sm:$0xff] }
 0xa41   : > { %16301 = vmatpush2.bf16.msra.mxu0 %v19366_v52  ;;  %v10216_v55 = vld [vmem:[#allocation12 + $0x1d90] sm:$0xff]  ;;  %v19583_v61 = vcombine.high %v10088_v2, %v10092_v45  ;;  %v19582_v12 = vcombine.low %v10088_v2, %v10092_v45 }
 0xa42   : > { %16342 = vmatpush2.bf16.msra.mxu1 %v19494_v46  ;;  %16302 = vmatprep.subr.bf16.mxu0 %v19359_v15  ;;  %v10220_v50 = vld [vmem:[#allocation12 + $0x1db0] sm:$0xff] }
 0xa43   : > { %16343 = vmatprep.subr.bf16.mxu1 %v19487_v59  ;;  %v19711_v31 = vcombine.high %v10216_v55, %v10220_v50  ;;  %v10080_v11 = vld [vmem:[#allocation12 + $0x1950] sm:$0xff]  ;;  %v19710_v10 = vcombine.low %v10216_v55, %v10220_v50 }
 0xa44   : > { %v10084_v32 = vld [vmem:[#allocation12 + $0x1970] sm:$0xff] }
 0xa45   : > { %16303 = vmatpush2.bf16.msra.mxu0 %v19358_v21  ;;  %v10208_v46 = vld [vmem:[#allocation12 + $0x1d50] sm:$0xff]  ;;  %v19575_v21 = vcombine.high %v10080_v11, %v10084_v32 }
 0xa46   : > { %16344 = vmatpush2.bf16.msra.mxu1 %v19486_v3  ;;  %16304 = vmatprep.subr.bf16.mxu0 %v19351_v60  ;;  %v10212_v15 = vld [vmem:[#allocation12 + $0x1d70] sm:$0xff] }
 0xa47   : > { %16345 = vmatprep.subr.bf16.mxu1 %v19479_v7  ;;  %v19703_v8 = vcombine.high %v10208_v46, %v10212_v15  ;;  %v10072_v20 = vld [vmem:[#allocation12 + $0x1910] sm:$0xff]  ;;  %v19702_v18 = vcombine.low %v10208_v46, %v10212_v15 }
 0xa48   : > { %v10076_v30 = vld [vmem:[#allocation12 + $0x1930] sm:$0xff] }
 0xa49   : > { %16305 = vmatpush2.bf16.msra.mxu0 %v19350_v42  ;;  %v10200_v34 = vld [vmem:[#allocation12 + $0x1d10] sm:$0xff]  ;;  %v19567_v0 = vcombine.high %v10072_v20, %v10076_v30  ;;  %v19566_v2 = vcombine.low %v10072_v20, %v10076_v30 }
 0xa4a   : > { %16346 = vmatpush2.bf16.msra.mxu1 %v19478_v22  ;;  %16306 = vmatprep.subr.bf16.mxu0 %v19343_v51  ;;  %v10204_v42 = vld [vmem:[#allocation12 + $0x1d30] sm:$0xff] }
 0xa4b   : > { %16347 = vmatprep.subr.bf16.mxu1 %v19471_v16  ;;  %v19574_v16 = vcombine.low %v10080_v11, %v10084_v32  ;;  %v19695_v38 = vcombine.high %v10200_v34, %v10204_v42  ;;  %v19694_v45 = vcombine.low %v10200_v34, %v10204_v42  ;;  %v10048_v15 = vld [vmem:[#allocation12 + $0x1850] sm:$0xff] }
 0xa4c   : > { %v10168_v20 = vld [vmem:[#allocation12 + $0x1c10] sm:$0xff] }
 0xa4d   : > { %16307 = vmatpush2.bf16.msra.mxu0 %v19342_v54  ;;  %v10064_v54 = vld [vmem:[#allocation12 + $0x18d0] sm:$0xff] }
 0xa4e   : > { %16348 = vmatpush2.bf16.msra.mxu1 %v19470_v63  ;;  %16358 = vmatprep.subr.bf16.mxu0 %v19591_v43  ;;  %v10068_v63 = vld [vmem:[#allocation12 + $0x18f0] sm:$0xff] }
 0xa4f   : > { %16399 = vmatprep.subr.bf16.mxu1 %v19719_v44  ;;  %v10192_v43 = vld [vmem:[#allocation12 + $0x1cd0] sm:$0xff]  ;;  %v19559_v55 = vcombine.high %v10064_v54, %v10068_v63  ;;  %v19558_v11 = vcombine.low %v10064_v54, %v10068_v63 }
 0xa50   : > { %v16064_v52 = vpop.f32.mrf.mxu0  ;;  %16309 = vmatmul.mubr.bf16.vlgmr.msra.gmra.mxu0 %v23791_v1  ;;  %v10196_v44 = vld [vmem:[#allocation12 + $0x1cf0] sm:$0xff] }
 0xa51   : > { %v16065_v59 = vadd.f32 %v16064_v52, %v23877_v62  ;;  %16350 = vmatmul.mubr.bf16.vlgmr.msra.gmra.mxu1 %v23795_v56  ;;  %16359 = vmatpush1.bf16.msra.mxu0 %v19590_v23  ;;  %v16105_v9 = vpop.f32.mrf.mxu1  ;;  %v19687_v50 = vcombine.high %v10192_v43, %v10196_v44  ;;  %v10056_v23 = vld [vmem:[#allocation12 + $0x1890] sm:$0xff]  ;;  %v19686_v32 = vcombine.low %v10192_v43, %v10196_v44 }
 0xa52   : > { %16400 = vmatpush1.bf16.msra.mxu1 %v19718_v29  ;;  %v16066_v27 = vpop.f32.mrf.mxu0  ;;  %16360 = vmatprep.subr.bf16.mxu0 %v19583_v61  ;;  %v10060_v29 = vld [vmem:[#allocation12 + $0x18b0] sm:$0xff] }
 0xa53   : > { %v16067_v3 = vadd.f32 %v16066_v27, %v23881_v17  ;;  %v23887_v60 = vadd.f32 %v16105_v9, %v16065_v59  ;;  %v16107_v7 = vpop.f32.mrf.mxu1  ;;  %16401 = vmatprep.subr.bf16.mxu1 %v19711_v31  ;;  %16390 = vmatprep.mubr.bf16.mxu0 %v23797_v36  ;;  %v10184_v61 = vld [vmem:[#allocation12 + $0x1c90] sm:$0xff]  ;;  %v19551_v52 = vcombine.high %v10056_v23, %v10060_v29 }
 0xa54   : > { %v16068_v62 = vpop.f32.mrf.mxu0  ;;  %16431 = vmatprep.mubr.bf16.mxu1 %v23799_v40  ;;  %v10188_v31 = vld [vmem:[#allocation12 + $0x1cb0] sm:$0xff]  ;;  %v19550_v27 = vcombine.low %v10056_v23, %v10060_v29 }
 0xa55   : > { %v23891_v22 = vadd.f32 %v16107_v7, %v16067_v3  ;;  %16361 = vmatpush1.bf16.msra.mxu0 %v19582_v12  ;;  %v16109_v51 = vpop.f32.mrf.mxu1  ;;  %v19679_v46 = vcombine.high %v10184_v61, %v10188_v31  ;;  %v10052_v59 = vld [vmem:[#allocation12 + $0x1870] sm:$0xff] }
 0xa56   : > { %16402 = vmatpush1.bf16.msra.mxu1 %v19710_v10  ;;  %v16069_v17 = vpop.f32.mrf.mxu0  ;;  %16362 = vmatprep.subr.bf16.mxu0 %v19575_v21  ;;  %v10176_v9 = vld [vmem:[#allocation12 + $0x1c50] sm:$0xff]  ;;  %v19678_v10 = vcombine.low %v10184_v61, %v10188_v31  ;;  %v19543_v21 = vcombine.high %v10048_v15, %v10052_v59  ;;  %v19542_v62 = vcombine.low %v10048_v15, %v10052_v59 }
 0xa57   : > { %v16110_v37 = vpop.f32.mrf.mxu1  ;;  %16403 = vmatprep.subr.bf16.mxu1 %v19703_v8  ;;  %v10180_v12 = vld [vmem:[#allocation12 + $0x1c70] sm:$0xff] }
 0xa58   : > { %v19671_v3 = vcombine.high %v10176_v9, %v10180_v12  ;;  %v10040_v7 = vld [vmem:[#allocation12 + $0x1810] sm:$0xff]  ;;  %v19670_v34 = vcombine.low %v10176_v9, %v10180_v12 }
 0xa59   : > { %16363 = vmatpush1.bf16.msra.mxu0 %v19574_v16  ;;  %v10044_v8 = vld [vmem:[#allocation12 + $0x1830] sm:$0xff] }
 0xa5a   : > { %16404 = vmatpush1.bf16.msra.mxu1 %v19702_v18  ;;  %16364 = vmatprep.subr.bf16.mxu0 %v19567_v0  ;;  %v10172_v30 = vld [vmem:[#allocation12 + $0x1c30] sm:$0xff]  ;;  %v19535_v42 = vcombine.high %v10040_v7, %v10044_v8  ;;  %v19534_v37 = vcombine.low %v10040_v7, %v10044_v8 }
 0xa5b   : > { %16405 = vmatprep.subr.bf16.mxu1 %v19695_v38  ;;  %v19663_v51 = vcombine.high %v10168_v20, %v10172_v30  ;;  %v10160_v16 = vld [vmem:[#allocation12 + $0x1bd0] sm:$0xff]  ;;  %v19662_v38 = vcombine.low %v10168_v20, %v10172_v30 }
 0xa5c   : > { %v10164_v17 = vld [vmem:[#allocation12 + $0x1bf0] sm:$0xff] }
 0xa5d   : > { %16365 = vmatpush1.bf16.msra.mxu0 %v19566_v2  ;;  %v10288_v18 = vld [vmem:[#allocation12 + $0x1fd0] sm:$0xff]  ;;  %v19655_v54 = vcombine.high %v10160_v16, %v10164_v17 }
 0xa5e   : > { %16406 = vmatpush1.bf16.msra.mxu1 %v19694_v45  ;;  %16366 = vmatprep.subr.bf16.mxu0 %v19559_v55  ;;  %v10292_v0 = vld [vmem:[#allocation12 + $0x1ff0] sm:$0xff]  ;;  %v19654_v55 = vcombine.low %v10160_v16, %v10164_v17 }
 0xa5f   : > { %16407 = vmatprep.subr.bf16.mxu1 %v19687_v50  ;;  %v19783_v63 = vcombine.high %v10288_v18, %v10292_v0  ;;  %v10152_v43 = vld [vmem:[#allocation12 + $0x1b90] sm:$0xff]  ;;  %v19782_v50 = vcombine.low %v10288_v18, %v10292_v0 }
 0xa60   : > { %v10156_v44 = vld [vmem:[#allocation12 + $0x1bb0] sm:$0xff] }
 0xa61   : > { %16367 = vmatpush1.bf16.msra.mxu0 %v19558_v11  ;;  %v10280_v2 = vld [vmem:[#allocation12 + $0x1f90] sm:$0xff]  ;;  %v19647_v23 = vcombine.high %v10152_v43, %v10156_v44 }
 0xa62   : > { %16408 = vmatpush1.bf16.msra.mxu1 %v19686_v32  ;;  %16368 = vmatprep.subr.bf16.mxu0 %v19551_v52  ;;  %v10284_v45 = vld [vmem:[#allocation12 + $0x1fb0] sm:$0xff]  ;;  %v19646_v52 = vcombine.low %v10152_v43, %v10156_v44 }
 0xa63   : > { %16409 = vmatprep.subr.bf16.mxu1 %v19679_v46  ;;  %v19775_v29 = vcombine.high %v10280_v2, %v10284_v45  ;;  %v10144_v61 = vld [vmem:[#allocation12 + $0x1b50] sm:$0xff]  ;;  %v19774_v46 = vcombine.low %v10280_v2, %v10284_v45 }
 0xa64   : > { %v10148_v31 = vld [vmem:[#allocation12 + $0x1b70] sm:$0xff] }
 0xa65   : > { %16369 = vmatpush1.bf16.msra.mxu0 %v19550_v27  ;;  %v10272_v11 = vld [vmem:[#allocation12 + $0x1f50] sm:$0xff]  ;;  %v19639_v15 = vcombine.high %v10144_v61, %v10148_v31 }
 0xa66   : > { %16410 = vmatpush1.bf16.msra.mxu1 %v19678_v10  ;;  %16370 = vmatprep.subr.bf16.mxu0 %v19543_v21  ;;  %v10276_v32 = vld [vmem:[#allocation12 + $0x1f70] sm:$0xff]  ;;  %v19638_v21 = vcombine.low %v10144_v61, %v10148_v31 }
 0xa67   : > { %16411 = vmatprep.subr.bf16.mxu1 %v19671_v3  ;;  %v19767_v59 = vcombine.high %v10272_v11, %v10276_v32  ;;  %v10136_v9 = vld [vmem:[#allocation12 + $0x1b10] sm:$0xff]  ;;  %v19766_v3 = vcombine.low %v10272_v11, %v10276_v32 }
 0xa68   : > { %v10140_v12 = vld [vmem:[#allocation12 + $0x1b30] sm:$0xff] }
 0xa69   : > { %16371 = vmatpush1.bf16.msra.mxu0 %v19542_v62  ;;  %v10264_v27 = vld [vmem:[#allocation12 + $0x1f10] sm:$0xff]  ;;  %v19631_v7 = vcombine.high %v10136_v9, %v10140_v12 }
 0xa6a   : > { %16412 = vmatpush1.bf16.msra.mxu1 %v19670_v34  ;;  %16372 = vmatprep.subr.bf16.mxu0 %v19535_v42  ;;  %v10268_v10 = vld [vmem:[#allocation12 + $0x1f30] sm:$0xff]  ;;  %v19630_v42 = vcombine.low %v10136_v9, %v10140_v12 }
 0xa6b   : > { %16413 = vmatprep.subr.bf16.mxu1 %v19663_v51  ;;  %v19759_v8 = vcombine.high %v10264_v27, %v10268_v10  ;;  %v10128_v20 = vld [vmem:[#allocation12 + $0x1ad0] sm:$0xff]  ;;  %v19758_v51 = vcombine.low %v10264_v27, %v10268_v10  ;;  %v9329_v27 = vld [vmem:[#allocation12 + $0x1d8] sm:$0xff] }
 0xa6c   : > { %v10132_v30 = vld [vmem:[#allocation12 + $0x1af0] sm:$0xff]  ;;  %v9333_v10 = vld [vmem:[#allocation12 + $0x1f8] sm:$0xff] }
 0xa6d   : > { %16373 = vmatpush1.bf16.msra.mxu0 %v19534_v37  ;;  %v10256_v62 = vld [vmem:[#allocation12 + $0x1ed0] sm:$0xff]  ;;  %v19623_v16 = vcombine.high %v10128_v20, %v10132_v30 }
 0xa6e   : > { %16414 = vmatpush1.bf16.msra.mxu1 %v19662_v38  ;;  %16374 = vmatprep.subr.bf16.mxu0 %v19655_v54  ;;  %v10260_v34 = vld [vmem:[#allocation12 + $0x1ef0] sm:$0xff]  ;;  %v19622_v54 = vcombine.low %v10128_v20, %v10132_v30  ;;  %v18825_v30 = vcombine.high %v9329_v27, %v9333_v10 }
 0xa6f   : > { %16415 = vmatprep.subr.bf16.mxu1 %v19783_v63  ;;  %v19751_v17 = vcombine.high %v10256_v62, %v10260_v34  ;;  %v10120_v18 = vld [vmem:[#allocation12 + $0x1a90] sm:$0xff]  ;;  %v19750_v63 = vcombine.low %v10256_v62, %v10260_v34  ;;  %v10318_v34 = vsub.s32 5, %v23249_v19 }
 0xa70   : > { %v10124_v0 = vld [vmem:[#allocation12 + $0x1ab0] sm:$0xff] }
 0xa71   : > { %16375 = vmatpush2.bf16.msra.mxu0 %v19654_v55  ;;  %v10248_v37 = vld [vmem:[#allocation12 + $0x1e90] sm:$0xff]  ;;  %v19615_v43 = vcombine.high %v10120_v18, %v10124_v0 }
 0xa72   : > { %16416 = vmatpush2.bf16.msra.mxu1 %v19782_v50  ;;  %16376 = vmatprep.subr.bf16.mxu0 %v19647_v23  ;;  %v10252_v38 = vld [vmem:[#allocation12 + $0x1eb0] sm:$0xff]  ;;  %v19614_v23 = vcombine.low %v10120_v18, %v10124_v0  ;;  %v18824_v18 = vcombine.low %v9329_v27, %v9333_v10  ;;  %v9449_v0 = vld [vmem:[#allocation12 + $0x598] sm:$0xff] }
 0xa73   : > { %16417 = vmatprep.subr.bf16.mxu1 %v19775_v29  ;;  %v19743_v44 = vcombine.high %v10248_v37, %v10252_v38  ;;  %v10112_v2 = vld [vmem:[#allocation12 + $0x1a50] sm:$0xff]  ;;  %v19742_v29 = vcombine.low %v10248_v37, %v10252_v38  ;;  %v9453_v37 = vld [vmem:[#allocation12 + $0x5b8] sm:$0xff] }
 0xa74   : > { %v10116_v45 = vld [vmem:[#allocation12 + $0x1a70] sm:$0xff]  ;;  %v9433_v10 = vld [vmem:[#allocation12 + $0x518] sm:$0xff] }
 0xa75   : > { %16377 = vmatpush2.bf16.msra.mxu0 %v19646_v52  ;;  %v10240_v55 = vld [vmem:[#allocation12 + $0x1e50] sm:$0xff]  ;;  %v19607_v61 = vcombine.high %v10112_v2, %v10116_v45 }
 0xa76   : > { %16418 = vmatpush2.bf16.msra.mxu1 %v19774_v46  ;;  %16378 = vmatprep.subr.bf16.mxu0 %v19639_v15  ;;  %v10244_v50 = vld [vmem:[#allocation12 + $0x1e70] sm:$0xff]  ;;  %v19606_v15 = vcombine.low %v10112_v2, %v10116_v45  ;;  %v18945_v45 = vcombine.high %v9449_v0, %v9453_v37 }
 0xa77   : > { %16419 = vmatprep.subr.bf16.mxu1 %v19767_v59  ;;  %v19735_v31 = vcombine.high %v10240_v55, %v10244_v50  ;;  %v10104_v11 = vld [vmem:[#allocation12 + $0x1a10] sm:$0xff]  ;;  %v19734_v59 = vcombine.low %v10240_v55, %v10244_v50  ;;  %v9441_v55 = vld [vmem:[#allocation12 + $0x558] sm:$0xff] }
 0xa78   : > { %v10108_v32 = vld [vmem:[#allocation12 + $0x1a30] sm:$0xff]  ;;  %v9445_v50 = vld [vmem:[#allocation12 + $0x578] sm:$0xff] }
 0xa79   : > { %16379 = vmatpush2.bf16.msra.mxu0 %v19638_v21  ;;  %v10232_v52 = vld [vmem:[#allocation12 + $0x1e10] sm:$0xff]  ;;  %v19599_v9 = vcombine.high %v10104_v11, %v10108_v32  ;;  %v9457_v21 = vld [vmem:[#allocation12 + $0x5d8] sm:$0xff] }
 0xa7a   : > { %16420 = vmatpush2.bf16.msra.mxu1 %v19766_v3  ;;  %16380 = vmatprep.subr.bf16.mxu0 %v19631_v7  ;;  %v10236_v46 = vld [vmem:[#allocation12 + $0x1e30] sm:$0xff]  ;;  %v9461_v3 = vld [vmem:[#allocation12 + $0x5f8] sm:$0xff]  ;;  %v19598_v7 = vcombine.low %v10104_v11, %v10108_v32  ;;  %v18944_v11 = vcombine.low %v9449_v0, %v9453_v37 }
 0xa7b   : > { %16421 = vmatprep.subr.bf16.mxu1 %v19759_v8  ;;  %v19727_v12 = vcombine.high %v10232_v52, %v10236_v46  ;;  %v10314_v8 = vsub.s32 4, %v23249_v19  ;;  %v19726_v20 = vcombine.low %v10232_v52, %v10236_v46  ;;  %v18953_v62 = vcombine.high %v9457_v21, %v9461_v3 }
 0xa7c   : > { %v18952_v38 = vcombine.low %v9457_v21, %v9461_v3  ;;  %v9437_v21 = vld [vmem:[#allocation12 + $0x538] sm:$0xff] }
 0xa7d   : > { %16381 = vmatpush2.bf16.msra.mxu0 %v19630_v42  ;;  %v9321_v42 = vld [vmem:[#allocation12 + $0x198] sm:$0xff]  ;;  %v18928_v37 = vcombine.low %v9433_v10, %v9437_v21 }
 0xa7e   : > { %16422 = vmatpush2.bf16.msra.mxu1 %v19758_v51  ;;  %16382 = vmatprep.subr.bf16.mxu0 %v19623_v16  ;;  %v9325_v51 = vld [vmem:[#allocation12 + $0x1b8] sm:$0xff]  ;;  %v21486_v16 = vld [vmem:[#allocation14] sm:$0xff] }
 0xa7f   : > { %16423 = vmatprep.subr.bf16.mxu1 %v19751_v17  ;;  %v10315_v17 = vrot.slane %v21486_v16, %v10314_v8 }
 0xa81   : > { %16383 = vmatpush2.bf16.msra.mxu0 %v19622_v54  ;;  %v10319_v54 = vrot.slane %v21486_v16, %v10318_v34  ;;  %v9301_v16 = vld [vmem:[#allocation12 + $0xf8] sm:$0xff] }
 0xa82   : > { %16424 = vmatpush2.bf16.msra.mxu1 %v19750_v63  ;;  %16384 = vmatprep.subr.bf16.mxu0 %v19615_v43  ;;  %v18817_v63 = vcombine.high %v9321_v42, %v9325_v51  ;;  %v9313_v43 = vld [vmem:[#allocation12 + $0x158] sm:$0xff] }
 0xa83   : > { %16425 = vmatprep.subr.bf16.mxu1 %v19743_v44  ;;  %v9317_v44 = vld [vmem:[#allocation12 + $0x178] sm:$0xff] }
 0xa84   : > { %v18809_v32 = vcombine.high %v9313_v43, %v9317_v44 }
 0xa85   : > { %16385 = vmatpush2.bf16.msra.mxu0 %v19614_v23 }
 0xa86   : > { %16426 = vmatpush2.bf16.msra.mxu1 %v19742_v29  ;;  %16386 = vmatprep.subr.bf16.mxu0 %v19607_v61  ;;  %v18816_v61 = vcombine.low %v9321_v42, %v9325_v51  ;;  %v18929_v42 = vcombine.high %v9433_v10, %v9437_v21  ;;  %v9297_v51 = vld [vmem:[#allocation12 + $0xd8] sm:$0xff] }
 0xa87   : > { %16427 = vmatprep.subr.bf16.mxu1 %v19735_v31  ;;  %v9405_v10 = vld [vmem:[#allocation12 + $0x438] sm:$0xff] }
 0xa89   : > { %16387 = vmatpush2.bf16.msra.mxu0 %v19606_v15 }
 0xa8a   : > { %16428 = vmatpush2.bf16.msra.mxu1 %v19734_v59  ;;  %16388 = vmatprep.subr.bf16.mxu0 %v19599_v9  ;;  %v18937_v59 = vcombine.high %v9441_v55, %v9445_v50  ;;  %v9305_v9 = vld [vmem:[#allocation12 + $0x118] sm:$0xff] }
 0xa8b   : > { %16429 = vmatprep.subr.bf16.mxu1 %v19727_v12  ;;  %v9309_v12 = vld [vmem:[#allocation12 + $0x138] sm:$0xff] }
 0xa8c   : > { %v18800_v0 = vcombine.low %v9305_v9, %v9309_v12 }
 0xa8d   : > { %16389 = vmatpush2.bf16.msra.mxu0 %v19598_v7  ;;  %v18808_v7 = vcombine.low %v9313_v43, %v9317_v44  ;;  %v9293_v43 = vld [vmem:[#allocation12 + $0xb8] sm:$0xff] }
 0xa8e   : > { %16430 = vmatpush2.bf16.msra.mxu1 %v19726_v20  ;;  %16440 = vmatprep.subr.bf16.mxu0 %v18825_v30  ;;  %v18936_v30 = vcombine.low %v9441_v55, %v9445_v50  ;;  %v9417_v44 = vld [vmem:[#allocation12 + $0x498] sm:$0xff] }
 0xa8f   : > { %16481 = vmatprep.subr.bf16.mxu1 %v18953_v62 }
 0xa90   : > { %v16146_v2 = vpop.f32.mrf.mxu0  ;;  %16391 = vmatmul.mubr.bf16.vlgmr.msra.gmra.mxu0 %v23807_v57 }
 0xa91   : > { %v16147_v23 = vadd.f32 %v16146_v2, %v10315_v17  ;;  %v16187_v29 = vpop.f32.mrf.mxu1  ;;  %16432 = vmatmul.mubr.bf16.vlgmr.msra.gmra.mxu1 %v23811_v58  ;;  %16441 = vmatpush1.bf16.msra.mxu0 %v18824_v18  ;;  %v9425_v17 = vld [vmem:[#allocation12 + $0x4d8] sm:$0xff] }
 0xa92   : > { %16472 = vmatprep.mubr.bf16.mxu0 %v23718_v5  ;;  %16482 = vmatpush1.bf16.msra.mxu1 %v18952_v38  ;;  %v16148_v31 = vpop.f32.mrf.mxu0  ;;  %v9429_v18 = vld [vmem:[#allocation12 + $0x4f8] sm:$0xff]  ;;  %v18793_v38 = vcombine.high %v9297_v51, %v9301_v16 }
 0xa93   : > { %v23902_v52 = vadd.f32 %v16187_v29, %v16147_v23  ;;  %16513 = vmatprep.mubr.bf16.mxu1 %v23720_v14  ;;  %v16149_v46 = vadd.f32 %v16148_v31, %v10319_v54  ;;  %v16189_v15 = vpop.f32.mrf.mxu1  ;;  %16442 = vmatprep.subr.bf16.mxu0 %v18817_v63  ;;  %v18801_v14 = vcombine.high %v9305_v9, %v9309_v12  ;;  %v9289_v63 = vld [vmem:[#allocation12 + $0x98] sm:$0xff] }
 0xa94   : > { %v16150_v27 = vpop.f32.mrf.mxu0  ;;  %16483 = vmatprep.subr.bf16.mxu1 %v18945_v45  ;;  %v18921_v54 = vcombine.high %v9425_v17, %v9429_v18  ;;  %v9421_v2 = vld [vmem:[#allocation12 + $0x4b8] sm:$0xff]  ;;  %v18792_v45 = vcombine.low %v9297_v51, %v9301_v16  ;;  %v18920_v55 = vcombine.low %v9425_v17, %v9429_v18  ;;  %v18785_v50 = vcombine.high %v9289_v63, %v9293_v43 }
 0xa95   : > { %v23905_v3 = vadd.f32 %v16189_v15, %v16149_v46  ;;  %v16191_v5 = vpop.f32.mrf.mxu1  ;;  %16443 = vmatpush1.bf16.msra.mxu0 %v18816_v61  ;;  %v18913_v23 = vcombine.high %v9417_v44, %v9421_v2  ;;  %v9281_v29 = vld [vmem:[#allocation12 + $0x58] sm:$0xff]  ;;  %v18912_v46 = vcombine.low %v9417_v44, %v9421_v2 }
 0xa96   : > { %16484 = vmatpush1.bf16.msra.mxu1 %v18944_v11  ;;  %v16151_v20 = vpop.f32.mrf.mxu0  ;;  %16444 = vmatprep.subr.bf16.mxu0 %v18809_v32  ;;  %v9285_v61 = vld [vmem:[#allocation12 + $0x78] sm:$0xff]  ;;  %v18784_v32 = vcombine.low %v9289_v63, %v9293_v43 }
 0xa97   : > { %v16192_v62 = vpop.f32.mrf.mxu1  ;;  %16485 = vmatprep.subr.bf16.mxu1 %v18937_v59  ;;  %v9409_v31 = vld [vmem:[#allocation12 + $0x458] sm:$0xff]  ;;  %v18777_v15 = vcombine.high %v9281_v29, %v9285_v61  ;;  %v18776_v21 = vcombine.low %v9281_v29, %v9285_v61 }
 0xa98   : > { %v9413_v11 = vld [vmem:[#allocation12 + $0x478] sm:$0xff] }
 0xa99   : > { %16445 = vmatpush1.bf16.msra.mxu0 %v18808_v7  ;;  %v18905_v59 = vcombine.high %v9409_v31, %v9413_v11  ;;  %v9273_v9 = vld [vmem:[#allocation12 + $0x18] sm:$0xff]  ;;  %v18904_v5 = vcombine.low %v9409_v31, %v9413_v11 }
 0xa9a   : > { %16486 = vmatpush1.bf16.msra.mxu1 %v18936_v30  ;;  %16446 = vmatprep.subr.bf16.mxu0 %v18801_v14  ;;  %v9277_v12 = vld [vmem:[#allocation12 + $0x38] sm:$0xff] }
 0xa9b   : > { %16487 = vmatprep.subr.bf16.mxu1 %v18929_v42  ;;  %v9401_v27 = vld [vmem:[#allocation12 + $0x418] sm:$0xff]  ;;  %v18769_v7 = vcombine.high %v9273_v9, %v9277_v12  ;;  %v18768_v51 = vcombine.low %v9273_v9, %v9277_v12 }
 0xa9c   : > { %v18897_v20 = vcombine.high %v9401_v27, %v9405_v10  ;;  %v9393_v30 = vld [vmem:[#allocation12 + $0x3d8] sm:$0xff]  ;;  %v18896_v16 = vcombine.low %v9401_v27, %v9405_v10 }
 0xa9d   : > { %16447 = vmatpush1.bf16.msra.mxu0 %v18800_v0  ;;  %v9397_v14 = vld [vmem:[#allocation12 + $0x3f8] sm:$0xff] }
 0xa9e   : > { %16488 = vmatpush1.bf16.msra.mxu1 %v18928_v37  ;;  %16448 = vmatprep.subr.bf16.mxu0 %v18793_v38  ;;  %v9521_v62 = vld [vmem:[#allocation12 + $0x7d8] sm:$0xff]  ;;  %v18889_v17 = vcombine.high %v9393_v30, %v9397_v14  ;;  %v18888_v63 = vcombine.low %v9393_v30, %v9397_v14 }
 0xa9f   : > { %16489 = vmatprep.subr.bf16.mxu1 %v18921_v54  ;;  %v9525_v42 = vld [vmem:[#allocation12 + $0x7f8] sm:$0xff] }
 0xaa0   : > { %v19017_v18 = vcombine.high %v9521_v62, %v9525_v42  ;;  %v9385_v0 = vld [vmem:[#allocation12 + $0x398] sm:$0xff]  ;;  %v19016_v43 = vcombine.low %v9521_v62, %v9525_v42 }
 0xaa1   : > { %16449 = vmatpush1.bf16.msra.mxu0 %v18792_v45  ;;  %v9389_v37 = vld [vmem:[#allocation12 + $0x3b8] sm:$0xff] }
 0xaa2   : > { %16490 = vmatpush1.bf16.msra.mxu1 %v18920_v55  ;;  %16450 = vmatprep.subr.bf16.mxu0 %v18785_v50  ;;  %v9513_v38 = vld [vmem:[#allocation12 + $0x798] sm:$0xff]  ;;  %v18881_v44 = vcombine.high %v9385_v0, %v9389_v37  ;;  %v18880_v29 = vcombine.low %v9385_v0, %v9389_v37 }
 0xaa3   : > { %16491 = vmatprep.subr.bf16.mxu1 %v18913_v23  ;;  %v9517_v54 = vld [vmem:[#allocation12 + $0x7b8] sm:$0xff] }
 0xaa4   : > { %v19009_v2 = vcombine.high %v9513_v38, %v9517_v54  ;;  %v9377_v45 = vld [vmem:[#allocation12 + $0x358] sm:$0xff]  ;;  %v19008_v61 = vcombine.low %v9513_v38, %v9517_v54 }
 0xaa5   : > { %16451 = vmatpush1.bf16.msra.mxu0 %v18784_v32  ;;  %v9381_v55 = vld [vmem:[#allocation12 + $0x378] sm:$0xff] }
 0xaa6   : > { %16492 = vmatpush1.bf16.msra.mxu1 %v18912_v46  ;;  %16452 = vmatprep.subr.bf16.mxu0 %v18777_v15  ;;  %v9505_v50 = vld [vmem:[#allocation12 + $0x758] sm:$0xff]  ;;  %v18873_v31 = vcombine.high %v9377_v45, %v9381_v55  ;;  %v18872_v9 = vcombine.low %v9377_v45, %v9381_v55 }
 0xaa7   : > { %16493 = vmatprep.subr.bf16.mxu1 %v18905_v59  ;;  %v9509_v23 = vld [vmem:[#allocation12 + $0x778] sm:$0xff] }
 0xaa8   : > { %v19001_v11 = vcombine.high %v9505_v50, %v9509_v23  ;;  %v9369_v32 = vld [vmem:[#allocation12 + $0x318] sm:$0xff]  ;;  %v19000_v12 = vcombine.low %v9505_v50, %v9509_v23 }
 0xaa9   : > { %16453 = vmatpush1.bf16.msra.mxu0 %v18776_v21  ;;  %v9373_v46 = vld [vmem:[#allocation12 + $0x338] sm:$0xff] }
 0xaaa   : > { %16494 = vmatpush1.bf16.msra.mxu1 %v18904_v5  ;;  %16454 = vmatprep.subr.bf16.mxu0 %v18769_v7  ;;  %v9497_v15 = vld [vmem:[#allocation12 + $0x718] sm:$0xff]  ;;  %v18865_v27 = vcombine.high %v9369_v32, %v9373_v46  ;;  %v18864_v30 = vcombine.low %v9369_v32, %v9373_v46 }
 0xaab   : > { %16495 = vmatprep.subr.bf16.mxu1 %v18897_v20  ;;  %v9501_v59 = vld [vmem:[#allocation12 + $0x738] sm:$0xff] }
 0xaac   : > { %v18993_v10 = vcombine.high %v9497_v15, %v9501_v59  ;;  %v9361_v21 = vld [vmem:[#allocation12 + $0x2d8] sm:$0xff]  ;;  %v18992_v14 = vcombine.low %v9497_v15, %v9501_v59 }
 0xaad   : > { %16455 = vmatpush1.bf16.msra.mxu0 %v18768_v51  ;;  %v9365_v5 = vld [vmem:[#allocation12 + $0x2f8] sm:$0xff] }
 0xaae   : > { %16496 = vmatpush1.bf16.msra.mxu1 %v18896_v16  ;;  %16456 = vmatprep.subr.bf16.mxu0 %v18889_v17  ;;  %v9489_v7 = vld [vmem:[#allocation12 + $0x6d8] sm:$0xff]  ;;  %v18857_v62 = vcombine.high %v9361_v21, %v9365_v5  ;;  %v18856_v0 = vcombine.low %v9361_v21, %v9365_v5 }
 0xaaf   : > { %16497 = vmatprep.subr.bf16.mxu1 %v19017_v18  ;;  %v9493_v20 = vld [vmem:[#allocation12 + $0x6f8] sm:$0xff] }
 0xab0   : > { %v18985_v42 = vcombine.high %v9489_v7, %v9493_v20  ;;  %v9353_v51 = vld [vmem:[#allocation12 + $0x298] sm:$0xff]  ;;  %v18984_v37 = vcombine.low %v9489_v7, %v9493_v20 }
 0xab1   : > { %16457 = vmatpush2.bf16.msra.mxu0 %v18888_v63  ;;  %v9357_v16 = vld [vmem:[#allocation12 + $0x2b8] sm:$0xff] }
 0xab2   : > { %16498 = vmatpush2.bf16.msra.mxu1 %v19016_v43  ;;  %16458 = vmatprep.subr.bf16.mxu0 %v18881_v44  ;;  %v9481_v17 = vld [vmem:[#allocation12 + $0x698] sm:$0xff]  ;;  %v18849_v38 = vcombine.high %v9353_v51, %v9357_v16  ;;  %v18848_v45 = vcombine.low %v9353_v51, %v9357_v16 }
 0xab3   : > { %16499 = vmatprep.subr.bf16.mxu1 %v19009_v2  ;;  %v9485_v18 = vld [vmem:[#allocation12 + $0x6b8] sm:$0xff] }
 0xab4   : > { %v18977_v54 = vcombine.high %v9481_v17, %v9485_v18  ;;  %v9345_v63 = vld [vmem:[#allocation12 + $0x258] sm:$0xff]  ;;  %v18976_v55 = vcombine.low %v9481_v17, %v9485_v18 }
 0xab5   : > { %16459 = vmatpush2.bf16.msra.mxu0 %v18880_v29  ;;  %v9349_v43 = vld [vmem:[#allocation12 + $0x278] sm:$0xff] }
 0xab6   : > { %16500 = vmatpush2.bf16.msra.mxu1 %v19008_v61  ;;  %16460 = vmatprep.subr.bf16.mxu0 %v18873_v31  ;;  %v9473_v44 = vld [vmem:[#allocation12 + $0x658] sm:$0xff]  ;;  %v18841_v50 = vcombine.high %v9345_v63, %v9349_v43  ;;  %v18840_v32 = vcombine.low %v9345_v63, %v9349_v43 }
 0xab7   : > { %16501 = vmatprep.subr.bf16.mxu1 %v19001_v11  ;;  %v9477_v2 = vld [vmem:[#allocation12 + $0x678] sm:$0xff] }
 0xab8   : > { %v18969_v23 = vcombine.high %v9473_v44, %v9477_v2  ;;  %v9337_v29 = vld [vmem:[#allocation12 + $0x218] sm:$0xff]  ;;  %v18968_v46 = vcombine.low %v9473_v44, %v9477_v2 }
 0xab9   : > { %16461 = vmatpush2.bf16.msra.mxu0 %v18872_v9  ;;  %v9341_v61 = vld [vmem:[#allocation12 + $0x238] sm:$0xff] }
 0xaba   : > { %16502 = vmatpush2.bf16.msra.mxu1 %v19000_v12  ;;  %16462 = vmatprep.subr.bf16.mxu0 %v18865_v27  ;;  %v9465_v31 = vld [vmem:[#allocation12 + $0x618] sm:$0xff]  ;;  %v18833_v15 = vcombine.high %v9337_v29, %v9341_v61  ;;  %v18832_v21 = vcombine.low %v9337_v29, %v9341_v61 }
 0xabb   : > { %16503 = vmatprep.subr.bf16.mxu1 %v18993_v10  ;;  %v9469_v11 = vld [vmem:[#allocation12 + $0x638] sm:$0xff] }
 0xabc   : > { %v18961_v59 = vcombine.high %v9465_v31, %v9469_v11  ;;  %v9585_v9 = vld [vmem:[#allocation12 + $0x9d8] sm:$0xff]  ;;  %v18960_v5 = vcombine.low %v9465_v31, %v9469_v11 }
 0xabd   : > { %16463 = vmatpush2.bf16.msra.mxu0 %v18864_v30  ;;  %v9589_v12 = vld [vmem:[#allocation12 + $0x9f8] sm:$0xff] }
 0xabe   : > { %16504 = vmatpush2.bf16.msra.mxu1 %v18992_v14  ;;  %16464 = vmatprep.subr.bf16.mxu0 %v18857_v62  ;;  %v9713_v27 = vld [vmem:[#allocation12 + $0xdd8] sm:$0xff]  ;;  %v19081_v7 = vcombine.high %v9585_v9, %v9589_v12  ;;  %v19080_v62 = vcombine.low %v9585_v9, %v9589_v12 }
 0xabf   : > { %16505 = vmatprep.subr.bf16.mxu1 %v18985_v42  ;;  %v9717_v10 = vld [vmem:[#allocation12 + $0xdf8] sm:$0xff] }
 0xac0   : > { %v19209_v20 = vcombine.high %v9713_v27, %v9717_v10  ;;  %v9577_v30 = vld [vmem:[#allocation12 + $0x998] sm:$0xff]  ;;  %v19208_v16 = vcombine.low %v9713_v27, %v9717_v10 }
 0xac1   : > { %16465 = vmatpush2.bf16.msra.mxu0 %v18856_v0  ;;  %v9581_v14 = vld [vmem:[#allocation12 + $0x9b8] sm:$0xff] }
 0xac2   : > { %16506 = vmatpush2.bf16.msra.mxu1 %v18984_v37  ;;  %16466 = vmatprep.subr.bf16.mxu0 %v18849_v38  ;;  %v9705_v42 = vld [vmem:[#allocation12 + $0xd98] sm:$0xff]  ;;  %v19073_v17 = vcombine.high %v9577_v30, %v9581_v14  ;;  %v19072_v2 = vcombine.low %v9577_v30, %v9581_v14 }
 0xac3   : > { %16507 = vmatprep.subr.bf16.mxu1 %v18977_v54  ;;  %v9709_v51 = vld [vmem:[#allocation12 + $0xdb8] sm:$0xff] }
 0xac4   : > { %v9569_v18 = vld [vmem:[#allocation12 + $0x958] sm:$0xff]  ;;  %v19201_v38 = vcombine.high %v9705_v42, %v9709_v51 }
 0xac5   : > { %16467 = vmatpush2.bf16.msra.mxu0 %v18848_v45  ;;  %v9573_v0 = vld [vmem:[#allocation12 + $0x978] sm:$0xff] }
 0xac6   : > { %16508 = vmatpush2.bf16.msra.mxu1 %v18976_v55  ;;  %16468 = vmatprep.subr.bf16.mxu0 %v18841_v50  ;;  %v9697_v54 = vld [vmem:[#allocation12 + $0xd58] sm:$0xff]  ;;  %v19200_v55 = vcombine.low %v9705_v42, %v9709_v51  ;;  %v19065_v50 = vcombine.high %v9569_v18, %v9573_v0 }
 0xac7   : > { %16509 = vmatprep.subr.bf16.mxu1 %v18969_v23  ;;  %v9701_v63 = vld [vmem:[#allocation12 + $0xd78] sm:$0xff] }
 0xac8   : > { %v9561_v61 = vld [vmem:[#allocation12 + $0x918] sm:$0xff] }
 0xac9   : > { %16469 = vmatpush2.bf16.msra.mxu0 %v18840_v32  ;;  %v9565_v31 = vld [vmem:[#allocation12 + $0x938] sm:$0xff] }
 0xaca   : > { %16510 = vmatpush2.bf16.msra.mxu1 %v18968_v46  ;;  %16470 = vmatprep.subr.bf16.mxu0 %v18833_v15  ;;  %v9689_v11 = vld [vmem:[#allocation12 + $0xd18] sm:$0xff]  ;;  %v19064_v15 = vcombine.low %v9569_v18, %v9573_v0  ;;  %v19057_v9 = vcombine.high %v9561_v61, %v9565_v31 }
 0xacb   : > { %16511 = vmatprep.subr.bf16.mxu1 %v18961_v59  ;;  %v9693_v32 = vld [vmem:[#allocation12 + $0xd38] sm:$0xff] }
 0xacc   : > { %v19185_v12 = vcombine.high %v9689_v11, %v9693_v32  ;;  %v9553_v27 = vld [vmem:[#allocation12 + $0x8d8] sm:$0xff] }
 0xacd   : > { %16471 = vmatpush2.bf16.msra.mxu0 %v18832_v21  ;;  %v9557_v10 = vld [vmem:[#allocation12 + $0x8f8] sm:$0xff] }
 0xace   : > { %16512 = vmatpush2.bf16.msra.mxu1 %v18960_v5  ;;  %16522 = vmatprep.subr.bf16.mxu0 %v19081_v7  ;;  %v9681_v21 = vld [vmem:[#allocation12 + $0xcd8] sm:$0xff]  ;;  %v19056_v7 = vcombine.low %v9561_v61, %v9565_v31  ;;  %v19049_v30 = vcombine.high %v9553_v27, %v9557_v10 }
 0xacf   : > { %16563 = vmatprep.subr.bf16.mxu1 %v19209_v20  ;;  %v9685_v5 = vld [vmem:[#allocation12 + $0xcf8] sm:$0xff]  ;;  %v19184_v20 = vcombine.low %v9689_v11, %v9693_v32 }
 0xad0   : > { %v16228_v37 = vpop.f32.mrf.mxu0  ;;  %16473 = vmatmul.mubr.bf16.vlgmr.msra.gmra.mxu0 %v23722_v28  ;;  %v19177_v14 = vcombine.high %v9681_v21, %v9685_v5  ;;  %v9549_v42 = vld [vmem:[#allocation12 + $0x8b8] sm:$0xff]  ;;  %v19176_v18 = vcombine.low %v9681_v21, %v9685_v5 }
 0xad1   : > { %v16229_v43 = vadd.f32 %v16228_v37, %v23902_v52  ;;  %v16269_v44 = vpop.f32.mrf.mxu1  ;;  %16514 = vmatmul.mubr.bf16.vlgmr.msra.gmra.mxu1 %v23716_v53  ;;  %16523 = vmatpush1.bf16.msra.mxu0 %v19080_v62  ;;  %v19193_v52 = vcombine.high %v9697_v54, %v9701_v63  ;;  %v9545_v62 = vld [vmem:[#allocation12 + $0x898] sm:$0xff] }
 0xad2   : > { %16554 = vmatprep.mubr.bf16.mxu0 %v23732_v33  ;;  %16564 = vmatpush1.bf16.msra.mxu1 %v19208_v16  ;;  %v16230_v45 = vpop.f32.mrf.mxu0  ;;  %v9673_v51 = vld [vmem:[#allocation12 + $0xc98] sm:$0xff]  ;;  %v19041_v0 = vcombine.high %v9545_v62, %v9549_v42 }
 0xad3   : > { %v23911_v23 = vadd.f32 %v16269_v44, %v16229_v43  ;;  %16595 = vmatprep.mubr.bf16.mxu1 %v23734_v48  ;;  %v16231_v28 = vadd.f32 %v16230_v45, %v23905_v3  ;;  %v16271_v29 = vpop.f32.mrf.mxu1  ;;  %16524 = vmatprep.subr.bf16.mxu0 %v19073_v17  ;;  %v19192_v48 = vcombine.low %v9697_v54, %v9701_v63  ;;  %v9677_v16 = vld [vmem:[#allocation12 + $0xcb8] sm:$0xff] }
 0xad4   : > { %v16232_v53 = vpop.f32.mrf.mxu0  ;;  %16565 = vmatprep.subr.bf16.mxu1 %v19201_v38  ;;  %v19048_v17 = vcombine.low %v9553_v27, %v9557_v10  ;;  %v19169_v37 = vcombine.high %v9673_v51, %v9677_v16  ;;  %v9537_v38 = vld [vmem:[#allocation12 + $0x858] sm:$0xff]  ;;  %v19040_v44 = vcombine.low %v9545_v62, %v9549_v42 }
 0xad5   : > { %v23915_v33 = vadd.f32 %v16271_v29, %v16231_v28  ;;  %v16273_v46 = vpop.f32.mrf.mxu1  ;;  %16525 = vmatpush1.bf16.msra.mxu0 %v19072_v2  ;;  %v9541_v54 = vld [vmem:[#allocation12 + $0x878] sm:$0xff]  ;;  %v19168_v2 = vcombine.low %v9673_v51, %v9677_v16 }
 0xad6   : > { %16566 = vmatpush1.bf16.msra.mxu1 %v19200_v55  ;;  %v16233_v59 = vpop.f32.mrf.mxu0  ;;  %16526 = vmatprep.subr.bf16.mxu0 %v19065_v50  ;;  %v9665_v63 = vld [vmem:[#allocation12 + $0xc58] sm:$0xff]  ;;  %v19033_v45 = vcombine.high %v9537_v38, %v9541_v54  ;;  %v19032_v61 = vcombine.low %v9537_v38, %v9541_v54 }
 0xad7   : > { %v16274_v3 = vpop.f32.mrf.mxu1  ;;  %16567 = vmatprep.subr.bf16.mxu1 %v19193_v52  ;;  %v9669_v43 = vld [vmem:[#allocation12 + $0xc78] sm:$0xff] }
 0xad8   : > { %v19161_v55 = vcombine.high %v9665_v63, %v9669_v43  ;;  %v9529_v50 = vld [vmem:[#allocation12 + $0x818] sm:$0xff]  ;;  %v19160_v31 = vcombine.low %v9665_v63, %v9669_v43 }
 0xad9   : > { %16527 = vmatpush1.bf16.msra.mxu0 %v19064_v15  ;;  %v9533_v28 = vld [vmem:[#allocation12 + $0x838] sm:$0xff] }
 0xada   : > { %16568 = vmatpush1.bf16.msra.mxu1 %v19192_v48  ;;  %16528 = vmatprep.subr.bf16.mxu0 %v19057_v9  ;;  %v9657_v29 = vld [vmem:[#allocation12 + $0xc18] sm:$0xff]  ;;  %v19025_v53 = vcombine.high %v9529_v50, %v9533_v28  ;;  %v19024_v48 = vcombine.low %v9529_v50, %v9533_v28 }
 0xadb   : > { %16569 = vmatprep.subr.bf16.mxu1 %v19185_v12  ;;  %v9661_v52 = vld [vmem:[#allocation12 + $0xc38] sm:$0xff] }
 0xadc   : > { %v19153_v11 = vcombine.high %v9657_v29, %v9661_v52  ;;  %v9649_v32 = vld [vmem:[#allocation12 + $0xbd8] sm:$0xff]  ;;  %v19152_v9 = vcombine.low %v9657_v29, %v9661_v52 }
 0xadd   : > { %16529 = vmatpush1.bf16.msra.mxu0 %v19056_v7  ;;  %v9653_v46 = vld [vmem:[#allocation12 + $0xbf8] sm:$0xff] }
 0xade   : > { %16570 = vmatpush1.bf16.msra.mxu1 %v19184_v20  ;;  %16530 = vmatprep.subr.bf16.mxu0 %v19049_v30  ;;  %v9777_v15 = vld [vmem:[#allocation12 + $0xfd8] sm:$0xff]  ;;  %v19145_v3 = vcombine.high %v9649_v32, %v9653_v46  ;;  %v19144_v7 = vcombine.low %v9649_v32, %v9653_v46 }
 0xadf   : > { %16571 = vmatprep.subr.bf16.mxu1 %v19177_v14  ;;  %v9781_v59 = vld [vmem:[#allocation12 + $0xff8] sm:$0xff] }
 0xae0   : > { %v19273_v12 = vcombine.high %v9777_v15, %v9781_v59  ;;  %v9641_v27 = vld [vmem:[#allocation12 + $0xb98] sm:$0xff]  ;;  %v19272_v20 = vcombine.low %v9777_v15, %v9781_v59 }
 0xae1   : > { %16531 = vmatpush1.bf16.msra.mxu0 %v19048_v17  ;;  %v9645_v10 = vld [vmem:[#allocation12 + $0xbb8] sm:$0xff] }
 0xae2   : > { %16572 = vmatpush1.bf16.msra.mxu1 %v19176_v18  ;;  %16532 = vmatprep.subr.bf16.mxu0 %v19041_v0  ;;  %v9769_v21 = vld [vmem:[#allocation12 + $0xf98] sm:$0xff]  ;;  %v19137_v30 = vcombine.high %v9641_v27, %v9645_v10  ;;  %v19136_v17 = vcombine.low %v9641_v27, %v9645_v10 }
 0xae3   : > { %16573 = vmatprep.subr.bf16.mxu1 %v19169_v37  ;;  %v9773_v5 = vld [vmem:[#allocation12 + $0xfb8] sm:$0xff] }
 0xae4   : > { %v19265_v14 = vcombine.high %v9769_v21, %v9773_v5  ;;  %v9633_v62 = vld [vmem:[#allocation12 + $0xb58] sm:$0xff]  ;;  %v19264_v18 = vcombine.low %v9769_v21, %v9773_v5 }
 0xae5   : > { %16533 = vmatpush1.bf16.msra.mxu0 %v19040_v44  ;;  %v9637_v42 = vld [vmem:[#allocation12 + $0xb78] sm:$0xff] }
 0xae6   : > { %16574 = vmatpush1.bf16.msra.mxu1 %v19168_v2  ;;  %16534 = vmatprep.subr.bf16.mxu0 %v19033_v45  ;;  %v9761_v51 = vld [vmem:[#allocation12 + $0xf58] sm:$0xff]  ;;  %v19129_v0 = vcombine.high %v9633_v62, %v9637_v42  ;;  %v19128_v44 = vcombine.low %v9633_v62, %v9637_v42 }
 0xae7   : > { %16575 = vmatprep.subr.bf16.mxu1 %v19161_v55  ;;  %v9765_v16 = vld [vmem:[#allocation12 + $0xf78] sm:$0xff] }
 0xae8   : > { %v19257_v37 = vcombine.high %v9761_v51, %v9765_v16  ;;  %v9625_v38 = vld [vmem:[#allocation12 + $0xb18] sm:$0xff]  ;;  %v19256_v2 = vcombine.low %v9761_v51, %v9765_v16 }
 0xae9   : > { %16535 = vmatpush1.bf16.msra.mxu0 %v19032_v61  ;;  %v9629_v54 = vld [vmem:[#allocation12 + $0xb38] sm:$0xff] }
 0xaea   : > { %16576 = vmatpush1.bf16.msra.mxu1 %v19160_v31  ;;  %16536 = vmatprep.subr.bf16.mxu0 %v19025_v53  ;;  %v9753_v63 = vld [vmem:[#allocation12 + $0xf18] sm:$0xff]  ;;  %v19121_v45 = vcombine.high %v9625_v38, %v9629_v54  ;;  %v19120_v61 = vcombine.low %v9625_v38, %v9629_v54 }
 0xaeb   : > { %16577 = vmatprep.subr.bf16.mxu1 %v19153_v11  ;;  %v9757_v43 = vld [vmem:[#allocation12 + $0xf38] sm:$0xff] }
 0xaec   : > { %v19249_v55 = vcombine.high %v9753_v63, %v9757_v43  ;;  %v9617_v50 = vld [vmem:[#allocation12 + $0xad8] sm:$0xff]  ;;  %v19248_v31 = vcombine.low %v9753_v63, %v9757_v43 }
 0xaed   : > { %16537 = vmatpush1.bf16.msra.mxu0 %v19024_v48  ;;  %v9621_v28 = vld [vmem:[#allocation12 + $0xaf8] sm:$0xff] }
 0xaee   : > { %16578 = vmatpush1.bf16.msra.mxu1 %v19152_v9  ;;  %16538 = vmatprep.subr.bf16.mxu0 %v19145_v3  ;;  %v9745_v29 = vld [vmem:[#allocation12 + $0xed8] sm:$0xff]  ;;  %v19113_v53 = vcombine.high %v9617_v50, %v9621_v28  ;;  %v19112_v48 = vcombine.low %v9617_v50, %v9621_v28 }
 0xaef   : > { %16579 = vmatprep.subr.bf16.mxu1 %v19273_v12  ;;  %v9749_v52 = vld [vmem:[#allocation12 + $0xef8] sm:$0xff] }
 0xaf0   : > { %v19241_v11 = vcombine.high %v9745_v29, %v9749_v52  ;;  %v9609_v32 = vld [vmem:[#allocation12 + $0xa98] sm:$0xff]  ;;  %v19240_v9 = vcombine.low %v9745_v29, %v9749_v52 }
 0xaf1   : > { %16539 = vmatpush2.bf16.msra.mxu0 %v19144_v7  ;;  %v9613_v46 = vld [vmem:[#allocation12 + $0xab8] sm:$0xff] }
 0xaf2   : > { %16580 = vmatpush2.bf16.msra.mxu1 %v19272_v20  ;;  %16540 = vmatprep.subr.bf16.mxu0 %v19137_v30  ;;  %v9737_v15 = vld [vmem:[#allocation12 + $0xe98] sm:$0xff]  ;;  %v19105_v3 = vcombine.high %v9609_v32, %v9613_v46  ;;  %v19104_v7 = vcombine.low %v9609_v32, %v9613_v46 }
 0xaf3   : > { %16581 = vmatprep.subr.bf16.mxu1 %v19265_v14  ;;  %v9741_v59 = vld [vmem:[#allocation12 + $0xeb8] sm:$0xff] }
 0xaf4   : > { %v19233_v12 = vcombine.high %v9737_v15, %v9741_v59  ;;  %v9601_v27 = vld [vmem:[#allocation12 + $0xa58] sm:$0xff]  ;;  %v19232_v20 = vcombine.low %v9737_v15, %v9741_v59 }
 0xaf5   : > { %16541 = vmatpush2.bf16.msra.mxu0 %v19136_v17  ;;  %v9605_v10 = vld [vmem:[#allocation12 + $0xa78] sm:$0xff] }
 0xaf6   : > { %16582 = vmatpush2.bf16.msra.mxu1 %v19264_v18  ;;  %16542 = vmatprep.subr.bf16.mxu0 %v19129_v0  ;;  %v9729_v21 = vld [vmem:[#allocation12 + $0xe58] sm:$0xff]  ;;  %v19097_v30 = vcombine.high %v9601_v27, %v9605_v10  ;;  %v19096_v17 = vcombine.low %v9601_v27, %v9605_v10 }
 0xaf7   : > { %16583 = vmatprep.subr.bf16.mxu1 %v19257_v37  ;;  %v9733_v5 = vld [vmem:[#allocation12 + $0xe78] sm:$0xff] }
 0xaf8   : > { %v19225_v14 = vcombine.high %v9729_v21, %v9733_v5  ;;  %v9593_v62 = vld [vmem:[#allocation12 + $0xa18] sm:$0xff]  ;;  %v19224_v18 = vcombine.low %v9729_v21, %v9733_v5 }
 0xaf9   : > { %16543 = vmatpush2.bf16.msra.mxu0 %v19128_v44  ;;  %v9597_v42 = vld [vmem:[#allocation12 + $0xa38] sm:$0xff] }
 0xafa   : > { %16584 = vmatpush2.bf16.msra.mxu1 %v19256_v2  ;;  %16544 = vmatprep.subr.bf16.mxu0 %v19121_v45  ;;  %v9721_v51 = vld [vmem:[#allocation12 + $0xe18] sm:$0xff]  ;;  %v19089_v0 = vcombine.high %v9593_v62, %v9597_v42  ;;  %v19088_v44 = vcombine.low %v9593_v62, %v9597_v42 }
 0xafb   : > { %16585 = vmatprep.subr.bf16.mxu1 %v19249_v55  ;;  %v9725_v16 = vld [vmem:[#allocation12 + $0xe38] sm:$0xff] }
 0xafc   : > { %v19217_v37 = vcombine.high %v9721_v51, %v9725_v16  ;;  %v9841_v38 = vld [vmem:[#allocation12 + $0x11d8] sm:$0xff]  ;;  %v19216_v2 = vcombine.low %v9721_v51, %v9725_v16 }
 0xafd   : > { %16545 = vmatpush2.bf16.msra.mxu0 %v19120_v61  ;;  %v9845_v54 = vld [vmem:[#allocation12 + $0x11f8] sm:$0xff] }
 0xafe   : > { %16586 = vmatpush2.bf16.msra.mxu1 %v19248_v31  ;;  %16546 = vmatprep.subr.bf16.mxu0 %v19113_v53  ;;  %v9969_v63 = vld [vmem:[#allocation12 + $0x15d8] sm:$0xff]  ;;  %v19337_v45 = vcombine.high %v9841_v38, %v9845_v54  ;;  %v19336_v61 = vcombine.low %v9841_v38, %v9845_v54 }
 0xaff   : > { %16587 = vmatprep.subr.bf16.mxu1 %v19241_v11  ;;  %v9973_v43 = vld [vmem:[#allocation12 + $0x15f8] sm:$0xff] }
 0xb00   : > { %v19465_v55 = vcombine.high %v9969_v63, %v9973_v43  ;;  %v9833_v50 = vld [vmem:[#allocation12 + $0x1198] sm:$0xff]  ;;  %v19464_v31 = vcombine.low %v9969_v63, %v9973_v43 }
 0xb01   : > { %16547 = vmatpush2.bf16.msra.mxu0 %v19112_v48  ;;  %v9837_v28 = vld [vmem:[#allocation12 + $0x11b8] sm:$0xff] }
 0xb02   : > { %16588 = vmatpush2.bf16.msra.mxu1 %v19240_v9  ;;  %16548 = vmatprep.subr.bf16.mxu0 %v19105_v3  ;;  %v9961_v29 = vld [vmem:[#allocation12 + $0x1598] sm:$0xff]  ;;  %v19329_v53 = vcombine.high %v9833_v50, %v9837_v28 }
 0xb03   : > { %16589 = vmatprep.subr.bf16.mxu1 %v19233_v12  ;;  %v9965_v52 = vld [vmem:[#allocation12 + $0x15b8] sm:$0xff]  ;;  %v19328_v12 = vcombine.low %v9833_v50, %v9837_v28 }
 0xb04   : > { %v19457_v11 = vcombine.high %v9961_v29, %v9965_v52  ;;  %v9825_v32 = vld [vmem:[#allocation12 + $0x1158] sm:$0xff]  ;;  %v19456_v10 = vcombine.low %v9961_v29, %v9965_v52 }
 0xb05   : > { %16549 = vmatpush2.bf16.msra.mxu0 %v19104_v7  ;;  %v9829_v46 = vld [vmem:[#allocation12 + $0x1178] sm:$0xff] }
 0xb06   : > { %16590 = vmatpush2.bf16.msra.mxu1 %v19232_v20  ;;  %16550 = vmatprep.subr.bf16.mxu0 %v19097_v30  ;;  %v9953_v59 = vld [vmem:[#allocation12 + $0x1558] sm:$0xff]  ;;  %v19321_v21 = vcombine.high %v9825_v32, %v9829_v46  ;;  %v19320_v16 = vcombine.low %v9825_v32, %v9829_v46 }
 0xb07   : > { %16591 = vmatprep.subr.bf16.mxu1 %v19225_v14  ;;  %v9957_v48 = vld [vmem:[#allocation12 + $0x1578] sm:$0xff] }
 0xb08   : > { %v9817_v30 = vld [vmem:[#allocation12 + $0x1118] sm:$0xff] }
 0xb09   : > { %16551 = vmatpush2.bf16.msra.mxu0 %v19096_v17  ;;  %v9821_v14 = vld [vmem:[#allocation12 + $0x1138] sm:$0xff]  ;;  %v19448_v17 = vcombine.low %v9953_v59, %v9957_v48 }
 0xb0a   : > { %16592 = vmatpush2.bf16.msra.mxu1 %v19224_v18  ;;  %16552 = vmatprep.subr.bf16.mxu0 %v19089_v0  ;;  %v9949_v62 = vld [vmem:[#allocation12 + $0x1538] sm:$0xff]  ;;  %v19313_v18 = vcombine.high %v9817_v30, %v9821_v14  ;;  %v19312_v43 = vcombine.low %v9817_v30, %v9821_v14 }
 0xb0b   : > { %16593 = vmatprep.subr.bf16.mxu1 %v19217_v37  ;;  %v9809_v38 = vld [vmem:[#allocation12 + $0x10d8] sm:$0xff] }
 0xb0c   : > { %v9937_v54 = vld [vmem:[#allocation12 + $0x14d8] sm:$0xff] }
 0xb0d   : > { %16553 = vmatpush2.bf16.msra.mxu0 %v19088_v44  ;;  %v9941_v63 = vld [vmem:[#allocation12 + $0x14f8] sm:$0xff] }
 0xb0e   : > { %16594 = vmatpush2.bf16.msra.mxu1 %v19216_v2  ;;  %16604 = vmatprep.subr.bf16.mxu0 %v19337_v45  ;;  %v19433_v2 = vcombine.high %v9937_v54, %v9941_v63  ;;  %v9801_v45 = vld [vmem:[#allocation12 + $0x1098] sm:$0xff]  ;;  %v19432_v52 = vcombine.low %v9937_v54, %v9941_v63 }
 0xb0f   : > { %16645 = vmatprep.subr.bf16.mxu1 %v19465_v55  ;;  %v9805_v55 = vld [vmem:[#allocation12 + $0x10b8] sm:$0xff] }
 0xb10   : > { %v16310_v15 = vpop.f32.mrf.mxu0  ;;  %16555 = vmatmul.mubr.bf16.vlgmr.msra.gmra.mxu0 %v23763_v26  ;;  %v19449_v26 = vcombine.high %v9953_v59, %v9957_v48  ;;  %v9929_v50 = vld [vmem:[#allocation12 + $0x1498] sm:$0xff] }
 0xb11   : > { %v16311_v9 = vadd.f32 %v16310_v15, %v23911_v23  ;;  %16596 = vmatmul.mubr.bf16.vlgmr.msra.gmra.mxu1 %v23759_v24  ;;  %16605 = vmatpush1.bf16.msra.mxu0 %v19336_v61  ;;  %v16351_v3 = vpop.f32.mrf.mxu1  ;;  %v9945_v23 = vld [vmem:[#allocation12 + $0x1518] sm:$0xff]  ;;  %v19297_v61 = vcombine.high %v9801_v45, %v9805_v55  ;;  %v19296_v15 = vcombine.low %v9801_v45, %v9805_v55 }
 0xb12   : > { %v16312_v27 = vpop.f32.mrf.mxu0  ;;  %16646 = vmatpush1.bf16.msra.mxu1 %v19464_v31  ;;  %16606 = vmatprep.subr.bf16.mxu0 %v19329_v53  ;;  %v19441_v37 = vcombine.high %v9945_v23, %v9949_v62  ;;  %v9933_v28 = vld [vmem:[#allocation12 + $0x14b8] sm:$0xff] }
 0xb13   : > { %v16313_v5 = vadd.f32 %v16312_v27, %v23915_v33  ;;  %v23921_v7 = vadd.f32 %v16351_v3, %v16311_v9  ;;  %v16353_v20 = vpop.f32.mrf.mxu1  ;;  %16647 = vmatprep.subr.bf16.mxu1 %v19457_v11  ;;  %16636 = vmatprep.mubr.bf16.mxu0 %v23765_v47  ;;  %v9813_v47 = vld [vmem:[#allocation12 + $0x10f8] sm:$0xff]  ;;  %v19425_v31 = vcombine.high %v9929_v50, %v9933_v28 }
 0xb14   : > { %v16314_v24 = vpop.f32.mrf.mxu0  ;;  %16677 = vmatprep.mubr.bf16.mxu1 %v23767_v13  ;;  %v19440_v13 = vcombine.low %v9945_v23, %v9949_v62  ;;  %v19305_v44 = vcombine.high %v9809_v38, %v9813_v47  ;;  %v19304_v29 = vcombine.low %v9809_v38, %v9813_v47  ;;  %v9793_v53 = vld [vmem:[#allocation12 + $0x1058] sm:$0xff]  ;;  %v19424_v59 = vcombine.low %v9929_v50, %v9933_v28 }
 0xb15   : > { %v23925_v42 = vadd.f32 %v16353_v20, %v16313_v5  ;;  %16607 = vmatpush1.bf16.msra.mxu0 %v19328_v12  ;;  %v16355_v51 = vpop.f32.mrf.mxu1  ;;  %v9797_v11 = vld [vmem:[#allocation12 + $0x1078] sm:$0xff] }
 0xb16   : > { %v16315_v33 = vpop.f32.mrf.mxu0  ;;  %16648 = vmatpush1.bf16.msra.mxu1 %v19456_v10  ;;  %16608 = vmatprep.subr.bf16.mxu0 %v19321_v21  ;;  %v9921_v32 = vld [vmem:[#allocation12 + $0x1458] sm:$0xff]  ;;  %v19289_v48 = vcombine.high %v9793_v53, %v9797_v11  ;;  %v19288_v21 = vcombine.low %v9793_v53, %v9797_v11 }
 0xb17   : > { %v16356_v0 = vpop.f32.mrf.mxu1  ;;  %16649 = vmatprep.subr.bf16.mxu1 %v19449_v26  ;;  %v9925_v46 = vld [vmem:[#allocation12 + $0x1478] sm:$0xff] }
 0xb18   : > { %v19417_v9 = vcombine.high %v9921_v32, %v9925_v46  ;;  %v9785_v3 = vld [vmem:[#allocation12 + $0x1018] sm:$0xff]  ;;  %v19416_v5 = vcombine.low %v9921_v32, %v9925_v46 }
 0xb19   : > { %16609 = vmatpush1.bf16.msra.mxu0 %v19320_v16  ;;  %v9789_v12 = vld [vmem:[#allocation12 + $0x1038] sm:$0xff] }
 0xb1a   : > { %16650 = vmatpush1.bf16.msra.mxu1 %v19448_v17  ;;  %16610 = vmatprep.subr.bf16.mxu0 %v19313_v18  ;;  %v9913_v27 = vld [vmem:[#allocation12 + $0x1418] sm:$0xff]  ;;  %v19281_v20 = vcombine.high %v9785_v3, %v9789_v12  ;;  %v19280_v62 = vcombine.low %v9785_v3, %v9789_v12 }
 0xb1b   : > { %16651 = vmatprep.subr.bf16.mxu1 %v19441_v37  ;;  %v9917_v10 = vld [vmem:[#allocation12 + $0x1438] sm:$0xff] }
 0xb1c   : > { %v19409_v26 = vcombine.high %v9913_v27, %v9917_v10  ;;  %v9905_v30 = vld [vmem:[#allocation12 + $0x13d8] sm:$0xff]  ;;  %v19408_v51 = vcombine.low %v9913_v27, %v9917_v10 }
 0xb1d   : > { %16611 = vmatpush1.bf16.msra.mxu0 %v19312_v43  ;;  %v9909_v14 = vld [vmem:[#allocation12 + $0x13f8] sm:$0xff] }
 0xb1e   : > { %16652 = vmatpush1.bf16.msra.mxu1 %v19440_v13  ;;  %16612 = vmatprep.subr.bf16.mxu0 %v19305_v44  ;;  %v10033_v24 = vld [vmem:[#allocation12 + $0x17d8] sm:$0xff]  ;;  %v19401_v16 = vcombine.high %v9905_v30, %v9909_v14  ;;  %v19400_v38 = vcombine.low %v9905_v30, %v9909_v14 }
 0xb1f   : > { %16653 = vmatprep.subr.bf16.mxu1 %v19433_v2  ;;  %v10037_v23 = vld [vmem:[#allocation12 + $0x17f8] sm:$0xff] }
 0xb20   : > { %v19529_v33 = vcombine.high %v10033_v24, %v10037_v23  ;;  %v9897_v17 = vld [vmem:[#allocation12 + $0x1398] sm:$0xff]  ;;  %v19528_v47 = vcombine.low %v10033_v24, %v10037_v23 }
 0xb21   : > { %16613 = vmatpush1.bf16.msra.mxu0 %v19304_v29  ;;  %v9901_v18 = vld [vmem:[#allocation12 + $0x13b8] sm:$0xff] }
 0xb22   : > { %16654 = vmatpush1.bf16.msra.mxu1 %v19432_v52  ;;  %16614 = vmatprep.subr.bf16.mxu0 %v19297_v61  ;;  %v10025_v0 = vld [vmem:[#allocation12 + $0x1798] sm:$0xff]  ;;  %v19393_v54 = vcombine.high %v9897_v17, %v9901_v18  ;;  %v19392_v45 = vcombine.low %v9897_v17, %v9901_v18 }
 0xb23   : > { %16655 = vmatprep.subr.bf16.mxu1 %v19425_v31  ;;  %v10029_v37 = vld [vmem:[#allocation12 + $0x17b8] sm:$0xff] }
 0xb24   : > { %v19521_v63 = vcombine.high %v10025_v0, %v10029_v37  ;;  %v9889_v43 = vld [vmem:[#allocation12 + $0x1358] sm:$0xff]  ;;  %v19520_v55 = vcombine.low %v10025_v0, %v10029_v37 }
 0xb25   : > { %16615 = vmatpush1.bf16.msra.mxu0 %v19296_v15  ;;  %v9893_v13 = vld [vmem:[#allocation12 + $0x1378] sm:$0xff] }
 0xb26   : > { %16656 = vmatpush1.bf16.msra.mxu1 %v19424_v59  ;;  %16616 = vmatprep.subr.bf16.mxu0 %v19289_v48  ;;  %v10017_v44 = vld [vmem:[#allocation12 + $0x1758] sm:$0xff]  ;;  %v19385_v50 = vcombine.high %v9889_v43, %v9893_v13  ;;  %v19384_v53 = vcombine.low %v9889_v43, %v9893_v13 }
 0xb27   : > { %16657 = vmatprep.subr.bf16.mxu1 %v19417_v9  ;;  %v10021_v2 = vld [vmem:[#allocation12 + $0x1778] sm:$0xff] }
 0xb28   : > { %v19513_v28 = vcombine.high %v10017_v44, %v10021_v2  ;;  %v9881_v29 = vld [vmem:[#allocation12 + $0x1318] sm:$0xff]  ;;  %v19512_v11 = vcombine.low %v10017_v44, %v10021_v2 }
 0xb29   : > { %16617 = vmatpush1.bf16.msra.mxu0 %v19288_v21  ;;  %v9885_v52 = vld [vmem:[#allocation12 + $0x1338] sm:$0xff] }
 0xb2a   : > { %16658 = vmatpush1.bf16.msra.mxu1 %v19416_v5  ;;  %16618 = vmatprep.subr.bf16.mxu0 %v19281_v20  ;;  %v10009_v61 = vld [vmem:[#allocation12 + $0x1718] sm:$0xff]  ;;  %v19377_v32 = vcombine.high %v9881_v29, %v9885_v52  ;;  %v19376_v3 = vcombine.low %v9881_v29, %v9885_v52 }
 0xb2b   : > { %16659 = vmatprep.subr.bf16.mxu1 %v19409_v26  ;;  %v10013_v31 = vld [vmem:[#allocation12 + $0x1738] sm:$0xff] }
 0xb2c   : > { %v19505_v46 = vcombine.high %v10009_v61, %v10013_v31  ;;  %v9873_v15 = vld [vmem:[#allocation12 + $0x12d8] sm:$0xff]  ;;  %v19504_v12 = vcombine.low %v10009_v61, %v10013_v31 }
 0xb2d   : > { %16619 = vmatpush1.bf16.msra.mxu0 %v19280_v62  ;;  %v9877_v59 = vld [vmem:[#allocation12 + $0x12f8] sm:$0xff] }
 0xb2e   : > { %16660 = vmatpush1.bf16.msra.mxu1 %v19408_v51  ;;  %16620 = vmatprep.subr.bf16.mxu0 %v19401_v16  ;;  %v10001_v48 = vld [vmem:[#allocation12 + $0x16d8] sm:$0xff]  ;;  %v19369_v27 = vcombine.high %v9873_v15, %v9877_v59  ;;  %v19368_v30 = vcombine.low %v9873_v15, %v9877_v59 }
 0xb2f   : > { %16661 = vmatprep.subr.bf16.mxu1 %v19529_v33  ;;  %v10005_v9 = vld [vmem:[#allocation12 + $0x16f8] sm:$0xff] }
 0xb30   : > { %v19497_v10 = vcombine.high %v10001_v48, %v10005_v9  ;;  %v9865_v21 = vld [vmem:[#allocation12 + $0x1298] sm:$0xff]  ;;  %v19496_v14 = vcombine.low %v10001_v48, %v10005_v9 }
 0xb31   : > { %16621 = vmatpush2.bf16.msra.mxu0 %v19400_v38  ;;  %v9869_v5 = vld [vmem:[#allocation12 + $0x12b8] sm:$0xff] }
 0xb32   : > { %16662 = vmatpush2.bf16.msra.mxu1 %v19528_v47  ;;  %16622 = vmatprep.subr.bf16.mxu0 %v19393_v54  ;;  %v9993_v20 = vld [vmem:[#allocation12 + $0x1698] sm:$0xff]  ;;  %v19361_v24 = vcombine.high %v9865_v21, %v9869_v5  ;;  %v19360_v17 = vcombine.low %v9865_v21, %v9869_v5 }
 0xb33   : > { %16663 = vmatprep.subr.bf16.mxu1 %v19521_v63  ;;  %v9997_v26 = vld [vmem:[#allocation12 + $0x16b8] sm:$0xff] }
 0xb34   : > { %v19489_v23 = vcombine.high %v9993_v20, %v9997_v26  ;;  %v9857_v62 = vld [vmem:[#allocation12 + $0x1258] sm:$0xff]  ;;  %v19488_v18 = vcombine.low %v9993_v20, %v9997_v26 }
 0xb35   : > { %16623 = vmatpush2.bf16.msra.mxu0 %v19392_v45  ;;  %v9861_v51 = vld [vmem:[#allocation12 + $0x1278] sm:$0xff] }
 0xb36   : > { %16664 = vmatpush2.bf16.msra.mxu1 %v19520_v55  ;;  %16624 = vmatprep.subr.bf16.mxu0 %v19385_v50  ;;  %v9985_v16 = vld [vmem:[#allocation12 + $0x1658] sm:$0xff]  ;;  %v19353_v0 = vcombine.high %v9857_v62, %v9861_v51  ;;  %v19352_v43 = vcombine.low %v9857_v62, %v9861_v51 }
 0xb37   : > { %16665 = vmatprep.subr.bf16.mxu1 %v19513_v28  ;;  %v9989_v33 = vld [vmem:[#allocation12 + $0x1678] sm:$0xff] }
 0xb38   : > { %v19481_v37 = vcombine.high %v9985_v16, %v9989_v33  ;;  %v9849_v38 = vld [vmem:[#allocation12 + $0x1218] sm:$0xff]  ;;  %v19480_v13 = vcombine.low %v9985_v16, %v9989_v33 }
 0xb39   : > { %16625 = vmatpush2.bf16.msra.mxu0 %v19384_v53  ;;  %v9853_v47 = vld [vmem:[#allocation12 + $0x1238] sm:$0xff] }
 0xb3a   : > { %16666 = vmatpush2.bf16.msra.mxu1 %v19512_v11  ;;  %16626 = vmatprep.subr.bf16.mxu0 %v19377_v32  ;;  %v9977_v54 = vld [vmem:[#allocation12 + $0x1618] sm:$0xff]  ;;  %v19345_v44 = vcombine.high %v9849_v38, %v9853_v47  ;;  %v19344_v29 = vcombine.low %v9849_v38, %v9853_v47 }
 0xb3b   : > { %16667 = vmatprep.subr.bf16.mxu1 %v19505_v46  ;;  %v9981_v63 = vld [vmem:[#allocation12 + $0x1638] sm:$0xff] }
 0xb3c   : > { %v19473_v2 = vcombine.high %v9977_v54, %v9981_v63  ;;  %v10097_v45 = vld [vmem:[#allocation12 + $0x19d8] sm:$0xff]  ;;  %v19472_v52 = vcombine.low %v9977_v54, %v9981_v63 }
 0xb3d   : > { %16627 = vmatpush2.bf16.msra.mxu0 %v19376_v3  ;;  %v10101_v55 = vld [vmem:[#allocation12 + $0x19f8] sm:$0xff] }
 0xb3e   : > { %16668 = vmatpush2.bf16.msra.mxu1 %v19504_v12  ;;  %16628 = vmatprep.subr.bf16.mxu0 %v19369_v27  ;;  %v10225_v50 = vld [vmem:[#allocation12 + $0x1dd8] sm:$0xff]  ;;  %v19593_v61 = vcombine.high %v10097_v45, %v10101_v55  ;;  %v19592_v15 = vcombine.low %v10097_v45, %v10101_v55 }
 0xb3f   : > { %16669 = vmatprep.subr.bf16.mxu1 %v19497_v10  ;;  %v10229_v28 = vld [vmem:[#allocation12 + $0x1df8] sm:$0xff] }
 0xb40   : > { %v19721_v31 = vcombine.high %v10225_v50, %v10229_v28  ;;  %v10089_v53 = vld [vmem:[#allocation12 + $0x1998] sm:$0xff]  ;;  %v19720_v59 = vcombine.low %v10225_v50, %v10229_v28 }
 0xb41   : > { %16629 = vmatpush2.bf16.msra.mxu0 %v19368_v30  ;;  %v10093_v11 = vld [vmem:[#allocation12 + $0x19b8] sm:$0xff] }
 0xb42   : > { %16670 = vmatpush2.bf16.msra.mxu1 %v19496_v14  ;;  %16630 = vmatprep.subr.bf16.mxu0 %v19361_v24  ;;  %v10217_v32 = vld [vmem:[#allocation12 + $0x1d98] sm:$0xff]  ;;  %v19585_v48 = vcombine.high %v10089_v53, %v10093_v11  ;;  %v19584_v26 = vcombine.low %v10089_v53, %v10093_v11 }
 0xb43   : > { %16671 = vmatprep.subr.bf16.mxu1 %v19489_v23  ;;  %v10221_v46 = vld [vmem:[#allocation12 + $0x1db8] sm:$0xff] }
 0xb44   : > { %v19713_v9 = vcombine.high %v10217_v32, %v10221_v46  ;;  %v10081_v3 = vld [vmem:[#allocation12 + $0x1958] sm:$0xff]  ;;  %v19712_v14 = vcombine.low %v10217_v32, %v10221_v46 }
 0xb45   : > { %16631 = vmatpush2.bf16.msra.mxu0 %v19360_v17  ;;  %v10085_v12 = vld [vmem:[#allocation12 + $0x1978] sm:$0xff] }
 0xb46   : > { %16672 = vmatpush2.bf16.msra.mxu1 %v19488_v18  ;;  %16632 = vmatprep.subr.bf16.mxu0 %v19353_v0  ;;  %v10209_v10 = vld [vmem:[#allocation12 + $0x1d58] sm:$0xff]  ;;  %v19577_v24 = vcombine.high %v10081_v3, %v10085_v12 }
 0xb47   : > { %16673 = vmatprep.subr.bf16.mxu1 %v19481_v37  ;;  %v10213_v21 = vld [vmem:[#allocation12 + $0x1d78] sm:$0xff]  ;;  %v19576_v37 = vcombine.low %v10081_v3, %v10085_v12 }
 0xb48   : > { %v10073_v16 = vld [vmem:[#allocation12 + $0x1918] sm:$0xff]  ;;  %v19704_v38 = vcombine.low %v10209_v10, %v10213_v21 }
 0xb49   : > { %16633 = vmatpush2.bf16.msra.mxu0 %v19352_v43  ;;  %v10077_v33 = vld [vmem:[#allocation12 + $0x1938] sm:$0xff] }
 0xb4a   : > { %16674 = vmatpush2.bf16.msra.mxu1 %v19480_v13  ;;  %16634 = vmatprep.subr.bf16.mxu0 %v19345_v44  ;;  %v10201_v17 = vld [vmem:[#allocation12 + $0x1d18] sm:$0xff]  ;;  %v19569_v47 = vcombine.high %v10073_v16, %v10077_v33 }
 0xb4b   : > { %16675 = vmatprep.subr.bf16.mxu1 %v19473_v2  ;;  %v10065_v43 = vld [vmem:[#allocation12 + $0x18d8] sm:$0xff]  ;;  %v19568_v2 = vcombine.low %v10073_v16, %v10077_v33 }
 0xb4c   : > { %v10193_v13 = vld [vmem:[#allocation12 + $0x1cd8] sm:$0xff] }
 0xb4d   : > { %16635 = vmatpush2.bf16.msra.mxu0 %v19344_v29  ;;  %v10197_v44 = vld [vmem:[#allocation12 + $0x1cf8] sm:$0xff] }
 0xb4e   : > { %16676 = vmatpush2.bf16.msra.mxu1 %v19472_v52  ;;  %16686 = vmatprep.subr.bf16.mxu0 %v19593_v61  ;;  %v19689_v55 = vcombine.high %v10193_v13, %v10197_v44  ;;  %v10057_v50 = vld [vmem:[#allocation12 + $0x1898] sm:$0xff] }
 0xb4f   : > { %16727 = vmatprep.subr.bf16.mxu1 %v19721_v31  ;;  %v10061_v28 = vld [vmem:[#allocation12 + $0x18b8] sm:$0xff]  ;;  %v19688_v31 = vcombine.low %v10193_v13, %v10197_v44 }
 0xb50   : > { %v16392_v27 = vpop.f32.mrf.mxu0  ;;  %16637 = vmatmul.mubr.bf16.vlgmr.msra.gmra.mxu0 %v23791_v1  ;;  %v19705_v1 = vcombine.high %v10209_v10, %v10213_v21  ;;  %v10185_v29 = vld [vmem:[#allocation12 + $0x1c98] sm:$0xff]  ;;  %v19553_v53 = vcombine.high %v10057_v50, %v10061_v28 }
 0xb51   : > { %v16393_v5 = vadd.f32 %v16392_v27, %v23921_v7  ;;  %16687 = vmatpush1.bf16.msra.mxu0 %v19592_v15  ;;  %v16433_v20 = vpop.f32.mrf.mxu1  ;;  %16678 = vmatmul.mubr.bf16.vlgmr.msra.gmra.mxu1 %v23795_v56  ;;  %v10205_v56 = vld [vmem:[#allocation12 + $0x1d38] sm:$0xff] }
 0xb52   : > { %v16394_v30 = vpop.f32.mrf.mxu0  ;;  %16728 = vmatpush1.bf16.msra.mxu1 %v19720_v59  ;;  %16688 = vmatprep.subr.bf16.mxu0 %v19585_v48  ;;  %v19697_v63 = vcombine.high %v10201_v17, %v10205_v56  ;;  %v10189_v52 = vld [vmem:[#allocation12 + $0x1cb8] sm:$0xff]  ;;  %v19552_v48 = vcombine.low %v10057_v50, %v10061_v28 }
 0xb53   : > { %v16395_v23 = vadd.f32 %v16394_v30, %v23925_v42  ;;  %v23931_v62 = vadd.f32 %v16433_v20, %v16393_v5  ;;  %v16435_v51 = vpop.f32.mrf.mxu1  ;;  %16729 = vmatprep.subr.bf16.mxu1 %v19713_v9  ;;  %16718 = vmatprep.mubr.bf16.mxu0 %v23797_v36  ;;  %v10069_v36 = vld [vmem:[#allocation12 + $0x18f8] sm:$0xff]  ;;  %v19681_v11 = vcombine.high %v10185_v29, %v10189_v52 }
 0xb54   : > { %v16396_v7 = vpop.f32.mrf.mxu0  ;;  %16759 = vmatprep.mubr.bf16.mxu1 %v23799_v40  ;;  %v19696_v40 = vcombine.low %v10201_v17, %v10205_v56  ;;  %v19561_v45 = vcombine.high %v10065_v43, %v10069_v36  ;;  %v19560_v61 = vcombine.low %v10065_v43, %v10069_v36  ;;  %v10049_v32 = vld [vmem:[#allocation12 + $0x1858] sm:$0xff]  ;;  %v19680_v9 = vcombine.low %v10185_v29, %v10189_v52 }
 0xb55   : > { %v23935_v18 = vadd.f32 %v16435_v51, %v16395_v23  ;;  %16689 = vmatpush1.bf16.msra.mxu0 %v19584_v26  ;;  %v16437_v0 = vpop.f32.mrf.mxu1  ;;  %v10053_v46 = vld [vmem:[#allocation12 + $0x1878] sm:$0xff] }
 0xb56   : > { %v16397_v42 = vpop.f32.mrf.mxu0  ;;  %16730 = vmatpush1.bf16.msra.mxu1 %v19712_v14  ;;  %16690 = vmatprep.subr.bf16.mxu0 %v19577_v24  ;;  %v10177_v15 = vld [vmem:[#allocation12 + $0x1c58] sm:$0xff]  ;;  %v19545_v3 = vcombine.high %v10049_v32, %v10053_v46  ;;  %v19544_v20 = vcombine.low %v10049_v32, %v10053_v46 }
 0xb57   : > { %v16438_v54 = vpop.f32.mrf.mxu1  ;;  %16731 = vmatprep.subr.bf16.mxu1 %v19705_v1  ;;  %v10181_v59 = vld [vmem:[#allocation12 + $0x1c78] sm:$0xff] }
 0xb58   : > { %v19673_v12 = vcombine.high %v10177_v15, %v10181_v59  ;;  %v10041_v27 = vld [vmem:[#allocation12 + $0x1818] sm:$0xff]  ;;  %v19672_v26 = vcombine.low %v10177_v15, %v10181_v59 }
 0xb59   : > { %16691 = vmatpush1.bf16.msra.mxu0 %v19576_v37  ;;  %v10045_v10 = vld [vmem:[#allocation12 + $0x1838] sm:$0xff] }
 0xb5a   : > { %16732 = vmatpush1.bf16.msra.mxu1 %v19704_v38  ;;  %16692 = vmatprep.subr.bf16.mxu0 %v19569_v47  ;;  %v10169_v21 = vld [vmem:[#allocation12 + $0x1c18] sm:$0xff]  ;;  %v19537_v30 = vcombine.high %v10041_v27, %v10045_v10  ;;  %v19536_v16 = vcombine.low %v10041_v27, %v10045_v10 }
 0xb5b   : > { %16733 = vmatprep.subr.bf16.mxu1 %v19697_v63  ;;  %v10173_v5 = vld [vmem:[#allocation12 + $0x1c38] sm:$0xff] }
 0xb5c   : > { %v19665_v14 = vcombine.high %v10169_v21, %v10173_v5  ;;  %v10161_v24 = vld [vmem:[#allocation12 + $0x1bd8] sm:$0xff]  ;;  %v19664_v33 = vcombine.low %v10169_v21, %v10173_v5 }
 0xb5d   : > { %16693 = vmatpush1.bf16.msra.mxu0 %v19568_v2  ;;  %v10165_v23 = vld [vmem:[#allocation12 + $0x1bf8] sm:$0xff] }
 0xb5e   : > { %16734 = vmatpush1.bf16.msra.mxu1 %v19696_v40  ;;  %16694 = vmatprep.subr.bf16.mxu0 %v19561_v45  ;;  %v10289_v51 = vld [vmem:[#allocation12 + $0x1fd8] sm:$0xff]  ;;  %v19657_v7 = vcombine.high %v10161_v24, %v10165_v23  ;;  %v19656_v38 = vcombine.low %v10161_v24, %v10165_v23 }
 0xb5f   : > { %16735 = vmatprep.subr.bf16.mxu1 %v19689_v55  ;;  %v10293_v1 = vld [vmem:[#allocation12 + $0x1ff8] sm:$0xff] }
 0xb60   : > { %v19785_v17 = vcombine.high %v10289_v51, %v10293_v1  ;;  %v10153_v56 = vld [vmem:[#allocation12 + $0x1b98] sm:$0xff]  ;;  %v19784_v47 = vcombine.low %v10289_v51, %v10293_v1 }
 0xb61   : > { %16695 = vmatpush1.bf16.msra.mxu0 %v19560_v61  ;;  %v10157_v0 = vld [vmem:[#allocation12 + $0x1bb8] sm:$0xff] }
 0xb62   : > { %16736 = vmatpush1.bf16.msra.mxu1 %v19688_v31  ;;  %16696 = vmatprep.subr.bf16.mxu0 %v19553_v53  ;;  %v10281_v37 = vld [vmem:[#allocation12 + $0x1f98] sm:$0xff]  ;;  %v19649_v54 = vcombine.high %v10153_v56, %v10157_v0  ;;  %v19648_v2 = vcombine.low %v10153_v56, %v10157_v0 }
 0xb63   : > { %16737 = vmatprep.subr.bf16.mxu1 %v19681_v11  ;;  %v10285_v42 = vld [vmem:[#allocation12 + $0x1fb8] sm:$0xff] }
 0xb64   : > { %v19777_v63 = vcombine.high %v10281_v37, %v10285_v42  ;;  %v10145_v43 = vld [vmem:[#allocation12 + $0x1b58] sm:$0xff]  ;;  %v19776_v40 = vcombine.low %v10281_v37, %v10285_v42 }
 0xb65   : > { %16697 = vmatpush1.bf16.msra.mxu0 %v19552_v48  ;;  %v10149_v36 = vld [vmem:[#allocation12 + $0x1b78] sm:$0xff] }
 0xb66   : > { %16738 = vmatpush1.bf16.msra.mxu1 %v19680_v9  ;;  %16698 = vmatprep.subr.bf16.mxu0 %v19545_v3  ;;  %v10273_v13 = vld [vmem:[#allocation12 + $0x1f58] sm:$0xff]  ;;  %v19641_v45 = vcombine.high %v10145_v43, %v10149_v36  ;;  %v19640_v61 = vcombine.low %v10145_v43, %v10149_v36  ;;  %v10322_v36 = vsub.s32 6, %v23249_v19 }
 0xb67   : > { %16739 = vmatprep.subr.bf16.mxu1 %v19673_v12  ;;  %v10277_v44 = vld [vmem:[#allocation12 + $0x1f78] sm:$0xff] }
 0xb68   : > { %v19769_v55 = vcombine.high %v10273_v13, %v10277_v44  ;;  %v10137_v50 = vld [vmem:[#allocation12 + $0x1b18] sm:$0xff]  ;;  %v19768_v31 = vcombine.low %v10273_v13, %v10277_v44  ;;  %v16826_v44 = vld [vmem:[#allocation15 + $0x1c8] sm:$0xff] }
 0xb69   : > { %16699 = vmatpush1.bf16.msra.mxu0 %v19544_v20  ;;  %v10141_v28 = vld [vmem:[#allocation12 + $0x1b38] sm:$0xff] }
 0xb6a   : > { %16740 = vmatpush1.bf16.msra.mxu1 %v19672_v26  ;;  %16700 = vmatprep.subr.bf16.mxu0 %v19537_v30  ;;  %v10265_v29 = vld [vmem:[#allocation12 + $0x1f18] sm:$0xff]  ;;  %v19633_v53 = vcombine.high %v10137_v50, %v10141_v28  ;;  %v19632_v48 = vcombine.low %v10137_v50, %v10141_v28  ;;  %v16825_v50 = vld [vmem:[#allocation15 + $0x1c0] sm:$0xff] }
 0xb6b   : > { %16741 = vmatprep.subr.bf16.mxu1 %v19665_v14  ;;  %v10269_v52 = vld [vmem:[#allocation12 + $0x1f38] sm:$0xff] }
 0xb6c   : > { %v19761_v11 = vcombine.high %v10265_v29, %v10269_v52  ;;  %v10129_v32 = vld [vmem:[#allocation12 + $0x1ad8] sm:$0xff]  ;;  %v19760_v9 = vcombine.low %v10265_v29, %v10269_v52  ;;  %v16818_v29 = vld [vmem:[#allocation15 + $0x188] sm:$0xff] }
 0xb6d   : > { %16701 = vmatpush1.bf16.msra.mxu0 %v19536_v16  ;;  %v10133_v46 = vld [vmem:[#allocation12 + $0x1af8] sm:$0xff] }
 0xb6e   : > { %16742 = vmatpush1.bf16.msra.mxu1 %v19664_v33  ;;  %16702 = vmatprep.subr.bf16.mxu0 %v19657_v7  ;;  %v10257_v15 = vld [vmem:[#allocation12 + $0x1ed8] sm:$0xff]  ;;  %v19625_v3 = vcombine.high %v10129_v32, %v10133_v46  ;;  %v19624_v20 = vcombine.low %v10129_v32, %v10133_v46  ;;  %v16810_v46 = vld [vmem:[#allocation15 + $0x148] sm:$0xff] }
 0xb6f   : > { %16743 = vmatprep.subr.bf16.mxu1 %v19785_v17  ;;  %v10261_v59 = vld [vmem:[#allocation12 + $0x1ef8] sm:$0xff] }
 0xb70   : > { %v19753_v12 = vcombine.high %v10257_v15, %v10261_v59  ;;  %v10121_v27 = vld [vmem:[#allocation12 + $0x1a98] sm:$0xff]  ;;  %v19752_v26 = vcombine.low %v10257_v15, %v10261_v59 }
 0xb71   : > { %16703 = vmatpush2.bf16.msra.mxu0 %v19656_v38  ;;  %v10125_v10 = vld [vmem:[#allocation12 + $0x1ab8] sm:$0xff] }
 0xb72   : > { %16744 = vmatpush2.bf16.msra.mxu1 %v19784_v47  ;;  %16704 = vmatprep.subr.bf16.mxu0 %v19649_v54  ;;  %v10249_v21 = vld [vmem:[#allocation12 + $0x1e98] sm:$0xff]  ;;  %v19617_v30 = vcombine.high %v10121_v27, %v10125_v10  ;;  %v19616_v16 = vcombine.low %v10121_v27, %v10125_v10 }
 0xb73   : > { %16745 = vmatprep.subr.bf16.mxu1 %v19777_v63  ;;  %v10253_v5 = vld [vmem:[#allocation12 + $0x1eb8] sm:$0xff] }
 0xb74   : > { %v19745_v14 = vcombine.high %v10249_v21, %v10253_v5  ;;  %v10113_v24 = vld [vmem:[#allocation12 + $0x1a58] sm:$0xff]  ;;  %v19744_v33 = vcombine.low %v10249_v21, %v10253_v5  ;;  %v16801_v5 = vld [vmem:[#allocation15 + $0x100] sm:$0xff] }
 0xb75   : > { %16705 = vmatpush2.bf16.msra.mxu0 %v19648_v2  ;;  %v10117_v23 = vld [vmem:[#allocation12 + $0x1a78] sm:$0xff]  ;;  %v10326_v2 = vsub.s32 7, %v23249_v19 }
 0xb76   : > { %16746 = vmatpush2.bf16.msra.mxu1 %v19776_v40  ;;  %16706 = vmatprep.subr.bf16.mxu0 %v19641_v45  ;;  %v10241_v51 = vld [vmem:[#allocation12 + $0x1e58] sm:$0xff]  ;;  %v19609_v7 = vcombine.high %v10113_v24, %v10117_v23  ;;  %v19608_v38 = vcombine.low %v10113_v24, %v10117_v23  ;;  %v16828_v40 = vld [vmem:[#allocation15 + $0x1d8] sm:$0xff]  ;;  %v16793_v23 = vld [vmem:[#allocation15 + $0xc0] sm:$0xff] }
 0xb77   : > { %16747 = vmatprep.subr.bf16.mxu1 %v19769_v55  ;;  %v10245_v1 = vld [vmem:[#allocation12 + $0x1e78] sm:$0xff]  ;;  %v21487_v45 = vld [vmem:[#allocation14] sm:$0xff] }
 0xb78   : > { %v19737_v17 = vcombine.high %v10241_v51, %v10245_v1  ;;  %v10105_v56 = vld [vmem:[#allocation12 + $0x1a18] sm:$0xff]  ;;  %v19736_v47 = vcombine.low %v10241_v51, %v10245_v1  ;;  %v10323_v55 = vrot.slane %v21487_v45, %v10322_v36  ;;  %v10327_v28 = vrot.slane %v21487_v45, %v10326_v2  ;;  %v16796_v51 = vld [vmem:[#allocation15 + $0xd8] sm:$0xff] }
 0xb79   : > { %16707 = vmatpush2.bf16.msra.mxu0 %v19640_v61  ;;  %v10109_v0 = vld [vmem:[#allocation12 + $0x1a38] sm:$0xff] }
 0xb7a   : > { %16748 = vmatpush2.bf16.msra.mxu1 %v19768_v31  ;;  %16708 = vmatprep.subr.bf16.mxu0 %v19633_v53  ;;  %v10233_v37 = vld [vmem:[#allocation12 + $0x1e18] sm:$0xff]  ;;  %v19601_v54 = vcombine.high %v10105_v56, %v10109_v0  ;;  %v19600_v43 = vcombine.low %v10105_v56, %v10109_v0  ;;  %v16817_v31 = vld [vmem:[#allocation15 + $0x180] sm:$0xff]  ;;  %v16820_v53 = vld [vmem:[#allocation15 + $0x198] sm:$0xff] }
 0xb7b   : > { %16749 = vmatprep.subr.bf16.mxu1 %v19761_v11  ;;  %v10237_v42 = vld [vmem:[#allocation12 + $0x1e38] sm:$0xff]  ;;  %v16778_v56 = vld [vmem:[#allocation15 + $0x48] sm:$0xff] }
 0xb7c   : > { %v19729_v63 = vcombine.high %v10233_v37, %v10237_v42  ;;  %v19728_v13 = vcombine.low %v10233_v37, %v10237_v42  ;;  %v16827_v52 = vld [vmem:[#allocation15 + $0x1d0] sm:$0xff]  ;;  %v16777_v37 = vld [vmem:[#allocation15 + $0x40] sm:$0xff]  ;;  %v16770_v42 = vld [vmem:[#allocation15 + $0x8] sm:$0xff] }
 0xb7d   : > { %16709 = vmatpush2.bf16.msra.mxu0 %v19632_v48  ;;  %v16819_v15 = vld [vmem:[#allocation15 + $0x190] sm:$0xff]  ;;  %v16809_v48 = vld [vmem:[#allocation15 + $0x140] sm:$0xff] }
 0xb7e   : > { %16750 = vmatpush2.bf16.msra.mxu1 %v19760_v9  ;;  %16710 = vmatprep.subr.bf16.mxu0 %v19625_v3  ;;  %v16812_v9 = vld [vmem:[#allocation15 + $0x158] sm:$0xff]  ;;  %v16811_v10 = vld [vmem:[#allocation15 + $0x150] sm:$0xff] }
 0xb7f   : > { %16751 = vmatprep.subr.bf16.mxu1 %v19753_v12  ;;  %v16787_v0 = vld [vmem:[#allocation15 + $0x90] sm:$0xff] }
 0xb80   : > { %v16771_v45 = vld [vmem:[#allocation15 + $0x10] sm:$0xff] }
 0xb81   : > { %16711 = vmatpush2.bf16.msra.mxu0 %v19624_v20 }
 0xb82   : > { %16752 = vmatpush2.bf16.msra.mxu1 %v19752_v26  ;;  %16712 = vmatprep.subr.bf16.mxu0 %v19617_v30  ;;  %v16794_v30 = vld [vmem:[#allocation15 + $0xc8] sm:$0xff] }
 0xb83   : > { %16753 = vmatprep.subr.bf16.mxu1 %v19745_v14  ;;  %v16803_v14 = vld [vmem:[#allocation15 + $0x110] sm:$0xff] }
 0xb85   : > { %16713 = vmatpush2.bf16.msra.mxu0 %v19616_v16  ;;  %v16786_v16 = vld [vmem:[#allocation15 + $0x88] sm:$0xff] }
 0xb86   : > { %16754 = vmatpush2.bf16.msra.mxu1 %v19744_v33  ;;  %16714 = vmatprep.subr.bf16.mxu0 %v19609_v7  ;;  %v16795_v33 = vld [vmem:[#allocation15 + $0xd0] sm:$0xff]  ;;  %v16785_v7 = vld [vmem:[#allocation15 + $0x80] sm:$0xff] }
 0xb87   : > { %16755 = vmatprep.subr.bf16.mxu1 %v19737_v17  ;;  %v16788_v17 = vld [vmem:[#allocation15 + $0x98] sm:$0xff] }
 0xb89   : > { %16715 = vmatpush2.bf16.msra.mxu0 %v19608_v38  ;;  %v16780_v38 = vld [vmem:[#allocation15 + $0x58] sm:$0xff] }
 0xb8a   : > { %16756 = vmatpush2.bf16.msra.mxu1 %v19736_v47  ;;  %16716 = vmatprep.subr.bf16.mxu0 %v19601_v54  ;;  %v16769_v47 = vld [vmem:[#allocation15] sm:$0xff]  ;;  %v16779_v54 = vld [vmem:[#allocation15 + $0x50] sm:$0xff] }
 0xb8b   : > { %16757 = vmatprep.subr.bf16.mxu1 %v19729_v63  ;;  %v16830_v63 = vld [vmem:[#allocation15 + $0x1e8] sm:$0xff] }
 0xb8d   : > { %16717 = vmatpush2.bf16.msra.mxu0 %v19600_v43  ;;  %v23953_v43 = vld [vmem:[%s24080_s11] sm:$0x3f] }
 0xb8e   : > { %16758 = vmatpush2.bf16.msra.mxu1 %v19728_v13  ;;  %16895 = vmatprep.subr.mxu0 %v16826_v44  ;;  %v16829_v13 = vld [vmem:[#allocation15 + $0x1e0] sm:$0xff]  ;;  %v16772_v44 = vld [vmem:[#allocation15 + $0x18] sm:$0xff] }
 0xb8f   : > { %16966 = vmatprep.subr.mxu1 %v16828_v40  ;;  %v16822_v40 = vld [vmem:[#allocation15 + $0x1a8] sm:$0xff] }
 0xb90   : > { %v16474_v61 = vpop.f32.mrf.mxu0  ;;  %16719 = vmatmul.mubr.bf16.vlgmr.msra.gmra.mxu0 %v23807_v57  ;;  %v16802_v57 = vld [vmem:[#allocation15 + $0x108] sm:$0xff] }
 0xb91   : > { %v16475_v11 = vadd.f32 %v16474_v61, %v10323_v55  ;;  %v16515_v32 = vpop.f32.mrf.mxu1  ;;  %16896 = vmatpush1.msra.mxu0 %v16825_v50  ;;  %16760 = vmatmul.mubr.bf16.vlgmr.msra.gmra.mxu1 %v23811_v58  ;;  %v16804_v58 = vld [vmem:[#allocation15 + $0x118] sm:$0xff]  ;;  %v16821_v55 = vld [vmem:[#allocation15 + $0x1a0] sm:$0xff]  ;;  %v16814_v50 = vld [vmem:[#allocation15 + $0x168] sm:$0xff] }
 0xb92   : > { %v16476_v59 = vpop.f32.mrf.mxu0  ;;  %16897 = vmatprep.subr.mxu0 %v16818_v29  ;;  %16967 = vmatpush1.msra.mxu1 %v16827_v52  ;;  %v16813_v29 = vld [vmem:[#allocation15 + $0x160] sm:$0xff]  ;;  %v16831_v52 = vld [vmem:[#allocation15 + $0x1f0] sm:$0xff]  ;;  %v16806_v61 = vld [vmem:[#allocation15 + $0x128] sm:$0xff] }
 0xb93   : > { %v23945_v3 = vadd.f32 %v16515_v32, %v16475_v11  ;;  %v16477_v12 = vadd.f32 %v16476_v59, %v10327_v28  ;;  %v16517_v27 = vpop.f32.mrf.mxu1  ;;  %16898 = vmatpush1.msra.mxu0 %v16817_v31  ;;  %16968 = vmatprep.subr.mxu1 %v16820_v53  ;;  %v16832_v28 = vld [vmem:[#allocation15 + $0x1f8] sm:$0xff]  ;;  %v16805_v53 = vld [vmem:[#allocation15 + $0x120] sm:$0xff]  ;;  %v16823_v11 = vld [vmem:[#allocation15 + $0x1b0] sm:$0xff] }
 0xb94   : > { %v16478_v21 = vpop.f32.mrf.mxu0  ;;  %16899 = vmatprep.subr.mxu0 %v16810_v46  ;;  %16969 = vmatpush1.msra.mxu1 %v16819_v15  ;;  %v16824_v31 = vld [vmem:[#allocation15 + $0x1b8] sm:$0xff]  ;;  %v16798_v32 = vld [vmem:[#allocation15 + $0xe8] sm:$0xff]  ;;  %v16797_v15 = vld [vmem:[#allocation15 + $0xe0] sm:$0xff] }
 0xb95   : > { %v23947_v20 = vadd.f32 %v16517_v27, %v16477_v12  ;;  %v16519_v26 = vpop.f32.mrf.mxu1  ;;  %16900 = vmatpush1.msra.mxu0 %v16809_v48  ;;  %16970 = vmatprep.subr.mxu1 %v16812_v9  ;;  %v16816_v46 = vld [vmem:[#allocation15 + $0x178] sm:$0xff]  ;;  %v16815_v59 = vld [vmem:[#allocation15 + $0x170] sm:$0xff]  ;;  %v16790_v48 = vld [vmem:[#allocation15 + $0xa8] sm:$0xff] }
 0xb96   : > { %v16479_v24 = vpop.f32.mrf.mxu0  ;;  %16901 = vmatprep.subr.mxu0 %v16802_v57  ;;  %16971 = vmatpush1.msra.mxu1 %v16811_v10  ;;  %v16808_v9 = vld [vmem:[#allocation15 + $0x138] sm:$0xff]  ;;  %v16789_v12 = vld [vmem:[#allocation15 + $0xa0] sm:$0xff]  ;;  %v16807_v27 = vld [vmem:[#allocation15 + $0x130] sm:$0xff] }
 0xb97   : > { %v16520_v1 = vpop.f32.mrf.mxu1  ;;  %16902 = vmatpush1.msra.mxu0 %v16801_v5  ;;  %16972 = vmatprep.subr.mxu1 %v16804_v58  ;;  %v16782_v57 = vld [vmem:[#allocation15 + $0x68] sm:$0xff]  ;;  %v16800_v10 = vld [vmem:[#allocation15 + $0xf8] sm:$0xff]  ;;  %v16781_v21 = vld [vmem:[#allocation15 + $0x60] sm:$0xff] }
 0xb98   : > { %16903 = vmatprep.subr.mxu0 %v16794_v30  ;;  %16973 = vmatpush1.msra.mxu1 %v16803_v14  ;;  %v16799_v5 = vld [vmem:[#allocation15 + $0xf0] sm:$0xff]  ;;  %v16774_v58 = vld [vmem:[#allocation15 + $0x28] sm:$0xff]  ;;  %v16792_v26 = vld [vmem:[#allocation15 + $0xb8] sm:$0xff] }
 0xb99   : > { %16904 = vmatpush1.msra.mxu0 %v16793_v23  ;;  %16974 = vmatprep.subr.mxu1 %v16796_v51  ;;  %v16773_v30 = vld [vmem:[#allocation15 + $0x20] sm:$0xff]  ;;  %v16791_v14 = vld [vmem:[#allocation15 + $0xb0] sm:$0xff]  ;;  %v16784_v24 = vld [vmem:[#allocation15 + $0x78] sm:$0xff] }
 0xb9a   : > { %16905 = vmatprep.subr.mxu0 %v16786_v16  ;;  %16975 = vmatpush1.msra.mxu1 %v16795_v33  ;;  %v16783_v23 = vld [vmem:[#allocation15 + $0x70] sm:$0xff]  ;;  %v16776_v51 = vld [vmem:[#allocation15 + $0x38] sm:$0xff] }
 0xb9b   : > { %16906 = vmatpush1.msra.mxu0 %v16785_v7  ;;  %16976 = vmatprep.subr.mxu1 %v16788_v17  ;;  %v16775_v1 = vld [vmem:[#allocation15 + $0x30] sm:$0xff] }
 0xb9c   : > { %16907 = vmatprep.subr.mxu0 %v16778_v56  ;;  %16977 = vmatpush1.msra.mxu1 %v16787_v0 }
 0xb9d   : > { %16908 = vmatpush1.msra.mxu0 %v16777_v37  ;;  %16943 = vmatprep.mubr.f32.mxu0 %v21819_v4 }
 0xb9e   : > { %16909 = vmatprep.subr.mxu0 %v16770_v42  ;;  %16978 = vmatprep.subr.mxu1 %v16780_v38 }
 0xb9f   : > { %16910 = vmatpush1.msra.mxu0 %v16769_v47  ;;  %16979 = vmatpush1.msra.mxu1 %v16779_v54 }
 0xba0   : > { %17037 = vmatprep.subr.mxu0 %v16830_v63  ;;  %19786 = vmatmul.mubr.msk.f32.vlgmr.msra.gmra.mxu0 %vm16875_vm3, %v23953_v43 }
 0xba1   : > { %17038 = vmatpush1.msra.mxu0 %v16829_v13  ;;  %16980 = vmatprep.subr.mxu1 %v16772_v44 }
 0xba2   : > { %17039 = vmatprep.subr.mxu0 %v16822_v40  ;;  %16981 = vmatpush1.msra.mxu1 %v16771_v45 }
 0xba3   : > { %17040 = vmatpush1.msra.mxu0 %v16821_v55  ;;  %17014 = vmatprep.mubr.f32.mxu1 %v21819_v4 }
 0xba4   : > { %17041 = vmatprep.subr.mxu0 %v16814_v50  ;;  %17108 = vmatprep.subr.mxu1 %v16832_v28 }
 0xba5   : > { %19787 = vmatmul.mubr.msk.f32.vlgmr.msra.gmra.mxu1 %vm16875_vm3, %v23953_v43  ;;  %17042 = vmatpush1.msra.mxu0 %v16813_v29 }
 0xba6   : > { %17109 = vmatpush1.msra.mxu1 %v16831_v52  ;;  %17043 = vmatprep.subr.mxu0 %v16806_v61 }
 0xba7   : > { %17110 = vmatprep.subr.mxu1 %v16824_v31  ;;  %17044 = vmatpush1.msra.mxu0 %v16805_v53 }
 0xba8   : > { %17111 = vmatpush1.msra.mxu1 %v16823_v11  ;;  %17045 = vmatprep.subr.mxu0 %v16798_v32 }
 0xba9   : > { %17112 = vmatprep.subr.mxu1 %v16816_v46  ;;  %17046 = vmatpush1.msra.mxu0 %v16797_v15 }
 0xbaa   : > { %17113 = vmatpush1.msra.mxu1 %v16815_v59  ;;  %17047 = vmatprep.subr.mxu0 %v16790_v48  ;;  %v16833_v59 = vld [vmem:[#allocation17] sm:$0xff] }
 0xbab   : > { %17114 = vmatprep.subr.mxu1 %v16808_v9  ;;  %17048 = vmatpush1.msra.mxu0 %v16789_v12  ;;  %v16838_v48 = vrot.slane %v16833_v59, %v23268_v41  ;;  %v16842_v9 = vrot.slane %v16833_v59, %v23272_v35  ;;  %v16850_v41 = vrot.slane %v16833_v59, %v23628_v6 }
 0xbac   : > { %17115 = vmatpush1.msra.mxu1 %v16807_v27  ;;  %17049 = vmatprep.subr.mxu0 %v16782_v57 }
 0xbad   : > { %17116 = vmatprep.subr.mxu1 %v16800_v10  ;;  %17050 = vmatpush1.msra.mxu0 %v16781_v21  ;;  %v16846_v10 = vrot.slane %v16833_v59, %v23625_v39  ;;  %v17163_v39 = vmul.f32 %v23847_v49, %v23847_v49 }
 0xbae   : > { %17117 = vmatpush1.msra.mxu1 %v16799_v5  ;;  %17051 = vmatprep.subr.mxu0 %v16774_v58 }
 0xbaf   : > { %17118 = vmatprep.subr.mxu1 %v16792_v26  ;;  %17052 = vmatpush1.msra.mxu0 %v16773_v30 }
 0xbb0   : > { %17085 = vmatprep.mubr.f32.mxu0 %v21819_v4  ;;  %17119 = vmatpush1.msra.mxu1 %v16791_v14  ;;  %v17164_v14 = vmul.f32 %v23851_v25, %v23851_v25 }
 0xbb1   : > { %19788 = vmatmul.mubr.msk.f32.vlgmr.msra.gmra.mxu0 %vm16875_vm3, %v23953_v43  ;;  %17120 = vmatprep.subr.mxu1 %v16784_v24  ;;  %v17165_v24 = vmul.f32 %v23887_v60, %v23887_v60 }
 0xbb2   : > { %17121 = vmatpush1.msra.mxu1 %v16783_v23  ;;  %17156 = vmatprep.mubr.f32.mxu1 %v21819_v4 }
 0xbb3   : > { %17122 = vmatprep.subr.mxu1 %v16776_v51 }
 0xbb4   : > { %17123 = vmatpush1.msra.mxu1 %v16775_v1 }
 0xbb5   : > { %19789 = vmatmul.mubr.msk.f32.vlgmr.msra.gmra.mxu1 %vm16875_vm3, %v23953_v43 }
 0xbd0   : > { %v16556_v16 = vpop.f32.mrf.mxu0 }
 0xbd1   : > { %v16557_v33 = vadd.f32 %v16556_v16, %v23945_v3  ;;  %v16597_v7 = vpop.f32.mrf.mxu1  ;;  %v17173_v16 = vsel %vm17171_vm5, %v17164_v14, 0.0 }
 0xbd2   : > { %v16558_v17 = vpop.f32.mrf.mxu0 }
 0xbd3   : > { %v16598_v56 = vadd.f32 %v16597_v7, %v16557_v33  ;;  %v16559_v0 = vadd.f32 %v16558_v17, %v23947_v20  ;;  %v16599_v37 = vpop.f32.mrf.mxu1  ;;  %v17172_v33 = vsel %vm17171_vm5, %v17163_v39, 0.0  ;;  %v17166_v7 = vmul.f32 %v23891_v22, %v23891_v22 }
 0xbd4   : > { %v16560_v42 = vpop.f32.mrf.mxu0 }
 0xbd5   : > { %v16600_v38 = vadd.f32 %v16599_v37, %v16559_v0  ;;  %v16601_v47 = vpop.f32.mrf.mxu1  ;;  %v17175_v0 = vsel %vm17171_vm5, %v17165_v24, 0.0 }
 0xbd6   : > { %v16561_v54 = vpop.f32.mrf.mxu0  ;;  %v17174_v47 = vadd.f32 %v17173_v16, %v17172_v33 }
 0xbd7   : > { %v16602_v63 = vpop.f32.mrf.mxu1  ;;  %v17167_v54 = vmul.f32 %v23931_v62, %v23931_v62 }
 0xbd8   : > { %v16858_v63 = vrot.slane %v16833_v59, %v10318_v34  ;;  %v17168_v34 = vmul.f32 %v23935_v18, %v23935_v18 }
 0xc10   : > { %v16638_v4 = vpop.f32.mrf.mxu0 }
 0xc11   : > { %v16639_v13 = vadd.f32 %v16638_v4, %v16598_v56  ;;  %v16679_v44 = vpop.f32.mrf.mxu1  ;;  %v17176_v4 = vadd.f32 %v17175_v0, %v17174_v47 }
 0xc12   : > { %v16640_v40 = vpop.f32.mrf.mxu0 }
 0xc13   : > { %v16641_v45 = vadd.f32 %v16640_v40, %v16600_v38  ;;  %v16680_v43 = vadd.f32 %v16679_v44, %v16639_v13  ;;  %v16681_v55 = vpop.f32.mrf.mxu1  ;;  %v16854_v38 = vrot.slane %v16833_v59, %v10314_v8  ;;  %v17177_v13 = vsel %vm17171_vm5, %v17166_v7, 0.0 }
 0xc14   : > { %v16642_v50 = vpop.f32.mrf.mxu0  ;;  %v16862_v8 = vrot.slane %v16833_v59, %v10322_v36 }
 0xc15   : > { %v16682_v3 = vadd.f32 %v16681_v55, %v16641_v45  ;;  %v16683_v28 = vpop.f32.mrf.mxu1 }
 0xc16   : > { %v16643_v29 = vpop.f32.mrf.mxu0  ;;  %v17179_v28 = vsel %vm17171_vm5, %v17167_v54, 0.0 }
 0xc17   : > { %v16684_v52 = vpop.f32.mrf.mxu1 }
 0xc50   : > { %v16720_v61 = vpop.f32.mrf.mxu0 }
 0xc51   : > { %v16761_v20 = vpop.f32.mrf.mxu1  ;;  %v16721_v17 = vadd.f32 %v16720_v61, %v16680_v43 }
 0xc52   : > { %v16722_v31 = vpop.f32.mrf.mxu0 }
 0xc53   : > { %v16763_v53 = vpop.f32.mrf.mxu1  ;;  %v24009_v44 = vadd.f32 %v16761_v20, %v16721_v17  ;;  %v16723_v43 = vadd.f32 %v16722_v31, %v16682_v3  ;;  %v16866_v3 = vrot.slane %v16833_v59, %v10326_v2  ;;  %v17178_v20 = vadd.f32 %v17177_v13, %v17176_v4 }
 0xc54   : > { %v16724_v11 = vpop.f32.mrf.mxu0 }
 0xc55   : > { %v16765_v32 = vpop.f32.mrf.mxu1  ;;  %v17169_v31 = vmul.f32 %v24009_v44, %v24009_v44  ;;  %v16764_v36 = vadd.f32 %v16763_v53, %v16723_v43 }
 0xc56   : > { %v16725_v46 = vpop.f32.mrf.mxu0 }
 0xc57   : > { %v16766_v15 = vpop.f32.mrf.mxu1  ;;  %v17183_v53 = vsel %vm17171_vm5, %v17169_v31, 0.0 }
 0xc60   : > { %v16945_v12 = vpop.f32.mrf.mxu0 }
 0xc61   : > { %v23970_v27 = vadd.f32 %v16945_v12, %v16838_v48 }
 0xc62   : > { %v16947_v57 = vpop.f32.mrf.mxu0 }
 0xc63   : > { %v23973_v21 = vadd.f32 %v16947_v57, %v16842_v9  ;;  %v17199_v58 = vmul.f32 %v23970_v27, %v23970_v27  ;;  %v17180_v9 = vadd.f32 %v17179_v28, %v17178_v20 }
 0xc65   : > { %v17016_v5 = vpop.f32.mrf.mxu1  ;;  %v17200_v26 = vmul.f32 %v23973_v21, %v23973_v21  ;;  %v17208_v23 = vsel %vm17207_vm4, %v17199_v58, 0.0  ;;  %v17170_v58 = vmul.f32 %v16764_v36, %v16764_v36 }
 0xc66   : > { %v23979_v30 = vadd.f32 %v17016_v5, %v16846_v10  ;;  %v17181_v10 = vsel %vm17171_vm5, %v17168_v34, 0.0 }
 0xc67   : > { %v17018_v35 = vpop.f32.mrf.mxu1  ;;  %v17209_v51 = vsel %vm17207_vm4, %v17200_v26, 0.0  ;;  %v17182_v14 = vadd.f32 %v17181_v10, %v17180_v9 }
 0xc68   : > { %v17201_v1 = vmul.f32 %v23979_v30, %v23979_v30  ;;  %v23992_v6 = vadd.f32 %v17018_v35, %v16850_v41  ;;  %v17210_v56 = vadd.f32 %v17209_v51, %v17208_v23  ;;  %v17185_v51 = vsel %vm17171_vm5, %v17170_v58, 0.0 }
 0xc69   : > { %v17184_v23 = vadd.f32 %v17183_v53, %v17182_v14 }
 0xc6a   : > { %v17211_v37 = vsel %vm17207_vm4, %v17201_v1, 0.0  ;;  %v17202_v42 = vmul.f32 %v23992_v6, %v23992_v6 }
 0xc6b   : > { %v17212_v40 = vadd.f32 %v17211_v37, %v17210_v56  ;;  %v17186_v1 = vadd.f32 %v17185_v51, %v17184_v23 }
 0xc6c   : > { %v17213_v55 = vsel %vm17207_vm4, %v17202_v42, 0.0 }
 0xc6d   : > { %v17214_v11 = vadd.f32 %v17213_v55, %v17212_v40 }
 0xc71   : > { %v17087_v45 = vpop.f32.mrf.mxu0 }
 0xc72   : > { %v24012_v50 = vadd.f32 %v17087_v45, %v16854_v38 }
 0xc73   : > { %v17089_v29 = vpop.f32.mrf.mxu0 }
 0xc74   : > { %v17203_v52 = vmul.f32 %v24012_v50, %v24012_v50  ;;  %v17090_v61 = vadd.f32 %v17089_v29, %v16858_v63 }
 0xc75   : > { %v17158_v32 = vpop.f32.mrf.mxu1 }
 0xc76   : > { %v17215_v46 = vsel %vm17207_vm4, %v17203_v52, 0.0  ;;  %v17204_v15 = vmul.f32 %v17090_v61, %v17090_v61  ;;  %v17159_v48 = vadd.f32 %v17158_v32, %v16862_v8 }
 0xc77   : > { %v17216_v12 = vadd.f32 %v17215_v46, %v17214_v11  ;;  %v17160_v57 = vpop.f32.mrf.mxu1 }
 0xc78   : > { %v17217_v5 = vsel %vm17207_vm4, %v17204_v15, 0.0  ;;  %v17205_v19 = vmul.f32 %v17159_v48, %v17159_v48  ;;  %v17161_v2 = vadd.f32 %v17160_v57, %v16866_v3 }
 0xc79   : > { %v17218_v59 = vadd.f32 %v17217_v5, %v17216_v12 }
 0xc7a   : > { %v17206_v26 = vmul.f32 %v17161_v2, %v17161_v2  ;;  %v17219_v41 = vsel %vm17207_vm4, %v17205_v19, 0.0 }
 0xc7b   : > { %v17220_v35 = vadd.f32 %v17219_v41, %v17218_v59 }
 0xc7c   : > { %v17221_v39 = vsel %vm17207_vm4, %v17206_v26, 0.0 }
 0xc7d   : > { %v17222_v24 = vadd.f32 %v17221_v39, %v17220_v35 }
 0xc7f   : > { %17223 = vadd.xlane.f32.xlu1 %v17222_v24 }
 0xc83   : > { %17187 = vadd.xlane.f32.xlu1 %v17186_v1 }
 0xd08   : > { %v17224_v16 = vpop.xlane.xlu1 %17223 }
 0xd09   : > { %v17225_v33 = vmax.f32 %v17224_v16, 1e-24 }
 0xd0b   : > { %21481 = vrsqrt.f32 %v17225_v33 }
 0xd0c   : > { %v17188_v7 = vpop.xlane.xlu1 %17187 }
 0xd0d   : > { %v17189_v17 = vmax.f32 %v17188_v7, 1e-24 }
 0xd0f   : > { %21483 = vrsqrt.f32 %v17189_v17 }
 0xd18   : > { %v21482_v56 = vpop.eup %21481 }
 0xd19   : > { %v17228_v0 = vmul.f32 %v21482_v56, %v23973_v21  ;;  %v17230_v37 = vmul.f32 %v21482_v56, %v23992_v6  ;;  %v17227_v42 = vmul.f32 %v21482_v56, %v23970_v27  ;;  %v17229_v38 = vmul.f32 %v21482_v56, %v23979_v30 }
 0xd1a   : > { %v17232_v47 = vmul.f32 %v21482_v56, %v17090_v61  ;;  %v17234_v54 = vmul.f32 %v21482_v56, %v17161_v2  ;;  %v17231_v27 = vmul.f32 %v21482_v56, %v24012_v50  ;;  %v17233_v30 = vmul.f32 %v21482_v56, %v17159_v48 }
 0xd1b   : > { %17265 = vmatprep.subr.mxu0 %v17228_v0  ;;  %17335 = vmatprep.subr.mxu1 %v17230_v37 }
 0xd1c   : > { %v21484_v63 = vpop.eup %21483  ;;  %17266 = vmatpush1.xpose.msra.mxu0 %v17227_v42  ;;  %17336 = vmatpush1.xpose.msra.mxu1 %v17229_v38 }
 0xd1d   : > { %17405 = vmatprep.subr.mxu0 %v17232_v47  ;;  %17475 = vmatprep.subr.mxu1 %v17234_v54  ;;  %v17192_v4 = vmul.f32 %v21484_v63, %v23851_v25  ;;  %v17194_v13 = vmul.f32 %v21484_v63, %v23891_v22  ;;  %v17191_v21 = vmul.f32 %v21484_v63, %v23847_v49 }
 0xd1e   : > { %v17193_v6 = vmul.f32 %v21484_v63, %v23887_v60  ;;  %v17196_v40 = vmul.f32 %v21484_v63, %v23935_v18  ;;  %v17198_v45 = vmul.f32 %v21484_v63, %v16764_v36  ;;  %v17195_v25 = vmul.f32 %v21484_v63, %v23931_v62 }
 0xd1f   : > { %17299 = vmatprep.mubr.f32.mxu0 %v17192_v4  ;;  %17369 = vmatprep.mubr.f32.mxu1 %v17194_v13  ;;  %v17197_v49 = vmul.f32 %v21484_v63, %v24009_v44 }
 0xd20   : > { %17300 = vmatmul.mubr.f32.vlgmr.msra.gmra.mxu0 %v17191_v21  ;;  %17370 = vmatmul.mubr.f32.vlgmr.msra.gmra.mxu1 %v17193_v6 }
 0xd21   : > { %17406 = vmatpush1.xpose.msra.mxu0 %v17231_v27  ;;  %17476 = vmatpush1.xpose.msra.mxu1 %v17233_v30 }
 0xd22   : > { %17439 = vmatprep.mubr.f32.mxu0 %v17196_v40  ;;  %17509 = vmatprep.mubr.f32.mxu1 %v17198_v45 }
 0xd24   : > { %17440 = vmatmul.mubr.f32.vlgmr.msra.gmra.mxu0 %v17195_v25  ;;  %17510 = vmatmul.mubr.f32.vlgmr.msra.gmra.mxu1 %v17197_v49 }
 0xde0   : > { %v17301_v60 = vpop.f32.mrf.mxu0  ;;  %v17371_v22 = vpop.f32.mrf.mxu1 }
 0xde1   : > { %v17372_v50 = vadd.f32 %v17371_v22, %v17301_v60 }
 0xde2   : > { %v17303_v43 = vpop.f32.mrf.mxu0  ;;  %v17373_v55 = vpop.f32.mrf.mxu1 }
 0xde4   : > { %v17441_v8 = vpop.f32.mrf.mxu0  ;;  %v17511_v28 = vpop.f32.mrf.mxu1 }
 0xde5   : > { %v17442_v29 = vadd.f32 %v17441_v8, %v17372_v50 }
 0xde6   : > { %v17443_v18 = vpop.f32.mrf.mxu0  ;;  %v17513_v34 = vpop.f32.mrf.mxu1 }
 0xde7   : > { %v17512_v52 = vadd.f32 %v17511_v28, %v17442_v29 }
 0xde9   : > { %17516 = vst.msk [vmem:[#allocation18] sm:$0x3] %vm17515_vm6, %v17512_v52 }
 0xdea PF: > { %p19880_p10 = scmp.eq.s32.totalorder %s21918_s19, 1  ;;  %s21821_s22 = smov [#allocation18]  }
 0xdeb   : > { %s17524_s16 = sshll.u32 %s21821_s22, 4  ;;  %s17525_s16 = int_to_ptr.vmem [resolvable:$true] %s17524_s16 }
 0xdec   : > { %s21724_s23 = scalar_lea.vmem %s17525_s16, 32  ;;  %p21731_p1 = scmp.lt.s32.totalorder %s17525_s16, %s17525_s16 }
 0xded   : > { %p21725_p12 = scmp.ne.s32.totalorder %s17525_s16, %s21724_s23  ;;  %p21732_p5 = scmp.lt.s32.totalorder %s21724_s23, %s21724_s23 }
 0xdef   : > { %p21726_p11 = pnand %p21725_p12, %p19880_p10  ;;  %p21733_p13 = por %p21732_p5, %p21731_p1 }
 0xdf1   : > { %p21727_p9 = pneg %p21726_p11 }
 0xdf3   : > { %p21734_p6 = pnand %p21733_p13, %p21727_p9 }
 0xdf5   : > { %21737 = shalt.err (!%p21734_p6)
}
 0xdf6   : > { %19831 = dma.vmem_to_hbm [thread:$0]  (%p19880_p10), %s17525_s16, 32, %s24083_s14, [#allocation5]  }
 0xdf7   : > { %21785 = dma.done.wait (%p19880_p10), [#allocation5], 32  }
 0xdf8   : > { %21787 = vsyncadd (%p19880_p10), [#allocation5], 4294967264 }
 0xdf9 PF: > { %p29_p3 = scmp.ge.s32.totalorder %s22007_s26, 4   ;;  %s24132_s29 = smov %s21794_s30 }
 0xdfa   : > { %s24133_s30 = smov %s21798_s15  ;;  %s24134_s15 = smov %s22019_s24 }
 0xdfb   : > { %s24135_s16 = smov %s22007_s26  ;;  %31 = sbr.rel (!%p29_p3) target bundleno = 13 (0xd), region = 157 }
 0xe00   :  { %17537 = vsyncpa [#allocation4], 1 }
 0xe01   :  { %17539 = vsyncpa [#allocation4 + $0x1], 1 }
 0xe02   :  { %17540 = vsyncpa [#allocation7], 1 }
 0xe03   :  { %17541 = vsyncpa [#allocation10], 1 }
 0xe04   :  { %17542 = vsyncpa [#allocation13], 1 }
 0xe05   :  { %17543 = vsyncpa [#allocation16], 1 }
 0xe06   :  { %17544 = vsyncpa [#allocation5], 1 }
 0xe07   :  { %17546 = vsyncpa [#allocation5 + $0x1], 1 }

</bundles_post_ra>
